<compile_context>
chip_gen: v5e
topology: v5e:2x2
jax: 0.10.0
libtpu: 0.0.40
codegen_flags: <defaults>
</compile_context>

<pallas_src>
import math
from functools import partial

import jax
import jax.numpy as jnp
from jax import lax
from jax.experimental import pallas as pl
from jax.experimental.pallas import tpu as pltpu

D_MODEL = 32
N_HEADS = 4
D_HEAD = D_MODEL // N_HEADS
D_FF = 4 * D_MODEL
E_LAYERS = 2
D_LAYERS = 2
LN_EPS = 1e-5
PACK_W = 128          # lane width of the packed parameter slab
NEG_MASK = -1e9       # finite "minus infinity" for causal masking


# --------------------------- parameter packing ------------------------------

def _pack_tree(tree):
    """Pack a pytree of 2-D f32 arrays into one lane-dense [R, PACK_W] slab.

    Narrow tensors (<=32 / <=64 lanes) are packed several-across inside the
    128-lane slab (column bins), so the one-shot HBM->VMEM DMA is ~2x smaller
    than naive one-leaf-per-row-block padding.  Returns (packed, (treedef,
    layout)); layout[i] = (row_off, rows, col_off, cols).  Row offsets are
    8-aligned so every in-kernel view starts on a sublane-tile boundary.
    """
    leaves, treedef = jax.tree_util.tree_flatten(tree)
    info = []
    for leaf in leaves:
        leaf = jnp.asarray(leaf, jnp.float32)
        assert leaf.ndim == 2 and leaf.shape[1] <= PACK_W, leaf.shape
        r, c = leaf.shape
        slot = 32 if c <= 32 else (64 if c <= 64 else PACK_W)
        info.append((leaf, r, c, slot))

    layout = [None] * len(leaves)
    bands, row_base = [], 0
    for slot in (PACK_W, 64, 32):
        idxs = [i for i, rec in enumerate(info) if rec[3] == slot]
        if not idxs:
            continue
        nbins = PACK_W // slot
        bins = [[] for _ in range(nbins)]
        heights = [0] * nbins
        for i in sorted(idxs, key=lambda j: -info[j][1]):     # tallest first
            k = min(range(nbins), key=lambda n: heights[n])
            bins[k].append((i, heights[k]))
            heights[k] += (info[i][1] + 7) // 8 * 8
        band_h = max(heights)
        band = jnp.zeros((band_h, PACK_W), jnp.float32)
        for k, members in enumerate(bins):
            for i, off in members:
                leaf, r, c, _ = info[i]
                band = band.at[off:off + r, k * slot:k * slot + c].set(leaf)
                layout[i] = (row_base + off, r, k * slot, c)
        bands.append(band)
        row_base += band_h
    return jnp.concatenate(bands, axis=0), (treedef, tuple(layout))


def _unpack_tree(params_ref, meta):
    """Rebuild the pytree as zero-cost static VMEM ref views into the slab."""
    treedef, layout = meta
    views = [params_ref.at[ro:ro + r, co:co + c] for (ro, r, co, c) in layout]
    return jax.tree_util.tree_unflatten(treedef, views)


def positional_embedding(seq_len, d_model):
    pos = jnp.arange(seq_len, dtype=jnp.float32)[:, None]
    div = jnp.exp(jnp.arange(0, d_model, 2, dtype=jnp.float32)
                  * (-math.log(10000.0) / d_model))
    pe = jnp.zeros((seq_len, d_model), jnp.float32)
    pe = pe.at[:, 0::2].set(jnp.sin(pos * div))
    pe = pe.at[:, 1::2].set(jnp.cos(pos * div))
    return pe


def _linear_wb(p):
    """Stack Linear weight [din, dout] and bias [dout] into one [din+1, dout]."""
    return jnp.concatenate([p["w"], p["b"].reshape(1, -1)], axis=0)


def _ln_gb(p):
    return jnp.stack([p["g"], p["b"]], axis=0)            # [2, D]


def _conv_emb_w(conv_w):
    # torch Conv1d(1, d_model, k=3, circular, bias=False) weight [d_model, 1, 3]
    # -> [3, d_model] rows = taps multiplying x[l-1], x[l], x[l+1].
    return jnp.transpose(conv_w, (2, 1, 0)).reshape(3, D_MODEL)


# Precomputed 0/1 / additive masks (live in the weight slab, built once).
def _head_col_mask(l):
    """[H*l, D]: 1 where the lane belongs to the row-block's head."""
    row = jnp.arange(N_HEADS * l)[:, None] // l
    col = jnp.arange(D_MODEL)[None, :] // D_HEAD
    return (row == col).astype(jnp.float32)


def _block_diag_mask(lq, lk):
    """[H*lq, H*lk]: 1 iff row head-block == column head-block."""
    row = jnp.arange(N_HEADS * lq)[:, None] // lq
    col = jnp.arange(N_HEADS * lk)[None, :] // lk
    return (row == col).astype(jnp.float32)


def _causal_stack_mask(l):
    """[H*l, l]: additive causal mask, tiled over heads along rows."""
    i = jnp.arange(N_HEADS * l)[:, None] % l
    j = jnp.arange(l)[None, :]
    return jnp.where(j > i, NEG_MASK, 0.0).astype(jnp.float32)


def _mix_lanesel_mask(l):
    """[H*l, D]: 1 where lane group == (stacked row index % (D/Dh))."""
    grp = D_MODEL // D_HEAD
    row = jnp.arange(N_HEADS * l)[:, None] % grp
    col = jnp.arange(D_MODEL)[None, :] // D_HEAD
    return (row == col).astype(jnp.float32)


def _mix_rowsum_mask(l):
    """[l, H*l]: 0/1 row-regroup matrix for the mix=True reinterpretation."""
    grp = D_MODEL // D_HEAD
    r = jnp.arange(l)[:, None]
    m = jnp.arange(N_HEADS * l)[None, :] // grp
    return (m == r).astype(jnp.float32)


def prepare_params(params, batch, l_enc, l_dec):
    """One-time repack of the raw parameter pytree into a single VMEM slab."""
    q_scale = 1.0 / math.sqrt(D_HEAD)        # folded into Wq (and its bias)

    def attn_self(p):
        wqkv = {"w": jnp.concatenate([p["wq"]["w"] * q_scale,
                                      p["wk"]["w"], p["wv"]["w"]], axis=1),
                "b": jnp.concatenate([p["wq"]["b"] * q_scale,
                                      p["wk"]["b"], p["wv"]["b"]], axis=0)}
        return {"wqkv": _linear_wb(wqkv), "wo": _linear_wb(p["wo"])}

    def attn_cross(p):
        wq = {"w": p["wq"]["w"] * q_scale, "b": p["wq"]["b"] * q_scale}
        wkv = {"w": jnp.concatenate([p["wk"]["w"], p["wv"]["w"]], axis=1),
               "b": jnp.concatenate([p["wk"]["b"], p["wv"]["b"]], axis=0)}
        return {"wq": _linear_wb(wq), "wkv": _linear_wb(wkv),
                "wo": _linear_wb(p["wo"])}

    enc_layers = [{"attn": attn_self(lp["attn"]),
                   "ff1": _linear_wb(lp["conv1"]), "ff2": _linear_wb(lp["conv2"]),
                   "ln1": _ln_gb(lp["norm1"]), "ln2": _ln_gb(lp["norm2"])}
                  for lp in params["enc_layers"]]
    dec_layers = [{"self": attn_self(lp["self_attn"]),
                   "cross": attn_cross(lp["cross_attn"]),
                   "ff1": _linear_wb(lp["conv1"]), "ff2": _linear_wb(lp["conv2"]),
                   "ln1": _ln_gb(lp["norm1"]), "ln2": _ln_gb(lp["norm2"]),
                   "ln3": _ln_gb(lp["norm3"])}
                  for lp in params["dec_layers"]]

    masks = {}
    for l in sorted({l_enc, l_dec}):
        masks[f"col_{l}"] = _head_col_mask(l)
        masks[f"causal_{l}"] = _causal_stack_mask(l)
    for (lq, lk) in sorted({(l_enc, l_enc), (l_dec, l_dec), (l_dec, l_enc)}):
        masks[f"bd_{lq}_{lk}"] = _block_diag_mask(lq, lk)
    masks["mix_lanesel"] = _mix_lanesel_mask(l_dec)
    masks["mix_rowsum"] = _mix_rowsum_mask(l_dec)

    tree = {
        "emb_enc": _conv_emb_w(params["enc_emb_conv"]),
        "emb_dec": _conv_emb_w(params["dec_emb_conv"]),
        # positional embeddings pre-tiled to [B*L, D] (no in-kernel concat)
        "pe_enc": jnp.concatenate([positional_embedding(l_enc, D_MODEL)] * batch, 0),
        "pe_dec": jnp.concatenate([positional_embedding(l_dec, D_MODEL)] * batch, 0),
        "enc_layers": enc_layers,
        "enc_norm": _ln_gb(params["enc_norm"]),
        "dec_layers": dec_layers,
        "dec_norm": _ln_gb(params["dec_norm"]),
        "proj": _linear_wb(params["proj"]),
        "masks": masks,
    }
    return _pack_tree(tree)


# --------------------------- in-kernel building blocks ----------------------

def _linear(x, wb_ref, act=None):
    """x @ W + b, W/b packed as a [din+1, dout] ref view (loaded at use site)."""
    wb = wb_ref[...]
    din = wb.shape[0] - 1
    y = jnp.dot(x, wb[:din, :], preferred_element_type=jnp.float32) + wb[din:, :]
    if act == "gelu":                 # exact erf gelu (torch F.gelu default)
        y = 0.5 * y * (1.0 + jax.lax.erf(y * (1.0 / math.sqrt(2.0))))
    return y


def _layernorm(x, gb_ref):
    gb = gb_ref[...]                  # [2, D]: gamma; beta
    mu = jnp.mean(x, axis=-1, keepdims=True)
    xc = x - mu
    var = jnp.mean(xc * xc, axis=-1, keepdims=True)
    return xc * jax.lax.rsqrt(var + LN_EPS) * gb[0:1, :] + gb[1:2, :]


def _softmax_rows(s):
    m = jnp.max(s, axis=-1, keepdims=True)
    p = jnp.exp(s - m)
    return p * pl.reciprocal(jnp.sum(p, axis=-1, keepdims=True), approx=True)


def _mha(q2, k2, v2, batch, lq, lk, masks, causal, mix):
    """All-head softmax attention on flattened [B*L, D_MODEL] tensors.

    Per (batch, attention): ONE MXU push for all-head scores (head-stacked,
    masked Q against K) and ONE for the all-head P.V context (block-diagonal
    P), instead of N_HEADS separate 8x8x8 pushes.  The 1/sqrt(D_HEAD) scale is
    already folded into the Q projection.  mix=True (Informer's head/position
    reinterpretation) is realised with one extra tiny 0/1-matrix matmul.
    """
    col_q = masks[f"col_{lq}"][...]                       # [H*lq, D]
    bd = masks[f"bd_{lq}_{lk}"][...]                      # [H*lq, H*lk]
    causal_add = masks[f"causal_{lq}"][...] if causal else None
    if mix:
        lanesel = masks["mix_lanesel"][...]               # [H*lq, D]
        rowsum = masks["mix_rowsum"][...]                 # [lq, H*lq]
    else:
        col_k = masks[f"col_{lk}"][...]                   # [H*lk, D]

    outs = []
    for b in range(batch):
        qb = q2[b * lq:(b + 1) * lq, :]
        kb = k2[b * lk:(b + 1) * lk, :]
        vb = v2[b * lk:(b + 1) * lk, :]
        # all-head scores, heads stacked along rows: [H*lq, lk]
        q_stack = jnp.concatenate([qb] * N_HEADS, axis=0) * col_q
        s = lax.dot_general(q_stack, kb, (((1,), (1,)), ((), ())),
                            preferred_element_type=jnp.float32)
        if causal:
            s = s + causal_add
        p = _softmax_rows(s)                              # [H*lq, lk]
        p_bd = jnp.concatenate([p] * N_HEADS, axis=1) * bd  # block-diag P
        if not mix:
            v_exp = jnp.concatenate([vb] * N_HEADS, axis=0) * col_k
            c = jnp.dot(p_bd, v_exp, preferred_element_type=jnp.float32)
            ctx = c[0:lq, :]
            for h in range(1, N_HEADS):                   # sum head row-blocks
                ctx = ctx + c[h * lq:(h + 1) * lq, :]
            outs.append(ctx)                              # [lq, D] concat-heads
        else:
            v_stack = jnp.concatenate(
                [vb[:, h * D_HEAD:(h + 1) * D_HEAD] for h in range(N_HEADS)],
                axis=0)                                   # [H*lk, Dh]
            c = jnp.dot(p_bd, v_stack, preferred_element_type=jnp.float32)
            # row-major reinterpret of [H, lq, Dh] as [lq, H*Dh] via one
            # masked lane-replicate + one 0/1 row-regroup matmul.
            c_wide = jnp.concatenate([c] * (D_MODEL // D_HEAD), axis=1) * lanesel
            outs.append(jnp.dot(rowsum, c_wide,
                                preferred_element_type=jnp.float32))  # [lq, D]
    return jnp.concatenate(outs, axis=0)                  # [B*lq, D]


def _self_attention(x2, p, batch, seq, masks, causal, mix):
    qkv = _linear(x2, p["wqkv"])                 # fused [32, 96] projection
    q = qkv[:, 0:D_MODEL]
    k = qkv[:, D_MODEL:2 * D_MODEL]
    v = qkv[:, 2 * D_MODEL:3 * D_MODEL]
    ctx = _mha(q, k, v, batch, seq, seq, masks, causal, mix)
    return _linear(ctx, p["wo"])


def _cross_attention(x2, cross2, p, batch, lq, lk, masks):
    q = _linear(x2, p["wq"])
    kv = _linear(cross2, p["wkv"])               # fused [32, 64] K/V projection
    ctx = _mha(q, kv[:, 0:D_MODEL], kv[:, D_MODEL:2 * D_MODEL],
               batch, lq, lk, masks, causal=False, mix=False)
    return _linear(ctx, p["wo"])


def _encoder_layer(x2, p, batch, seq, masks):
    x2 = x2 + _self_attention(x2, p["attn"], batch, seq, masks,
                              causal=True, mix=False)
    x2 = _layernorm(x2, p["ln1"])
    y = _linear(x2, p["ff1"], act="gelu")        # Conv1d(k=1) == per-token linear
    y = _linear(y, p["ff2"])
    return _layernorm(x2 + y, p["ln2"])


def _decoder_layer(x2, cross2, p, batch, lq, lk, masks):
    x2 = x2 + _self_attention(x2, p["self"], batch, lq, masks,
                              causal=True, mix=True)
    x2 = _layernorm(x2, p["ln1"])
    x2 = x2 + _cross_attention(x2, cross2, p["cross"], batch, lq, lk, masks)
    x2 = _layernorm(x2, p["ln2"])
    y = _linear(x2, p["ff1"], act="gelu")
    y = _linear(y, p["ff2"])
    return _layernorm(x2 + y, p["ln3"])


# ------------------------------ fused kernel --------------------------------

def _informer_kernel(xe_ref, xd_ref, params_ref, o_ref, *,
                     meta, batch, l_enc, l_dec):
    P = _unpack_tree(params_ref, meta)
    masks = P["masks"]
    f32_max = float(jnp.finfo(jnp.float32).max)

    def embed(x_ref, w_ref, pe_ref, l):
        # x_ref: [l, batch] raw series -> nan_to_num + circular 3-tap conv
        # embedding (VPU broadcasts, no MXU) + pre-tiled positional embedding.
        x = x_ref[...]
        x = jnp.where(jnp.isnan(x), 0.0, x)               # torch nan_to_num_
        x = jnp.clip(x, -f32_max, f32_max)
        prv = jnp.concatenate([x[l - 1:l, :], x[0:l - 1, :]], axis=0)
        nxt = jnp.concatenate([x[1:l, :], x[0:1, :]], axis=0)
        w = w_ref[...]                                    # [3, D]
        cols = []
        for b in range(batch):
            cols.append(prv[:, b:b + 1] * w[0:1, :]
                        + x[:, b:b + 1] * w[1:2, :]
                        + nxt[:, b:b + 1] * w[2:3, :])
        return jnp.concatenate(cols, axis=0) + pe_ref[...]   # [B*l, D]

    enc = embed(xe_ref, P["emb_enc"], P["pe_enc"], l_enc)     # [B*L_enc, D]
    for lp in P["enc_layers"]:
        enc = _encoder_layer(enc, lp, batch, l_enc, masks)
    enc = _layernorm(enc, P["enc_norm"])

    dec = embed(xd_ref, P["emb_dec"], P["pe_dec"], l_dec)     # [B*L_dec, D]
    for lp in P["dec_layers"]:
        dec = _decoder_layer(dec, enc, lp, batch, l_dec, l_enc, masks)
    dec = _layernorm(dec, P["dec_norm"])

    y = _linear(dec, P["proj"])                               # [B*L_dec, 1]
    # emit directly in [L_dec, B] layout (host just adds the trailing 1 dim)
    o_ref[...] = jnp.concatenate(
        [y[b * l_dec:(b + 1) * l_dec, :] for b in range(batch)],
        axis=1).astype(o_ref.dtype)


# ------------------------------ host wrapper ---------------------------------

def informer_forward(packed_params, x_enc, x_dec, *, meta):
    l_enc, batch, _ = x_enc.shape
    l_dec = x_dec.shape[0]
    # ProbSparse attention == full attention only while
    # u = min(factor*ceil(ln L), L) == L (factor=5).  Assert at trace time.
    for L in (l_enc, l_dec):
        assert 5 * math.ceil(math.log(L)) >= L, (
            "ProbSparse top-u selection would be active at this length; the "
            "full-attention kernel would no longer match Informer.")
    xe = x_enc.reshape(l_enc, batch)          # drop trailing singleton (free)
    xd = x_dec.reshape(l_dec, batch)
    vmem = pl.BlockSpec(memory_space=pltpu.MemorySpace.VMEM)
    # TODO(synk): on v7x (2 TensorCores/chip) a batch-parallel grid=(B,) with
    # dimension_semantics=("parallel",) would use both cores; kept gridless
    # here because v5e/v6e are single-core and a grid only adds per-step
    # overhead for this tiny, latency-bound model.
    out = pl.pallas_call(
        partial(_informer_kernel, meta=meta, batch=batch,
                l_enc=l_enc, l_dec=l_dec),
        out_shape=jax.ShapeDtypeStruct((l_dec, batch), jnp.float32),
        in_specs=[vmem, vmem, vmem],
        out_specs=vmem,
    )(xe, xd, packed_params)
    return out[:, :, None]                                   # [L_dec, B, 1]


# ------------------------------- parameters ----------------------------------

def init_params(key):
    keys = iter(jax.random.split(key, 128))

    def lin(din, dout, scale=0.05):
        return {"w": scale * jax.random.normal(next(keys), (din, dout), jnp.float32),
                "b": scale * jax.random.normal(next(keys), (dout,), jnp.float32)}

    def norm():
        return {"g": jnp.ones((D_MODEL,), jnp.float32),
                "b": jnp.zeros((D_MODEL,), jnp.float32)}

    def attn():
        return {"wq": lin(D_MODEL, D_MODEL), "wk": lin(D_MODEL, D_MODEL),
                "wv": lin(D_MODEL, D_MODEL), "wo": lin(D_MODEL, D_MODEL)}

    def enc_layer():
        return {"attn": attn(), "conv1": lin(D_MODEL, D_FF),
                "conv2": lin(D_FF, D_MODEL), "norm1": norm(), "norm2": norm()}

    def dec_layer():
        return {"self_attn": attn(), "cross_attn": attn(),
                "conv1": lin(D_MODEL, D_FF), "conv2": lin(D_FF, D_MODEL),
                "norm1": norm(), "norm2": norm(), "norm3": norm()}

    return {
        "enc_emb_conv": 0.5 * jax.random.normal(next(keys), (D_MODEL, 1, 3), jnp.float32),
        "dec_emb_conv": 0.5 * jax.random.normal(next(keys), (D_MODEL, 1, 3), jnp.float32),
        "enc_layers": [enc_layer() for _ in range(E_LAYERS)],
        "enc_norm": norm(),
        "dec_layers": [dec_layer() for _ in range(D_LAYERS)],
        "dec_norm": norm(),
        "proj": lin(D_MODEL, 1),
    }


# ------------------------- pure-JAX reference (check) ------------------------

def reference_forward(params, x_enc, x_dec):
    def dense(x, p, act=None):
        y = x @ p["w"] + p["b"]
        if act == "gelu":
            y = 0.5 * y * (1.0 + jax.lax.erf(y * (1.0 / math.sqrt(2.0))))
        return y

    def layernorm(x, p):
        mu = x.mean(-1, keepdims=True)
        xc = x - mu
        var = (xc * xc).mean(-1, keepdims=True)
        return xc * jax.lax.rsqrt(var + LN_EPS) * p["g"] + p["b"]

    def embed(x_bl1, conv_w):
        xcat = jnp.concatenate(
            [jnp.roll(x_bl1, 1, axis=1), x_bl1, jnp.roll(x_bl1, -1, axis=1)], axis=-1)
        wmat = jnp.transpose(conv_w, (2, 1, 0)).reshape(3, D_MODEL)
        return xcat @ wmat + positional_embedding(x_bl1.shape[1], D_MODEL)[None]

    def attention(q, k, v, causal):                    # [B, H, L, Dh]
        s = jnp.einsum("bhqd,bhkd->bhqk", q, k) / math.sqrt(D_HEAD)
        if causal:
            lq, lk = s.shape[-2:]
            keep = jnp.tril(jnp.ones((lq, lk), bool))
            s = jnp.where(keep, s, -jnp.inf)
        return jnp.einsum("bhqk,bhkd->bhqd", jax.nn.softmax(s, axis=-1), v)

    def attn_layer(p, xq, xkv, causal, mix):
        bsz, lq, _ = xq.shape
        lk = xkv.shape[1]
        q = dense(xq, p["wq"]).reshape(bsz, lq, N_HEADS, D_HEAD).transpose(0, 2, 1, 3)
        k = dense(xkv, p["wk"]).reshape(bsz, lk, N_HEADS, D_HEAD).transpose(0, 2, 1, 3)
        v = dense(xkv, p["wv"]).reshape(bsz, lk, N_HEADS, D_HEAD).transpose(0, 2, 1, 3)
        o = attention(q, k, v, causal).transpose(0, 2, 1, 3)   # [B, L, H, Dh]
        if mix:
            o = o.transpose(0, 2, 1, 3)                        # [B, H, L, Dh]
        return dense(o.reshape(bsz, lq, D_MODEL), p["wo"])

    def enc_layer(p, x):
        x = x + attn_layer(p["attn"], x, x, True, False)
        x = layernorm(x, p["norm1"])
        y = dense(dense(x, p["conv1"], "gelu"), p["conv2"])
        return layernorm(x + y, p["norm2"])

    def dec_layer(p, x, cross):
        x = x + attn_layer(p["self_attn"], x, x, True, True)
        x = layernorm(x, p["norm1"])
        x = x + attn_layer(p["cross_attn"], x, cross, False, False)
        x = layernorm(x, p["norm2"])
        y = dense(dense(x, p["conv1"], "gelu"), p["conv2"])
        return layernorm(x + y, p["norm3"])

    xe = jnp.transpose(jnp.nan_to_num(x_enc), (1, 0, 2))
    xd = jnp.transpose(jnp.nan_to_num(x_dec), (1, 0, 2))
    enc = embed(xe, params["enc_emb_conv"])
    for lp in params["enc_layers"]:
        enc = enc_layer(lp, enc)
    enc = layernorm(enc, params["enc_norm"])
    dec = embed(xd, params["dec_emb_conv"])
    for lp in params["dec_layers"]:
        dec = dec_layer(lp, dec, enc)
    dec = layernorm(dec, params["dec_norm"])
    return jnp.transpose(dense(dec, params["proj"]), (1, 0, 2))


# ---------------------------------- main --------------------------------------

if __name__ == "__main__":
    key = jax.random.PRNGKey(0)
    kp, ke, kd = jax.random.split(key, 3)

    BATCH, L_ENC, L_DEC = 2, 8, 8
    params = init_params(kp)
    x_enc = jax.random.normal(ke, (L_ENC, BATCH, 1), jnp.float32)
    x_dec = jax.random.normal(kd, (L_DEC, BATCH, 1), jnp.float32)
    x_enc = x_enc.at[0, 0, 0].set(jnp.nan)       # exercise nan_to_num_ semantics

    # One-time repack of weights + masks + pe into a single column-packed slab.
    packed_params, meta = prepare_params(params, BATCH, L_ENC, L_DEC)

    fwd = jax.jit(partial(informer_forward, meta=meta))
    out = fwd(packed_params, x_enc, x_dec)
    jax.block_until_ready(out)

    assert out.shape == (L_DEC, BATCH, 1), out.shape
    assert bool(jnp.all(jnp.isfinite(out)))

    # Numerics self-check against a pure-JAX/XLA reference (loose tolerance to
    # allow for approx-reciprocal softmax and different MXU accumulation
    # paths; real bugs show up as O(0.1+)).
    ref = jax.jit(reference_forward)(params, x_enc, x_dec)
    max_err = float(jnp.max(jnp.abs(out - ref)))
    assert max_err < 5e-2, f"kernel/reference mismatch: max_abs_err={max_err}"

    print("KERNEL_OK")
</pallas_src>

<mosaic_0001>
module attributes {stable_mosaic.version = 11 : i64} {
  func.func @_informer_kernel(%arg0: memref<8x2xf32, #tpu.memory_space<vmem>>, %arg1: memref<8x2xf32, #tpu.memory_space<vmem>>, %arg2: memref<656x128xf32, #tpu.memory_space<vmem>>, %arg3: memref<8x2xf32, #tpu.memory_space<vmem>>) attributes {dimension_semantics = [], scalar_prefetch = 0 : i64, scratch_operands = 0 : i64, tpu.core_type = #tpu.core_type<tc>} {
    %c0 = arith.constant 0 : index
    %c0_0 = arith.constant 0 : index
    %0 = vector.load %arg0[%c0, %c0_0] : memref<8x2xf32, #tpu.memory_space<vmem>>, vector<8x2xf32>
    %1 = arith.cmpf one, %0, %0 : vector<8x2xf32>
    %cst = arith.constant 0.000000e+00 : f32
    %2 = vector.broadcast %cst : f32 to vector<8x2xf32>
    %3 = arith.select %1, %2, %0 : vector<8x2xi1>, vector<8x2xf32>
    %cst_1 = arith.constant -3.40282347E+38 : f32
    %cst_2 = arith.constant 3.40282347E+38 : f32
    %4 = vector.broadcast %cst_1 : f32 to vector<8x2xf32>
    %5 = arith.maximumf %4, %3 : vector<8x2xf32>
    %6 = vector.broadcast %cst_2 : f32 to vector<8x2xf32>
    %7 = arith.minimumf %6, %5 : vector<8x2xf32>
    %8 = vector.extract_strided_slice %7 {offsets = [7, 0], sizes = [1, 2], strides = [1, 1]} : vector<8x2xf32> to vector<1x2xf32>
    %9 = vector.extract_strided_slice %7 {offsets = [0, 0], sizes = [7, 2], strides = [1, 1]} : vector<8x2xf32> to vector<7x2xf32>
    %10 = tpu.concatenate %8, %9 in 0 : vector<1x2xf32>, vector<7x2xf32> -> vector<8x2xf32>
    %11 = vector.extract_strided_slice %7 {offsets = [1, 0], sizes = [7, 2], strides = [1, 1]} : vector<8x2xf32> to vector<7x2xf32>
    %12 = vector.extract_strided_slice %7 {offsets = [0, 0], sizes = [1, 2], strides = [1, 1]} : vector<8x2xf32> to vector<1x2xf32>
    %13 = tpu.concatenate %11, %12 in 0 : vector<7x2xf32>, vector<1x2xf32> -> vector<8x2xf32>
    %c624 = arith.constant 624 : index
    %c64 = arith.constant 64 : index
    %14 = vector.load %arg2[%c624, %c64] : memref<656x128xf32, #tpu.memory_space<vmem>>, vector<3x32xf32>
    %15 = vector.extract_strided_slice %10 {offsets = [0, 0], sizes = [8, 1], strides = [1, 1]} : vector<8x2xf32> to vector<8x1xf32>
    %16 = vector.extract_strided_slice %14 {offsets = [0, 0], sizes = [1, 32], strides = [1, 1]} : vector<3x32xf32> to vector<1x32xf32>
    %17 = vector.broadcast %15 : vector<8x1xf32> to vector<8x32xf32>
    %18 = vector.broadcast %16 : vector<1x32xf32> to vector<8x32xf32>
    %19 = arith.mulf %17, %18 : vector<8x32xf32>
    %20 = vector.extract_strided_slice %7 {offsets = [0, 0], sizes = [8, 1], strides = [1, 1]} : vector<8x2xf32> to vector<8x1xf32>
    %21 = vector.extract_strided_slice %14 {offsets = [1, 0], sizes = [1, 32], strides = [1, 1]} : vector<3x32xf32> to vector<1x32xf32>
    %22 = vector.broadcast %20 : vector<8x1xf32> to vector<8x32xf32>
    %23 = vector.broadcast %21 : vector<1x32xf32> to vector<8x32xf32>
    %24 = arith.mulf %22, %23 : vector<8x32xf32>
    %25 = arith.addf %19, %24 : vector<8x32xf32>
    %26 = vector.extract_strided_slice %13 {offsets = [0, 0], sizes = [8, 1], strides = [1, 1]} : vector<8x2xf32> to vector<8x1xf32>
    %27 = vector.extract_strided_slice %14 {offsets = [2, 0], sizes = [1, 32], strides = [1, 1]} : vector<3x32xf32> to vector<1x32xf32>
    %28 = vector.broadcast %26 : vector<8x1xf32> to vector<8x32xf32>
    %29 = vector.broadcast %27 : vector<1x32xf32> to vector<8x32xf32>
    %30 = arith.mulf %28, %29 : vector<8x32xf32>
    %31 = arith.addf %25, %30 : vector<8x32xf32>
    %32 = vector.extract_strided_slice %10 {offsets = [0, 1], sizes = [8, 1], strides = [1, 1]} : vector<8x2xf32> to vector<8x1xf32>
    %33 = vector.extract_strided_slice %14 {offsets = [0, 0], sizes = [1, 32], strides = [1, 1]} : vector<3x32xf32> to vector<1x32xf32>
    %34 = vector.broadcast %32 : vector<8x1xf32> to vector<8x32xf32>
    %35 = vector.broadcast %33 : vector<1x32xf32> to vector<8x32xf32>
    %36 = arith.mulf %34, %35 : vector<8x32xf32>
    %37 = vector.extract_strided_slice %7 {offsets = [0, 1], sizes = [8, 1], strides = [1, 1]} : vector<8x2xf32> to vector<8x1xf32>
    %38 = vector.extract_strided_slice %14 {offsets = [1, 0], sizes = [1, 32], strides = [1, 1]} : vector<3x32xf32> to vector<1x32xf32>
    %39 = vector.broadcast %37 : vector<8x1xf32> to vector<8x32xf32>
    %40 = vector.broadcast %38 : vector<1x32xf32> to vector<8x32xf32>
    %41 = arith.mulf %39, %40 : vector<8x32xf32>
    %42 = arith.addf %36, %41 : vector<8x32xf32>
    %43 = vector.extract_strided_slice %13 {offsets = [0, 1], sizes = [8, 1], strides = [1, 1]} : vector<8x2xf32> to vector<8x1xf32>
    %44 = vector.extract_strided_slice %14 {offsets = [2, 0], sizes = [1, 32], strides = [1, 1]} : vector<3x32xf32> to vector<1x32xf32>
    %45 = vector.broadcast %43 : vector<8x1xf32> to vector<8x32xf32>
    %46 = vector.broadcast %44 : vector<1x32xf32> to vector<8x32xf32>
    %47 = arith.mulf %45, %46 : vector<8x32xf32>
    %48 = arith.addf %42, %47 : vector<8x32xf32>
    %49 = tpu.concatenate %31, %48 in 0 : vector<8x32xf32>, vector<8x32xf32> -> vector<16x32xf32>
    %c608 = arith.constant 608 : index
    %c96 = arith.constant 96 : index
    %50 = vector.load %arg2[%c608, %c96] : memref<656x128xf32, #tpu.memory_space<vmem>>, vector<16x32xf32>
    %51 = arith.addf %49, %50 : vector<16x32xf32>
    %c160 = arith.constant 160 : index
    %c0_3 = arith.constant 0 : index
    %52 = vector.load %arg2[%c160, %c0_3] : memref<656x128xf32, #tpu.memory_space<vmem>>, vector<33x96xf32>
    %53 = vector.extract_strided_slice %52 {offsets = [0, 0], sizes = [32, 96], strides = [1, 1]} : vector<33x96xf32> to vector<32x96xf32>
    %cst_4 = arith.constant dense<0.000000e+00> : vector<16x96xf32>
    %54 = tpu.matmul %51, %53, %cst_4 {dimension_numbers = #tpu.dot_dimension_numbers<[1], [0], [0], [1], [0, 0, 1, 1], [], []>} : vector<16x32xf32>, vector<32x96xf32>, vector<16x96xf32> -> vector<16x96xf32>
    %55 = vector.extract_strided_slice %52 {offsets = [32, 0], sizes = [1, 96], strides = [1, 1]} : vector<33x96xf32> to vector<1x96xf32>
    %56 = vector.broadcast %55 : vector<1x96xf32> to vector<16x96xf32>
    %57 = arith.addf %54, %56 : vector<16x96xf32>
    %58 = vector.extract_strided_slice %57 {offsets = [0, 0], sizes = [16, 32], strides = [1, 1]} : vector<16x96xf32> to vector<16x32xf32>
    %59 = vector.extract_strided_slice %57 {offsets = [0, 32], sizes = [16, 32], strides = [1, 1]} : vector<16x96xf32> to vector<16x32xf32>
    %60 = vector.extract_strided_slice %57 {offsets = [0, 64], sizes = [16, 32], strides = [1, 1]} : vector<16x96xf32> to vector<16x32xf32>
    %c576 = arith.constant 576 : index
    %c96_5 = arith.constant 96 : index
    %61 = vector.load %arg2[%c576, %c96_5] : memref<656x128xf32, #tpu.memory_space<vmem>>, vector<32x32xf32>
    %c576_6 = arith.constant 576 : index
    %c32 = arith.constant 32 : index
    %62 = vector.load %arg2[%c576_6, %c32] : memref<656x128xf32, #tpu.memory_space<vmem>>, vector<32x32xf32>
    %c576_7 = arith.constant 576 : index
    %c64_8 = arith.constant 64 : index
    %63 = vector.load %arg2[%c576_7, %c64_8] : memref<656x128xf32, #tpu.memory_space<vmem>>, vector<32x8xf32>
    %c576_9 = arith.constant 576 : index
    %c96_10 = arith.constant 96 : index
    %64 = vector.load %arg2[%c576_9, %c96_10] : memref<656x128xf32, #tpu.memory_space<vmem>>, vector<32x32xf32>
    %65 = vector.extract_strided_slice %58 {offsets = [0, 0], sizes = [8, 32], strides = [1, 1]} : vector<16x32xf32> to vector<8x32xf32>
    %66 = vector.extract_strided_slice %59 {offsets = [0, 0], sizes = [8, 32], strides = [1, 1]} : vector<16x32xf32> to vector<8x32xf32>
    %67 = vector.extract_strided_slice %60 {offsets = [0, 0], sizes = [8, 32], strides = [1, 1]} : vector<16x32xf32> to vector<8x32xf32>
    %68 = tpu.concatenate %65, %65, %65, %65 in 0 : vector<8x32xf32>, vector<8x32xf32>, vector<8x32xf32>, vector<8x32xf32> -> vector<32x32xf32>
    %69 = arith.mulf %68, %61 : vector<32x32xf32>
    %cst_11 = arith.constant dense<0.000000e+00> : vector<32x8xf32>
    %70 = tpu.matmul %69, %66, %cst_11 {dimension_numbers = #tpu.dot_dimension_numbers<[1], [1], [0], [0], [0, 0, 1, 0], [], []>} : vector<32x32xf32>, vector<8x32xf32>, vector<32x8xf32> -> vector<32x8xf32>
    %71 = arith.addf %70, %63 : vector<32x8xf32>
    %cst_12 = arith.constant dense<0xFF800000> : vector<32xf32>
    %72 = vector.multi_reduction <maximumf>, %71, %cst_12 [1] : vector<32x8xf32> to vector<32xf32>
    %73 = vector.shape_cast %72 : vector<32xf32> to vector<32x1xf32>
    %74 = vector.broadcast %73 : vector<32x1xf32> to vector<32x8xf32>
    %75 = arith.subf %71, %74 : vector<32x8xf32>
    %76 = math.exp %75 : vector<32x8xf32>
    %cst_13 = arith.constant dense<0.000000e+00> : vector<32xf32>
    %77 = vector.multi_reduction <add>, %76, %cst_13 [1] : vector<32x8xf32> to vector<32xf32>
    %78 = vector.shape_cast %77 : vector<32xf32> to vector<32x1xf32>
    %79 = tpu.reciprocal %78 {approx = true} : vector<32x1xf32> -> vector<32x1xf32>
    %80 = vector.broadcast %79 : vector<32x1xf32> to vector<32x8xf32>
    %81 = arith.mulf %76, %80 : vector<32x8xf32>
    %82 = tpu.concatenate %81, %81, %81, %81 in 1 : vector<32x8xf32>, vector<32x8xf32>, vector<32x8xf32>, vector<32x8xf32> -> vector<32x32xf32>
    %83 = arith.mulf %82, %62 : vector<32x32xf32>
    %84 = tpu.concatenate %67, %67, %67, %67 in 0 : vector<8x32xf32>, vector<8x32xf32>, vector<8x32xf32>, vector<8x32xf32> -> vector<32x32xf32>
    %85 = arith.mulf %84, %64 : vector<32x32xf32>
    %cst_14 = arith.constant dense<0.000000e+00> : vector<32x32xf32>
    %86 = tpu.matmul %83, %85, %cst_14 {dimension_numbers = #tpu.dot_dimension_numbers<[1], [0], [0], [1], [0, 0, 1, 1], [], []>} : vector<32x32xf32>, vector<32x32xf32>, vector<32x32xf32> -> vector<32x32xf32>
    %87 = vector.extract_strided_slice %86 {offsets = [0, 0], sizes = [8, 32], strides = [1, 1]} : vector<32x32xf32> to vector<8x32xf32>
    %88 = vector.extract_strided_slice %86 {offsets = [8, 0], sizes = [8, 32], strides = [1, 1]} : vector<32x32xf32> to vector<8x32xf32>
    %89 = arith.addf %87, %88 : vector<8x32xf32>
    %90 = vector.extract_strided_slice %86 {offsets = [16, 0], sizes = [8, 32], strides = [1, 1]} : vector<32x32xf32> to vector<8x32xf32>
    %91 = arith.addf %89, %90 : vector<8x32xf32>
    %92 = vector.extract_strided_slice %86 {offsets = [24, 0], sizes = [8, 32], strides = [1, 1]} : vector<32x32xf32> to vector<8x32xf32>
    %93 = arith.addf %91, %92 : vector<8x32xf32>
    %94 = vector.extract_strided_slice %58 {offsets = [8, 0], sizes = [8, 32], strides = [1, 1]} : vector<16x32xf32> to vector<8x32xf32>
    %95 = vector.extract_strided_slice %59 {offsets = [8, 0], sizes = [8, 32], strides = [1, 1]} : vector<16x32xf32> to vector<8x32xf32>
    %96 = vector.extract_strided_slice %60 {offsets = [8, 0], sizes = [8, 32], strides = [1, 1]} : vector<16x32xf32> to vector<8x32xf32>
    %97 = tpu.concatenate %94, %94, %94, %94 in 0 : vector<8x32xf32>, vector<8x32xf32>, vector<8x32xf32>, vector<8x32xf32> -> vector<32x32xf32>
    %98 = arith.mulf %97, %61 : vector<32x32xf32>
    %cst_15 = arith.constant dense<0.000000e+00> : vector<32x8xf32>
    %99 = tpu.matmul %98, %95, %cst_15 {dimension_numbers = #tpu.dot_dimension_numbers<[1], [1], [0], [0], [0, 0, 1, 0], [], []>} : vector<32x32xf32>, vector<8x32xf32>, vector<32x8xf32> -> vector<32x8xf32>
    %100 = arith.addf %99, %63 : vector<32x8xf32>
    %cst_16 = arith.constant dense<0xFF800000> : vector<32xf32>
    %101 = vector.multi_reduction <maximumf>, %100, %cst_16 [1] : vector<32x8xf32> to vector<32xf32>
    %102 = vector.shape_cast %101 : vector<32xf32> to vector<32x1xf32>
    %103 = vector.broadcast %102 : vector<32x1xf32> to vector<32x8xf32>
    %104 = arith.subf %100, %103 : vector<32x8xf32>
    %105 = math.exp %104 : vector<32x8xf32>
    %cst_17 = arith.constant dense<0.000000e+00> : vector<32xf32>
    %106 = vector.multi_reduction <add>, %105, %cst_17 [1] : vector<32x8xf32> to vector<32xf32>
    %107 = vector.shape_cast %106 : vector<32xf32> to vector<32x1xf32>
    %108 = tpu.reciprocal %107 {approx = true} : vector<32x1xf32> -> vector<32x1xf32>
    %109 = vector.broadcast %108 : vector<32x1xf32> to vector<32x8xf32>
    %110 = arith.mulf %105, %109 : vector<32x8xf32>
    %111 = tpu.concatenate %110, %110, %110, %110 in 1 : vector<32x8xf32>, vector<32x8xf32>, vector<32x8xf32>, vector<32x8xf32> -> vector<32x32xf32>
    %112 = arith.mulf %111, %62 : vector<32x32xf32>
    %113 = tpu.concatenate %96, %96, %96, %96 in 0 : vector<8x32xf32>, vector<8x32xf32>, vector<8x32xf32>, vector<8x32xf32> -> vector<32x32xf32>
    %114 = arith.mulf %113, %64 : vector<32x32xf32>
    %cst_18 = arith.constant dense<0.000000e+00> : vector<32x32xf32>
    %115 = tpu.matmul %112, %114, %cst_18 {dimension_numbers = #tpu.dot_dimension_numbers<[1], [0], [0], [1], [0, 0, 1, 1], [], []>} : vector<32x32xf32>, vector<32x32xf32>, vector<32x32xf32> -> vector<32x32xf32>
    %116 = vector.extract_strided_slice %115 {offsets = [0, 0], sizes = [8, 32], strides = [1, 1]} : vector<32x32xf32> to vector<8x32xf32>
    %117 = vector.extract_strided_slice %115 {offsets = [8, 0], sizes = [8, 32], strides = [1, 1]} : vector<32x32xf32> to vector<8x32xf32>
    %118 = arith.addf %116, %117 : vector<8x32xf32>
    %119 = vector.extract_strided_slice %115 {offsets = [16, 0], sizes = [8, 32], strides = [1, 1]} : vector<32x32xf32> to vector<8x32xf32>
    %120 = arith.addf %118, %119 : vector<8x32xf32>
    %121 = vector.extract_strided_slice %115 {offsets = [24, 0], sizes = [8, 32], strides = [1, 1]} : vector<32x32xf32> to vector<8x32xf32>
    %122 = arith.addf %120, %121 : vector<8x32xf32>
    %123 = tpu.concatenate %93, %122 in 0 : vector<8x32xf32>, vector<8x32xf32> -> vector<16x32xf32>
    %c536 = arith.constant 536 : index
    %c64_19 = arith.constant 64 : index
    %124 = vector.load %arg2[%c536, %c64_19] : memref<656x128xf32, #tpu.memory_space<vmem>>, vector<33x32xf32>
    %125 = vector.extract_strided_slice %124 {offsets = [0, 0], sizes = [32, 32], strides = [1, 1]} : vector<33x32xf32> to vector<32x32xf32>
    %cst_20 = arith.constant dense<0.000000e+00> : vector<16x32xf32>
    %126 = tpu.matmul %123, %125, %cst_20 {dimension_numbers = #tpu.dot_dimension_numbers<[1], [0], [0], [1], [0, 0, 1, 1], [], []>} : vector<16x32xf32>, vector<32x32xf32>, vector<16x32xf32> -> vector<16x32xf32>
    %127 = vector.extract_strided_slice %124 {offsets = [32, 0], sizes = [1, 32], strides = [1, 1]} : vector<33x32xf32> to vector<1x32xf32>
    %128 = vector.broadcast %127 : vector<1x32xf32> to vector<16x32xf32>
    %129 = arith.addf %126, %128 : vector<16x32xf32>
    %130 = arith.addf %51, %129 : vector<16x32xf32>
    %c640 = arith.constant 640 : index
    %c96_21 = arith.constant 96 : index
    %131 = vector.load %arg2[%c640, %c96_21] : memref<656x128xf32, #tpu.memory_space<vmem>>, vector<2x32xf32>
    %cst_22 = arith.constant dense<0.000000e+00> : vector<16xf32>
    %132 = vector.multi_reduction <add>, %130, %cst_22 [1] : vector<16x32xf32> to vector<16xf32>
    %133 = vector.shape_cast %132 : vector<16xf32> to vector<16x1xf32>
    %cst_23 = arith.constant 3.200000e+01 : f32
    %134 = vector.broadcast %cst_23 : f32 to vector<16x1xf32>
    %135 = arith.divf %133, %134 : vector<16x1xf32>
    %136 = vector.broadcast %135 : vector<16x1xf32> to vector<16x32xf32>
    %137 = arith.subf %130, %136 : vector<16x32xf32>
    %138 = arith.mulf %137, %137 : vector<16x32xf32>
    %cst_24 = arith.constant dense<0.000000e+00> : vector<16xf32>
    %139 = vector.multi_reduction <add>, %138, %cst_24 [1] : vector<16x32xf32> to vector<16xf32>
    %140 = vector.shape_cast %139 : vector<16xf32> to vector<16x1xf32>
    %cst_25 = arith.constant 3.200000e+01 : f32
    %141 = vector.broadcast %cst_25 : f32 to vector<16x1xf32>
    %142 = arith.divf %140, %141 : vector<16x1xf32>
    %cst_26 = arith.constant 9.99999974E-6 : f32
    %143 = vector.broadcast %cst_26 : f32 to vector<16x1xf32>
    %144 = arith.addf %142, %143 : vector<16x1xf32>
    %145 = math.rsqrt %144 : vector<16x1xf32>
    %146 = vector.broadcast %145 : vector<16x1xf32> to vector<16x32xf32>
    %147 = arith.mulf %137, %146 : vector<16x32xf32>
    %148 = vector.extract_strided_slice %131 {offsets = [0, 0], sizes = [1, 32], strides = [1, 1]} : vector<2x32xf32> to vector<1x32xf32>
    %149 = vector.broadcast %148 : vector<1x32xf32> to vector<16x32xf32>
    %150 = arith.mulf %147, %149 : vector<16x32xf32>
    %151 = vector.extract_strided_slice %131 {offsets = [1, 0], sizes = [1, 32], strides = [1, 1]} : vector<2x32xf32> to vector<1x32xf32>
    %152 = vector.broadcast %151 : vector<1x32xf32> to vector<16x32xf32>
    %153 = arith.addf %150, %152 : vector<16x32xf32>
    %c200 = arith.constant 200 : index
    %c0_27 = arith.constant 0 : index
    %154 = vector.load %arg2[%c200, %c0_27] : memref<656x128xf32, #tpu.memory_space<vmem>>, vector<33x128xf32>
    %155 = vector.extract_strided_slice %154 {offsets = [0, 0], sizes = [32, 128], strides = [1, 1]} : vector<33x128xf32> to vector<32x128xf32>
    %cst_28 = arith.constant dense<0.000000e+00> : vector<16x128xf32>
    %156 = tpu.matmul %153, %155, %cst_28 {dimension_numbers = #tpu.dot_dimension_numbers<[1], [0], [0], [1], [0, 0, 1, 1], [], []>} : vector<16x32xf32>, vector<32x128xf32>, vector<16x128xf32> -> vector<16x128xf32>
    %157 = vector.extract_strided_slice %154 {offsets = [32, 0], sizes = [1, 128], strides = [1, 1]} : vector<33x128xf32> to vector<1x128xf32>
    %158 = vector.broadcast %157 : vector<1x128xf32> to vector<16x128xf32>
    %159 = arith.addf %156, %158 : vector<16x128xf32>
    %cst_29 = arith.constant 5.000000e-01 : f32
    %160 = vector.broadcast %cst_29 : f32 to vector<16x128xf32>
    %161 = arith.mulf %160, %159 : vector<16x128xf32>
    %cst_30 = arith.constant 0.707106769 : f32
    %162 = vector.broadcast %cst_30 : f32 to vector<16x128xf32>
    %163 = arith.mulf %159, %162 : vector<16x128xf32>
    %164 = math.erf %163 : vector<16x128xf32>
    %cst_31 = arith.constant 1.000000e+00 : f32
    %165 = vector.broadcast %cst_31 : f32 to vector<16x128xf32>
    %166 = arith.addf %165, %164 : vector<16x128xf32>
    %167 = arith.mulf %161, %166 : vector<16x128xf32>
    %c360 = arith.constant 360 : index
    %c64_32 = arith.constant 64 : index
    %168 = vector.load %arg2[%c360, %c64_32] : memref<656x128xf32, #tpu.memory_space<vmem>>, vector<129x32xf32>
    %169 = vector.extract_strided_slice %168 {offsets = [0, 0], sizes = [128, 32], strides = [1, 1]} : vector<129x32xf32> to vector<128x32xf32>
    %cst_33 = arith.constant dense<0.000000e+00> : vector<16x32xf32>
    %170 = tpu.matmul %167, %169, %cst_33 {dimension_numbers = #tpu.dot_dimension_numbers<[1], [0], [0], [1], [0, 0, 1, 1], [], []>} : vector<16x128xf32>, vector<128x32xf32>, vector<16x32xf32> -> vector<16x32xf32>
    %171 = vector.extract_strided_slice %168 {offsets = [128, 0], sizes = [1, 32], strides = [1, 1]} : vector<129x32xf32> to vector<1x32xf32>
    %172 = vector.broadcast %171 : vector<1x32xf32> to vector<16x32xf32>
    %173 = arith.addf %170, %172 : vector<16x32xf32>
    %174 = arith.addf %153, %173 : vector<16x32xf32>
    %c648 = arith.constant 648 : index
    %c0_34 = arith.constant 0 : index
    %175 = vector.load %arg2[%c648, %c0_34] : memref<656x128xf32, #tpu.memory_space<vmem>>, vector<2x32xf32>
    %cst_35 = arith.constant dense<0.000000e+00> : vector<16xf32>
    %176 = vector.multi_reduction <add>, %174, %cst_35 [1] : vector<16x32xf32> to vector<16xf32>
    %177 = vector.shape_cast %176 : vector<16xf32> to vector<16x1xf32>
    %cst_36 = arith.constant 3.200000e+01 : f32
    %178 = vector.broadcast %cst_36 : f32 to vector<16x1xf32>
    %179 = arith.divf %177, %178 : vector<16x1xf32>
    %180 = vector.broadcast %179 : vector<16x1xf32> to vector<16x32xf32>
    %181 = arith.subf %174, %180 : vector<16x32xf32>
    %182 = arith.mulf %181, %181 : vector<16x32xf32>
    %cst_37 = arith.constant dense<0.000000e+00> : vector<16xf32>
    %183 = vector.multi_reduction <add>, %182, %cst_37 [1] : vector<16x32xf32> to vector<16xf32>
    %184 = vector.shape_cast %183 : vector<16xf32> to vector<16x1xf32>
    %cst_38 = arith.constant 3.200000e+01 : f32
    %185 = vector.broadcast %cst_38 : f32 to vector<16x1xf32>
    %186 = arith.divf %184, %185 : vector<16x1xf32>
    %cst_39 = arith.constant 9.99999974E-6 : f32
    %187 = vector.broadcast %cst_39 : f32 to vector<16x1xf32>
    %188 = arith.addf %186, %187 : vector<16x1xf32>
    %189 = math.rsqrt %188 : vector<16x1xf32>
    %190 = vector.broadcast %189 : vector<16x1xf32> to vector<16x32xf32>
    %191 = arith.mulf %181, %190 : vector<16x32xf32>
    %192 = vector.extract_strided_slice %175 {offsets = [0, 0], sizes = [1, 32], strides = [1, 1]} : vector<2x32xf32> to vector<1x32xf32>
    %193 = vector.broadcast %192 : vector<1x32xf32> to vector<16x32xf32>
    %194 = arith.mulf %191, %193 : vector<16x32xf32>
    %195 = vector.extract_strided_slice %175 {offsets = [1, 0], sizes = [1, 32], strides = [1, 1]} : vector<2x32xf32> to vector<1x32xf32>
    %196 = vector.broadcast %195 : vector<1x32xf32> to vector<16x32xf32>
    %197 = arith.addf %194, %196 : vector<16x32xf32>
    %c240 = arith.constant 240 : index
    %c0_40 = arith.constant 0 : index
    %198 = vector.load %arg2[%c240, %c0_40] : memref<656x128xf32, #tpu.memory_space<vmem>>, vector<33x96xf32>
    %199 = vector.extract_strided_slice %198 {offsets = [0, 0], sizes = [32, 96], strides = [1, 1]} : vector<33x96xf32> to vector<32x96xf32>
    %cst_41 = arith.constant dense<0.000000e+00> : vector<16x96xf32>
    %200 = tpu.matmul %197, %199, %cst_41 {dimension_numbers = #tpu.dot_dimension_numbers<[1], [0], [0], [1], [0, 0, 1, 1], [], []>} : vector<16x32xf32>, vector<32x96xf32>, vector<16x96xf32> -> vector<16x96xf32>
    %201 = vector.extract_strided_slice %198 {offsets = [32, 0], sizes = [1, 96], strides = [1, 1]} : vector<33x96xf32> to vector<1x96xf32>
    %202 = vector.broadcast %201 : vector<1x96xf32> to vector<16x96xf32>
    %203 = arith.addf %200, %202 : vector<16x96xf32>
    %204 = vector.extract_strided_slice %203 {offsets = [0, 0], sizes = [16, 32], strides = [1, 1]} : vector<16x96xf32> to vector<16x32xf32>
    %205 = vector.extract_strided_slice %203 {offsets = [0, 32], sizes = [16, 32], strides = [1, 1]} : vector<16x96xf32> to vector<16x32xf32>
    %206 = vector.extract_strided_slice %203 {offsets = [0, 64], sizes = [16, 32], strides = [1, 1]} : vector<16x96xf32> to vector<16x32xf32>
    %c576_42 = arith.constant 576 : index
    %c96_43 = arith.constant 96 : index
    %207 = vector.load %arg2[%c576_42, %c96_43] : memref<656x128xf32, #tpu.memory_space<vmem>>, vector<32x32xf32>
    %c576_44 = arith.constant 576 : index
    %c32_45 = arith.constant 32 : index
    %208 = vector.load %arg2[%c576_44, %c32_45] : memref<656x128xf32, #tpu.memory_space<vmem>>, vector<32x32xf32>
    %c576_46 = arith.constant 576 : index
    %c64_47 = arith.constant 64 : index
    %209 = vector.load %arg2[%c576_46, %c64_47] : memref<656x128xf32, #tpu.memory_space<vmem>>, vector<32x8xf32>
    %c576_48 = arith.constant 576 : index
    %c96_49 = arith.constant 96 : index
    %210 = vector.load %arg2[%c576_48, %c96_49] : memref<656x128xf32, #tpu.memory_space<vmem>>, vector<32x32xf32>
    %211 = vector.extract_strided_slice %204 {offsets = [0, 0], sizes = [8, 32], strides = [1, 1]} : vector<16x32xf32> to vector<8x32xf32>
    %212 = vector.extract_strided_slice %205 {offsets = [0, 0], sizes = [8, 32], strides = [1, 1]} : vector<16x32xf32> to vector<8x32xf32>
    %213 = vector.extract_strided_slice %206 {offsets = [0, 0], sizes = [8, 32], strides = [1, 1]} : vector<16x32xf32> to vector<8x32xf32>
    %214 = tpu.concatenate %211, %211, %211, %211 in 0 : vector<8x32xf32>, vector<8x32xf32>, vector<8x32xf32>, vector<8x32xf32> -> vector<32x32xf32>
    %215 = arith.mulf %214, %207 : vector<32x32xf32>
    %cst_50 = arith.constant dense<0.000000e+00> : vector<32x8xf32>
    %216 = tpu.matmul %215, %212, %cst_50 {dimension_numbers = #tpu.dot_dimension_numbers<[1], [1], [0], [0], [0, 0, 1, 0], [], []>} : vector<32x32xf32>, vector<8x32xf32>, vector<32x8xf32> -> vector<32x8xf32>
    %217 = arith.addf %216, %209 : vector<32x8xf32>
    %cst_51 = arith.constant dense<0xFF800000> : vector<32xf32>
    %218 = vector.multi_reduction <maximumf>, %217, %cst_51 [1] : vector<32x8xf32> to vector<32xf32>
    %219 = vector.shape_cast %218 : vector<32xf32> to vector<32x1xf32>
    %220 = vector.broadcast %219 : vector<32x1xf32> to vector<32x8xf32>
    %221 = arith.subf %217, %220 : vector<32x8xf32>
    %222 = math.exp %221 : vector<32x8xf32>
    %cst_52 = arith.constant dense<0.000000e+00> : vector<32xf32>
    %223 = vector.multi_reduction <add>, %222, %cst_52 [1] : vector<32x8xf32> to vector<32xf32>
    %224 = vector.shape_cast %223 : vector<32xf32> to vector<32x1xf32>
    %225 = tpu.reciprocal %224 {approx = true} : vector<32x1xf32> -> vector<32x1xf32>
    %226 = vector.broadcast %225 : vector<32x1xf32> to vector<32x8xf32>
    %227 = arith.mulf %222, %226 : vector<32x8xf32>
    %228 = tpu.concatenate %227, %227, %227, %227 in 1 : vector<32x8xf32>, vector<32x8xf32>, vector<32x8xf32>, vector<32x8xf32> -> vector<32x32xf32>
    %229 = arith.mulf %228, %208 : vector<32x32xf32>
    %230 = tpu.concatenate %213, %213, %213, %213 in 0 : vector<8x32xf32>, vector<8x32xf32>, vector<8x32xf32>, vector<8x32xf32> -> vector<32x32xf32>
    %231 = arith.mulf %230, %210 : vector<32x32xf32>
    %cst_53 = arith.constant dense<0.000000e+00> : vector<32x32xf32>
    %232 = tpu.matmul %229, %231, %cst_53 {dimension_numbers = #tpu.dot_dimension_numbers<[1], [0], [0], [1], [0, 0, 1, 1], [], []>} : vector<32x32xf32>, vector<32x32xf32>, vector<32x32xf32> -> vector<32x32xf32>
    %233 = vector.extract_strided_slice %232 {offsets = [0, 0], sizes = [8, 32], strides = [1, 1]} : vector<32x32xf32> to vector<8x32xf32>
    %234 = vector.extract_strided_slice %232 {offsets = [8, 0], sizes = [8, 32], strides = [1, 1]} : vector<32x32xf32> to vector<8x32xf32>
    %235 = arith.addf %233, %234 : vector<8x32xf32>
    %236 = vector.extract_strided_slice %232 {offsets = [16, 0], sizes = [8, 32], strides = [1, 1]} : vector<32x32xf32> to vector<8x32xf32>
    %237 = arith.addf %235, %236 : vector<8x32xf32>
    %238 = vector.extract_strided_slice %232 {offsets = [24, 0], sizes = [8, 32], strides = [1, 1]} : vector<32x32xf32> to vector<8x32xf32>
    %239 = arith.addf %237, %238 : vector<8x32xf32>
    %240 = vector.extract_strided_slice %204 {offsets = [8, 0], sizes = [8, 32], strides = [1, 1]} : vector<16x32xf32> to vector<8x32xf32>
    %241 = vector.extract_strided_slice %205 {offsets = [8, 0], sizes = [8, 32], strides = [1, 1]} : vector<16x32xf32> to vector<8x32xf32>
    %242 = vector.extract_strided_slice %206 {offsets = [8, 0], sizes = [8, 32], strides = [1, 1]} : vector<16x32xf32> to vector<8x32xf32>
    %243 = tpu.concatenate %240, %240, %240, %240 in 0 : vector<8x32xf32>, vector<8x32xf32>, vector<8x32xf32>, vector<8x32xf32> -> vector<32x32xf32>
    %244 = arith.mulf %243, %207 : vector<32x32xf32>
    %cst_54 = arith.constant dense<0.000000e+00> : vector<32x8xf32>
    %245 = tpu.matmul %244, %241, %cst_54 {dimension_numbers = #tpu.dot_dimension_numbers<[1], [1], [0], [0], [0, 0, 1, 0], [], []>} : vector<32x32xf32>, vector<8x32xf32>, vector<32x8xf32> -> vector<32x8xf32>
    %246 = arith.addf %245, %209 : vector<32x8xf32>
    %cst_55 = arith.constant dense<0xFF800000> : vector<32xf32>
    %247 = vector.multi_reduction <maximumf>, %246, %cst_55 [1] : vector<32x8xf32> to vector<32xf32>
    %248 = vector.shape_cast %247 : vector<32xf32> to vector<32x1xf32>
    %249 = vector.broadcast %248 : vector<32x1xf32> to vector<32x8xf32>
    %250 = arith.subf %246, %249 : vector<32x8xf32>
    %251 = math.exp %250 : vector<32x8xf32>
    %cst_56 = arith.constant dense<0.000000e+00> : vector<32xf32>
    %252 = vector.multi_reduction <add>, %251, %cst_56 [1] : vector<32x8xf32> to vector<32xf32>
    %253 = vector.shape_cast %252 : vector<32xf32> to vector<32x1xf32>
    %254 = tpu.reciprocal %253 {approx = true} : vector<32x1xf32> -> vector<32x1xf32>
    %255 = vector.broadcast %254 : vector<32x1xf32> to vector<32x8xf32>
    %256 = arith.mulf %251, %255 : vector<32x8xf32>
    %257 = tpu.concatenate %256, %256, %256, %256 in 1 : vector<32x8xf32>, vector<32x8xf32>, vector<32x8xf32>, vector<32x8xf32> -> vector<32x32xf32>
    %258 = arith.mulf %257, %208 : vector<32x32xf32>
    %259 = tpu.concatenate %242, %242, %242, %242 in 0 : vector<8x32xf32>, vector<8x32xf32>, vector<8x32xf32>, vector<8x32xf32> -> vector<32x32xf32>
    %260 = arith.mulf %259, %210 : vector<32x32xf32>
    %cst_57 = arith.constant dense<0.000000e+00> : vector<32x32xf32>
    %261 = tpu.matmul %258, %260, %cst_57 {dimension_numbers = #tpu.dot_dimension_numbers<[1], [0], [0], [1], [0, 0, 1, 1], [], []>} : vector<32x32xf32>, vector<32x32xf32>, vector<32x32xf32> -> vector<32x32xf32>
    %262 = vector.extract_strided_slice %261 {offsets = [0, 0], sizes = [8, 32], strides = [1, 1]} : vector<32x32xf32> to vector<8x32xf32>
    %263 = vector.extract_strided_slice %261 {offsets = [8, 0], sizes = [8, 32], strides = [1, 1]} : vector<32x32xf32> to vector<8x32xf32>
    %264 = arith.addf %262, %263 : vector<8x32xf32>
    %265 = vector.extract_strided_slice %261 {offsets = [16, 0], sizes = [8, 32], strides = [1, 1]} : vector<32x32xf32> to vector<8x32xf32>
    %266 = arith.addf %264, %265 : vector<8x32xf32>
    %267 = vector.extract_strided_slice %261 {offsets = [24, 0], sizes = [8, 32], strides = [1, 1]} : vector<32x32xf32> to vector<8x32xf32>
    %268 = arith.addf %266, %267 : vector<8x32xf32>
    %269 = tpu.concatenate %239, %268 in 0 : vector<8x32xf32>, vector<8x32xf32> -> vector<16x32xf32>
    %c536_58 = arith.constant 536 : index
    %c96_59 = arith.constant 96 : index
    %270 = vector.load %arg2[%c536_58, %c96_59] : memref<656x128xf32, #tpu.memory_space<vmem>>, vector<33x32xf32>
    %271 = vector.extract_strided_slice %270 {offsets = [0, 0], sizes = [32, 32], strides = [1, 1]} : vector<33x32xf32> to vector<32x32xf32>
    %cst_60 = arith.constant dense<0.000000e+00> : vector<16x32xf32>
    %272 = tpu.matmul %269, %271, %cst_60 {dimension_numbers = #tpu.dot_dimension_numbers<[1], [0], [0], [1], [0, 0, 1, 1], [], []>} : vector<16x32xf32>, vector<32x32xf32>, vector<16x32xf32> -> vector<16x32xf32>
    %273 = vector.extract_strided_slice %270 {offsets = [32, 0], sizes = [1, 32], strides = [1, 1]} : vector<33x32xf32> to vector<1x32xf32>
    %274 = vector.broadcast %273 : vector<1x32xf32> to vector<16x32xf32>
    %275 = arith.addf %272, %274 : vector<16x32xf32>
    %276 = arith.addf %197, %275 : vector<16x32xf32>
    %c648_61 = arith.constant 648 : index
    %c32_62 = arith.constant 32 : index
    %277 = vector.load %arg2[%c648_61, %c32_62] : memref<656x128xf32, #tpu.memory_space<vmem>>, vector<2x32xf32>
    %cst_63 = arith.constant dense<0.000000e+00> : vector<16xf32>
    %278 = vector.multi_reduction <add>, %276, %cst_63 [1] : vector<16x32xf32> to vector<16xf32>
    %279 = vector.shape_cast %278 : vector<16xf32> to vector<16x1xf32>
    %cst_64 = arith.constant 3.200000e+01 : f32
    %280 = vector.broadcast %cst_64 : f32 to vector<16x1xf32>
    %281 = arith.divf %279, %280 : vector<16x1xf32>
    %282 = vector.broadcast %281 : vector<16x1xf32> to vector<16x32xf32>
    %283 = arith.subf %276, %282 : vector<16x32xf32>
    %284 = arith.mulf %283, %283 : vector<16x32xf32>
    %cst_65 = arith.constant dense<0.000000e+00> : vector<16xf32>
    %285 = vector.multi_reduction <add>, %284, %cst_65 [1] : vector<16x32xf32> to vector<16xf32>
    %286 = vector.shape_cast %285 : vector<16xf32> to vector<16x1xf32>
    %cst_66 = arith.constant 3.200000e+01 : f32
    %287 = vector.broadcast %cst_66 : f32 to vector<16x1xf32>
    %288 = arith.divf %286, %287 : vector<16x1xf32>
    %cst_67 = arith.constant 9.99999974E-6 : f32
    %289 = vector.broadcast %cst_67 : f32 to vector<16x1xf32>
    %290 = arith.addf %288, %289 : vector<16x1xf32>
    %291 = math.rsqrt %290 : vector<16x1xf32>
    %292 = vector.broadcast %291 : vector<16x1xf32> to vector<16x32xf32>
    %293 = arith.mulf %283, %292 : vector<16x32xf32>
    %294 = vector.extract_strided_slice %277 {offsets = [0, 0], sizes = [1, 32], strides = [1, 1]} : vector<2x32xf32> to vector<1x32xf32>
    %295 = vector.broadcast %294 : vector<1x32xf32> to vector<16x32xf32>
    %296 = arith.mulf %293, %295 : vector<16x32xf32>
    %297 = vector.extract_strided_slice %277 {offsets = [1, 0], sizes = [1, 32], strides = [1, 1]} : vector<2x32xf32> to vector<1x32xf32>
    %298 = vector.broadcast %297 : vector<1x32xf32> to vector<16x32xf32>
    %299 = arith.addf %296, %298 : vector<16x32xf32>
    %c280 = arith.constant 280 : index
    %c0_68 = arith.constant 0 : index
    %300 = vector.load %arg2[%c280, %c0_68] : memref<656x128xf32, #tpu.memory_space<vmem>>, vector<33x128xf32>
    %301 = vector.extract_strided_slice %300 {offsets = [0, 0], sizes = [32, 128], strides = [1, 1]} : vector<33x128xf32> to vector<32x128xf32>
    %cst_69 = arith.constant dense<0.000000e+00> : vector<16x128xf32>
    %302 = tpu.matmul %299, %301, %cst_69 {dimension_numbers = #tpu.dot_dimension_numbers<[1], [0], [0], [1], [0, 0, 1, 1], [], []>} : vector<16x32xf32>, vector<32x128xf32>, vector<16x128xf32> -> vector<16x128xf32>
    %303 = vector.extract_strided_slice %300 {offsets = [32, 0], sizes = [1, 128], strides = [1, 1]} : vector<33x128xf32> to vector<1x128xf32>
    %304 = vector.broadcast %303 : vector<1x128xf32> to vector<16x128xf32>
    %305 = arith.addf %302, %304 : vector<16x128xf32>
    %cst_70 = arith.constant 5.000000e-01 : f32
    %306 = vector.broadcast %cst_70 : f32 to vector<16x128xf32>
    %307 = arith.mulf %306, %305 : vector<16x128xf32>
    %cst_71 = arith.constant 0.707106769 : f32
    %308 = vector.broadcast %cst_71 : f32 to vector<16x128xf32>
    %309 = arith.mulf %305, %308 : vector<16x128xf32>
    %310 = math.erf %309 : vector<16x128xf32>
    %cst_72 = arith.constant 1.000000e+00 : f32
    %311 = vector.broadcast %cst_72 : f32 to vector<16x128xf32>
    %312 = arith.addf %311, %310 : vector<16x128xf32>
    %313 = arith.mulf %307, %312 : vector<16x128xf32>
    %c360_73 = arith.constant 360 : index
    %c96_74 = arith.constant 96 : index
    %314 = vector.load %arg2[%c360_73, %c96_74] : memref<656x128xf32, #tpu.memory_space<vmem>>, vector<129x32xf32>
    %315 = vector.extract_strided_slice %314 {offsets = [0, 0], sizes = [128, 32], strides = [1, 1]} : vector<129x32xf32> to vector<128x32xf32>
    %cst_75 = arith.constant dense<0.000000e+00> : vector<16x32xf32>
    %316 = tpu.matmul %313, %315, %cst_75 {dimension_numbers = #tpu.dot_dimension_numbers<[1], [0], [0], [1], [0, 0, 1, 1], [], []>} : vector<16x128xf32>, vector<128x32xf32>, vector<16x32xf32> -> vector<16x32xf32>
    %317 = vector.extract_strided_slice %314 {offsets = [128, 0], sizes = [1, 32], strides = [1, 1]} : vector<129x32xf32> to vector<1x32xf32>
    %318 = vector.broadcast %317 : vector<1x32xf32> to vector<16x32xf32>
    %319 = arith.addf %316, %318 : vector<16x32xf32>
    %320 = arith.addf %299, %319 : vector<16x32xf32>
    %c648_76 = arith.constant 648 : index
    %c64_77 = arith.constant 64 : index
    %321 = vector.load %arg2[%c648_76, %c64_77] : memref<656x128xf32, #tpu.memory_space<vmem>>, vector<2x32xf32>
    %cst_78 = arith.constant dense<0.000000e+00> : vector<16xf32>
    %322 = vector.multi_reduction <add>, %320, %cst_78 [1] : vector<16x32xf32> to vector<16xf32>
    %323 = vector.shape_cast %322 : vector<16xf32> to vector<16x1xf32>
    %cst_79 = arith.constant 3.200000e+01 : f32
    %324 = vector.broadcast %cst_79 : f32 to vector<16x1xf32>
    %325 = arith.divf %323, %324 : vector<16x1xf32>
    %326 = vector.broadcast %325 : vector<16x1xf32> to vector<16x32xf32>
    %327 = arith.subf %320, %326 : vector<16x32xf32>
    %328 = arith.mulf %327, %327 : vector<16x32xf32>
    %cst_80 = arith.constant dense<0.000000e+00> : vector<16xf32>
    %329 = vector.multi_reduction <add>, %328, %cst_80 [1] : vector<16x32xf32> to vector<16xf32>
    %330 = vector.shape_cast %329 : vector<16xf32> to vector<16x1xf32>
    %cst_81 = arith.constant 3.200000e+01 : f32
    %331 = vector.broadcast %cst_81 : f32 to vector<16x1xf32>
    %332 = arith.divf %330, %331 : vector<16x1xf32>
    %cst_82 = arith.constant 9.99999974E-6 : f32
    %333 = vector.broadcast %cst_82 : f32 to vector<16x1xf32>
    %334 = arith.addf %332, %333 : vector<16x1xf32>
    %335 = math.rsqrt %334 : vector<16x1xf32>
    %336 = vector.broadcast %335 : vector<16x1xf32> to vector<16x32xf32>
    %337 = arith.mulf %327, %336 : vector<16x32xf32>
    %338 = vector.extract_strided_slice %321 {offsets = [0, 0], sizes = [1, 32], strides = [1, 1]} : vector<2x32xf32> to vector<1x32xf32>
    %339 = vector.broadcast %338 : vector<1x32xf32> to vector<16x32xf32>
    %340 = arith.mulf %337, %339 : vector<16x32xf32>
    %341 = vector.extract_strided_slice %321 {offsets = [1, 0], sizes = [1, 32], strides = [1, 1]} : vector<2x32xf32> to vector<1x32xf32>
    %342 = vector.broadcast %341 : vector<1x32xf32> to vector<16x32xf32>
    %343 = arith.addf %340, %342 : vector<16x32xf32>
    %c648_83 = arith.constant 648 : index
    %c96_84 = arith.constant 96 : index
    %344 = vector.load %arg2[%c648_83, %c96_84] : memref<656x128xf32, #tpu.memory_space<vmem>>, vector<2x32xf32>
    %cst_85 = arith.constant dense<0.000000e+00> : vector<16xf32>
    %345 = vector.multi_reduction <add>, %343, %cst_85 [1] : vector<16x32xf32> to vector<16xf32>
    %346 = vector.shape_cast %345 : vector<16xf32> to vector<16x1xf32>
    %cst_86 = arith.constant 3.200000e+01 : f32
    %347 = vector.broadcast %cst_86 : f32 to vector<16x1xf32>
    %348 = arith.divf %346, %347 : vector<16x1xf32>
    %349 = vector.broadcast %348 : vector<16x1xf32> to vector<16x32xf32>
    %350 = arith.subf %343, %349 : vector<16x32xf32>
    %351 = arith.mulf %350, %350 : vector<16x32xf32>
    %cst_87 = arith.constant dense<0.000000e+00> : vector<16xf32>
    %352 = vector.multi_reduction <add>, %351, %cst_87 [1] : vector<16x32xf32> to vector<16xf32>
    %353 = vector.shape_cast %352 : vector<16xf32> to vector<16x1xf32>
    %cst_88 = arith.constant 3.200000e+01 : f32
    %354 = vector.broadcast %cst_88 : f32 to vector<16x1xf32>
    %355 = arith.divf %353, %354 : vector<16x1xf32>
    %cst_89 = arith.constant 9.99999974E-6 : f32
    %356 = vector.broadcast %cst_89 : f32 to vector<16x1xf32>
    %357 = arith.addf %355, %356 : vector<16x1xf32>
    %358 = math.rsqrt %357 : vector<16x1xf32>
    %359 = vector.broadcast %358 : vector<16x1xf32> to vector<16x32xf32>
    %360 = arith.mulf %350, %359 : vector<16x32xf32>
    %361 = vector.extract_strided_slice %344 {offsets = [0, 0], sizes = [1, 32], strides = [1, 1]} : vector<2x32xf32> to vector<1x32xf32>
    %362 = vector.broadcast %361 : vector<1x32xf32> to vector<16x32xf32>
    %363 = arith.mulf %360, %362 : vector<16x32xf32>
    %364 = vector.extract_strided_slice %344 {offsets = [1, 0], sizes = [1, 32], strides = [1, 1]} : vector<2x32xf32> to vector<1x32xf32>
    %365 = vector.broadcast %364 : vector<1x32xf32> to vector<16x32xf32>
    %366 = arith.addf %363, %365 : vector<16x32xf32>
    %c0_90 = arith.constant 0 : index
    %c0_91 = arith.constant 0 : index
    %367 = vector.load %arg1[%c0_90, %c0_91] : memref<8x2xf32, #tpu.memory_space<vmem>>, vector<8x2xf32>
    %368 = arith.cmpf one, %367, %367 : vector<8x2xf32>
    %cst_92 = arith.constant 0.000000e+00 : f32
    %369 = vector.broadcast %cst_92 : f32 to vector<8x2xf32>
    %370 = arith.select %368, %369, %367 : vector<8x2xi1>, vector<8x2xf32>
    %cst_93 = arith.constant -3.40282347E+38 : f32
    %cst_94 = arith.constant 3.40282347E+38 : f32
    %371 = vector.broadcast %cst_93 : f32 to vector<8x2xf32>
    %372 = arith.maximumf %371, %370 : vector<8x2xf32>
    %373 = vector.broadcast %cst_94 : f32 to vector<8x2xf32>
    %374 = arith.minimumf %373, %372 : vector<8x2xf32>
    %375 = vector.extract_strided_slice %374 {offsets = [7, 0], sizes = [1, 2], strides = [1, 1]} : vector<8x2xf32> to vector<1x2xf32>
    %376 = vector.extract_strided_slice %374 {offsets = [0, 0], sizes = [7, 2], strides = [1, 1]} : vector<8x2xf32> to vector<7x2xf32>
    %377 = tpu.concatenate %375, %376 in 0 : vector<1x2xf32>, vector<7x2xf32> -> vector<8x2xf32>
    %378 = vector.extract_strided_slice %374 {offsets = [1, 0], sizes = [7, 2], strides = [1, 1]} : vector<8x2xf32> to vector<7x2xf32>
    %379 = vector.extract_strided_slice %374 {offsets = [0, 0], sizes = [1, 2], strides = [1, 1]} : vector<8x2xf32> to vector<1x2xf32>
    %380 = tpu.concatenate %378, %379 in 0 : vector<7x2xf32>, vector<1x2xf32> -> vector<8x2xf32>
    %c624_95 = arith.constant 624 : index
    %c0_96 = arith.constant 0 : index
    %381 = vector.load %arg2[%c624_95, %c0_96] : memref<656x128xf32, #tpu.memory_space<vmem>>, vector<3x32xf32>
    %382 = vector.extract_strided_slice %377 {offsets = [0, 0], sizes = [8, 1], strides = [1, 1]} : vector<8x2xf32> to vector<8x1xf32>
    %383 = vector.extract_strided_slice %381 {offsets = [0, 0], sizes = [1, 32], strides = [1, 1]} : vector<3x32xf32> to vector<1x32xf32>
    %384 = vector.broadcast %382 : vector<8x1xf32> to vector<8x32xf32>
    %385 = vector.broadcast %383 : vector<1x32xf32> to vector<8x32xf32>
    %386 = arith.mulf %384, %385 : vector<8x32xf32>
    %387 = vector.extract_strided_slice %374 {offsets = [0, 0], sizes = [8, 1], strides = [1, 1]} : vector<8x2xf32> to vector<8x1xf32>
    %388 = vector.extract_strided_slice %381 {offsets = [1, 0], sizes = [1, 32], strides = [1, 1]} : vector<3x32xf32> to vector<1x32xf32>
    %389 = vector.broadcast %387 : vector<8x1xf32> to vector<8x32xf32>
    %390 = vector.broadcast %388 : vector<1x32xf32> to vector<8x32xf32>
    %391 = arith.mulf %389, %390 : vector<8x32xf32>
    %392 = arith.addf %386, %391 : vector<8x32xf32>
    %393 = vector.extract_strided_slice %380 {offsets = [0, 0], sizes = [8, 1], strides = [1, 1]} : vector<8x2xf32> to vector<8x1xf32>
    %394 = vector.extract_strided_slice %381 {offsets = [2, 0], sizes = [1, 32], strides = [1, 1]} : vector<3x32xf32> to vector<1x32xf32>
    %395 = vector.broadcast %393 : vector<8x1xf32> to vector<8x32xf32>
    %396 = vector.broadcast %394 : vector<1x32xf32> to vector<8x32xf32>
    %397 = arith.mulf %395, %396 : vector<8x32xf32>
    %398 = arith.addf %392, %397 : vector<8x32xf32>
    %399 = vector.extract_strided_slice %377 {offsets = [0, 1], sizes = [8, 1], strides = [1, 1]} : vector<8x2xf32> to vector<8x1xf32>
    %400 = vector.extract_strided_slice %381 {offsets = [0, 0], sizes = [1, 32], strides = [1, 1]} : vector<3x32xf32> to vector<1x32xf32>
    %401 = vector.broadcast %399 : vector<8x1xf32> to vector<8x32xf32>
    %402 = vector.broadcast %400 : vector<1x32xf32> to vector<8x32xf32>
    %403 = arith.mulf %401, %402 : vector<8x32xf32>
    %404 = vector.extract_strided_slice %374 {offsets = [0, 1], sizes = [8, 1], strides = [1, 1]} : vector<8x2xf32> to vector<8x1xf32>
    %405 = vector.extract_strided_slice %381 {offsets = [1, 0], sizes = [1, 32], strides = [1, 1]} : vector<3x32xf32> to vector<1x32xf32>
    %406 = vector.broadcast %404 : vector<8x1xf32> to vector<8x32xf32>
    %407 = vector.broadcast %405 : vector<1x32xf32> to vector<8x32xf32>
    %408 = arith.mulf %406, %407 : vector<8x32xf32>
    %409 = arith.addf %403, %408 : vector<8x32xf32>
    %410 = vector.extract_strided_slice %380 {offsets = [0, 1], sizes = [8, 1], strides = [1, 1]} : vector<8x2xf32> to vector<8x1xf32>
    %411 = vector.extract_strided_slice %381 {offsets = [2, 0], sizes = [1, 32], strides = [1, 1]} : vector<3x32xf32> to vector<1x32xf32>
    %412 = vector.broadcast %410 : vector<8x1xf32> to vector<8x32xf32>
    %413 = vector.broadcast %411 : vector<1x32xf32> to vector<8x32xf32>
    %414 = arith.mulf %412, %413 : vector<8x32xf32>
    %415 = arith.addf %409, %414 : vector<8x32xf32>
    %416 = tpu.concatenate %398, %415 in 0 : vector<8x32xf32>, vector<8x32xf32> -> vector<16x32xf32>
    %c608_97 = arith.constant 608 : index
    %c64_98 = arith.constant 64 : index
    %417 = vector.load %arg2[%c608_97, %c64_98] : memref<656x128xf32, #tpu.memory_space<vmem>>, vector<16x32xf32>
    %418 = arith.addf %416, %417 : vector<16x32xf32>
    %c40 = arith.constant 40 : index
    %c0_99 = arith.constant 0 : index
    %419 = vector.load %arg2[%c40, %c0_99] : memref<656x128xf32, #tpu.memory_space<vmem>>, vector<33x96xf32>
    %420 = vector.extract_strided_slice %419 {offsets = [0, 0], sizes = [32, 96], strides = [1, 1]} : vector<33x96xf32> to vector<32x96xf32>
    %cst_100 = arith.constant dense<0.000000e+00> : vector<16x96xf32>
    %421 = tpu.matmul %418, %420, %cst_100 {dimension_numbers = #tpu.dot_dimension_numbers<[1], [0], [0], [1], [0, 0, 1, 1], [], []>} : vector<16x32xf32>, vector<32x96xf32>, vector<16x96xf32> -> vector<16x96xf32>
    %422 = vector.extract_strided_slice %419 {offsets = [32, 0], sizes = [1, 96], strides = [1, 1]} : vector<33x96xf32> to vector<1x96xf32>
    %423 = vector.broadcast %422 : vector<1x96xf32> to vector<16x96xf32>
    %424 = arith.addf %421, %423 : vector<16x96xf32>
    %425 = vector.extract_strided_slice %424 {offsets = [0, 0], sizes = [16, 32], strides = [1, 1]} : vector<16x96xf32> to vector<16x32xf32>
    %426 = vector.extract_strided_slice %424 {offsets = [0, 32], sizes = [16, 32], strides = [1, 1]} : vector<16x96xf32> to vector<16x32xf32>
    %427 = vector.extract_strided_slice %424 {offsets = [0, 64], sizes = [16, 32], strides = [1, 1]} : vector<16x96xf32> to vector<16x32xf32>
    %c576_101 = arith.constant 576 : index
    %c96_102 = arith.constant 96 : index
    %428 = vector.load %arg2[%c576_101, %c96_102] : memref<656x128xf32, #tpu.memory_space<vmem>>, vector<32x32xf32>
    %c576_103 = arith.constant 576 : index
    %c32_104 = arith.constant 32 : index
    %429 = vector.load %arg2[%c576_103, %c32_104] : memref<656x128xf32, #tpu.memory_space<vmem>>, vector<32x32xf32>
    %c576_105 = arith.constant 576 : index
    %c64_106 = arith.constant 64 : index
    %430 = vector.load %arg2[%c576_105, %c64_106] : memref<656x128xf32, #tpu.memory_space<vmem>>, vector<32x8xf32>
    %c608_107 = arith.constant 608 : index
    %c32_108 = arith.constant 32 : index
    %431 = vector.load %arg2[%c608_107, %c32_108] : memref<656x128xf32, #tpu.memory_space<vmem>>, vector<32x32xf32>
    %c616 = arith.constant 616 : index
    %c0_109 = arith.constant 0 : index
    %432 = vector.load %arg2[%c616, %c0_109] : memref<656x128xf32, #tpu.memory_space<vmem>>, vector<8x32xf32>
    %433 = vector.extract_strided_slice %425 {offsets = [0, 0], sizes = [8, 32], strides = [1, 1]} : vector<16x32xf32> to vector<8x32xf32>
    %434 = vector.extract_strided_slice %426 {offsets = [0, 0], sizes = [8, 32], strides = [1, 1]} : vector<16x32xf32> to vector<8x32xf32>
    %435 = vector.extract_strided_slice %427 {offsets = [0, 0], sizes = [8, 32], strides = [1, 1]} : vector<16x32xf32> to vector<8x32xf32>
    %436 = tpu.concatenate %433, %433, %433, %433 in 0 : vector<8x32xf32>, vector<8x32xf32>, vector<8x32xf32>, vector<8x32xf32> -> vector<32x32xf32>
    %437 = arith.mulf %436, %428 : vector<32x32xf32>
    %cst_110 = arith.constant dense<0.000000e+00> : vector<32x8xf32>
    %438 = tpu.matmul %437, %434, %cst_110 {dimension_numbers = #tpu.dot_dimension_numbers<[1], [1], [0], [0], [0, 0, 1, 0], [], []>} : vector<32x32xf32>, vector<8x32xf32>, vector<32x8xf32> -> vector<32x8xf32>
    %439 = arith.addf %438, %430 : vector<32x8xf32>
    %cst_111 = arith.constant dense<0xFF800000> : vector<32xf32>
    %440 = vector.multi_reduction <maximumf>, %439, %cst_111 [1] : vector<32x8xf32> to vector<32xf32>
    %441 = vector.shape_cast %440 : vector<32xf32> to vector<32x1xf32>
    %442 = vector.broadcast %441 : vector<32x1xf32> to vector<32x8xf32>
    %443 = arith.subf %439, %442 : vector<32x8xf32>
    %444 = math.exp %443 : vector<32x8xf32>
    %cst_112 = arith.constant dense<0.000000e+00> : vector<32xf32>
    %445 = vector.multi_reduction <add>, %444, %cst_112 [1] : vector<32x8xf32> to vector<32xf32>
    %446 = vector.shape_cast %445 : vector<32xf32> to vector<32x1xf32>
    %447 = tpu.reciprocal %446 {approx = true} : vector<32x1xf32> -> vector<32x1xf32>
    %448 = vector.broadcast %447 : vector<32x1xf32> to vector<32x8xf32>
    %449 = arith.mulf %444, %448 : vector<32x8xf32>
    %450 = tpu.concatenate %449, %449, %449, %449 in 1 : vector<32x8xf32>, vector<32x8xf32>, vector<32x8xf32>, vector<32x8xf32> -> vector<32x32xf32>
    %451 = arith.mulf %450, %429 : vector<32x32xf32>
    %452 = vector.extract_strided_slice %435 {offsets = [0, 0], sizes = [8, 8], strides = [1, 1]} : vector<8x32xf32> to vector<8x8xf32>
    %453 = vector.extract_strided_slice %435 {offsets = [0, 8], sizes = [8, 8], strides = [1, 1]} : vector<8x32xf32> to vector<8x8xf32>
    %454 = vector.extract_strided_slice %435 {offsets = [0, 16], sizes = [8, 8], strides = [1, 1]} : vector<8x32xf32> to vector<8x8xf32>
    %455 = vector.extract_strided_slice %435 {offsets = [0, 24], sizes = [8, 8], strides = [1, 1]} : vector<8x32xf32> to vector<8x8xf32>
    %456 = tpu.concatenate %452, %453, %454, %455 in 0 : vector<8x8xf32>, vector<8x8xf32>, vector<8x8xf32>, vector<8x8xf32> -> vector<32x8xf32>
    %cst_113 = arith.constant dense<0.000000e+00> : vector<32x8xf32>
    %457 = tpu.matmul %451, %456, %cst_113 {dimension_numbers = #tpu.dot_dimension_numbers<[1], [0], [0], [1], [0, 0, 1, 1], [], []>} : vector<32x32xf32>, vector<32x8xf32>, vector<32x8xf32> -> vector<32x8xf32>
    %458 = tpu.concatenate %457, %457, %457, %457 in 1 : vector<32x8xf32>, vector<32x8xf32>, vector<32x8xf32>, vector<32x8xf32> -> vector<32x32xf32>
    %459 = arith.mulf %458, %431 : vector<32x32xf32>
    %cst_114 = arith.constant dense<0.000000e+00> : vector<8x32xf32>
    %460 = tpu.matmul %432, %459, %cst_114 {dimension_numbers = #tpu.dot_dimension_numbers<[1], [0], [0], [1], [0, 0, 1, 1], [], []>} : vector<8x32xf32>, vector<32x32xf32>, vector<8x32xf32> -> vector<8x32xf32>
    %461 = vector.extract_strided_slice %425 {offsets = [8, 0], sizes = [8, 32], strides = [1, 1]} : vector<16x32xf32> to vector<8x32xf32>
    %462 = vector.extract_strided_slice %426 {offsets = [8, 0], sizes = [8, 32], strides = [1, 1]} : vector<16x32xf32> to vector<8x32xf32>
    %463 = vector.extract_strided_slice %427 {offsets = [8, 0], sizes = [8, 32], strides = [1, 1]} : vector<16x32xf32> to vector<8x32xf32>
    %464 = tpu.concatenate %461, %461, %461, %461 in 0 : vector<8x32xf32>, vector<8x32xf32>, vector<8x32xf32>, vector<8x32xf32> -> vector<32x32xf32>
    %465 = arith.mulf %464, %428 : vector<32x32xf32>
    %cst_115 = arith.constant dense<0.000000e+00> : vector<32x8xf32>
    %466 = tpu.matmul %465, %462, %cst_115 {dimension_numbers = #tpu.dot_dimension_numbers<[1], [1], [0], [0], [0, 0, 1, 0], [], []>} : vector<32x32xf32>, vector<8x32xf32>, vector<32x8xf32> -> vector<32x8xf32>
    %467 = arith.addf %466, %430 : vector<32x8xf32>
    %cst_116 = arith.constant dense<0xFF800000> : vector<32xf32>
    %468 = vector.multi_reduction <maximumf>, %467, %cst_116 [1] : vector<32x8xf32> to vector<32xf32>
    %469 = vector.shape_cast %468 : vector<32xf32> to vector<32x1xf32>
    %470 = vector.broadcast %469 : vector<32x1xf32> to vector<32x8xf32>
    %471 = arith.subf %467, %470 : vector<32x8xf32>
    %472 = math.exp %471 : vector<32x8xf32>
    %cst_117 = arith.constant dense<0.000000e+00> : vector<32xf32>
    %473 = vector.multi_reduction <add>, %472, %cst_117 [1] : vector<32x8xf32> to vector<32xf32>
    %474 = vector.shape_cast %473 : vector<32xf32> to vector<32x1xf32>
    %475 = tpu.reciprocal %474 {approx = true} : vector<32x1xf32> -> vector<32x1xf32>
    %476 = vector.broadcast %475 : vector<32x1xf32> to vector<32x8xf32>
    %477 = arith.mulf %472, %476 : vector<32x8xf32>
    %478 = tpu.concatenate %477, %477, %477, %477 in 1 : vector<32x8xf32>, vector<32x8xf32>, vector<32x8xf32>, vector<32x8xf32> -> vector<32x32xf32>
    %479 = arith.mulf %478, %429 : vector<32x32xf32>
    %480 = vector.extract_strided_slice %463 {offsets = [0, 0], sizes = [8, 8], strides = [1, 1]} : vector<8x32xf32> to vector<8x8xf32>
    %481 = vector.extract_strided_slice %463 {offsets = [0, 8], sizes = [8, 8], strides = [1, 1]} : vector<8x32xf32> to vector<8x8xf32>
    %482 = vector.extract_strided_slice %463 {offsets = [0, 16], sizes = [8, 8], strides = [1, 1]} : vector<8x32xf32> to vector<8x8xf32>
    %483 = vector.extract_strided_slice %463 {offsets = [0, 24], sizes = [8, 8], strides = [1, 1]} : vector<8x32xf32> to vector<8x8xf32>
    %484 = tpu.concatenate %480, %481, %482, %483 in 0 : vector<8x8xf32>, vector<8x8xf32>, vector<8x8xf32>, vector<8x8xf32> -> vector<32x8xf32>
    %cst_118 = arith.constant dense<0.000000e+00> : vector<32x8xf32>
    %485 = tpu.matmul %479, %484, %cst_118 {dimension_numbers = #tpu.dot_dimension_numbers<[1], [0], [0], [1], [0, 0, 1, 1], [], []>} : vector<32x32xf32>, vector<32x8xf32>, vector<32x8xf32> -> vector<32x8xf32>
    %486 = tpu.concatenate %485, %485, %485, %485 in 1 : vector<32x8xf32>, vector<32x8xf32>, vector<32x8xf32>, vector<32x8xf32> -> vector<32x32xf32>
    %487 = arith.mulf %486, %431 : vector<32x32xf32>
    %cst_119 = arith.constant dense<0.000000e+00> : vector<8x32xf32>
    %488 = tpu.matmul %432, %487, %cst_119 {dimension_numbers = #tpu.dot_dimension_numbers<[1], [0], [0], [1], [0, 0, 1, 1], [], []>} : vector<8x32xf32>, vector<32x32xf32>, vector<8x32xf32> -> vector<8x32xf32>
    %489 = tpu.concatenate %460, %488 in 0 : vector<8x32xf32>, vector<8x32xf32> -> vector<16x32xf32>
    %c496 = arith.constant 496 : index
    %c64_120 = arith.constant 64 : index
    %490 = vector.load %arg2[%c496, %c64_120] : memref<656x128xf32, #tpu.memory_space<vmem>>, vector<33x32xf32>
    %491 = vector.extract_strided_slice %490 {offsets = [0, 0], sizes = [32, 32], strides = [1, 1]} : vector<33x32xf32> to vector<32x32xf32>
    %cst_121 = arith.constant dense<0.000000e+00> : vector<16x32xf32>
    %492 = tpu.matmul %489, %491, %cst_121 {dimension_numbers = #tpu.dot_dimension_numbers<[1], [0], [0], [1], [0, 0, 1, 1], [], []>} : vector<16x32xf32>, vector<32x32xf32>, vector<16x32xf32> -> vector<16x32xf32>
    %493 = vector.extract_strided_slice %490 {offsets = [32, 0], sizes = [1, 32], strides = [1, 1]} : vector<33x32xf32> to vector<1x32xf32>
    %494 = vector.broadcast %493 : vector<1x32xf32> to vector<16x32xf32>
    %495 = arith.addf %492, %494 : vector<16x32xf32>
    %496 = arith.addf %418, %495 : vector<16x32xf32>
    %c624_122 = arith.constant 624 : index
    %c96_123 = arith.constant 96 : index
    %497 = vector.load %arg2[%c624_122, %c96_123] : memref<656x128xf32, #tpu.memory_space<vmem>>, vector<2x32xf32>
    %cst_124 = arith.constant dense<0.000000e+00> : vector<16xf32>
    %498 = vector.multi_reduction <add>, %496, %cst_124 [1] : vector<16x32xf32> to vector<16xf32>
    %499 = vector.shape_cast %498 : vector<16xf32> to vector<16x1xf32>
    %cst_125 = arith.constant 3.200000e+01 : f32
    %500 = vector.broadcast %cst_125 : f32 to vector<16x1xf32>
    %501 = arith.divf %499, %500 : vector<16x1xf32>
    %502 = vector.broadcast %501 : vector<16x1xf32> to vector<16x32xf32>
    %503 = arith.subf %496, %502 : vector<16x32xf32>
    %504 = arith.mulf %503, %503 : vector<16x32xf32>
    %cst_126 = arith.constant dense<0.000000e+00> : vector<16xf32>
    %505 = vector.multi_reduction <add>, %504, %cst_126 [1] : vector<16x32xf32> to vector<16xf32>
    %506 = vector.shape_cast %505 : vector<16xf32> to vector<16x1xf32>
    %cst_127 = arith.constant 3.200000e+01 : f32
    %507 = vector.broadcast %cst_127 : f32 to vector<16x1xf32>
    %508 = arith.divf %506, %507 : vector<16x1xf32>
    %cst_128 = arith.constant 9.99999974E-6 : f32
    %509 = vector.broadcast %cst_128 : f32 to vector<16x1xf32>
    %510 = arith.addf %508, %509 : vector<16x1xf32>
    %511 = math.rsqrt %510 : vector<16x1xf32>
    %512 = vector.broadcast %511 : vector<16x1xf32> to vector<16x32xf32>
    %513 = arith.mulf %503, %512 : vector<16x32xf32>
    %514 = vector.extract_strided_slice %497 {offsets = [0, 0], sizes = [1, 32], strides = [1, 1]} : vector<2x32xf32> to vector<1x32xf32>
    %515 = vector.broadcast %514 : vector<1x32xf32> to vector<16x32xf32>
    %516 = arith.mulf %513, %515 : vector<16x32xf32>
    %517 = vector.extract_strided_slice %497 {offsets = [1, 0], sizes = [1, 32], strides = [1, 1]} : vector<2x32xf32> to vector<1x32xf32>
    %518 = vector.broadcast %517 : vector<1x32xf32> to vector<16x32xf32>
    %519 = arith.addf %516, %518 : vector<16x32xf32>
    %c496_129 = arith.constant 496 : index
    %c32_130 = arith.constant 32 : index
    %520 = vector.load %arg2[%c496_129, %c32_130] : memref<656x128xf32, #tpu.memory_space<vmem>>, vector<33x32xf32>
    %521 = vector.extract_strided_slice %520 {offsets = [0, 0], sizes = [32, 32], strides = [1, 1]} : vector<33x32xf32> to vector<32x32xf32>
    %cst_131 = arith.constant dense<0.000000e+00> : vector<16x32xf32>
    %522 = tpu.matmul %519, %521, %cst_131 {dimension_numbers = #tpu.dot_dimension_numbers<[1], [0], [0], [1], [0, 0, 1, 1], [], []>} : vector<16x32xf32>, vector<32x32xf32>, vector<16x32xf32> -> vector<16x32xf32>
    %523 = vector.extract_strided_slice %520 {offsets = [32, 0], sizes = [1, 32], strides = [1, 1]} : vector<33x32xf32> to vector<1x32xf32>
    %524 = vector.broadcast %523 : vector<1x32xf32> to vector<16x32xf32>
    %525 = arith.addf %522, %524 : vector<16x32xf32>
    %c320 = arith.constant 320 : index
    %c0_132 = arith.constant 0 : index
    %526 = vector.load %arg2[%c320, %c0_132] : memref<656x128xf32, #tpu.memory_space<vmem>>, vector<33x64xf32>
    %527 = vector.extract_strided_slice %526 {offsets = [0, 0], sizes = [32, 64], strides = [1, 1]} : vector<33x64xf32> to vector<32x64xf32>
    %cst_133 = arith.constant dense<0.000000e+00> : vector<16x64xf32>
    %528 = tpu.matmul %366, %527, %cst_133 {dimension_numbers = #tpu.dot_dimension_numbers<[1], [0], [0], [1], [0, 0, 1, 1], [], []>} : vector<16x32xf32>, vector<32x64xf32>, vector<16x64xf32> -> vector<16x64xf32>
    %529 = vector.extract_strided_slice %526 {offsets = [32, 0], sizes = [1, 64], strides = [1, 1]} : vector<33x64xf32> to vector<1x64xf32>
    %530 = vector.broadcast %529 : vector<1x64xf32> to vector<16x64xf32>
    %531 = arith.addf %528, %530 : vector<16x64xf32>
    %532 = vector.extract_strided_slice %531 {offsets = [0, 0], sizes = [16, 32], strides = [1, 1]} : vector<16x64xf32> to vector<16x32xf32>
    %533 = vector.extract_strided_slice %531 {offsets = [0, 32], sizes = [16, 32], strides = [1, 1]} : vector<16x64xf32> to vector<16x32xf32>
    %c576_134 = arith.constant 576 : index
    %c96_135 = arith.constant 96 : index
    %534 = vector.load %arg2[%c576_134, %c96_135] : memref<656x128xf32, #tpu.memory_space<vmem>>, vector<32x32xf32>
    %c576_136 = arith.constant 576 : index
    %c32_137 = arith.constant 32 : index
    %535 = vector.load %arg2[%c576_136, %c32_137] : memref<656x128xf32, #tpu.memory_space<vmem>>, vector<32x32xf32>
    %c576_138 = arith.constant 576 : index
    %c96_139 = arith.constant 96 : index
    %536 = vector.load %arg2[%c576_138, %c96_139] : memref<656x128xf32, #tpu.memory_space<vmem>>, vector<32x32xf32>
    %537 = vector.extract_strided_slice %525 {offsets = [0, 0], sizes = [8, 32], strides = [1, 1]} : vector<16x32xf32> to vector<8x32xf32>
    %538 = vector.extract_strided_slice %532 {offsets = [0, 0], sizes = [8, 32], strides = [1, 1]} : vector<16x32xf32> to vector<8x32xf32>
    %539 = vector.extract_strided_slice %533 {offsets = [0, 0], sizes = [8, 32], strides = [1, 1]} : vector<16x32xf32> to vector<8x32xf32>
    %540 = tpu.concatenate %537, %537, %537, %537 in 0 : vector<8x32xf32>, vector<8x32xf32>, vector<8x32xf32>, vector<8x32xf32> -> vector<32x32xf32>
    %541 = arith.mulf %540, %534 : vector<32x32xf32>
    %cst_140 = arith.constant dense<0.000000e+00> : vector<32x8xf32>
    %542 = tpu.matmul %541, %538, %cst_140 {dimension_numbers = #tpu.dot_dimension_numbers<[1], [1], [0], [0], [0, 0, 1, 0], [], []>} : vector<32x32xf32>, vector<8x32xf32>, vector<32x8xf32> -> vector<32x8xf32>
    %cst_141 = arith.constant dense<0xFF800000> : vector<32xf32>
    %543 = vector.multi_reduction <maximumf>, %542, %cst_141 [1] : vector<32x8xf32> to vector<32xf32>
    %544 = vector.shape_cast %543 : vector<32xf32> to vector<32x1xf32>
    %545 = vector.broadcast %544 : vector<32x1xf32> to vector<32x8xf32>
    %546 = arith.subf %542, %545 : vector<32x8xf32>
    %547 = math.exp %546 : vector<32x8xf32>
    %cst_142 = arith.constant dense<0.000000e+00> : vector<32xf32>
    %548 = vector.multi_reduction <add>, %547, %cst_142 [1] : vector<32x8xf32> to vector<32xf32>
    %549 = vector.shape_cast %548 : vector<32xf32> to vector<32x1xf32>
    %550 = tpu.reciprocal %549 {approx = true} : vector<32x1xf32> -> vector<32x1xf32>
    %551 = vector.broadcast %550 : vector<32x1xf32> to vector<32x8xf32>
    %552 = arith.mulf %547, %551 : vector<32x8xf32>
    %553 = tpu.concatenate %552, %552, %552, %552 in 1 : vector<32x8xf32>, vector<32x8xf32>, vector<32x8xf32>, vector<32x8xf32> -> vector<32x32xf32>
    %554 = arith.mulf %553, %535 : vector<32x32xf32>
    %555 = tpu.concatenate %539, %539, %539, %539 in 0 : vector<8x32xf32>, vector<8x32xf32>, vector<8x32xf32>, vector<8x32xf32> -> vector<32x32xf32>
    %556 = arith.mulf %555, %536 : vector<32x32xf32>
    %cst_143 = arith.constant dense<0.000000e+00> : vector<32x32xf32>
    %557 = tpu.matmul %554, %556, %cst_143 {dimension_numbers = #tpu.dot_dimension_numbers<[1], [0], [0], [1], [0, 0, 1, 1], [], []>} : vector<32x32xf32>, vector<32x32xf32>, vector<32x32xf32> -> vector<32x32xf32>
    %558 = vector.extract_strided_slice %557 {offsets = [0, 0], sizes = [8, 32], strides = [1, 1]} : vector<32x32xf32> to vector<8x32xf32>
    %559 = vector.extract_strided_slice %557 {offsets = [8, 0], sizes = [8, 32], strides = [1, 1]} : vector<32x32xf32> to vector<8x32xf32>
    %560 = arith.addf %558, %559 : vector<8x32xf32>
    %561 = vector.extract_strided_slice %557 {offsets = [16, 0], sizes = [8, 32], strides = [1, 1]} : vector<32x32xf32> to vector<8x32xf32>
    %562 = arith.addf %560, %561 : vector<8x32xf32>
    %563 = vector.extract_strided_slice %557 {offsets = [24, 0], sizes = [8, 32], strides = [1, 1]} : vector<32x32xf32> to vector<8x32xf32>
    %564 = arith.addf %562, %563 : vector<8x32xf32>
    %565 = vector.extract_strided_slice %525 {offsets = [8, 0], sizes = [8, 32], strides = [1, 1]} : vector<16x32xf32> to vector<8x32xf32>
    %566 = vector.extract_strided_slice %532 {offsets = [8, 0], sizes = [8, 32], strides = [1, 1]} : vector<16x32xf32> to vector<8x32xf32>
    %567 = vector.extract_strided_slice %533 {offsets = [8, 0], sizes = [8, 32], strides = [1, 1]} : vector<16x32xf32> to vector<8x32xf32>
    %568 = tpu.concatenate %565, %565, %565, %565 in 0 : vector<8x32xf32>, vector<8x32xf32>, vector<8x32xf32>, vector<8x32xf32> -> vector<32x32xf32>
    %569 = arith.mulf %568, %534 : vector<32x32xf32>
    %cst_144 = arith.constant dense<0.000000e+00> : vector<32x8xf32>
    %570 = tpu.matmul %569, %566, %cst_144 {dimension_numbers = #tpu.dot_dimension_numbers<[1], [1], [0], [0], [0, 0, 1, 0], [], []>} : vector<32x32xf32>, vector<8x32xf32>, vector<32x8xf32> -> vector<32x8xf32>
    %cst_145 = arith.constant dense<0xFF800000> : vector<32xf32>
    %571 = vector.multi_reduction <maximumf>, %570, %cst_145 [1] : vector<32x8xf32> to vector<32xf32>
    %572 = vector.shape_cast %571 : vector<32xf32> to vector<32x1xf32>
    %573 = vector.broadcast %572 : vector<32x1xf32> to vector<32x8xf32>
    %574 = arith.subf %570, %573 : vector<32x8xf32>
    %575 = math.exp %574 : vector<32x8xf32>
    %cst_146 = arith.constant dense<0.000000e+00> : vector<32xf32>
    %576 = vector.multi_reduction <add>, %575, %cst_146 [1] : vector<32x8xf32> to vector<32xf32>
    %577 = vector.shape_cast %576 : vector<32xf32> to vector<32x1xf32>
    %578 = tpu.reciprocal %577 {approx = true} : vector<32x1xf32> -> vector<32x1xf32>
    %579 = vector.broadcast %578 : vector<32x1xf32> to vector<32x8xf32>
    %580 = arith.mulf %575, %579 : vector<32x8xf32>
    %581 = tpu.concatenate %580, %580, %580, %580 in 1 : vector<32x8xf32>, vector<32x8xf32>, vector<32x8xf32>, vector<32x8xf32> -> vector<32x32xf32>
    %582 = arith.mulf %581, %535 : vector<32x32xf32>
    %583 = tpu.concatenate %567, %567, %567, %567 in 0 : vector<8x32xf32>, vector<8x32xf32>, vector<8x32xf32>, vector<8x32xf32> -> vector<32x32xf32>
    %584 = arith.mulf %583, %536 : vector<32x32xf32>
    %cst_147 = arith.constant dense<0.000000e+00> : vector<32x32xf32>
    %585 = tpu.matmul %582, %584, %cst_147 {dimension_numbers = #tpu.dot_dimension_numbers<[1], [0], [0], [1], [0, 0, 1, 1], [], []>} : vector<32x32xf32>, vector<32x32xf32>, vector<32x32xf32> -> vector<32x32xf32>
    %586 = vector.extract_strided_slice %585 {offsets = [0, 0], sizes = [8, 32], strides = [1, 1]} : vector<32x32xf32> to vector<8x32xf32>
    %587 = vector.extract_strided_slice %585 {offsets = [8, 0], sizes = [8, 32], strides = [1, 1]} : vector<32x32xf32> to vector<8x32xf32>
    %588 = arith.addf %586, %587 : vector<8x32xf32>
    %589 = vector.extract_strided_slice %585 {offsets = [16, 0], sizes = [8, 32], strides = [1, 1]} : vector<32x32xf32> to vector<8x32xf32>
    %590 = arith.addf %588, %589 : vector<8x32xf32>
    %591 = vector.extract_strided_slice %585 {offsets = [24, 0], sizes = [8, 32], strides = [1, 1]} : vector<32x32xf32> to vector<8x32xf32>
    %592 = arith.addf %590, %591 : vector<8x32xf32>
    %593 = tpu.concatenate %564, %592 in 0 : vector<8x32xf32>, vector<8x32xf32> -> vector<16x32xf32>
    %c496_148 = arith.constant 496 : index
    %c0_149 = arith.constant 0 : index
    %594 = vector.load %arg2[%c496_148, %c0_149] : memref<656x128xf32, #tpu.memory_space<vmem>>, vector<33x32xf32>
    %595 = vector.extract_strided_slice %594 {offsets = [0, 0], sizes = [32, 32], strides = [1, 1]} : vector<33x32xf32> to vector<32x32xf32>
    %cst_150 = arith.constant dense<0.000000e+00> : vector<16x32xf32>
    %596 = tpu.matmul %593, %595, %cst_150 {dimension_numbers = #tpu.dot_dimension_numbers<[1], [0], [0], [1], [0, 0, 1, 1], [], []>} : vector<16x32xf32>, vector<32x32xf32>, vector<16x32xf32> -> vector<16x32xf32>
    %597 = vector.extract_strided_slice %594 {offsets = [32, 0], sizes = [1, 32], strides = [1, 1]} : vector<33x32xf32> to vector<1x32xf32>
    %598 = vector.broadcast %597 : vector<1x32xf32> to vector<16x32xf32>
    %599 = arith.addf %596, %598 : vector<16x32xf32>
    %600 = arith.addf %519, %599 : vector<16x32xf32>
    %c632 = arith.constant 632 : index
    %c0_151 = arith.constant 0 : index
    %601 = vector.load %arg2[%c632, %c0_151] : memref<656x128xf32, #tpu.memory_space<vmem>>, vector<2x32xf32>
    %cst_152 = arith.constant dense<0.000000e+00> : vector<16xf32>
    %602 = vector.multi_reduction <add>, %600, %cst_152 [1] : vector<16x32xf32> to vector<16xf32>
    %603 = vector.shape_cast %602 : vector<16xf32> to vector<16x1xf32>
    %cst_153 = arith.constant 3.200000e+01 : f32
    %604 = vector.broadcast %cst_153 : f32 to vector<16x1xf32>
    %605 = arith.divf %603, %604 : vector<16x1xf32>
    %606 = vector.broadcast %605 : vector<16x1xf32> to vector<16x32xf32>
    %607 = arith.subf %600, %606 : vector<16x32xf32>
    %608 = arith.mulf %607, %607 : vector<16x32xf32>
    %cst_154 = arith.constant dense<0.000000e+00> : vector<16xf32>
    %609 = vector.multi_reduction <add>, %608, %cst_154 [1] : vector<16x32xf32> to vector<16xf32>
    %610 = vector.shape_cast %609 : vector<16xf32> to vector<16x1xf32>
    %cst_155 = arith.constant 3.200000e+01 : f32
    %611 = vector.broadcast %cst_155 : f32 to vector<16x1xf32>
    %612 = arith.divf %610, %611 : vector<16x1xf32>
    %cst_156 = arith.constant 9.99999974E-6 : f32
    %613 = vector.broadcast %cst_156 : f32 to vector<16x1xf32>
    %614 = arith.addf %612, %613 : vector<16x1xf32>
    %615 = math.rsqrt %614 : vector<16x1xf32>
    %616 = vector.broadcast %615 : vector<16x1xf32> to vector<16x32xf32>
    %617 = arith.mulf %607, %616 : vector<16x32xf32>
    %618 = vector.extract_strided_slice %601 {offsets = [0, 0], sizes = [1, 32], strides = [1, 1]} : vector<2x32xf32> to vector<1x32xf32>
    %619 = vector.broadcast %618 : vector<1x32xf32> to vector<16x32xf32>
    %620 = arith.mulf %617, %619 : vector<16x32xf32>
    %621 = vector.extract_strided_slice %601 {offsets = [1, 0], sizes = [1, 32], strides = [1, 1]} : vector<2x32xf32> to vector<1x32xf32>
    %622 = vector.broadcast %621 : vector<1x32xf32> to vector<16x32xf32>
    %623 = arith.addf %620, %622 : vector<16x32xf32>
    %c0_157 = arith.constant 0 : index
    %c0_158 = arith.constant 0 : index
    %624 = vector.load %arg2[%c0_157, %c0_158] : memref<656x128xf32, #tpu.memory_space<vmem>>, vector<33x128xf32>
    %625 = vector.extract_strided_slice %624 {offsets = [0, 0], sizes = [32, 128], strides = [1, 1]} : vector<33x128xf32> to vector<32x128xf32>
    %cst_159 = arith.constant dense<0.000000e+00> : vector<16x128xf32>
    %626 = tpu.matmul %623, %625, %cst_159 {dimension_numbers = #tpu.dot_dimension_numbers<[1], [0], [0], [1], [0, 0, 1, 1], [], []>} : vector<16x32xf32>, vector<32x128xf32>, vector<16x128xf32> -> vector<16x128xf32>
    %627 = vector.extract_strided_slice %624 {offsets = [32, 0], sizes = [1, 128], strides = [1, 1]} : vector<33x128xf32> to vector<1x128xf32>
    %628 = vector.broadcast %627 : vector<1x128xf32> to vector<16x128xf32>
    %629 = arith.addf %626, %628 : vector<16x128xf32>
    %cst_160 = arith.constant 5.000000e-01 : f32
    %630 = vector.broadcast %cst_160 : f32 to vector<16x128xf32>
    %631 = arith.mulf %630, %629 : vector<16x128xf32>
    %cst_161 = arith.constant 0.707106769 : f32
    %632 = vector.broadcast %cst_161 : f32 to vector<16x128xf32>
    %633 = arith.mulf %629, %632 : vector<16x128xf32>
    %634 = math.erf %633 : vector<16x128xf32>
    %cst_162 = arith.constant 1.000000e+00 : f32
    %635 = vector.broadcast %cst_162 : f32 to vector<16x128xf32>
    %636 = arith.addf %635, %634 : vector<16x128xf32>
    %637 = arith.mulf %631, %636 : vector<16x128xf32>
    %c360_163 = arith.constant 360 : index
    %c0_164 = arith.constant 0 : index
    %638 = vector.load %arg2[%c360_163, %c0_164] : memref<656x128xf32, #tpu.memory_space<vmem>>, vector<129x32xf32>
    %639 = vector.extract_strided_slice %638 {offsets = [0, 0], sizes = [128, 32], strides = [1, 1]} : vector<129x32xf32> to vector<128x32xf32>
    %cst_165 = arith.constant dense<0.000000e+00> : vector<16x32xf32>
    %640 = tpu.matmul %637, %639, %cst_165 {dimension_numbers = #tpu.dot_dimension_numbers<[1], [0], [0], [1], [0, 0, 1, 1], [], []>} : vector<16x128xf32>, vector<128x32xf32>, vector<16x32xf32> -> vector<16x32xf32>
    %641 = vector.extract_strided_slice %638 {offsets = [128, 0], sizes = [1, 32], strides = [1, 1]} : vector<129x32xf32> to vector<1x32xf32>
    %642 = vector.broadcast %641 : vector<1x32xf32> to vector<16x32xf32>
    %643 = arith.addf %640, %642 : vector<16x32xf32>
    %644 = arith.addf %623, %643 : vector<16x32xf32>
    %c632_166 = arith.constant 632 : index
    %c64_167 = arith.constant 64 : index
    %645 = vector.load %arg2[%c632_166, %c64_167] : memref<656x128xf32, #tpu.memory_space<vmem>>, vector<2x32xf32>
    %cst_168 = arith.constant dense<0.000000e+00> : vector<16xf32>
    %646 = vector.multi_reduction <add>, %644, %cst_168 [1] : vector<16x32xf32> to vector<16xf32>
    %647 = vector.shape_cast %646 : vector<16xf32> to vector<16x1xf32>
    %cst_169 = arith.constant 3.200000e+01 : f32
    %648 = vector.broadcast %cst_169 : f32 to vector<16x1xf32>
    %649 = arith.divf %647, %648 : vector<16x1xf32>
    %650 = vector.broadcast %649 : vector<16x1xf32> to vector<16x32xf32>
    %651 = arith.subf %644, %650 : vector<16x32xf32>
    %652 = arith.mulf %651, %651 : vector<16x32xf32>
    %cst_170 = arith.constant dense<0.000000e+00> : vector<16xf32>
    %653 = vector.multi_reduction <add>, %652, %cst_170 [1] : vector<16x32xf32> to vector<16xf32>
    %654 = vector.shape_cast %653 : vector<16xf32> to vector<16x1xf32>
    %cst_171 = arith.constant 3.200000e+01 : f32
    %655 = vector.broadcast %cst_171 : f32 to vector<16x1xf32>
    %656 = arith.divf %654, %655 : vector<16x1xf32>
    %cst_172 = arith.constant 9.99999974E-6 : f32
    %657 = vector.broadcast %cst_172 : f32 to vector<16x1xf32>
    %658 = arith.addf %656, %657 : vector<16x1xf32>
    %659 = math.rsqrt %658 : vector<16x1xf32>
    %660 = vector.broadcast %659 : vector<16x1xf32> to vector<16x32xf32>
    %661 = arith.mulf %651, %660 : vector<16x32xf32>
    %662 = vector.extract_strided_slice %645 {offsets = [0, 0], sizes = [1, 32], strides = [1, 1]} : vector<2x32xf32> to vector<1x32xf32>
    %663 = vector.broadcast %662 : vector<1x32xf32> to vector<16x32xf32>
    %664 = arith.mulf %661, %663 : vector<16x32xf32>
    %665 = vector.extract_strided_slice %645 {offsets = [1, 0], sizes = [1, 32], strides = [1, 1]} : vector<2x32xf32> to vector<1x32xf32>
    %666 = vector.broadcast %665 : vector<1x32xf32> to vector<16x32xf32>
    %667 = arith.addf %664, %666 : vector<16x32xf32>
    %c120 = arith.constant 120 : index
    %c0_173 = arith.constant 0 : index
    %668 = vector.load %arg2[%c120, %c0_173] : memref<656x128xf32, #tpu.memory_space<vmem>>, vector<33x96xf32>
    %669 = vector.extract_strided_slice %668 {offsets = [0, 0], sizes = [32, 96], strides = [1, 1]} : vector<33x96xf32> to vector<32x96xf32>
    %cst_174 = arith.constant dense<0.000000e+00> : vector<16x96xf32>
    %670 = tpu.matmul %667, %669, %cst_174 {dimension_numbers = #tpu.dot_dimension_numbers<[1], [0], [0], [1], [0, 0, 1, 1], [], []>} : vector<16x32xf32>, vector<32x96xf32>, vector<16x96xf32> -> vector<16x96xf32>
    %671 = vector.extract_strided_slice %668 {offsets = [32, 0], sizes = [1, 96], strides = [1, 1]} : vector<33x96xf32> to vector<1x96xf32>
    %672 = vector.broadcast %671 : vector<1x96xf32> to vector<16x96xf32>
    %673 = arith.addf %670, %672 : vector<16x96xf32>
    %674 = vector.extract_strided_slice %673 {offsets = [0, 0], sizes = [16, 32], strides = [1, 1]} : vector<16x96xf32> to vector<16x32xf32>
    %675 = vector.extract_strided_slice %673 {offsets = [0, 32], sizes = [16, 32], strides = [1, 1]} : vector<16x96xf32> to vector<16x32xf32>
    %676 = vector.extract_strided_slice %673 {offsets = [0, 64], sizes = [16, 32], strides = [1, 1]} : vector<16x96xf32> to vector<16x32xf32>
    %c576_175 = arith.constant 576 : index
    %c96_176 = arith.constant 96 : index
    %677 = vector.load %arg2[%c576_175, %c96_176] : memref<656x128xf32, #tpu.memory_space<vmem>>, vector<32x32xf32>
    %c576_177 = arith.constant 576 : index
    %c32_178 = arith.constant 32 : index
    %678 = vector.load %arg2[%c576_177, %c32_178] : memref<656x128xf32, #tpu.memory_space<vmem>>, vector<32x32xf32>
    %c576_179 = arith.constant 576 : index
    %c64_180 = arith.constant 64 : index
    %679 = vector.load %arg2[%c576_179, %c64_180] : memref<656x128xf32, #tpu.memory_space<vmem>>, vector<32x8xf32>
    %c608_181 = arith.constant 608 : index
    %c32_182 = arith.constant 32 : index
    %680 = vector.load %arg2[%c608_181, %c32_182] : memref<656x128xf32, #tpu.memory_space<vmem>>, vector<32x32xf32>
    %c616_183 = arith.constant 616 : index
    %c0_184 = arith.constant 0 : index
    %681 = vector.load %arg2[%c616_183, %c0_184] : memref<656x128xf32, #tpu.memory_space<vmem>>, vector<8x32xf32>
    %682 = vector.extract_strided_slice %674 {offsets = [0, 0], sizes = [8, 32], strides = [1, 1]} : vector<16x32xf32> to vector<8x32xf32>
    %683 = vector.extract_strided_slice %675 {offsets = [0, 0], sizes = [8, 32], strides = [1, 1]} : vector<16x32xf32> to vector<8x32xf32>
    %684 = vector.extract_strided_slice %676 {offsets = [0, 0], sizes = [8, 32], strides = [1, 1]} : vector<16x32xf32> to vector<8x32xf32>
    %685 = tpu.concatenate %682, %682, %682, %682 in 0 : vector<8x32xf32>, vector<8x32xf32>, vector<8x32xf32>, vector<8x32xf32> -> vector<32x32xf32>
    %686 = arith.mulf %685, %677 : vector<32x32xf32>
    %cst_185 = arith.constant dense<0.000000e+00> : vector<32x8xf32>
    %687 = tpu.matmul %686, %683, %cst_185 {dimension_numbers = #tpu.dot_dimension_numbers<[1], [1], [0], [0], [0, 0, 1, 0], [], []>} : vector<32x32xf32>, vector<8x32xf32>, vector<32x8xf32> -> vector<32x8xf32>
    %688 = arith.addf %687, %679 : vector<32x8xf32>
    %cst_186 = arith.constant dense<0xFF800000> : vector<32xf32>
    %689 = vector.multi_reduction <maximumf>, %688, %cst_186 [1] : vector<32x8xf32> to vector<32xf32>
    %690 = vector.shape_cast %689 : vector<32xf32> to vector<32x1xf32>
    %691 = vector.broadcast %690 : vector<32x1xf32> to vector<32x8xf32>
    %692 = arith.subf %688, %691 : vector<32x8xf32>
    %693 = math.exp %692 : vector<32x8xf32>
    %cst_187 = arith.constant dense<0.000000e+00> : vector<32xf32>
    %694 = vector.multi_reduction <add>, %693, %cst_187 [1] : vector<32x8xf32> to vector<32xf32>
    %695 = vector.shape_cast %694 : vector<32xf32> to vector<32x1xf32>
    %696 = tpu.reciprocal %695 {approx = true} : vector<32x1xf32> -> vector<32x1xf32>
    %697 = vector.broadcast %696 : vector<32x1xf32> to vector<32x8xf32>
    %698 = arith.mulf %693, %697 : vector<32x8xf32>
    %699 = tpu.concatenate %698, %698, %698, %698 in 1 : vector<32x8xf32>, vector<32x8xf32>, vector<32x8xf32>, vector<32x8xf32> -> vector<32x32xf32>
    %700 = arith.mulf %699, %678 : vector<32x32xf32>
    %701 = vector.extract_strided_slice %684 {offsets = [0, 0], sizes = [8, 8], strides = [1, 1]} : vector<8x32xf32> to vector<8x8xf32>
    %702 = vector.extract_strided_slice %684 {offsets = [0, 8], sizes = [8, 8], strides = [1, 1]} : vector<8x32xf32> to vector<8x8xf32>
    %703 = vector.extract_strided_slice %684 {offsets = [0, 16], sizes = [8, 8], strides = [1, 1]} : vector<8x32xf32> to vector<8x8xf32>
    %704 = vector.extract_strided_slice %684 {offsets = [0, 24], sizes = [8, 8], strides = [1, 1]} : vector<8x32xf32> to vector<8x8xf32>
    %705 = tpu.concatenate %701, %702, %703, %704 in 0 : vector<8x8xf32>, vector<8x8xf32>, vector<8x8xf32>, vector<8x8xf32> -> vector<32x8xf32>
    %cst_188 = arith.constant dense<0.000000e+00> : vector<32x8xf32>
    %706 = tpu.matmul %700, %705, %cst_188 {dimension_numbers = #tpu.dot_dimension_numbers<[1], [0], [0], [1], [0, 0, 1, 1], [], []>} : vector<32x32xf32>, vector<32x8xf32>, vector<32x8xf32> -> vector<32x8xf32>
    %707 = tpu.concatenate %706, %706, %706, %706 in 1 : vector<32x8xf32>, vector<32x8xf32>, vector<32x8xf32>, vector<32x8xf32> -> vector<32x32xf32>
    %708 = arith.mulf %707, %680 : vector<32x32xf32>
    %cst_189 = arith.constant dense<0.000000e+00> : vector<8x32xf32>
    %709 = tpu.matmul %681, %708, %cst_189 {dimension_numbers = #tpu.dot_dimension_numbers<[1], [0], [0], [1], [0, 0, 1, 1], [], []>} : vector<8x32xf32>, vector<32x32xf32>, vector<8x32xf32> -> vector<8x32xf32>
    %710 = vector.extract_strided_slice %674 {offsets = [8, 0], sizes = [8, 32], strides = [1, 1]} : vector<16x32xf32> to vector<8x32xf32>
    %711 = vector.extract_strided_slice %675 {offsets = [8, 0], sizes = [8, 32], strides = [1, 1]} : vector<16x32xf32> to vector<8x32xf32>
    %712 = vector.extract_strided_slice %676 {offsets = [8, 0], sizes = [8, 32], strides = [1, 1]} : vector<16x32xf32> to vector<8x32xf32>
    %713 = tpu.concatenate %710, %710, %710, %710 in 0 : vector<8x32xf32>, vector<8x32xf32>, vector<8x32xf32>, vector<8x32xf32> -> vector<32x32xf32>
    %714 = arith.mulf %713, %677 : vector<32x32xf32>
    %cst_190 = arith.constant dense<0.000000e+00> : vector<32x8xf32>
    %715 = tpu.matmul %714, %711, %cst_190 {dimension_numbers = #tpu.dot_dimension_numbers<[1], [1], [0], [0], [0, 0, 1, 0], [], []>} : vector<32x32xf32>, vector<8x32xf32>, vector<32x8xf32> -> vector<32x8xf32>
    %716 = arith.addf %715, %679 : vector<32x8xf32>
    %cst_191 = arith.constant dense<0xFF800000> : vector<32xf32>
    %717 = vector.multi_reduction <maximumf>, %716, %cst_191 [1] : vector<32x8xf32> to vector<32xf32>
    %718 = vector.shape_cast %717 : vector<32xf32> to vector<32x1xf32>
    %719 = vector.broadcast %718 : vector<32x1xf32> to vector<32x8xf32>
    %720 = arith.subf %716, %719 : vector<32x8xf32>
    %721 = math.exp %720 : vector<32x8xf32>
    %cst_192 = arith.constant dense<0.000000e+00> : vector<32xf32>
    %722 = vector.multi_reduction <add>, %721, %cst_192 [1] : vector<32x8xf32> to vector<32xf32>
    %723 = vector.shape_cast %722 : vector<32xf32> to vector<32x1xf32>
    %724 = tpu.reciprocal %723 {approx = true} : vector<32x1xf32> -> vector<32x1xf32>
    %725 = vector.broadcast %724 : vector<32x1xf32> to vector<32x8xf32>
    %726 = arith.mulf %721, %725 : vector<32x8xf32>
    %727 = tpu.concatenate %726, %726, %726, %726 in 1 : vector<32x8xf32>, vector<32x8xf32>, vector<32x8xf32>, vector<32x8xf32> -> vector<32x32xf32>
    %728 = arith.mulf %727, %678 : vector<32x32xf32>
    %729 = vector.extract_strided_slice %712 {offsets = [0, 0], sizes = [8, 8], strides = [1, 1]} : vector<8x32xf32> to vector<8x8xf32>
    %730 = vector.extract_strided_slice %712 {offsets = [0, 8], sizes = [8, 8], strides = [1, 1]} : vector<8x32xf32> to vector<8x8xf32>
    %731 = vector.extract_strided_slice %712 {offsets = [0, 16], sizes = [8, 8], strides = [1, 1]} : vector<8x32xf32> to vector<8x8xf32>
    %732 = vector.extract_strided_slice %712 {offsets = [0, 24], sizes = [8, 8], strides = [1, 1]} : vector<8x32xf32> to vector<8x8xf32>
    %733 = tpu.concatenate %729, %730, %731, %732 in 0 : vector<8x8xf32>, vector<8x8xf32>, vector<8x8xf32>, vector<8x8xf32> -> vector<32x8xf32>
    %cst_193 = arith.constant dense<0.000000e+00> : vector<32x8xf32>
    %734 = tpu.matmul %728, %733, %cst_193 {dimension_numbers = #tpu.dot_dimension_numbers<[1], [0], [0], [1], [0, 0, 1, 1], [], []>} : vector<32x32xf32>, vector<32x8xf32>, vector<32x8xf32> -> vector<32x8xf32>
    %735 = tpu.concatenate %734, %734, %734, %734 in 1 : vector<32x8xf32>, vector<32x8xf32>, vector<32x8xf32>, vector<32x8xf32> -> vector<32x32xf32>
    %736 = arith.mulf %735, %680 : vector<32x32xf32>
    %cst_194 = arith.constant dense<0.000000e+00> : vector<8x32xf32>
    %737 = tpu.matmul %681, %736, %cst_194 {dimension_numbers = #tpu.dot_dimension_numbers<[1], [0], [0], [1], [0, 0, 1, 1], [], []>} : vector<8x32xf32>, vector<32x32xf32>, vector<8x32xf32> -> vector<8x32xf32>
    %738 = tpu.concatenate %709, %737 in 0 : vector<8x32xf32>, vector<8x32xf32> -> vector<16x32xf32>
    %c536_195 = arith.constant 536 : index
    %c32_196 = arith.constant 32 : index
    %739 = vector.load %arg2[%c536_195, %c32_196] : memref<656x128xf32, #tpu.memory_space<vmem>>, vector<33x32xf32>
    %740 = vector.extract_strided_slice %739 {offsets = [0, 0], sizes = [32, 32], strides = [1, 1]} : vector<33x32xf32> to vector<32x32xf32>
    %cst_197 = arith.constant dense<0.000000e+00> : vector<16x32xf32>
    %741 = tpu.matmul %738, %740, %cst_197 {dimension_numbers = #tpu.dot_dimension_numbers<[1], [0], [0], [1], [0, 0, 1, 1], [], []>} : vector<16x32xf32>, vector<32x32xf32>, vector<16x32xf32> -> vector<16x32xf32>
    %742 = vector.extract_strided_slice %739 {offsets = [32, 0], sizes = [1, 32], strides = [1, 1]} : vector<33x32xf32> to vector<1x32xf32>
    %743 = vector.broadcast %742 : vector<1x32xf32> to vector<16x32xf32>
    %744 = arith.addf %741, %743 : vector<16x32xf32>
    %745 = arith.addf %667, %744 : vector<16x32xf32>
    %c632_198 = arith.constant 632 : index
    %c96_199 = arith.constant 96 : index
    %746 = vector.load %arg2[%c632_198, %c96_199] : memref<656x128xf32, #tpu.memory_space<vmem>>, vector<2x32xf32>
    %cst_200 = arith.constant dense<0.000000e+00> : vector<16xf32>
    %747 = vector.multi_reduction <add>, %745, %cst_200 [1] : vector<16x32xf32> to vector<16xf32>
    %748 = vector.shape_cast %747 : vector<16xf32> to vector<16x1xf32>
    %cst_201 = arith.constant 3.200000e+01 : f32
    %749 = vector.broadcast %cst_201 : f32 to vector<16x1xf32>
    %750 = arith.divf %748, %749 : vector<16x1xf32>
    %751 = vector.broadcast %750 : vector<16x1xf32> to vector<16x32xf32>
    %752 = arith.subf %745, %751 : vector<16x32xf32>
    %753 = arith.mulf %752, %752 : vector<16x32xf32>
    %cst_202 = arith.constant dense<0.000000e+00> : vector<16xf32>
    %754 = vector.multi_reduction <add>, %753, %cst_202 [1] : vector<16x32xf32> to vector<16xf32>
    %755 = vector.shape_cast %754 : vector<16xf32> to vector<16x1xf32>
    %cst_203 = arith.constant 3.200000e+01 : f32
    %756 = vector.broadcast %cst_203 : f32 to vector<16x1xf32>
    %757 = arith.divf %755, %756 : vector<16x1xf32>
    %cst_204 = arith.constant 9.99999974E-6 : f32
    %758 = vector.broadcast %cst_204 : f32 to vector<16x1xf32>
    %759 = arith.addf %757, %758 : vector<16x1xf32>
    %760 = math.rsqrt %759 : vector<16x1xf32>
    %761 = vector.broadcast %760 : vector<16x1xf32> to vector<16x32xf32>
    %762 = arith.mulf %752, %761 : vector<16x32xf32>
    %763 = vector.extract_strided_slice %746 {offsets = [0, 0], sizes = [1, 32], strides = [1, 1]} : vector<2x32xf32> to vector<1x32xf32>
    %764 = vector.broadcast %763 : vector<1x32xf32> to vector<16x32xf32>
    %765 = arith.mulf %762, %764 : vector<16x32xf32>
    %766 = vector.extract_strided_slice %746 {offsets = [1, 0], sizes = [1, 32], strides = [1, 1]} : vector<2x32xf32> to vector<1x32xf32>
    %767 = vector.broadcast %766 : vector<1x32xf32> to vector<16x32xf32>
    %768 = arith.addf %765, %767 : vector<16x32xf32>
    %c536_205 = arith.constant 536 : index
    %c0_206 = arith.constant 0 : index
    %769 = vector.load %arg2[%c536_205, %c0_206] : memref<656x128xf32, #tpu.memory_space<vmem>>, vector<33x32xf32>
    %770 = vector.extract_strided_slice %769 {offsets = [0, 0], sizes = [32, 32], strides = [1, 1]} : vector<33x32xf32> to vector<32x32xf32>
    %cst_207 = arith.constant dense<0.000000e+00> : vector<16x32xf32>
    %771 = tpu.matmul %768, %770, %cst_207 {dimension_numbers = #tpu.dot_dimension_numbers<[1], [0], [0], [1], [0, 0, 1, 1], [], []>} : vector<16x32xf32>, vector<32x32xf32>, vector<16x32xf32> -> vector<16x32xf32>
    %772 = vector.extract_strided_slice %769 {offsets = [32, 0], sizes = [1, 32], strides = [1, 1]} : vector<33x32xf32> to vector<1x32xf32>
    %773 = vector.broadcast %772 : vector<1x32xf32> to vector<16x32xf32>
    %774 = arith.addf %771, %773 : vector<16x32xf32>
    %c320_208 = arith.constant 320 : index
    %c64_209 = arith.constant 64 : index
    %775 = vector.load %arg2[%c320_208, %c64_209] : memref<656x128xf32, #tpu.memory_space<vmem>>, vector<33x64xf32>
    %776 = vector.extract_strided_slice %775 {offsets = [0, 0], sizes = [32, 64], strides = [1, 1]} : vector<33x64xf32> to vector<32x64xf32>
    %cst_210 = arith.constant dense<0.000000e+00> : vector<16x64xf32>
    %777 = tpu.matmul %366, %776, %cst_210 {dimension_numbers = #tpu.dot_dimension_numbers<[1], [0], [0], [1], [0, 0, 1, 1], [], []>} : vector<16x32xf32>, vector<32x64xf32>, vector<16x64xf32> -> vector<16x64xf32>
    %778 = vector.extract_strided_slice %775 {offsets = [32, 0], sizes = [1, 64], strides = [1, 1]} : vector<33x64xf32> to vector<1x64xf32>
    %779 = vector.broadcast %778 : vector<1x64xf32> to vector<16x64xf32>
    %780 = arith.addf %777, %779 : vector<16x64xf32>
    %781 = vector.extract_strided_slice %780 {offsets = [0, 0], sizes = [16, 32], strides = [1, 1]} : vector<16x64xf32> to vector<16x32xf32>
    %782 = vector.extract_strided_slice %780 {offsets = [0, 32], sizes = [16, 32], strides = [1, 1]} : vector<16x64xf32> to vector<16x32xf32>
    %c576_211 = arith.constant 576 : index
    %c96_212 = arith.constant 96 : index
    %783 = vector.load %arg2[%c576_211, %c96_212] : memref<656x128xf32, #tpu.memory_space<vmem>>, vector<32x32xf32>
    %c576_213 = arith.constant 576 : index
    %c32_214 = arith.constant 32 : index
    %784 = vector.load %arg2[%c576_213, %c32_214] : memref<656x128xf32, #tpu.memory_space<vmem>>, vector<32x32xf32>
    %c576_215 = arith.constant 576 : index
    %c96_216 = arith.constant 96 : index
    %785 = vector.load %arg2[%c576_215, %c96_216] : memref<656x128xf32, #tpu.memory_space<vmem>>, vector<32x32xf32>
    %786 = vector.extract_strided_slice %774 {offsets = [0, 0], sizes = [8, 32], strides = [1, 1]} : vector<16x32xf32> to vector<8x32xf32>
    %787 = vector.extract_strided_slice %781 {offsets = [0, 0], sizes = [8, 32], strides = [1, 1]} : vector<16x32xf32> to vector<8x32xf32>
    %788 = vector.extract_strided_slice %782 {offsets = [0, 0], sizes = [8, 32], strides = [1, 1]} : vector<16x32xf32> to vector<8x32xf32>
    %789 = tpu.concatenate %786, %786, %786, %786 in 0 : vector<8x32xf32>, vector<8x32xf32>, vector<8x32xf32>, vector<8x32xf32> -> vector<32x32xf32>
    %790 = arith.mulf %789, %783 : vector<32x32xf32>
    %cst_217 = arith.constant dense<0.000000e+00> : vector<32x8xf32>
    %791 = tpu.matmul %790, %787, %cst_217 {dimension_numbers = #tpu.dot_dimension_numbers<[1], [1], [0], [0], [0, 0, 1, 0], [], []>} : vector<32x32xf32>, vector<8x32xf32>, vector<32x8xf32> -> vector<32x8xf32>
    %cst_218 = arith.constant dense<0xFF800000> : vector<32xf32>
    %792 = vector.multi_reduction <maximumf>, %791, %cst_218 [1] : vector<32x8xf32> to vector<32xf32>
    %793 = vector.shape_cast %792 : vector<32xf32> to vector<32x1xf32>
    %794 = vector.broadcast %793 : vector<32x1xf32> to vector<32x8xf32>
    %795 = arith.subf %791, %794 : vector<32x8xf32>
    %796 = math.exp %795 : vector<32x8xf32>
    %cst_219 = arith.constant dense<0.000000e+00> : vector<32xf32>
    %797 = vector.multi_reduction <add>, %796, %cst_219 [1] : vector<32x8xf32> to vector<32xf32>
    %798 = vector.shape_cast %797 : vector<32xf32> to vector<32x1xf32>
    %799 = tpu.reciprocal %798 {approx = true} : vector<32x1xf32> -> vector<32x1xf32>
    %800 = vector.broadcast %799 : vector<32x1xf32> to vector<32x8xf32>
    %801 = arith.mulf %796, %800 : vector<32x8xf32>
    %802 = tpu.concatenate %801, %801, %801, %801 in 1 : vector<32x8xf32>, vector<32x8xf32>, vector<32x8xf32>, vector<32x8xf32> -> vector<32x32xf32>
    %803 = arith.mulf %802, %784 : vector<32x32xf32>
    %804 = tpu.concatenate %788, %788, %788, %788 in 0 : vector<8x32xf32>, vector<8x32xf32>, vector<8x32xf32>, vector<8x32xf32> -> vector<32x32xf32>
    %805 = arith.mulf %804, %785 : vector<32x32xf32>
    %cst_220 = arith.constant dense<0.000000e+00> : vector<32x32xf32>
    %806 = tpu.matmul %803, %805, %cst_220 {dimension_numbers = #tpu.dot_dimension_numbers<[1], [0], [0], [1], [0, 0, 1, 1], [], []>} : vector<32x32xf32>, vector<32x32xf32>, vector<32x32xf32> -> vector<32x32xf32>
    %807 = vector.extract_strided_slice %806 {offsets = [0, 0], sizes = [8, 32], strides = [1, 1]} : vector<32x32xf32> to vector<8x32xf32>
    %808 = vector.extract_strided_slice %806 {offsets = [8, 0], sizes = [8, 32], strides = [1, 1]} : vector<32x32xf32> to vector<8x32xf32>
    %809 = arith.addf %807, %808 : vector<8x32xf32>
    %810 = vector.extract_strided_slice %806 {offsets = [16, 0], sizes = [8, 32], strides = [1, 1]} : vector<32x32xf32> to vector<8x32xf32>
    %811 = arith.addf %809, %810 : vector<8x32xf32>
    %812 = vector.extract_strided_slice %806 {offsets = [24, 0], sizes = [8, 32], strides = [1, 1]} : vector<32x32xf32> to vector<8x32xf32>
    %813 = arith.addf %811, %812 : vector<8x32xf32>
    %814 = vector.extract_strided_slice %774 {offsets = [8, 0], sizes = [8, 32], strides = [1, 1]} : vector<16x32xf32> to vector<8x32xf32>
    %815 = vector.extract_strided_slice %781 {offsets = [8, 0], sizes = [8, 32], strides = [1, 1]} : vector<16x32xf32> to vector<8x32xf32>
    %816 = vector.extract_strided_slice %782 {offsets = [8, 0], sizes = [8, 32], strides = [1, 1]} : vector<16x32xf32> to vector<8x32xf32>
    %817 = tpu.concatenate %814, %814, %814, %814 in 0 : vector<8x32xf32>, vector<8x32xf32>, vector<8x32xf32>, vector<8x32xf32> -> vector<32x32xf32>
    %818 = arith.mulf %817, %783 : vector<32x32xf32>
    %cst_221 = arith.constant dense<0.000000e+00> : vector<32x8xf32>
    %819 = tpu.matmul %818, %815, %cst_221 {dimension_numbers = #tpu.dot_dimension_numbers<[1], [1], [0], [0], [0, 0, 1, 0], [], []>} : vector<32x32xf32>, vector<8x32xf32>, vector<32x8xf32> -> vector<32x8xf32>
    %cst_222 = arith.constant dense<0xFF800000> : vector<32xf32>
    %820 = vector.multi_reduction <maximumf>, %819, %cst_222 [1] : vector<32x8xf32> to vector<32xf32>
    %821 = vector.shape_cast %820 : vector<32xf32> to vector<32x1xf32>
    %822 = vector.broadcast %821 : vector<32x1xf32> to vector<32x8xf32>
    %823 = arith.subf %819, %822 : vector<32x8xf32>
    %824 = math.exp %823 : vector<32x8xf32>
    %cst_223 = arith.constant dense<0.000000e+00> : vector<32xf32>
    %825 = vector.multi_reduction <add>, %824, %cst_223 [1] : vector<32x8xf32> to vector<32xf32>
    %826 = vector.shape_cast %825 : vector<32xf32> to vector<32x1xf32>
    %827 = tpu.reciprocal %826 {approx = true} : vector<32x1xf32> -> vector<32x1xf32>
    %828 = vector.broadcast %827 : vector<32x1xf32> to vector<32x8xf32>
    %829 = arith.mulf %824, %828 : vector<32x8xf32>
    %830 = tpu.concatenate %829, %829, %829, %829 in 1 : vector<32x8xf32>, vector<32x8xf32>, vector<32x8xf32>, vector<32x8xf32> -> vector<32x32xf32>
    %831 = arith.mulf %830, %784 : vector<32x32xf32>
    %832 = tpu.concatenate %816, %816, %816, %816 in 0 : vector<8x32xf32>, vector<8x32xf32>, vector<8x32xf32>, vector<8x32xf32> -> vector<32x32xf32>
    %833 = arith.mulf %832, %785 : vector<32x32xf32>
    %cst_224 = arith.constant dense<0.000000e+00> : vector<32x32xf32>
    %834 = tpu.matmul %831, %833, %cst_224 {dimension_numbers = #tpu.dot_dimension_numbers<[1], [0], [0], [1], [0, 0, 1, 1], [], []>} : vector<32x32xf32>, vector<32x32xf32>, vector<32x32xf32> -> vector<32x32xf32>
    %835 = vector.extract_strided_slice %834 {offsets = [0, 0], sizes = [8, 32], strides = [1, 1]} : vector<32x32xf32> to vector<8x32xf32>
    %836 = vector.extract_strided_slice %834 {offsets = [8, 0], sizes = [8, 32], strides = [1, 1]} : vector<32x32xf32> to vector<8x32xf32>
    %837 = arith.addf %835, %836 : vector<8x32xf32>
    %838 = vector.extract_strided_slice %834 {offsets = [16, 0], sizes = [8, 32], strides = [1, 1]} : vector<32x32xf32> to vector<8x32xf32>
    %839 = arith.addf %837, %838 : vector<8x32xf32>
    %840 = vector.extract_strided_slice %834 {offsets = [24, 0], sizes = [8, 32], strides = [1, 1]} : vector<32x32xf32> to vector<8x32xf32>
    %841 = arith.addf %839, %840 : vector<8x32xf32>
    %842 = tpu.concatenate %813, %841 in 0 : vector<8x32xf32>, vector<8x32xf32> -> vector<16x32xf32>
    %c496_225 = arith.constant 496 : index
    %c96_226 = arith.constant 96 : index
    %843 = vector.load %arg2[%c496_225, %c96_226] : memref<656x128xf32, #tpu.memory_space<vmem>>, vector<33x32xf32>
    %844 = vector.extract_strided_slice %843 {offsets = [0, 0], sizes = [32, 32], strides = [1, 1]} : vector<33x32xf32> to vector<32x32xf32>
    %cst_227 = arith.constant dense<0.000000e+00> : vector<16x32xf32>
    %845 = tpu.matmul %842, %844, %cst_227 {dimension_numbers = #tpu.dot_dimension_numbers<[1], [0], [0], [1], [0, 0, 1, 1], [], []>} : vector<16x32xf32>, vector<32x32xf32>, vector<16x32xf32> -> vector<16x32xf32>
    %846 = vector.extract_strided_slice %843 {offsets = [32, 0], sizes = [1, 32], strides = [1, 1]} : vector<33x32xf32> to vector<1x32xf32>
    %847 = vector.broadcast %846 : vector<1x32xf32> to vector<16x32xf32>
    %848 = arith.addf %845, %847 : vector<16x32xf32>
    %849 = arith.addf %768, %848 : vector<16x32xf32>
    %c640_228 = arith.constant 640 : index
    %c0_229 = arith.constant 0 : index
    %850 = vector.load %arg2[%c640_228, %c0_229] : memref<656x128xf32, #tpu.memory_space<vmem>>, vector<2x32xf32>
    %cst_230 = arith.constant dense<0.000000e+00> : vector<16xf32>
    %851 = vector.multi_reduction <add>, %849, %cst_230 [1] : vector<16x32xf32> to vector<16xf32>
    %852 = vector.shape_cast %851 : vector<16xf32> to vector<16x1xf32>
    %cst_231 = arith.constant 3.200000e+01 : f32
    %853 = vector.broadcast %cst_231 : f32 to vector<16x1xf32>
    %854 = arith.divf %852, %853 : vector<16x1xf32>
    %855 = vector.broadcast %854 : vector<16x1xf32> to vector<16x32xf32>
    %856 = arith.subf %849, %855 : vector<16x32xf32>
    %857 = arith.mulf %856, %856 : vector<16x32xf32>
    %cst_232 = arith.constant dense<0.000000e+00> : vector<16xf32>
    %858 = vector.multi_reduction <add>, %857, %cst_232 [1] : vector<16x32xf32> to vector<16xf32>
    %859 = vector.shape_cast %858 : vector<16xf32> to vector<16x1xf32>
    %cst_233 = arith.constant 3.200000e+01 : f32
    %860 = vector.broadcast %cst_233 : f32 to vector<16x1xf32>
    %861 = arith.divf %859, %860 : vector<16x1xf32>
    %cst_234 = arith.constant 9.99999974E-6 : f32
    %862 = vector.broadcast %cst_234 : f32 to vector<16x1xf32>
    %863 = arith.addf %861, %862 : vector<16x1xf32>
    %864 = math.rsqrt %863 : vector<16x1xf32>
    %865 = vector.broadcast %864 : vector<16x1xf32> to vector<16x32xf32>
    %866 = arith.mulf %856, %865 : vector<16x32xf32>
    %867 = vector.extract_strided_slice %850 {offsets = [0, 0], sizes = [1, 32], strides = [1, 1]} : vector<2x32xf32> to vector<1x32xf32>
    %868 = vector.broadcast %867 : vector<1x32xf32> to vector<16x32xf32>
    %869 = arith.mulf %866, %868 : vector<16x32xf32>
    %870 = vector.extract_strided_slice %850 {offsets = [1, 0], sizes = [1, 32], strides = [1, 1]} : vector<2x32xf32> to vector<1x32xf32>
    %871 = vector.broadcast %870 : vector<1x32xf32> to vector<16x32xf32>
    %872 = arith.addf %869, %871 : vector<16x32xf32>
    %c80 = arith.constant 80 : index
    %c0_235 = arith.constant 0 : index
    %873 = vector.load %arg2[%c80, %c0_235] : memref<656x128xf32, #tpu.memory_space<vmem>>, vector<33x128xf32>
    %874 = vector.extract_strided_slice %873 {offsets = [0, 0], sizes = [32, 128], strides = [1, 1]} : vector<33x128xf32> to vector<32x128xf32>
    %cst_236 = arith.constant dense<0.000000e+00> : vector<16x128xf32>
    %875 = tpu.matmul %872, %874, %cst_236 {dimension_numbers = #tpu.dot_dimension_numbers<[1], [0], [0], [1], [0, 0, 1, 1], [], []>} : vector<16x32xf32>, vector<32x128xf32>, vector<16x128xf32> -> vector<16x128xf32>
    %876 = vector.extract_strided_slice %873 {offsets = [32, 0], sizes = [1, 128], strides = [1, 1]} : vector<33x128xf32> to vector<1x128xf32>
    %877 = vector.broadcast %876 : vector<1x128xf32> to vector<16x128xf32>
    %878 = arith.addf %875, %877 : vector<16x128xf32>
    %cst_237 = arith.constant 5.000000e-01 : f32
    %879 = vector.broadcast %cst_237 : f32 to vector<16x128xf32>
    %880 = arith.mulf %879, %878 : vector<16x128xf32>
    %cst_238 = arith.constant 0.707106769 : f32
    %881 = vector.broadcast %cst_238 : f32 to vector<16x128xf32>
    %882 = arith.mulf %878, %881 : vector<16x128xf32>
    %883 = math.erf %882 : vector<16x128xf32>
    %cst_239 = arith.constant 1.000000e+00 : f32
    %884 = vector.broadcast %cst_239 : f32 to vector<16x128xf32>
    %885 = arith.addf %884, %883 : vector<16x128xf32>
    %886 = arith.mulf %880, %885 : vector<16x128xf32>
    %c360_240 = arith.constant 360 : index
    %c32_241 = arith.constant 32 : index
    %887 = vector.load %arg2[%c360_240, %c32_241] : memref<656x128xf32, #tpu.memory_space<vmem>>, vector<129x32xf32>
    %888 = vector.extract_strided_slice %887 {offsets = [0, 0], sizes = [128, 32], strides = [1, 1]} : vector<129x32xf32> to vector<128x32xf32>
    %cst_242 = arith.constant dense<0.000000e+00> : vector<16x32xf32>
    %889 = tpu.matmul %886, %888, %cst_242 {dimension_numbers = #tpu.dot_dimension_numbers<[1], [0], [0], [1], [0, 0, 1, 1], [], []>} : vector<16x128xf32>, vector<128x32xf32>, vector<16x32xf32> -> vector<16x32xf32>
    %890 = vector.extract_strided_slice %887 {offsets = [128, 0], sizes = [1, 32], strides = [1, 1]} : vector<129x32xf32> to vector<1x32xf32>
    %891 = vector.broadcast %890 : vector<1x32xf32> to vector<16x32xf32>
    %892 = arith.addf %889, %891 : vector<16x32xf32>
    %893 = arith.addf %872, %892 : vector<16x32xf32>
    %c640_243 = arith.constant 640 : index
    %c32_244 = arith.constant 32 : index
    %894 = vector.load %arg2[%c640_243, %c32_244] : memref<656x128xf32, #tpu.memory_space<vmem>>, vector<2x32xf32>
    %cst_245 = arith.constant dense<0.000000e+00> : vector<16xf32>
    %895 = vector.multi_reduction <add>, %893, %cst_245 [1] : vector<16x32xf32> to vector<16xf32>
    %896 = vector.shape_cast %895 : vector<16xf32> to vector<16x1xf32>
    %cst_246 = arith.constant 3.200000e+01 : f32
    %897 = vector.broadcast %cst_246 : f32 to vector<16x1xf32>
    %898 = arith.divf %896, %897 : vector<16x1xf32>
    %899 = vector.broadcast %898 : vector<16x1xf32> to vector<16x32xf32>
    %900 = arith.subf %893, %899 : vector<16x32xf32>
    %901 = arith.mulf %900, %900 : vector<16x32xf32>
    %cst_247 = arith.constant dense<0.000000e+00> : vector<16xf32>
    %902 = vector.multi_reduction <add>, %901, %cst_247 [1] : vector<16x32xf32> to vector<16xf32>
    %903 = vector.shape_cast %902 : vector<16xf32> to vector<16x1xf32>
    %cst_248 = arith.constant 3.200000e+01 : f32
    %904 = vector.broadcast %cst_248 : f32 to vector<16x1xf32>
    %905 = arith.divf %903, %904 : vector<16x1xf32>
    %cst_249 = arith.constant 9.99999974E-6 : f32
    %906 = vector.broadcast %cst_249 : f32 to vector<16x1xf32>
    %907 = arith.addf %905, %906 : vector<16x1xf32>
    %908 = math.rsqrt %907 : vector<16x1xf32>
    %909 = vector.broadcast %908 : vector<16x1xf32> to vector<16x32xf32>
    %910 = arith.mulf %900, %909 : vector<16x32xf32>
    %911 = vector.extract_strided_slice %894 {offsets = [0, 0], sizes = [1, 32], strides = [1, 1]} : vector<2x32xf32> to vector<1x32xf32>
    %912 = vector.broadcast %911 : vector<1x32xf32> to vector<16x32xf32>
    %913 = arith.mulf %910, %912 : vector<16x32xf32>
    %914 = vector.extract_strided_slice %894 {offsets = [1, 0], sizes = [1, 32], strides = [1, 1]} : vector<2x32xf32> to vector<1x32xf32>
    %915 = vector.broadcast %914 : vector<1x32xf32> to vector<16x32xf32>
    %916 = arith.addf %913, %915 : vector<16x32xf32>
    %c640_250 = arith.constant 640 : index
    %c64_251 = arith.constant 64 : index
    %917 = vector.load %arg2[%c640_250, %c64_251] : memref<656x128xf32, #tpu.memory_space<vmem>>, vector<2x32xf32>
    %cst_252 = arith.constant dense<0.000000e+00> : vector<16xf32>
    %918 = vector.multi_reduction <add>, %916, %cst_252 [1] : vector<16x32xf32> to vector<16xf32>
    %919 = vector.shape_cast %918 : vector<16xf32> to vector<16x1xf32>
    %cst_253 = arith.constant 3.200000e+01 : f32
    %920 = vector.broadcast %cst_253 : f32 to vector<16x1xf32>
    %921 = arith.divf %919, %920 : vector<16x1xf32>
    %922 = vector.broadcast %921 : vector<16x1xf32> to vector<16x32xf32>
    %923 = arith.subf %916, %922 : vector<16x32xf32>
    %924 = arith.mulf %923, %923 : vector<16x32xf32>
    %cst_254 = arith.constant dense<0.000000e+00> : vector<16xf32>
    %925 = vector.multi_reduction <add>, %924, %cst_254 [1] : vector<16x32xf32> to vector<16xf32>
    %926 = vector.shape_cast %925 : vector<16xf32> to vector<16x1xf32>
    %cst_255 = arith.constant 3.200000e+01 : f32
    %927 = vector.broadcast %cst_255 : f32 to vector<16x1xf32>
    %928 = arith.divf %926, %927 : vector<16x1xf32>
    %cst_256 = arith.constant 9.99999974E-6 : f32
    %929 = vector.broadcast %cst_256 : f32 to vector<16x1xf32>
    %930 = arith.addf %928, %929 : vector<16x1xf32>
    %931 = math.rsqrt %930 : vector<16x1xf32>
    %932 = vector.broadcast %931 : vector<16x1xf32> to vector<16x32xf32>
    %933 = arith.mulf %923, %932 : vector<16x32xf32>
    %934 = vector.extract_strided_slice %917 {offsets = [0, 0], sizes = [1, 32], strides = [1, 1]} : vector<2x32xf32> to vector<1x32xf32>
    %935 = vector.broadcast %934 : vector<1x32xf32> to vector<16x32xf32>
    %936 = arith.mulf %933, %935 : vector<16x32xf32>
    %937 = vector.extract_strided_slice %917 {offsets = [1, 0], sizes = [1, 32], strides = [1, 1]} : vector<2x32xf32> to vector<1x32xf32>
    %938 = vector.broadcast %937 : vector<1x32xf32> to vector<16x32xf32>
    %939 = arith.addf %936, %938 : vector<16x32xf32>
    %c576_257 = arith.constant 576 : index
    %c0_258 = arith.constant 0 : index
    %940 = vector.load %arg2[%c576_257, %c0_258] : memref<656x128xf32, #tpu.memory_space<vmem>>, vector<33x1xf32>
    %941 = vector.extract_strided_slice %940 {offsets = [0, 0], sizes = [32, 1], strides = [1, 1]} : vector<33x1xf32> to vector<32x1xf32>
    %cst_259 = arith.constant dense<0.000000e+00> : vector<16x1xf32>
    %942 = tpu.matmul %939, %941, %cst_259 {dimension_numbers = #tpu.dot_dimension_numbers<[1], [0], [0], [1], [0, 0, 1, 1], [], []>} : vector<16x32xf32>, vector<32x1xf32>, vector<16x1xf32> -> vector<16x1xf32>
    %943 = vector.extract_strided_slice %940 {offsets = [32, 0], sizes = [1, 1], strides = [1, 1]} : vector<33x1xf32> to vector<1x1xf32>
    %944 = vector.broadcast %943 : vector<1x1xf32> to vector<16x1xf32>
    %945 = arith.addf %942, %944 : vector<16x1xf32>
    %946 = vector.extract_strided_slice %945 {offsets = [0, 0], sizes = [8, 1], strides = [1, 1]} : vector<16x1xf32> to vector<8x1xf32>
    %947 = vector.extract_strided_slice %945 {offsets = [8, 0], sizes = [8, 1], strides = [1, 1]} : vector<16x1xf32> to vector<8x1xf32>
    %948 = tpu.concatenate %946, %947 in 1 : vector<8x1xf32>, vector<8x1xf32> -> vector<8x2xf32>
    %c0_260 = arith.constant 0 : index
    %c0_261 = arith.constant 0 : index
    %949 = vector.load %arg3[%c0_260, %c0_261] : memref<8x2xf32, #tpu.memory_space<vmem>>, vector<8x2xf32>
    tpu.vector_store %arg3[%c0_260, %c0_261], %948 {strides = array<i32>} : memref<8x2xf32, #tpu.memory_space<vmem>>, vector<8x2xf32>,
    return
  }
}

</mosaic_0001>

<bundles_post_ra>
// kernel: informer_forward.1
= control target key start
LH: loop header
LB: loop body
LE: loop exit
PB: predicated region body
PF: predicated region fallthrough
CT: control target
= control target key end

     0   :  { %8 = vsyncpa [#allocation3], 0  ;;  %s6114_s15 = smov [#allocation2]   ;;  %s6115_s17 = smov 128   ;;  %s7906_s0 = inlined_call_operand.vmem [shape: f32[8,2], index: 0, kind: input, shape index: {}]   ;;  %s7907_s1 = inlined_call_operand.vmem [shape: f32[8,2], index: 1, kind: input, shape index: {}]   ;;  %s7908_s2 = inlined_call_operand.hbm [shape: f32[656,128], index: 2, kind: input, shape index: {}]   ;;  %s7909_s3 = inlined_call_operand.vmem [shape: f32[8,2], index: 3, kind: output, shape index: {}]  }
   0x1   :  { %s17_s14 = sshll.u32 %s7908_s2, 4  ;;  %s19_s16 = sshll.u32 %s6114_s15, 4  ;;  %s18_s14 = int_to_ptr.hbm [resolvable:$true] %s17_s14  ;;  %s20_s16 = int_to_ptr.vmem [resolvable:$true] %s19_s16 }
   0x2   :  { %s6116_s18 = smov 8  }
   0x3   :  { %25 = dma.hbm_to_vmem [thread:$0]  %s18_s14, 10496, %s20_s16, [#allocation3], %s6115_s17, %s6115_s17, %s6116_s18  }
   0x4   :  { %6112 = dma.done.wait [#allocation3], 10496  }
   0x5   :  { %6113 = vsyncadd [#allocation3], 4294956800  ;;  %v6117_v0 = vmov 0   ;;  %v6118_v1 = vmov 1   ;;  %v30_v2 = vld [vmem:[%s7906_s0] sm:$0xff]  ;;  %s6119_s2 = smov 96  }
   0x6   :  { %5426 = vset.pattern.permute.xlu0 %v6117_v0  ;;  %5427 = vset.pattern.permute.xlu1 %v6117_v0  ;;  %vm31_vm0 = vcmp.ne.f32.partialorder %v30_v2, %v30_v2  ;;  %v84_v7 = vld [vmem:[#allocation2 + $0x260] sm:$0xff]  ;;  %v85_v8 = vld [vmem:[#allocation2 + $0x268] sm:$0xff]  ;;  %v99_v10 = vld [vmem:[#allocation2 + $0xb8] sm:$0xff]  ;;  %s6120_s0 = smov 32   ;;  %s6121_s21 = smov 64   ;;  %vm108_vm1 = vcmask 261120  }
   0x7   :  { %5428 = vset.pattern.permute.xlu2 %v6118_v1  ;;  %v32_v3 = vsel %vm31_vm0, 0.0, %v30_v2  ;;  %v136_v9 = vld [vmem:[#allocation2 + $0x240] sm:$0xff]  ;;  %v98_v11 = vld [vmem:[#allocation2 + $0xb0] sm:$0xff]  ;;  %125 = vmatpush.msra.mxu0 %v99_v10  ;;  %v97_v12 = vld [vmem:[#allocation2 + $0xa8] sm:$0xff]  ;;  %vm218_vm2 = vcmask 64512   ;;  %s6122_s22 = smov 16  }
   0x8   :  { %v5251_v4 = vclamps-f32 %v32_v3, 3.4028235e+38  ;;  %v96_v13 = vld [vmem:[#allocation2 + $0xa0] sm:$0xff]  ;;  %v138_v14 = vld [vmem:[#allocation2 + $0x250] sm:$0xff]  ;;  %v137_v39 = vld [vmem:[#allocation2 + $0x248] sm:$0xff]  ;;  %s6123_s23 = smov 24  }
   0x9   :  { %126 = vmatpush.msra.mxu0 %v98_v11  ;;  %v44_v17 = vld [vmem:[#allocation2 + $0x270] sm:$0x7]  ;;  %v5745_v42 = vld [vmem:[#allocation2 + $0xc0] ss:$0 sm:$0xff]  ;;  %v139_v45 = vld [vmem:[#allocation2 + $0x258] sm:$0xff]  ;;  %vm307_vm3 = vcmask 130048  }
   0xa   :  { %53 = vperm.xlu0 %5426, %v5251_v4   ;;  %v40_v5 = vrot.slane %v5251_v4, 1  ;;  %v36_v6 = vrot.slane %v5251_v4, 7  ;;  %v6162_v19 = vperm.slane %v44_v17, 0  ;;  %v6164_v20 = vperm.slane %v44_v17, 1  ;;  %s6126_s26 = smov 120   ;;  %s6127_s27 = smov 112  }
   0xb   :  { %127 = vmatpush.msra.mxu0 %v97_v12  ;;  %v6166_v21 = vperm.slane %v44_v17, 2  ;;  %vm312_vm4 = vcmask 195584   ;;  %s6128_s28 = smov 1  }
   0xc   :  { %61 = vperm.xlu1 %5427, %v40_v5   ;;  %68 = vperm.xlu2 %5428, %v36_v6  }
   0xd   :  { %128 = vmatpush.msra.mxu0 %v96_v13 }
  0x12   :  { %47 = vperm.xlu0 %5426, %v36_v6  }
  0x14   :  { %88 = vrot.lane.b32.xlu1 %v84_v7, %s6119_s2  ;;  %73 = vperm.xlu2 %5428, %v5251_v4  }
  0x1a   :  { %5429 = vset.pattern.permute.xlu0 %v6118_v1 }
  0x1b   :  { %79 = vperm.xlu0 %5429, %v40_v5  }
  0x1c   :  { %90 = vrot.lane.b32.xlu1 %v85_v8, %s6119_s2  ;;  %5530 = vset.pattern.permute.xlu2 %v6117_v0 }
  0x23   :  { %5531 = vset.pattern.permute.xlu0 %v6117_v0 }
  0x24   :  { %144 = vrot.lane.b32.xlu0 %v136_v9, %s6120_s0 }
  0x2c   :  { %148 = vrot.lane.b32.xlu0 %v138_v14, %s6120_s0 }
  0x34   :  { %165 = vrot.lane.b32.xlu0 %v137_v39, %s6121_s21 }
  0x3c   :  { %319 = vrot.lane.b32.xlu0 %v137_v39, %s6119_s2 }
  0x66   :  { %v69_v16 = vpop.permute.xlu2 %68 }
  0x67   :  { %v71_v30 = vmul.f32 %v69_v16, %v6162_v19 }
  0x6e   :  { %v74_v27 = vpop.permute.xlu2 %73 }
  0x6f   :  { %v76_v31 = vmul.f32 %v74_v27, %v6164_v20 }
  0x71   :  { %v77_v34 = vadd.f32 %v76_v31, %v71_v30 }
  0x7c   :  { %v54_v15 = vpop.permute.xlu0 %53 }
  0x7d   :  { %v57_v23 = vmul.f32 %v6164_v20, %v54_v15 }
  0x7e   :  { %v62_v18 = vpop.permute.xlu1 %61 }
  0x7f   :  { %v65_v26 = vmul.f32 %v6166_v21, %v62_v18 }
  0x84   :  { %v48_v22 = vpop.permute.xlu0 %47 }
  0x85   :  { %v51_v24 = vmul.f32 %v6162_v19, %v48_v22 }
  0x86   :  { %v89_v25 = vpop.permute.xlu1 %88 }
  0x87   :  { %v58_v28 = vadd.f32 %v57_v23, %v51_v24 }
  0x89   :  { %v66_v29 = vadd.f32 %v65_v26, %v58_v28 }
  0x8b   :  { %v6173_v32 = vadd.f32 %v89_v25, %v66_v29 }
  0x8d   :  { %104 = vrot.lane.b32.xlu2 %v6173_v32, %s6121_s21  ;;  %v80_v33 = vpop.permute.xlu0 %79 }
  0x8e   :  { %v82_v35 = vmul.f32 %v80_v33, %v6166_v21  ;;  %v91_v36 = vpop.permute.xlu1 %90 }
  0x90   :  { %v83_v37 = vadd.f32 %v82_v35, %v77_v34 }
  0x92   :  { %v6178_v38 = vadd.f32 %v91_v36, %v83_v37 }
  0x94   :  { %106 = vrot.lane.b32.xlu1 %v6178_v38, %s6121_s21 }
  0x96   :  { %v6199_v49 = vpop.permute.xlu0 %144 }
  0x9e   :  { %v6208_v53 = vpop.permute.xlu0 %148 }
  0xa6   :  { %v6233_v2 = vpop.permute.xlu0 %165 }
  0xe7   :  { %v105_v40 = vpop.permute.xlu2 %104 }
  0xe8   :  { %5252 = vmatmul.msk.f32.vlgmr.msra.gmra.mxu0 %vm108_vm1, %v105_v40 }
 0x106   :  { %v107_v41 = vpop.permute.xlu1 %106 }
 0x107   :  { %5253 = vmatmul.msk.f32.gmra.mxu0 %vm108_vm1, %v107_v41 }
 0x165   :  { %v130_v43 = vpop.f32.mrf.mxu0 }
 0x166   :  { %v131_v44 = vadd.f32 %v5745_v42, %v130_v43 }
 0x168   :  { %161 = vrot.lane.b32.xlu2 %v131_v44, %s6119_s2  ;;  %v156_v50 = vmul.f32 %v6199_v49, %v131_v44  ;;  %v158_v54 = vmul.f32 %v6208_v53, %v131_v44 }
 0x170   :  { %146 = vrot.lane.b32.xlu2 %v137_v39, %s6120_s0 }
 0x178   :  { %163 = vrot.lane.b32.xlu2 %v136_v9, %s6121_s21 }
 0x180   :  { %169 = vrot.lane.b32.xlu2 %v139_v45, %s6121_s21 }
 0x184   :  { %v133_v46 = vpop.f32.mrf.mxu0 }
 0x185   :  { %v6190_v47 = vadd.f32 %v5745_v42, %v133_v46 }
 0x187   :  { %402 = vrot.lane.b32.xlu1 %v6190_v47, %s6119_s2  ;;  %v397_v57 = vmul.f32 %v6199_v49, %v6190_v47  ;;  %v399_v0 = vmul.f32 %v6208_v53, %v6190_v47 }
 0x188   :  { %323 = vrot.lane.b32.xlu2 %v139_v45, %s6119_s2 }
 0x18f   :  { %150 = vrot.lane.b32.xlu1 %v139_v45, %s6120_s0 }
 0x190   :  { %317 = vrot.lane.b32.xlu2 %v136_v9, %s6119_s2  ;;  %v6246_v9 = vpop.permute.xlu0 %319 }
 0x191   :  { %v334_v11 = vmul.f32 %v6246_v9, %v131_v44  ;;  %v548_v46 = vmul.f32 %v6246_v9, %v6190_v47 }
 0x197   :  { %167 = vrot.lane.b32.xlu1 %v138_v14, %s6121_s21 }
 0x19f   :  { %321 = vrot.lane.b32.xlu1 %v138_v14, %s6119_s2 }
 0x1c2   :  { %v162_v48 = vpop.permute.xlu2 %161 }
 0x1c3   :  { %5254 = vmatpush.xpose.msk.msra.mxu1 %vm108_vm1, %v162_v48 }
 0x1c6   :  { %5255 = vmatmul.msk.f32.vlgmr.msra.gmra.mxu1 %vm108_vm1, %v156_v50 }
 0x1ca   :  { %v6204_v51 = vpop.permute.xlu2 %146 }
 0x1cb   :  { %v157_v52 = vmul.f32 %v6204_v51, %v131_v44  ;;  %v398_v61 = vmul.f32 %v6204_v51, %v6190_v47 }
 0x1ce   :  { %5256 = vmatmul.msk.f32.gmra.mxu1 %vm108_vm1, %v157_v52 }
 0x1d2   :  { %v6212_v55 = vpop.permute.xlu2 %163 }
 0x1d6   :  { %5257 = vmatmul.msk.f32.gmra.mxu1 %vm108_vm1, %v158_v54 }
 0x1da   :  { %v6218_v58 = vpop.permute.xlu2 %169 }
 0x1e2   :  { %v6229_v63 = vpop.permute.xlu2 %323 }
 0x1e3   :  { %v336_v5 = vmul.f32 %v6229_v63, %v131_v44  ;;  %v550_v54 = vmul.f32 %v6229_v63, %v6190_v47 }
 0x1ea   :  { %v6242_v8 = vpop.permute.xlu2 %317 }
 0x1eb   :  { %v333_v10 = vmul.f32 %v6242_v8, %v131_v44 }
 0x1ed   :  { %v5435_v12 = vpack.i.bf16 %v333_v10, %v334_v11 }
 0x1f9   :  { %v403_v56 = vpop.permute.xlu1 %402 }
 0x1fa   :  { %5263 = vmatpush.xpose.msk.msra.mxu3 %vm108_vm1, %v403_v56 }
 0x1fd   :  { %5264 = vmatmul.msk.f32.vlgmr.msra.gmra.mxu3 %vm108_vm1, %v397_v57 }
 0x201   :  { %v6220_v59 = vpop.permute.xlu1 %150 }
 0x202   :  { %v159_v60 = vmul.f32 %v6220_v59, %v131_v44  ;;  %v400_v6 = vmul.f32 %v6220_v59, %v6190_v47 }
 0x204   :  { %5258 = vmatmul.msk.f32.gmra.mxu1 %vm108_vm1, %v159_v60 }
 0x205   :  { %5265 = vmatmul.msk.f32.gmra.mxu3 %vm108_vm1, %v398_v61 }
 0x209   :  { %v6227_v62 = vpop.permute.xlu1 %167 }
 0x20d   :  { %5266 = vmatmul.msk.f32.gmra.mxu3 %vm108_vm1, %v399_v0 }
 0x211   :  { %v6236_v3 = vpop.permute.xlu1 %321 }
 0x212   :  { %v335_v4 = vmul.f32 %v6236_v3, %v131_v44  ;;  %v547_v44 = vmul.f32 %v6242_v8, %v6190_v47  ;;  %v549_v52 = vmul.f32 %v6236_v3, %v6190_v47 }
 0x214   :  { %v5430_v7 = vpack.i.bf16 %v335_v4, %v336_v5  ;;  %v5445_v50 = vpack.i.bf16 %v547_v44, %v548_v46  ;;  %v5440_v56 = vpack.i.bf16 %v549_v52, %v550_v54 }
 0x215   :  { %5267 = vmatmul.msk.f32.gmra.mxu3 %vm108_vm1, %v400_v6 }
 0x216   :  { %5431 = vrot.lane.b32.xlu1 %v5430_v7, %s6121_s21 }
 0x21e   :  { %5436 = vrot.lane.b32.xlu1 %v5435_v12, %s6121_s21 }
 0x243   :  { %v206_v13 = vpop.f32.mrf.mxu1 }
 0x244   :  { %v207_v14 = vadd.f32 %v206_v13, %v6212_v55 }
 0x246   :  { %v219_v15 = vsel %vm218_vm2, %v207_v14, -inf }
 0x247   :  { %220 = vmax.xlane.f32.xlu0 %v219_v15 }
 0x24b   :  { %v209_v16 = vpop.f32.mrf.mxu1 }
 0x24c   :  { %v210_v17 = vadd.f32 %v209_v16, %v6233_v2 }
 0x24e   :  { %v222_v18 = vsel %vm218_vm2, %v210_v17, -inf }
 0x24f   :  { %223 = vmax.xlane.f32.xlu1 %v222_v18 }
 0x253   :  { %v212_v22 = vpop.f32.mrf.mxu1 }
 0x254   :  { %v213_v29 = vadd.f32 %v212_v22, %v6227_v62 }
 0x256   :  { %v225_v35 = vsel %vm218_vm2, %v213_v29, -inf }
 0x280   :  { %v435_v23 = vpop.f32.mrf.mxu3 }
 0x281   :  { %v436_v24 = vadd.f32 %v435_v23, %v6212_v55  ;;  %v215_v25 = vpop.f32.mrf.mxu1 }
 0x282   :  { %v216_v26 = vadd.f32 %v215_v25, %v6218_v58 }
 0x283   :  { %v447_v27 = vsel %vm218_vm2, %v436_v24, -inf }
 0x284   :  { %448 = vmax.xlane.f32.xlu2 %v447_v27  ;;  %v228_v28 = vsel %vm218_vm2, %v216_v26, -inf }
 0x285   :  { %229 = vmax.xlane.f32.xlu1 %v228_v28 }
 0x288   :  { %v5432_v30 = vpop.permute.xlu1 %5431  ;;  %v438_v31 = vpop.f32.mrf.mxu3 }
 0x289   :  { %v439_v33 = vadd.f32 %v438_v31, %v6233_v2  ;;  %v5433_v34 = vunpack.i.l.bf16 %v5432_v30  ;;  %v5434_v37 = vunpack.i.h.bf16 %v5432_v30 }
 0x28b   :  { %377 = vmatpush.msra.mxu2 %v5433_v34  ;;  %v450_v36 = vsel %vm218_vm2, %v439_v33, -inf }
 0x28c   :  { %226 = vmax.xlane.f32.xlu2 %v225_v35  ;;  %451 = vmax.xlane.f32.xlu0 %v450_v36 }
 0x28d   :  { %378 = vmatpush.msra.mxu2 %v5434_v37 }
 0x290   :  { %v441_v39 = vpop.f32.mrf.mxu3  ;;  %v5437_v40 = vpop.permute.xlu1 %5436 }
 0x291   :  { %v5438_v41 = vunpack.i.l.bf16 %v5437_v40  ;;  %v5439_v42 = vunpack.i.h.bf16 %v5437_v40  ;;  %v442_v10 = vadd.f32 %v441_v39, %v6227_v62 }
 0x293   :  { %379 = vmatpush.msra.mxu2 %v5438_v41  ;;  %v453_v47 = vsel %vm218_vm2, %v442_v10, -inf }
 0x295   :  { %380 = vmatpush.msra.mxu2 %v5439_v42 }
 0x298   :  { %v444_v43 = vpop.f32.mrf.mxu3 }
 0x299   :  { %v6266_v45 = vadd.f32 %v444_v43, %v6218_v58 }
 0x29b   :  { %v456_v48 = vsel %vm218_vm2, %v6266_v45, -inf }
 0x29c   :  { %457 = vmax.xlane.f32.xlu0 %v456_v48 }
 0x29e   :  { %5446 = vrot.lane.b32.xlu1 %v5445_v50, %s6121_s21 }
 0x2a4   :  { %5441 = vrot.lane.b32.xlu2 %v5440_v56, %s6121_s21 }
 0x2ba   :  { %v221_v57 = vpop.xlane.xlu0 %220 }
 0x2bb   :  { %v231_v60 = vsub.f32 %v207_v14, %v221_v57 }
 0x2bd   :  { %v235_v61 = vmul.f32 1.442695, %v231_v60 }
 0x2bf   :  { %5758 = vpow2.f32 %v235_v61 }
 0x2c2   :  { %v224_v0 = vpop.xlane.xlu1 %223 }
 0x2c3   :  { %v232_v4 = vsub.f32 %v210_v17, %v224_v0 }
 0x2c5   :  { %v6278_v5 = vpop.eup %5758  ;;  %v237_v6 = vmul.f32 1.442695, %v232_v4 }
 0x2c6   :  { %v243_v7 = vsel %vm218_vm2, %v6278_v5, 0.0 }
 0x2c7   :  { %5760 = vpow2.f32 %v237_v6 }
 0x2c8   :  { %244 = vadd.xlane.f32.xlu1 %v243_v7 }
 0x2cd   :  { %v5761_v11 = vpop.eup %5760  ;;  %454 = vmax.xlane.f32.xlu2 %v453_v47 }
 0x2ce   :  { %v246_v12 = vsel %vm218_vm2, %v5761_v11, 0.0 }
 0x2cf   :  { %247 = vadd.xlane.f32.xlu0 %v246_v12 }
 0x2f7   :  { %v449_v13 = vpop.xlane.xlu2 %448 }
 0x2f8   :  { %v459_v14 = vsub.f32 %v436_v24, %v449_v13  ;;  %v230_v15 = vpop.xlane.xlu1 %229 }
 0x2f9   :  { %v234_v17 = vsub.f32 %v216_v26, %v230_v15 }
 0x2fa   :  { %v463_v16 = vmul.f32 1.442695, %v459_v14 }
 0x2fb   :  { %v241_v18 = vmul.f32 1.442695, %v234_v17 }
 0x2fc   :  { %5762 = vpow2.f32 %v463_v16 }
 0x2fd   :  { %5764 = vpow2.f32 %v241_v18 }
 0x2ff   :  { %v227_v22 = vpop.xlane.xlu2 %226  ;;  %v452_v23 = vpop.xlane.xlu0 %451 }
 0x300   :  { %v233_v25 = vsub.f32 %v213_v29, %v227_v22  ;;  %v460_v27 = vsub.f32 %v439_v33, %v452_v23 }
 0x302   :  { %v5763_v28 = vpop.eup %5762  ;;  %v239_v30 = vmul.f32 1.442695, %v233_v25  ;;  %v465_v31 = vmul.f32 1.442695, %v460_v27 }
 0x303   :  { %v471_v34 = vsel %vm218_vm2, %v5763_v28, 0.0  ;;  %v6286_v36 = vpop.eup %5764 }
 0x304   :  { %5766 = vpow2.f32 %v239_v30  ;;  %472 = vadd.xlane.f32.xlu1 %v471_v34  ;;  %v252_v33 = vsel %vm218_vm2, %v6286_v36, 0.0 }
 0x305   :  { %5768 = vpow2.f32 %v465_v31 }
 0x307   :  { %v5442_v35 = vpop.permute.xlu2 %5441 }
 0x308   :  { %v5443_v24 = vunpack.i.l.bf16 %v5442_v35  ;;  %v5444_v37 = vunpack.i.h.bf16 %v5442_v35 }
 0x30a   :  { %v5767_v26 = vpop.eup %5766  ;;  %591 = vmatpush.msrb.mxu0 %v5443_v24 }
 0x30b   :  { %v5769_v39 = vpop.eup %5768  ;;  %v249_v29 = vsel %vm218_vm2, %v5767_v26, 0.0 }
 0x30c   :  { %592 = vmatpush.msrb.mxu0 %v5444_v37  ;;  %250 = vadd.xlane.f32.xlu0 %v249_v29  ;;  %v474_v40 = vsel %vm218_vm2, %v5769_v39, 0.0 }
 0x30d   :  { %253 = vadd.xlane.f32.xlu1 %v252_v33  ;;  %475 = vadd.xlane.f32.xlu2 %v474_v40 }
 0x30f   :  { %v458_v41 = vpop.xlane.xlu0 %457 }
 0x310   :  { %v462_v42 = vsub.f32 %v6266_v45, %v458_v41  ;;  %v5447_v43 = vpop.permute.xlu1 %5446 }
 0x311   :  { %v5448_v44 = vunpack.i.l.bf16 %v5447_v43  ;;  %v5449_v48 = vunpack.i.h.bf16 %v5447_v43 }
 0x312   :  { %v469_v46 = vmul.f32 1.442695, %v462_v42 }
 0x313   :  { %593 = vmatpush.msrb.mxu0 %v5448_v44 }
 0x314   :  { %5770 = vpow2.f32 %v469_v46 }
 0x315   :  { %594 = vmatpush.msrb.mxu0 %v5449_v48 }
 0x31a   :  { %v6293_v50 = vpop.eup %5770 }
 0x31b   :  { %v480_v52 = vsel %vm218_vm2, %v6293_v50, 0.0 }
 0x31c   :  { %481 = vadd.xlane.f32.xlu2 %v480_v52 }
 0x33b   :  { %v245_v54 = vpop.xlane.xlu1 %244 }
 0x33c   :  { %5772 = vrcp.f32 %v245_v54  ;;  %v613_v54 = vld [vmem:[#allocation2 + $0x228] sm:$0xff] }
 0x340   :  { %v455_v56 = vpop.xlane.xlu2 %454 }
 0x341   :  { %v461_v57 = vsub.f32 %v442_v10, %v455_v56  ;;  %v614_v56 = vld [vmem:[#allocation2 + $0x230] sm:$0xff] }
 0x342   :  { %v5773_v60 = vpop.eup %5772  ;;  %v248_v61 = vpop.xlane.xlu0 %247 }
 0x343   :  { %v467_v45 = vmul.f32 1.442695, %v461_v57  ;;  %5774 = vrcp.f32 %v248_v61  ;;  %v259_v0 = vmul.f32 %v5773_v60, %v6278_v5  ;;  %v5450_v60 = vpack.i.bf16 %v613_v54, %v614_v56 }
 0x345   :  { %5776 = vpow2.f32 %v467_v45  ;;  %279 = vrot.lane.b32.xlu2 %v259_v0, %s6122_s22 }
 0x349   :  { %v5775_v4 = vpop.eup %5774 }
 0x34a   :  { %v6299_v6 = vmul.f32 %v5775_v4, %v5761_v11 }
 0x34b   :  { %v5777_v7 = vpop.eup %5776 }
 0x34c   :  { %293 = vrot.lane.b32.xlu1 %v6299_v6, %s6123_s23  ;;  %v477_v10 = vsel %vm218_vm2, %v5777_v7, 0.0 }
 0x34d   :  { %478 = vadd.xlane.f32.xlu0 %v477_v10  ;;  %269 = vrot.lane.b32.xlu2 %v6299_v6, %s6116_s18 }
 0x361   :  { %267 = vrot.lane.b32.xlu0 %v259_v0, %s6116_s18 }
 0x369   :  { %291 = vrot.lane.b32.xlu0 %v259_v0, %s6123_s23 }
 0x371   :  { %281 = vrot.lane.b32.xlu0 %v6299_v6, %s6122_s22 }
 0x377   :  { %v473_v5 = vpop.xlane.xlu1 %472 }
 0x378   :  { %5778 = vrcp.f32 %v473_v5 }
 0x37e   :  { %v5779_v47 = vpop.eup %5778 }
 0x37f   :  { %v251_v11 = vpop.xlane.xlu0 %250  ;;  %v487_v12 = vmul.f32 %v5779_v47, %v5763_v28 }
 0x380   :  { %v476_v13 = vpop.xlane.xlu2 %475  ;;  %5780 = vrcp.f32 %v251_v11  ;;  %v254_v18 = vpop.xlane.xlu1 %253 }
 0x381   :  { %507 = vrot.lane.b32.xlu1 %v487_v12, %s6122_s22  ;;  %495 = vrot.lane.b32.xlu0 %v487_v12, %s6116_s18  ;;  %5782 = vrcp.f32 %v476_v13 }
 0x382   :  { %5784 = vrcp.f32 %v254_v18 }
 0x386   :  { %v5781_v14 = vpop.eup %5780 }
 0x387   :  { %v6312_v15 = vmul.f32 %v5781_v14, %v5767_v26  ;;  %v5783_v16 = vpop.eup %5782 }
 0x388   :  { %v6314_v17 = vmul.f32 %v5783_v16, %v5769_v39  ;;  %v5785_v22 = vpop.eup %5784 }
 0x389   :  { %519 = vrot.lane.b32.xlu0 %v487_v12, %s6123_s23  ;;  %271 = vrot.lane.b32.xlu2 %v6312_v15, %s6116_s18  ;;  %v6328_v23 = vmul.f32 %v5785_v22, %v6286_v36 }
 0x38a   :  { %497 = vrot.lane.b32.xlu1 %v6314_v17, %s6116_s18 }
 0x38f   :  { %v482_v27 = vpop.xlane.xlu2 %481 }
 0x391   :  { %295 = vrot.lane.b32.xlu0 %v6312_v15, %s6123_s23  ;;  %283 = vrot.lane.b32.xlu2 %v6312_v15, %s6122_s22 }
 0x392   :  { %521 = vrot.lane.b32.xlu1 %v6314_v17, %s6123_s23 }
 0x399   :  { %273 = vrot.lane.b32.xlu0 %v6328_v23, %s6116_s18  ;;  %509 = vrot.lane.b32.xlu2 %v6314_v17, %s6122_s22 }
 0x39f   :  { %v280_v24 = vpop.permute.xlu2 %279 }
 0x3a1   :  { %297 = vrot.lane.b32.xlu0 %v6328_v23, %s6123_s23  ;;  %285 = vrot.lane.b32.xlu2 %v6328_v23, %s6122_s22 }
 0x3a7   :  { %v270_v33 = vpop.permute.xlu2 %269 }
 0x3a8   :  { %v304_v40 = vsel %vm218_vm2, %v6299_v6, %v270_v33 }
 0x3be   :  { %v294_v42 = vpop.permute.xlu1 %293 }
 0x3c0   :  { %v479_v25 = vpop.xlane.xlu0 %478 }
 0x3c1   :  { %5786 = vrcp.f32 %v479_v25 }
 0x3c2   :  { %5788 = vrcp.f32 %v482_v27 }
 0x3c7   :  { %v5787_v28 = vpop.eup %5786 }
 0x3c8   :  { %v6338_v30 = vmul.f32 %v5787_v28, %v5777_v7  ;;  %v5789_v31 = vpop.eup %5788 }
 0x3c9   :  { %v6347_v34 = vmul.f32 %v5789_v31, %v6293_v50 }
 0x3ca   :  { %523 = vrot.lane.b32.xlu0 %v6338_v30, %s6123_s23  ;;  %511 = vrot.lane.b32.xlu2 %v6338_v30, %s6122_s22 }
 0x3cb   :  { %499 = vrot.lane.b32.xlu1 %v6338_v30, %s6116_s18 }
 0x3d2   :  { %525 = vrot.lane.b32.xlu0 %v6347_v34, %s6123_s23  ;;  %513 = vrot.lane.b32.xlu2 %v6347_v34, %s6122_s22 }
 0x3d3   :  { %501 = vrot.lane.b32.xlu1 %v6347_v34, %s6116_s18  ;;  %v268_v35 = vpop.permute.xlu0 %267 }
 0x3d4   :  { %v303_v36 = vsel %vm218_vm2, %v259_v0, %v268_v35 }
 0x3d5   :  { %v308_v26 = vsel %vm307_vm3, %v303_v36, %v280_v24  ;;  %v611_v36 = vld [vmem:[#allocation2 + $0x218] sm:$0xff] }
 0x3db   :  { %v292_v37 = vpop.permute.xlu0 %291  ;;  %5451 = vrot.lane.b32.xlu1 %v5450_v60, %s6121_s21 }
 0x3dc   :  { %v313_v39 = vsel %vm312_vm4, %v308_v26, %v292_v37  ;;  %v612_v26 = vld [vmem:[#allocation2 + $0x220] sm:$0xff] }
 0x3dd   :  { %v329_v29 = vmul.f32 %v6242_v8, %v313_v39  ;;  %v5455_v37 = vpack.i.bf16 %v611_v36, %v612_v26 }
 0x3df   :  { %5259 = vmatmul.msk.f32.vlgmr.msra.gmra.mxu2 %vm108_vm1, %v329_v29  ;;  %5456 = vrot.lane.b32.xlu2 %v5455_v37, %s6121_s21 }
 0x3e3   :  { %v282_v41 = vpop.permute.xlu0 %281  ;;  %v272_v48 = vpop.permute.xlu2 %271 }
 0x3e4   :  { %v309_v43 = vsel %vm307_vm3, %v304_v40, %v282_v41  ;;  %v305_v5 = vsel %vm218_vm2, %v6312_v15, %v272_v48 }
 0x3e5   :  { %v314_v44 = vsel %vm312_vm4, %v309_v43, %v294_v42 }
 0x3e6   :  { %v330_v46 = vmul.f32 %v6246_v9, %v314_v44 }
 0x3e8   :  { %5260 = vmatmul.msk.f32.gmra.mxu2 %vm108_vm1, %v330_v46 }
 0x3eb   :  { %v284_v61 = vpop.permute.xlu2 %283 }
 0x3ec   :  { %v310_v47 = vsel %vm307_vm3, %v305_v5, %v284_v61 }
 0x3f3   :  { %v508_v50 = vpop.permute.xlu1 %507  ;;  %v496_v52 = vpop.permute.xlu0 %495 }
 0x3f4   :  { %v531_v57 = vsel %vm218_vm2, %v487_v12, %v496_v52  ;;  %v510_v11 = vpop.permute.xlu2 %509 }
 0x3f5   :  { %v535_v45 = vsel %vm307_vm3, %v531_v57, %v508_v50 }
 0x3fb   :  { %v520_v0 = vpop.permute.xlu0 %519 }
 0x3fc   :  { %v498_v4 = vpop.permute.xlu1 %497  ;;  %v539_v6 = vsel %vm312_vm4, %v535_v45, %v520_v0  ;;  %v286_v27 = vpop.permute.xlu2 %285 }
 0x3fd   :  { %v543_v7 = vmul.f32 %v539_v6, %v6242_v8  ;;  %v532_v10 = vsel %vm218_vm2, %v6314_v17, %v498_v4 }
 0x3fe   :  { %v536_v14 = vsel %vm307_vm3, %v532_v10, %v510_v11 }
 0x3ff   :  { %5268 = vmatmul.msk.f32.vlgmr.msrb.gmra.mxu0 %vm108_vm1, %v543_v7 }
 0x403   :  { %v296_v12 = vpop.permute.xlu0 %295 }
 0x404   :  { %v522_v13 = vpop.permute.xlu1 %521  ;;  %v315_v16 = vsel %vm312_vm4, %v310_v47, %v296_v12 }
 0x405   :  { %v540_v18 = vsel %vm312_vm4, %v536_v14, %v522_v13  ;;  %v331_v22 = vmul.f32 %v6236_v3, %v315_v16 }
 0x406   :  { %v544_v25 = vmul.f32 %v540_v18, %v6246_v9 }
 0x407   :  { %5261 = vmatmul.msk.f32.gmra.mxu2 %vm108_vm1, %v331_v22 }
 0x408   :  { %5269 = vmatmul.msk.f32.gmra.mxu0 %vm108_vm1, %v544_v25 }
 0x40b   :  { %v274_v15 = vpop.permute.xlu0 %273 }
 0x40c   :  { %v306_v17 = vsel %vm218_vm2, %v6328_v23, %v274_v15 }
 0x40d   :  { %v311_v28 = vsel %vm307_vm3, %v306_v17, %v286_v27 }
 0x413   :  { %v298_v31 = vpop.permute.xlu0 %297 }
 0x414   :  { %v316_v35 = vsel %vm312_vm4, %v311_v28, %v298_v31 }
 0x415   :  { %v332_v24 = vmul.f32 %v6229_v63, %v316_v35 }
 0x417   :  { %5262 = vmatmul.msk.f32.gmra.mxu2 %vm108_vm1, %v332_v24 }
 0x424   :  { %v512_v39 = vpop.permute.xlu2 %511 }
 0x42c   :  { %v514_v44 = vpop.permute.xlu2 %513 }
 0x439   :  { %v5457_v60 = vpop.permute.xlu2 %5456 }
 0x43a   :  { %v5458_v61 = vunpack.i.l.bf16 %v5457_v60  ;;  %v5459_v45 = vunpack.i.h.bf16 %v5457_v60 }
 0x43c   :  { %v524_v33 = vpop.permute.xlu0 %523 }
 0x43d   :  { %v500_v29 = vpop.permute.xlu1 %499 }
 0x43e   :  { %v533_v23 = vsel %vm218_vm2, %v6338_v30, %v500_v29 }
 0x43f   :  { %v537_v40 = vsel %vm307_vm3, %v533_v23, %v512_v39 }
 0x440   :  { %v541_v41 = vsel %vm312_vm4, %v537_v40, %v524_v33  ;;  %v6124_v33 = vmov 32.0  }
 0x441   :  { %v545_v42 = vmul.f32 %v541_v41, %v6236_v3  ;;  %5790 = vrcp.f32 %v6124_v33 }
 0x443   :  { %5270 = vmatmul.msk.f32.gmra.mxu0 %vm108_vm1, %v545_v42 }
 0x444   :  { %v526_v50 = vpop.permute.xlu0 %525 }
 0x445   :  { %v502_v43 = vpop.permute.xlu1 %501 }
 0x446   :  { %v534_v46 = vsel %vm218_vm2, %v6347_v34, %v502_v43  ;;  %v5746_v34 = vld [vmem:[#allocation2 + $0x238] ss:$0 sm:$0xff] }
 0x447   :  { %v538_v48 = vsel %vm307_vm3, %v534_v46, %v514_v44  ;;  %634 = vrot.lane.b32.xlu0 %v5746_v34, %s6121_s21  ;;  %v5791_v23 = vpop.eup %5790 }
 0x448   :  { %v542_v52 = vsel %vm312_vm4, %v538_v48, %v526_v50  ;;  %v692_v40 = vmul.f32 32.0, %v5791_v23  ;;  %vm696_vm5 = vweird.f32 %v5791_v23 }
 0x449   :  { %v546_v30 = vmul.f32 %v542_v52, %v6229_v63 }
 0x44b   :  { %5271 = vmatmul.msk.f32.gmra.mxu0 %vm108_vm1, %v546_v30 }
 0x44d   :  { %v5452_v54 = vpop.permute.xlu1 %5451 }
 0x44e   :  { %v5453_v56 = vunpack.i.l.bf16 %v5452_v54  ;;  %v5454_v57 = vunpack.i.h.bf16 %v5452_v54 }
 0x450   :  { %655 = vmatpush.msrb.mxu1 %v5453_v56  ;;  %v676_v56 = vld [vmem:[#allocation2 + $0x280] sm:$0x3] }
 0x452   :  { %656 = vmatpush.msrb.mxu1 %v5454_v57  ;;  %v6420_v57 = vperm.slane %v676_v56, 0 }
 0x454   :  { %657 = vmatpush.msrb.mxu1 %v5458_v61 }
 0x456   :  { %658 = vmatpush.msrb.mxu1 %v5459_v45 }
 0x462   :  { %v382_v0 = vpop.f32.mrf.mxu2 }
 0x46b   :  { %v385_v4 = vpop.f32.mrf.mxu2 }
 0x46c   :  { %v394_v7 = vadd.f32 %v385_v4, %v382_v0  ;;  %v6426_v0 = vperm.slane %v676_v56, 1  ;;  %v898_v56 = vld [vmem:[#allocation2 + $0x1d0] sm:$0xff] }
 0x47c   :  { %v596_v11 = vpop.f32.mrf.mxu0 }
 0x485   :  { %v599_v12 = vpop.f32.mrf.mxu0 }
 0x486   :  { %v608_v14 = vadd.f32 %v599_v12, %v596_v11 }
 0x48a   :  { %v388_v6 = vpop.f32.mrf.mxu2 }
 0x48b   :  { %v395_v10 = vadd.f32 %v394_v7, %v388_v6 }
 0x49a   :  { %v391_v5 = vpop.f32.mrf.mxu2 }
 0x49b   :  { %v396_v47 = vadd.f32 %v395_v10, %v391_v5 }
 0x49d   :  { %5272 = vmatmul.msk.f32.vlgmr.msrb.gmra.mxu1 %vm108_vm1, %v396_v47 }
 0x4b9   :  { %v635_v25 = vpop.permute.xlu0 %634 }
 0x4c0   :  { %v602_v13 = vpop.f32.mrf.mxu0 }
 0x4c1   :  { %v609_v16 = vadd.f32 %v608_v14, %v602_v13  ;;  %v761_v13 = vld [vmem:[#allocation2 + $0xe0] sm:$0xff]  ;;  %v760_v14 = vld [vmem:[#allocation2 + $0xd8] sm:$0xff] }
 0x4c2   :  { %786 = vmatpush.msrb.mxu3 %v761_v13 }
 0x4c4   :  { %787 = vmatpush.msrb.mxu3 %v760_v14  ;;  %v887_v14 = vld [vmem:[#allocation2 + $0x178] sm:$0xff] }
 0x4c8   :  { %v605_v18 = vpop.f32.mrf.mxu0 }
 0x4c9   :  { %v610_v22 = vadd.f32 %v609_v16, %v605_v18  ;;  %v759_v18 = vld [vmem:[#allocation2 + $0xd0] sm:$0xff] }
 0x4ca   :  { %788 = vmatpush.msrb.mxu3 %v759_v18 }
 0x4cb   :  { %5273 = vmatmul.msk.f32.gmra.mxu1 %vm108_vm1, %v610_v22 }
 0x51a   :  { %v660_v15 = vpop.f32.mrf.mxu1 }
 0x51b   :  { %v661_v17 = vadd.f32 %v660_v15, %v635_v25 }
 0x51d   :  { %668 = vrot.lane.b32.xlu1 %v661_v17, %s6121_s21  ;;  %v758_v17 = vld [vmem:[#allocation2 + $0xc8] sm:$0xff] }
 0x51e   :  { %789 = vmatpush.msrb.mxu3 %v758_v17 }
 0x548   :  { %v663_v27 = vpop.f32.mrf.mxu1 }
 0x549   :  { %v664_v28 = vadd.f32 %v663_v27, %v635_v25 }
 0x54b   :  { %670 = vrot.lane.b32.xlu2 %v664_v28, %s6121_s21 }
 0x58f   :  { %v669_v31 = vpop.permute.xlu1 %668 }
 0x590   :  { %v674_v35 = vadd.f32 %v669_v31, %v6173_v32  ;;  %v693_v32 = vsub.f32 1.0, %v692_v40 }
 0x592   :  { %679 = vrot.lane.b32.xlu0 %v674_v35, %s6121_s21  ;;  %v694_v41 = vmul.f32 %v5791_v23, %v693_v32 }
 0x594   :  { %v695_v42 = vadd.f32 %v5791_v23, %v694_v41 }
 0x596   :  { %v6414_v43 = vsel %vm696_vm5, %v5791_v23, %v695_v42 }
 0x5a5   :  { %v671_v24 = vpop.permute.xlu2 %670 }
 0x5a6   :  { %v675_v36 = vadd.f32 %v671_v24, %v6178_v38 }
 0x5a8   :  { %681 = vrot.lane.b32.xlu1 %v675_v36, %s6121_s21 }
 0x604   :  { %v680_v26 = vpop.permute.xlu0 %679 }
 0x605   :  { %v685_v37 = vsel %vm108_vm1, %v680_v26, 0.0 }
 0x606   :  { %686 = vadd.xlane.f32.xlu2 %v685_v37 }
 0x61a   :  { %v682_v39 = vpop.permute.xlu1 %681 }
 0x61b   :  { %v688_v29 = vsel %vm108_vm1, %v682_v39, 0.0 }
 0x61c   :  { %689 = vadd.xlane.f32.xlu0 %v688_v29 }
 0x630   :  { %746 = vrot.lane.b32.xlu0 %v6420_v57, %s6119_s2 }
 0x679   :  { %v687_v38 = vpop.xlane.xlu2 %686 }
 0x67a   :  { %v698_v44 = vmul.f32 %v6414_v43, %v687_v38  ;;  %v899_v38 = vld [vmem:[#allocation2 + $0x1d8] sm:$0xff] }
 0x67c   :  { %v700_v46 = vsub.f32 %v674_v35, %v698_v44  ;;  %v900_v44 = vld [vmem:[#allocation2 + $0x1e0] sm:$0xff] }
 0x67e   :  { %v702_v48 = vmul.f32 %v700_v46, %v700_v46 }
 0x680   :  { %706 = vrot.lane.b32.xlu1 %v702_v48, %s6121_s21  ;;  %v891_v48 = vld [vmem:[#allocation2 + $0x198] sm:$0xff] }
 0x68f   :  { %v690_v50 = vpop.xlane.xlu0 %689 }
 0x690   :  { %v699_v52 = vmul.f32 %v6414_v43, %v690_v50  ;;  %v892_v50 = vld [vmem:[#allocation2 + $0x1a0] sm:$0xff] }
 0x692   :  { %v701_v30 = vsub.f32 %v675_v36, %v699_v52  ;;  %v5480_v52 = vpack.i.bf16 %v891_v48, %v892_v50 }
 0x694   :  { %v703_v54 = vmul.f32 %v701_v30, %v701_v30 }
 0x696   :  { %708 = vrot.lane.b32.xlu1 %v703_v54, %s6121_s21  ;;  %v897_v54 = vld [vmem:[#allocation2 + $0x1c8] sm:$0xff] }
 0x6a2   :  { %v6432_v31 = vpop.permute.xlu0 %746 }
 0x6f2   :  { %v707_v60 = vpop.permute.xlu1 %706 }
 0x6f3   :  { %v712_v61 = vsel %vm108_vm1, %v707_v60, 0.0  ;;  %v895_v60 = vld [vmem:[#allocation2 + $0x1b8] sm:$0xff] }
 0x6f4   :  { %713 = vadd.xlane.f32.xlu1 %v712_v61  ;;  %v5465_v61 = vpack.i.bf16 %v897_v54, %v898_v56 }
 0x708   :  { %v709_v45 = vpop.permute.xlu1 %708 }
 0x709   :  { %v715_v34 = vsel %vm108_vm1, %v709_v45, 0.0  ;;  %v885_v45 = vld [vmem:[#allocation2 + $0x168] sm:$0xff] }
 0x70a   :  { %716 = vadd.xlane.f32.xlu2 %v715_v34  ;;  %v886_v34 = vld [vmem:[#allocation2 + $0x170] sm:$0xff] }
 0x722   :  { %753 = vrot.lane.b32.xlu2 %v6426_v0, %s6119_s2 }
 0x72a   :  { %5466 = vrot.lane.b32.xlu2 %v5465_v61, %s6121_s21 }
 0x767   :  { %v714_v4 = vpop.xlane.xlu1 %713 }
 0x768   :  { %v718_v6 = vmul.f32 %v714_v4, %v6414_v43 }
 0x76a   :  { %v720_v7 = vadd.f32 1e-05, %v718_v6  ;;  %v893_v6 = vld [vmem:[#allocation2 + $0x1a8] sm:$0xff] }
 0x76c   :  { %5792 = vrsqrt.f32 %v720_v7  ;;  %vm728_vm7 = vweird.f32 %v720_v7 }
 0x772   :  { %v5793_v10 = vpop.eup %5792 }
 0x773   :  { %v723_v5 = vmul.f32 %v5793_v10, %v720_v7  ;;  %vm729_vm6 = vweird.f32 %v5793_v10  ;;  %v894_v7 = vld [vmem:[#allocation2 + $0x1b0] sm:$0xff] }
 0x774   :  { %vm730_vm8 = vmor %vm728_vm7, %vm729_vm6 }
 0x775   :  { %v724_v47 = vmul.f32 %v5793_v10, %v723_v5  ;;  %v5475_v5 = vpack.i.bf16 %v893_v6, %v894_v7 }
 0x777   :  { %v725_v11 = vmul.f32 0.5, %v724_v47  ;;  %v889_v47 = vld [vmem:[#allocation2 + $0x188] sm:$0xff]  ;;  %5476 = vrot.lane.b32.xlu2 %v5475_v5, %s6121_s21 }
 0x779   :  { %v726_v12 = vsub.f32 1.5, %v725_v11  ;;  %v890_v11 = vld [vmem:[#allocation2 + $0x190] sm:$0xff] }
 0x77a   :  { %v5485_v13 = vpack.i.bf16 %v889_v47, %v890_v11 }
 0x77b   :  { %v727_v16 = vmul.f32 %v5793_v10, %v726_v12 }
 0x77d   :  { %v717_v22 = vpop.xlane.xlu2 %716  ;;  %v731_v15 = vsel %vm730_vm8, %v5793_v10, %v727_v16  ;;  %v5495_v10 = vpack.i.bf16 %v885_v45, %v886_v34  ;;  %v888_v16 = vld [vmem:[#allocation2 + $0x180] sm:$0xff] }
 0x77e   :  { %v719_v25 = vmul.f32 %v717_v22, %v6414_v43  ;;  %v742_v28 = vmul.f32 %v731_v15, %v700_v46  ;;  %v5460_v46 = vpack.i.bf16 %v899_v38, %v900_v44  ;;  %v5490_v18 = vpack.i.bf16 %v887_v14, %v888_v16 }
 0x780   :  { %v721_v27 = vadd.f32 1e-05, %v719_v25  ;;  %v749_v35 = vmul.f32 %v6432_v31, %v742_v28  ;;  %5491 = vrot.lane.b32.xlu2 %v5490_v18, %s6121_s21 }
 0x782   :  { %5794 = vrsqrt.f32 %v721_v27  ;;  %vm738_vm10 = vweird.f32 %v721_v27 }
 0x785   :  { %v6435_v24 = vpop.permute.xlu2 %753 }
 0x786   :  { %v6438_v36 = vadd.f32 %v6435_v24, %v749_v35 }
 0x788   :  { %v5795_v26 = vpop.eup %5794  ;;  %766 = vrot.lane.b32.xlu1 %v6438_v36, %s6121_s21 }
 0x789   :  { %v733_v37 = vmul.f32 %v5795_v26, %v721_v27  ;;  %vm739_vm9 = vweird.f32 %v5795_v26 }
 0x78a   :  { %vm740_vm11 = vmor %vm738_vm10, %vm739_vm9 }
 0x78b   :  { %v734_v39 = vmul.f32 %v5795_v26, %v733_v37 }
 0x78d   :  { %v735_v29 = vmul.f32 0.5, %v734_v39  ;;  %v5467_v27 = vpop.permute.xlu2 %5466 }
 0x78e   :  { %v5468_v28 = vunpack.i.l.bf16 %v5467_v27  ;;  %v5469_v35 = vunpack.i.h.bf16 %v5467_v27 }
 0x78f   :  { %v736_v33 = vsub.f32 1.5, %v735_v29 }
 0x790   :  { %5481 = vrot.lane.b32.xlu1 %v5480_v52, %s6121_s21 }
 0x791   :  { %v737_v23 = vmul.f32 %v5795_v26, %v736_v33 }
 0x793   :  { %v741_v40 = vsel %vm740_vm11, %v5795_v26, %v737_v23  ;;  %v5747_v26 = vld [vmem:[#allocation2 + $0xe8] ss:$0 sm:$0xff] }
 0x794   :  { %v743_v32 = vmul.f32 %v741_v40, %v701_v30  ;;  %v896_v30 = vld [vmem:[#allocation2 + $0x1c0] sm:$0xff] }
 0x795   :  { %v5470_v4 = vpack.i.bf16 %v895_v60, %v896_v30 }
 0x796   :  { %v750_v41 = vmul.f32 %v6432_v31, %v743_v32 }
 0x798   :  { %v6444_v42 = vadd.f32 %v6435_v24, %v750_v41  ;;  %5496 = vrot.lane.b32.xlu1 %v5495_v10, %s6121_s21 }
 0x79a   :  { %768 = vrot.lane.b32.xlu0 %v6444_v42, %s6121_s21 }
 0x7a2   :  { %5461 = vrot.lane.b32.xlu0 %v5460_v46, %s6121_s21 }
 0x7aa   :  { %5471 = vrot.lane.b32.xlu0 %v5470_v4, %s6121_s21 }
 0x7b2   :  { %5486 = vrot.lane.b32.xlu0 %v5485_v13, %s6121_s21 }
 0x7d1   :  { %v5477_v40 = vpop.permute.xlu2 %5476 }
 0x7d2   :  { %v5478_v32 = vunpack.i.l.bf16 %v5477_v40  ;;  %v5479_v38 = vunpack.i.h.bf16 %v5477_v40 }
 0x7da   :  { %v5492_v6 = vpop.permute.xlu2 %5491 }
 0x7db   :  { %v5493_v10 = vunpack.i.l.bf16 %v5492_v6  ;;  %v5494_v11 = vunpack.i.h.bf16 %v5492_v6 }
 0x7fa   :  { %v767_v12 = vpop.permute.xlu1 %766 }
 0x7fb   :  { %5274 = vmatmul.msk.f32.vlgmr.msrb.gmra.mxu3 %vm108_vm1, %v767_v12 }
 0x802   :  { %v5482_v46 = vpop.permute.xlu1 %5481 }
 0x803   :  { %v5483_v48 = vunpack.i.l.bf16 %v5482_v46  ;;  %v5484_v52 = vunpack.i.h.bf16 %v5482_v46 }
 0x80a   :  { %v5497_v47 = vpop.permute.xlu1 %5496 }
 0x80b   :  { %v5498_v13 = vunpack.i.l.bf16 %v5497_v47  ;;  %v5499_v18 = vunpack.i.h.bf16 %v5497_v47 }
 0x80c   :  { %v769_v22 = vpop.permute.xlu0 %768 }
 0x80d   :  { %5275 = vmatmul.msk.f32.gmra.mxu3 %vm108_vm1, %v769_v22 }
 0x814   :  { %v5462_v25 = vpop.permute.xlu0 %5461 }
 0x815   :  { %v5463_v15 = vunpack.i.l.bf16 %v5462_v25  ;;  %v5464_v17 = vunpack.i.h.bf16 %v5462_v25 }
 0x817   :  { %971 = vmatpush.msrb.mxu2 %v5463_v15 }
 0x819   :  { %972 = vmatpush.msrb.mxu2 %v5464_v17 }
 0x81b   :  { %973 = vmatpush.msrb.mxu2 %v5468_v28  ;;  %v5748_v28 = vld [vmem:[#allocation2 + $0x1e8] ss:$0 sm:$0xff] }
 0x81c   :  { %v5472_v37 = vpop.permute.xlu0 %5471  ;;  %968 = vrot.lane.b32.xlu0 %v5748_v28, %s6121_s21 }
 0x81d   :  { %974 = vmatpush.msrb.mxu2 %v5469_v35  ;;  %v5473_v39 = vunpack.i.l.bf16 %v5472_v37  ;;  %v5474_v33 = vunpack.i.h.bf16 %v5472_v37 }
 0x81f   :  { %975 = vmatpush.msrb.mxu2 %v5473_v39 }
 0x821   :  { %976 = vmatpush.msrb.mxu2 %v5474_v33 }
 0x823   :  { %977 = vmatpush.msrb.mxu2 %v5478_v32 }
 0x824   :  { %v5487_v56 = vpop.permute.xlu0 %5486 }
 0x825   :  { %978 = vmatpush.msrb.mxu2 %v5479_v38  ;;  %v5488_v30 = vunpack.i.l.bf16 %v5487_v56  ;;  %v5489_v34 = vunpack.i.h.bf16 %v5487_v56 }
 0x827   :  { %979 = vmatpush.msrb.mxu2 %v5483_v48 }
 0x829   :  { %980 = vmatpush.msrb.mxu2 %v5484_v52 }
 0x82b   :  { %981 = vmatpush.msrb.mxu2 %v5488_v30 }
 0x82d   :  { %982 = vmatpush.msrb.mxu2 %v5489_v34 }
 0x82f   :  { %983 = vmatpush.msrb.mxu2 %v5493_v10 }
 0x831   :  { %984 = vmatpush.msrb.mxu2 %v5494_v11 }
 0x833   :  { %985 = vmatpush.msrb.mxu2 %v5498_v13 }
 0x835   :  { %986 = vmatpush.msrb.mxu2 %v5499_v18 }
 0x87e   :  { %v791_v29 = vpop.f32.mrf.mxu3 }
 0x87f   :  { %v6458_v23 = vadd.f32 %v5747_v26, %v791_v29 }
 0x881   :  { %v6461_v41 = vmul.f32 0.70710677, %v6458_v23 }
 0x883   :  { %v801_v44 = vmul.f32 %v6461_v41, %v6461_v41 }
 0x885   :  { %v802_v50 = vmin.f32 %v801_v44, 16.0 }
 0x887   :  { %v803_v54 = vmul.f32 2.1237322e-06, %v802_v50  ;;  %v814_v60 = vmul.f32 3.8918573e-05, %v802_v50 }
 0x889   :  { %v804_v61 = vadd.f32 0.00028619796, %v803_v54  ;;  %v815_v45 = vadd.f32 0.001143296, %v814_v60 }
 0x88b   :  { %v805_v4 = vmul.f32 %v804_v61, %v802_v50  ;;  %v816_v7 = vmul.f32 %v815_v45, %v802_v50 }
 0x88d   :  { %v806_v5 = vadd.f32 0.0036580483, %v805_v4  ;;  %v817_v12 = vadd.f32 0.014752088, %v816_v7 }
 0x88f   :  { %v818_v14 = vmul.f32 %v817_v12, %v802_v50  ;;  %v807_v22 = vmul.f32 %v806_v5, %v802_v50 }
 0x890   :  { %v794_v16 = vpop.f32.mrf.mxu3 }
 0x891   :  { %v6465_v25 = vadd.f32 %v5747_v26, %v794_v16  ;;  %v819_v15 = vadd.f32 0.112945676, %v818_v14  ;;  %v808_v35 = vadd.f32 0.05243302, %v807_v22 }
 0x893   :  { %v6468_v17 = vmul.f32 0.70710677, %v6465_v25  ;;  %v820_v27 = vmul.f32 %v819_v15, %v802_v50  ;;  %v809_v40 = vmul.f32 %v808_v35, %v802_v50 }
 0x895   :  { %v841_v37 = vmul.f32 %v6468_v17, %v6468_v17  ;;  %v821_v39 = vadd.f32 0.4994258, %v820_v27  ;;  %v810_v48 = vadd.f32 0.18741608, %v809_v40 }
 0x897   :  { %v842_v29 = vmin.f32 %v841_v37, 16.0  ;;  %v822_v33 = vmul.f32 %v821_v39, %v802_v50  ;;  %v811_v30 = vmul.f32 %v810_v48, %v802_v50 }
 0x899   :  { %v843_v26 = vmul.f32 2.1237322e-06, %v842_v29  ;;  %v823_v32 = vadd.f32 1.0, %v822_v33  ;;  %v854_v38 = vmul.f32 3.8918573e-05, %v842_v29  ;;  %v797_v33 = vmul.f32 0.5, %v6458_v23 }
 0x89a   :  { %v812_v7 = vadd.f32 1.1283791, %v811_v30 }
 0x89b   :  { %v844_v44 = vadd.f32 0.00028619796, %v843_v26  ;;  %5796 = vrcp.f32 %v823_v32  ;;  %v855_v46 = vadd.f32 0.001143296, %v854_v38  ;;  %v835_v5 = vand.u32 2147483648, %v823_v32 }
 0x89c   :  { %v833_v11 = vand.u32 2147483647, %v823_v32  ;;  %vm829_vm13 = vweird.f32 %v823_v32  ;;  %v813_v50 = vmul.f32 %v812_v7, %v6461_v41 }
 0x89d   :  { %v845_v52 = vmul.f32 %v844_v44, %v842_v29  ;;  %v856_v54 = vmul.f32 %v855_v46, %v842_v29  ;;  %v836_v18 = vor.u32 1.1754944e-38, %v835_v5 }
 0x89e   :  { %vm834_vm15 = vcmp.eq.f32.partialorder %v833_v11, 8.507059e+37 }
 0x89f   :  { %v857_v56 = vadd.f32 0.014752088, %v856_v54  ;;  %v846_v61 = vadd.f32 0.0036580483, %v845_v52 }
 0x8a1   :  { %v5797_v60 = vpop.eup %5796  ;;  %v858_v34 = vmul.f32 %v857_v56, %v842_v29  ;;  %v847_v10 = vmul.f32 %v846_v61, %v842_v29 }
 0x8a2   :  { %v825_v45 = vmul.f32 %v5797_v60, %v823_v32  ;;  %vm830_vm12 = vweird.f32 %v5797_v60 }
 0x8a3   :  { %v859_v6 = vadd.f32 0.112945676, %v858_v34  ;;  %v848_v16 = vadd.f32 0.05243302, %v847_v10  ;;  %vm831_vm14 = vmor %vm829_vm13, %vm830_vm12  ;;  %v969_v10 = vpop.permute.xlu0 %968 }
 0x8a4   :  { %v826_v4 = vsub.f32 1.0, %v825_v45 }
 0x8a5   :  { %v860_v12 = vmul.f32 %v859_v6, %v842_v29  ;;  %v849_v37 = vmul.f32 %v848_v16, %v842_v29 }
 0x8a6   :  { %v827_v47 = vmul.f32 %v5797_v60, %v826_v4 }
 0x8a7   :  { %v861_v14 = vadd.f32 0.4994258, %v860_v12  ;;  %v850_v26 = vadd.f32 0.18741608, %v849_v37 }
 0x8a8   :  { %v828_v13 = vadd.f32 %v5797_v60, %v827_v47 }
 0x8a9   :  { %v862_v15 = vmul.f32 %v861_v14, %v842_v29  ;;  %v851_v44 = vmul.f32 %v850_v26, %v842_v29  ;;  %v798_v29 = vmul.f32 0.5, %v6465_v25 }
 0x8aa   :  { %v832_v22 = vsel %vm831_vm14, %v5797_v60, %v828_v13 }
 0x8ab   :  { %v837_v27 = vsel %vm834_vm15, %v836_v18, %v832_v22  ;;  %v863_v35 = vadd.f32 1.0, %v862_v15  ;;  %v852_v52 = vadd.f32 1.1283791, %v851_v44 }
 0x8ac   :  { %v838_v28 = vmul.f32 %v837_v27, %v813_v50 }
 0x8ad   :  { %5798 = vrcp.f32 %v863_v35  ;;  %v875_v41 = vand.u32 2147483648, %v863_v35  ;;  %v873_v56 = vand.u32 2147483647, %v863_v35  ;;  %vm869_vm5 = vweird.f32 %v863_v35 }
 0x8ae   :  { %v5276_v39 = vclamps-f32 %v838_v28, 1.0  ;;  %v853_v61 = vmul.f32 %v852_v52, %v6468_v17 }
 0x8af   :  { %v876_v30 = vor.u32 1.1754944e-38, %v875_v41  ;;  %vm874_vm7 = vcmp.eq.f32.partialorder %v873_v56, 8.507059e+37 }
 0x8b0   :  { %v881_v40 = vadd.f32 1.0, %v5276_v39 }
 0x8b2   :  { %v883_v32 = vmul.f32 %v881_v40, %v797_v33  ;;  %v1004_v33 = vld [vmem:[#allocation2 + $0x288] sm:$0x3] }
 0x8b3   :  { %v5799_v38 = vpop.eup %5798  ;;  %v6489_v40 = vperm.slane %v1004_v33, 0 }
 0x8b4   :  { %987 = vmatmul.f32.vlgmr.msrb.gmra.mxu2 %v883_v32  ;;  %v865_v46 = vmul.f32 %v5799_v38, %v863_v35  ;;  %vm870_vm0 = vweird.f32 %v5799_v38 }
 0x8b5   :  { %vm871_vm6 = vmor %vm869_vm5, %vm870_vm0 }
 0x8b6   :  { %v866_v48 = vsub.f32 1.0, %v865_v46  ;;  %v6495_v46 = vperm.slane %v1004_v33, 1 }
 0x8b8   :  { %v867_v54 = vmul.f32 %v5799_v38, %v866_v48 }
 0x8ba   :  { %v868_v60 = vadd.f32 %v5799_v38, %v867_v54 }
 0x8bc   :  { %v872_v23 = vsel %vm871_vm6, %v5799_v38, %v868_v60  ;;  %v1082_v60 = vld [vmem:[#allocation2 + $0x108] sm:$0xff] }
 0x8bd   :  { %v877_v45 = vsel %vm874_vm7, %v876_v30, %v872_v23  ;;  %v1081_v30 = vld [vmem:[#allocation2 + $0x100] sm:$0xff]  ;;  %1107 = vmatpush.msra.mxu1 %v1082_v60 }
 0x8be   :  { %v878_v34 = vmul.f32 %v877_v45, %v853_v61  ;;  %v1080_v61 = vld [vmem:[#allocation2 + $0xf8] sm:$0xff] }
 0x8bf   :  { %1108 = vmatpush.msra.mxu1 %v1081_v30 }
 0x8c0   :  { %v5277_v4 = vclamps-f32 %v878_v34, 1.0 }
 0x8c1   :  { %1109 = vmatpush.msra.mxu1 %v1080_v61 }
 0x8c2   :  { %v882_v6 = vadd.f32 1.0, %v5277_v4  ;;  %v1079_v4 = vld [vmem:[#allocation2 + $0xf0] sm:$0xff] }
 0x8c3   :  { %1110 = vmatpush.msra.mxu1 %v1079_v4 }
 0x8c4   :  { %v884_v7 = vmul.f32 %v882_v6, %v798_v29 }
 0x8c6   :  { %990 = vmatmul.f32.gmra.mxu2 %v884_v7 }
 0x937   :  { %v988_v5 = vpop.f32.mrf.mxu2 }
 0x938   :  { %v989_v47 = vadd.f32 %v988_v5, %v969_v10 }
 0x93a   :  { %996 = vrot.lane.b32.xlu2 %v989_v47, %s6121_s21 }
 0x949   :  { %v991_v11 = vpop.f32.mrf.mxu2 }
 0x94a   :  { %v992_v12 = vadd.f32 %v991_v11, %v969_v10 }
 0x94c   :  { %998 = vrot.lane.b32.xlu1 %v992_v12, %s6121_s21 }
 0x994   :  { %v997_v17 = vpop.permute.xlu2 %996 }
 0x995   :  { %v1002_v13 = vadd.f32 %v997_v17, %v6438_v36 }
 0x997   :  { %1007 = vrot.lane.b32.xlu0 %v1002_v13, %s6121_s21 }
 0x9be   :  { %v999_v14 = vpop.permute.xlu1 %998 }
 0x9bf   :  { %v1003_v25 = vadd.f32 %v999_v14, %v6444_v42 }
 0x9c1   :  { %1009 = vrot.lane.b32.xlu2 %v1003_v25, %s6121_s21 }
 0xa09   :  { %v1008_v16 = vpop.permute.xlu0 %1007 }
 0xa0a   :  { %v1013_v18 = vsel %vm108_vm1, %v1008_v16, 0.0 }
 0xa0b   :  { %1014 = vadd.xlane.f32.xlu1 %v1013_v18 }
 0xa1b   :  { %v1010_v50 = vpop.permute.xlu2 %1009 }
 0xa1c   :  { %v1016_v22 = vsel %vm108_vm1, %v1010_v50, 0.0 }
 0xa1d   :  { %1017 = vadd.xlane.f32.xlu0 %v1016_v22 }
 0xa31   :  { %1067 = vrot.lane.b32.xlu0 %v6489_v40, %s6121_s21 }
 0xa7e   :  { %v1015_v15 = vpop.xlane.xlu1 %1014 }
 0xa7f   :  { %v1019_v27 = vmul.f32 %v1015_v15, %v6414_v43 }
 0xa81   :  { %v1021_v28 = vsub.f32 %v1002_v13, %v1019_v27 }
 0xa83   :  { %v1023_v36 = vmul.f32 %v1021_v28, %v1021_v28 }
 0xa85   :  { %1027 = vrot.lane.b32.xlu2 %v1023_v36, %s6121_s21 }
 0xa90   :  { %v1018_v35 = vpop.xlane.xlu0 %1017 }
 0xa91   :  { %v1020_v42 = vmul.f32 %v1018_v35, %v6414_v43 }
 0xa93   :  { %v1022_v37 = vsub.f32 %v1003_v25, %v1020_v42 }
 0xa95   :  { %v1024_v39 = vmul.f32 %v1022_v37, %v1022_v37 }
 0xa97   :  { %1029 = vrot.lane.b32.xlu2 %v1024_v39, %s6121_s21 }
 0xaa3   :  { %v1068_v25 = vpop.permute.xlu0 %1067 }
 0xadf   :  { %v1028_v26 = vpop.permute.xlu2 %1027 }
 0xae0   :  { %v1033_v32 = vsel %vm108_vm1, %v1028_v26, 0.0 }
 0xae1   :  { %1034 = vadd.xlane.f32.xlu2 %v1033_v32 }
 0xaf1   :  { %v1030_v38 = vpop.permute.xlu2 %1029 }
 0xaf2   :  { %v1036_v44 = vsel %vm108_vm1, %v1030_v38, 0.0 }
 0xaf3   :  { %1037 = vadd.xlane.f32.xlu1 %v1036_v44 }
 0xb0c   :  { %1074 = vrot.lane.b32.xlu1 %v6495_v46, %s6121_s21 }
 0xb54   :  { %v1035_v48 = vpop.xlane.xlu2 %1034 }
 0xb55   :  { %v1039_v41 = vmul.f32 %v1035_v48, %v6414_v43 }
 0xb57   :  { %v1041_v52 = vadd.f32 1e-05, %v1039_v41 }
 0xb59   :  { %5800 = vrsqrt.f32 %v1041_v52  ;;  %vm1049_vm9 = vweird.f32 %v1041_v52 }
 0xb5f   :  { %v5801_v54 = vpop.eup %5800 }
 0xb60   :  { %v1044_v56 = vmul.f32 %v5801_v54, %v1041_v52  ;;  %vm1050_vm8 = vweird.f32 %v5801_v54 }
 0xb61   :  { %vm1051_vm10 = vmor %vm1049_vm9, %vm1050_vm8 }
 0xb62   :  { %v1045_v23 = vmul.f32 %v5801_v54, %v1044_v56 }
 0xb64   :  { %v1046_v6 = vmul.f32 0.5, %v1045_v23 }
 0xb66   :  { %v1038_v45 = vpop.xlane.xlu1 %1037  ;;  %v1047_v7 = vsub.f32 1.5, %v1046_v6 }
 0xb67   :  { %v1040_v34 = vmul.f32 %v1038_v45, %v6414_v43 }
 0xb68   :  { %v1048_v47 = vmul.f32 %v5801_v54, %v1047_v7 }
 0xb69   :  { %v1042_v29 = vadd.f32 1e-05, %v1040_v34 }
 0xb6a   :  { %v1052_v17 = vsel %vm1051_vm10, %v5801_v54, %v1048_v47 }
 0xb6b   :  { %5802 = vrsqrt.f32 %v1042_v29  ;;  %v1063_v14 = vmul.f32 %v1052_v17, %v1021_v28  ;;  %vm1059_vm12 = vweird.f32 %v1042_v29 }
 0xb6d   :  { %v1070_v22 = vmul.f32 %v1068_v25, %v1063_v14 }
 0xb71   :  { %v5803_v10 = vpop.eup %5802 }
 0xb72   :  { %v1054_v5 = vmul.f32 %v5803_v10, %v1042_v29  ;;  %vm1060_vm11 = vweird.f32 %v5803_v10 }
 0xb73   :  { %vm1061_vm13 = vmor %vm1059_vm12, %vm1060_vm11 }
 0xb74   :  { %v1055_v11 = vmul.f32 %v5803_v10, %v1054_v5 }
 0xb76   :  { %v1056_v12 = vmul.f32 0.5, %v1055_v11 }
 0xb78   :  { %v1057_v13 = vsub.f32 1.5, %v1056_v12 }
 0xb7a   :  { %v1058_v16 = vmul.f32 %v5803_v10, %v1057_v13 }
 0xb7c   :  { %v1062_v18 = vsel %vm1061_vm13, %v5803_v10, %v1058_v16 }
 0xb7d   :  { %v1064_v50 = vmul.f32 %v1062_v18, %v1022_v37  ;;  %v5749_v37 = vld [vmem:[#allocation2 + $0x110] ss:$0 sm:$0xff] }
 0xb7e   :  { %v1075_v15 = vpop.permute.xlu1 %1074 }
 0xb7f   :  { %v1071_v27 = vmul.f32 %v1068_v25, %v1064_v50  ;;  %v6501_v36 = vadd.f32 %v1075_v15, %v1070_v22 }
 0xb81   :  { %v6503_v35 = vadd.f32 %v1075_v15, %v1071_v27  ;;  %1087 = vrot.lane.b32.xlu2 %v6501_v36, %s6121_s21 }
 0xb83   :  { %1089 = vrot.lane.b32.xlu0 %v6503_v35, %s6121_s21 }
 0xbdb   :  { %v1088_v28 = vpop.permute.xlu2 %1087 }
 0xbdc   :  { %5278 = vmatmul.msk.f32.vlgmr.msra.gmra.mxu1 %vm108_vm1, %v1088_v28 }
 0xbf5   :  { %v1090_v42 = vpop.permute.xlu0 %1089 }
 0xbf6   :  { %5279 = vmatmul.msk.f32.gmra.mxu1 %vm108_vm1, %v1090_v42 }
 0xc59   :  { %v1112_v39 = vpop.f32.mrf.mxu1 }
 0xc5a   :  { %v1113_v33 = vadd.f32 %v5749_v37, %v1112_v39 }
 0xc5c   :  { %1123 = vrot.lane.b32.xlu0 %v1113_v33, %s6119_s2  ;;  %v1270_v26 = vmul.f32 %v1113_v33, %v6236_v3  ;;  %v1271_v32 = vmul.f32 %v1113_v33, %v6229_v63  ;;  %v1268_v44 = vmul.f32 %v1113_v33, %v6242_v8  ;;  %v1269_v48 = vmul.f32 %v1113_v33, %v6246_v9 }
 0xc5d   :  { %v1118_v7 = vmul.f32 %v1113_v33, %v6199_v49  ;;  %v1119_v47 = vmul.f32 %v1113_v33, %v6204_v51  ;;  %v1120_v12 = vmul.f32 %v1113_v33, %v6208_v53  ;;  %v1121_v13 = vmul.f32 %v1113_v33, %v6220_v59 }
 0xc5e   :  { %v5500_v38 = vpack.i.bf16 %v1270_v26, %v1271_v32  ;;  %v5505_v41 = vpack.i.bf16 %v1268_v44, %v1269_v48 }
 0xc60   :  { %5501 = vrot.lane.b32.xlu2 %v5500_v38, %s6121_s21 }
 0xc64   :  { %5506 = vrot.lane.b32.xlu0 %v5505_v41, %s6121_s21 }
 0xc73   :  { %v1115_v52 = vpop.f32.mrf.mxu1 }
 0xc74   :  { %v1116_v54 = vadd.f32 %v5749_v37, %v1115_v52 }
 0xc76   :  { %1337 = vrot.lane.b32.xlu1 %v1116_v54, %s6119_s2  ;;  %v1482_v56 = vmul.f32 %v1116_v54, %v6242_v8  ;;  %v1483_v60 = vmul.f32 %v1116_v54, %v6246_v9  ;;  %v1484_v61 = vmul.f32 %v1116_v54, %v6236_v3  ;;  %v1485_v23 = vmul.f32 %v1116_v54, %v6229_v63 }
 0xc77   :  { %v1332_v14 = vmul.f32 %v1116_v54, %v6199_v49  ;;  %v1333_v50 = vmul.f32 %v1116_v54, %v6204_v51  ;;  %v1334_v28 = vmul.f32 %v1116_v54, %v6208_v53  ;;  %v1335_v42 = vmul.f32 %v1116_v54, %v6220_v59 }
 0xc78   :  { %v5515_v30 = vpack.i.bf16 %v1482_v56, %v1483_v60  ;;  %v5510_v45 = vpack.i.bf16 %v1484_v61, %v1485_v23 }
 0xc7a   :  { %5516 = vrot.lane.b32.xlu2 %v5515_v30, %s6121_s21 }
 0xc7e   :  { %5511 = vrot.lane.b32.xlu1 %v5510_v45, %s6121_s21 }
 0xcba   :  { %v5502_v34 = vpop.permute.xlu2 %5501 }
 0xcbb   :  { %v5503_v4 = vunpack.i.l.bf16 %v5502_v34  ;;  %v5504_v29 = vunpack.i.h.bf16 %v5502_v34 }
 0xcbd   :  { %1312 = vmatpush.msra.mxu0 %v5503_v4 }
 0xcbf   :  { %1313 = vmatpush.msra.mxu0 %v5504_v29 }
 0xcce   :  { %v1124_v6 = vpop.permute.xlu0 %1123 }
 0xccf   :  { %5280 = vmatpush.xpose.msk.msra.mxu3 %vm108_vm1, %v1124_v6 }
 0xcd2   :  { %5281 = vmatmul.msk.f32.vlgmr.msra.gmra.mxu3 %vm108_vm1, %v1118_v7 }
 0xcd4   :  { %v5517_v18 = vpop.permute.xlu2 %5516 }
 0xcd5   :  { %v5518_v15 = vunpack.i.l.bf16 %v5517_v18  ;;  %v5519_v27 = vunpack.i.h.bf16 %v5517_v18 }
 0xcd6   :  { %v5507_v10 = vpop.permute.xlu0 %5506 }
 0xcd7   :  { %v5508_v5 = vunpack.i.l.bf16 %v5507_v10  ;;  %v5509_v11 = vunpack.i.h.bf16 %v5507_v10 }
 0xcd9   :  { %1314 = vmatpush.msra.mxu0 %v5508_v5 }
 0xcda   :  { %5282 = vmatmul.msk.f32.gmra.mxu3 %vm108_vm1, %v1119_v47 }
 0xcdb   :  { %1315 = vmatpush.msra.mxu0 %v5509_v11 }
 0xce2   :  { %5283 = vmatmul.msk.f32.gmra.mxu3 %vm108_vm1, %v1120_v12 }
 0xce8   :  { %v1338_v17 = vpop.permute.xlu1 %1337 }
 0xce9   :  { %5289 = vmatpush.xpose.msk.msra.mxu2 %vm108_vm1, %v1338_v17 }
 0xcea   :  { %5284 = vmatmul.msk.f32.gmra.mxu3 %vm108_vm1, %v1121_v13 }
 0xcec   :  { %5290 = vmatmul.msk.f32.vlgmr.msra.gmra.mxu2 %vm108_vm1, %v1332_v14 }
 0xcf0   :  { %v5512_v25 = vpop.permute.xlu1 %5511 }
 0xcf1   :  { %v5513_v16 = vunpack.i.l.bf16 %v5512_v25  ;;  %v5514_v22 = vunpack.i.h.bf16 %v5512_v25 }
 0xcf3   :  { %1526 = vmatpush.msrb.mxu1 %v5513_v16 }
 0xcf4   :  { %5291 = vmatmul.msk.f32.gmra.mxu2 %vm108_vm1, %v1333_v50 }
 0xcf5   :  { %1527 = vmatpush.msrb.mxu1 %v5514_v22 }
 0xcf7   :  { %1528 = vmatpush.msrb.mxu1 %v5518_v15 }
 0xcf9   :  { %1529 = vmatpush.msrb.mxu1 %v5519_v27 }
 0xcfc   :  { %5292 = vmatmul.msk.f32.gmra.mxu2 %vm108_vm1, %v1334_v28 }
 0xd04   :  { %5293 = vmatmul.msk.f32.gmra.mxu2 %vm108_vm1, %v1335_v42 }
 0xd55   :  { %v1156_v37 = vpop.f32.mrf.mxu3 }
 0xd56   :  { %v1157_v39 = vadd.f32 %v1156_v37, %v6212_v55 }
 0xd58   :  { %v1168_v33 = vsel %vm218_vm2, %v1157_v39, -inf }
 0xd59   :  { %1169 = vmax.xlane.f32.xlu0 %v1168_v33 }
 0xd5d   :  { %v1159_v26 = vpop.f32.mrf.mxu3 }
 0xd5e   :  { %v1160_v32 = vadd.f32 %v1159_v26, %v6233_v2 }
 0xd60   :  { %v1171_v38 = vsel %vm218_vm2, %v1160_v32, -inf }
 0xd61   :  { %1172 = vmax.xlane.f32.xlu1 %v1171_v38 }
 0xd65   :  { %v1162_v44 = vpop.f32.mrf.mxu3 }
 0xd66   :  { %v1163_v48 = vadd.f32 %v1162_v44, %v6227_v62 }
 0xd68   :  { %v1174_v41 = vsel %vm218_vm2, %v1163_v48, -inf }
 0xd69   :  { %1175 = vmax.xlane.f32.xlu0 %v1174_v41 }
 0xd6d   :  { %v1165_v52 = vpop.f32.mrf.mxu3 }
 0xd6e   :  { %v1166_v54 = vadd.f32 %v1165_v52, %v6218_v58 }
 0xd6f   :  { %v1370_v56 = vpop.f32.mrf.mxu2 }
 0xd70   :  { %v1371_v60 = vadd.f32 %v1370_v56, %v6212_v55  ;;  %v1177_v30 = vsel %vm218_vm2, %v1166_v54, -inf }
 0xd71   :  { %1178 = vmax.xlane.f32.xlu1 %v1177_v30 }
 0xd72   :  { %v1382_v61 = vsel %vm218_vm2, %v1371_v60, -inf }
 0xd73   :  { %1383 = vmax.xlane.f32.xlu2 %v1382_v61 }
 0xd77   :  { %v1373_v23 = vpop.f32.mrf.mxu2 }
 0xd78   :  { %v1374_v45 = vadd.f32 %v1373_v23, %v6233_v2 }
 0xd7a   :  { %v1385_v34 = vsel %vm218_vm2, %v1374_v45, -inf }
 0xd7b   :  { %1386 = vmax.xlane.f32.xlu2 %v1385_v34 }
 0xd7f   :  { %v1376_v4 = vpop.f32.mrf.mxu2 }
 0xd80   :  { %v1377_v29 = vadd.f32 %v1376_v4, %v6227_v62 }
 0xd82   :  { %v1388_v6 = vsel %vm218_vm2, %v1377_v29, -inf }
 0xd83   :  { %1389 = vmax.xlane.f32.xlu0 %v1388_v6 }
 0xd87   :  { %v1379_v7 = vpop.f32.mrf.mxu2 }
 0xd88   :  { %v1380_v10 = vadd.f32 %v1379_v7, %v6218_v58 }
 0xd8a   :  { %v1391_v5 = vsel %vm218_vm2, %v1380_v10, -inf }
 0xd8b   :  { %1392 = vmax.xlane.f32.xlu2 %v1391_v5 }
 0xdcc   :  { %v1170_v47 = vpop.xlane.xlu0 %1169 }
 0xdcd   :  { %v1180_v11 = vsub.f32 %v1157_v39, %v1170_v47 }
 0xdcf   :  { %v1184_v12 = vmul.f32 1.442695, %v1180_v11 }
 0xdd1   :  { %5804 = vpow2.f32 %v1184_v12 }
 0xdd4   :  { %v1173_v17 = vpop.xlane.xlu1 %1172 }
 0xdd5   :  { %v1181_v13 = vsub.f32 %v1160_v32, %v1173_v17 }
 0xdd7   :  { %v5805_v14 = vpop.eup %5804  ;;  %v1186_v25 = vmul.f32 1.442695, %v1181_v13 }
 0xdd8   :  { %v1192_v16 = vsel %vm218_vm2, %v5805_v14, 0.0 }
 0xdd9   :  { %5806 = vpow2.f32 %v1186_v25  ;;  %1193 = vadd.xlane.f32.xlu1 %v1192_v16 }
 0xddc   :  { %v1176_v18 = vpop.xlane.xlu0 %1175 }
 0xddd   :  { %v1182_v50 = vsub.f32 %v1163_v48, %v1176_v18 }
 0xddf   :  { %v5807_v22 = vpop.eup %5806  ;;  %v1188_v15 = vmul.f32 1.442695, %v1182_v50 }
 0xde0   :  { %v1195_v27 = vsel %vm218_vm2, %v5807_v22, 0.0 }
 0xde1   :  { %5808 = vpow2.f32 %v1188_v15  ;;  %1196 = vadd.xlane.f32.xlu0 %v1195_v27 }
 0xde4   :  { %v1179_v28 = vpop.xlane.xlu1 %1178 }
 0xde5   :  { %v1183_v26 = vsub.f32 %v1166_v54, %v1179_v28 }
 0xde6   :  { %v1384_v42 = vpop.xlane.xlu2 %1383 }
 0xde7   :  { %v5809_v37 = vpop.eup %5808  ;;  %v1394_v39 = vsub.f32 %v1371_v60, %v1384_v42  ;;  %v1190_v38 = vmul.f32 1.442695, %v1183_v26 }
 0xde8   :  { %v1198_v33 = vsel %vm218_vm2, %v5809_v37, 0.0 }
 0xde9   :  { %v1398_v32 = vmul.f32 1.442695, %v1394_v39  ;;  %1199 = vadd.xlane.f32.xlu1 %v1198_v33 }
 0xdeb   :  { %5810 = vpow2.f32 %v1398_v32 }
 0xdec   :  { %5812 = vpow2.f32 %v1190_v38 }
 0xdee   :  { %v1387_v44 = vpop.xlane.xlu2 %1386 }
 0xdef   :  { %v1395_v41 = vsub.f32 %v1374_v45, %v1387_v44 }
 0xdf1   :  { %v5811_v48 = vpop.eup %5810  ;;  %v1400_v52 = vmul.f32 1.442695, %v1395_v41 }
 0xdf2   :  { %v1406_v56 = vsel %vm218_vm2, %v5811_v48, 0.0  ;;  %v5813_v61 = vpop.eup %5812 }
 0xdf3   :  { %5814 = vpow2.f32 %v1400_v52  ;;  %1407 = vadd.xlane.f32.xlu2 %v1406_v56  ;;  %v1201_v54 = vsel %vm218_vm2, %v5813_v61, 0.0  ;;  %v6016_v56 = vld [vmem:[#allocation2 + $0x238] ss:$0 sm:$0xff] }
 0xdf6   :  { %v1390_v30 = vpop.xlane.xlu0 %1389 }
 0xdf7   :  { %v1396_v23 = vsub.f32 %v1377_v29, %v1390_v30 }
 0xdf9   :  { %v5815_v60 = vpop.eup %5814  ;;  %v1402_v34 = vmul.f32 1.442695, %v1396_v23 }
 0xdfa   :  { %v1409_v4 = vsel %vm218_vm2, %v5815_v60, 0.0 }
 0xdfb   :  { %5816 = vpow2.f32 %v1402_v34  ;;  %1202 = vadd.xlane.f32.xlu2 %v1201_v54  ;;  %1410 = vadd.xlane.f32.xlu0 %v1409_v4 }
 0xdfe   :  { %v1393_v45 = vpop.xlane.xlu2 %1392 }
 0xdff   :  { %v1397_v6 = vsub.f32 %v1380_v10, %v1393_v45 }
 0xe01   :  { %v5817_v7 = vpop.eup %5816  ;;  %v1404_v5 = vmul.f32 1.442695, %v1397_v6 }
 0xe02   :  { %v1412_v47 = vsel %vm218_vm2, %v5817_v7, 0.0 }
 0xe03   :  { %5818 = vpow2.f32 %v1404_v5  ;;  %1413 = vadd.xlane.f32.xlu1 %v1412_v47 }
 0xe09   :  { %v5819_v11 = vpop.eup %5818 }
 0xe0a   :  { %v1415_v29 = vsel %vm218_vm2, %v5819_v11, 0.0 }
 0xe0b   :  { %1416 = vadd.xlane.f32.xlu0 %v1415_v29 }
 0xe4c   :  { %v1194_v12 = vpop.xlane.xlu1 %1193 }
 0xe4d   :  { %5820 = vrcp.f32 %v1194_v12 }
 0xe53   :  { %v5821_v17 = vpop.eup %5820 }
 0xe54   :  { %v1197_v13 = vpop.xlane.xlu0 %1196  ;;  %v1208_v25 = vmul.f32 %v5821_v17, %v5805_v14 }
 0xe55   :  { %5822 = vrcp.f32 %v1197_v13 }
 0xe56   :  { %1240 = vrot.lane.b32.xlu2 %v1208_v25, %s6123_s23  ;;  %1228 = vrot.lane.b32.xlu0 %v1208_v25, %s6122_s22 }
 0xe57   :  { %1216 = vrot.lane.b32.xlu1 %v1208_v25, %s6116_s18 }
 0xe5b   :  { %v5823_v10 = vpop.eup %5822 }
 0xe5c   :  { %v6570_v16 = vmul.f32 %v5823_v10, %v5807_v22  ;;  %v1200_v50 = vpop.xlane.xlu1 %1199 }
 0xe5e   :  { %1218 = vrot.lane.b32.xlu2 %v6570_v16, %s6116_s18 }
 0xe5f   :  { %1230 = vrot.lane.b32.xlu1 %v6570_v16, %s6122_s22 }
 0xe66   :  { %v1408_v18 = vpop.xlane.xlu2 %1407 }
 0xe67   :  { %5824 = vrcp.f32 %v1408_v18 }
 0xe68   :  { %5826 = vrcp.f32 %v1200_v50 }
 0xe6d   :  { %v5825_v14 = vpop.eup %5824 }
 0xe6e   :  { %v1411_v15 = vpop.xlane.xlu0 %1410  ;;  %v1422_v27 = vmul.f32 %v5825_v14, %v5811_v48  ;;  %v5827_v22 = vpop.eup %5826  ;;  %v6017_v14 = vld [vmem:[#allocation2 + $0x228] sm:$0xff] }
 0xe6f   :  { %5828 = vrcp.f32 %v1411_v15  ;;  %v6579_v42 = vmul.f32 %v5827_v22, %v5809_v37  ;;  %v1203_v33 = vpop.xlane.xlu2 %1202  ;;  %v6018_v15 = vld [vmem:[#allocation2 + $0x230] sm:$0xff] }
 0xe70   :  { %1430 = vrot.lane.b32.xlu0 %v1422_v27, %s6116_s18  ;;  %1454 = vrot.lane.b32.xlu1 %v1422_v27, %s6123_s23  ;;  %5830 = vrcp.f32 %v1203_v33  ;;  %v6019_v33 = vld [vmem:[#allocation2 + $0x218] sm:$0xff] }
 0xe71   :  { %1442 = vrot.lane.b32.xlu2 %v1422_v27, %s6122_s22 }
 0xe75   :  { %v5829_v28 = vpop.eup %5828 }
 0xe76   :  { %v6581_v39 = vmul.f32 %v5829_v28, %v5815_v60  ;;  %v1414_v26 = vpop.xlane.xlu1 %1413  ;;  %v5831_v37 = vpop.eup %5830 }
 0xe77   :  { %5832 = vrcp.f32 %v1414_v26  ;;  %v6595_v38 = vmul.f32 %v5831_v37, %v5813_v61  ;;  %v6020_v26 = vld [vmem:[#allocation2 + $0x220] sm:$0xff] }
 0xe78   :  { %1242 = vrot.lane.b32.xlu0 %v6570_v16, %s6123_s23  ;;  %1432 = vrot.lane.b32.xlu1 %v6581_v39, %s6116_s18  ;;  %v5525_v37 = vpack.i.bf16 %v6019_v33, %v6020_v26 }
 0xe79   :  { %1232 = vrot.lane.b32.xlu2 %v6579_v42, %s6122_s22 }
 0xe7d   :  { %v5833_v32 = vpop.eup %5832 }
 0xe7e   :  { %v6597_v44 = vmul.f32 %v5833_v32, %v5817_v7  ;;  %v1417_v41 = vpop.xlane.xlu0 %1416 }
 0xe7f   :  { %5834 = vrcp.f32 %v1417_v41 }
 0xe80   :  { %1220 = vrot.lane.b32.xlu0 %v6579_v42, %s6116_s18  ;;  %1244 = vrot.lane.b32.xlu1 %v6579_v42, %s6123_s23 }
 0xe81   :  { %1456 = vrot.lane.b32.xlu2 %v6581_v39, %s6123_s23 }
 0xe85   :  { %v5835_v48 = vpop.eup %5834 }
 0xe86   :  { %v6611_v52 = vmul.f32 %v5835_v48, %v5819_v11 }
 0xe88   :  { %1444 = vrot.lane.b32.xlu0 %v6581_v39, %s6122_s22  ;;  %1434 = vrot.lane.b32.xlu1 %v6597_v44, %s6116_s18 }
 0xe89   :  { %1234 = vrot.lane.b32.xlu2 %v6595_v38, %s6122_s22 }
 0xe90   :  { %1222 = vrot.lane.b32.xlu0 %v6595_v38, %s6116_s18  ;;  %1246 = vrot.lane.b32.xlu1 %v6595_v38, %s6123_s23 }
 0xe91   :  { %1458 = vrot.lane.b32.xlu2 %v6597_v44, %s6123_s23 }
 0xe98   :  { %1446 = vrot.lane.b32.xlu0 %v6597_v44, %s6122_s22  ;;  %1448 = vrot.lane.b32.xlu1 %v6611_v52, %s6122_s22 }
 0xe99   :  { %1460 = vrot.lane.b32.xlu2 %v6611_v52, %s6123_s23 }
 0xea0   :  { %1436 = vrot.lane.b32.xlu0 %v6611_v52, %s6116_s18  ;;  %5526 = vrot.lane.b32.xlu1 %v5525_v37, %s6120_s0 }
 0xea1   :  { %1558 = vrot.lane.b32.xlu2 %v6016_v56, %s6120_s0 }
 0xeb0   :  { %v1241_v60 = vpop.permute.xlu2 %1240 }
 0xeb8   :  { %v1219_v45 = vpop.permute.xlu2 %1218 }
 0xeb9   :  { %v1253_v13 = vsel %vm218_vm2, %v6570_v16, %v1219_v45 }
 0xec8   :  { %v1229_v30 = vpop.permute.xlu0 %1228 }
 0xec9   :  { %v1217_v61 = vpop.permute.xlu1 %1216 }
 0xeca   :  { %v1252_v23 = vsel %vm218_vm2, %v1208_v25, %v1217_v61 }
 0xecb   :  { %v1256_v34 = vsel %vm307_vm3, %v1252_v23, %v1229_v30  ;;  %v1443_v7 = vpop.permute.xlu2 %1442 }
 0xecc   :  { %v1260_v54 = vsel %vm312_vm4, %v1256_v34, %v1241_v60 }
 0xecd   :  { %v1264_v4 = vmul.f32 %v1260_v54, %v6242_v8 }
 0xecf   :  { %5285 = vmatmul.msk.f32.vlgmr.msra.gmra.mxu0 %vm108_vm1, %v1264_v4 }
 0xed1   :  { %v1231_v6 = vpop.permute.xlu1 %1230 }
 0xed2   :  { %v1257_v25 = vsel %vm307_vm3, %v1253_v13, %v1231_v6 }
 0xed3   :  { %v1233_v22 = vpop.permute.xlu2 %1232 }
 0xedb   :  { %v1457_v30 = vpop.permute.xlu2 %1456 }
 0xee2   :  { %v1455_v5 = vpop.permute.xlu1 %1454  ;;  %v1431_v47 = vpop.permute.xlu0 %1430 }
 0xee3   :  { %v1466_v11 = vsel %vm218_vm2, %v1422_v27, %v1431_v47  ;;  %v5520_v27 = vpack.i.bf16 %v6017_v14, %v6018_v15  ;;  %v1235_v45 = vpop.permute.xlu2 %1234 }
 0xee4   :  { %v1470_v29 = vsel %vm307_vm3, %v1466_v11, %v1443_v7 }
 0xee5   :  { %v1474_v12 = vsel %vm312_vm4, %v1470_v29, %v1455_v5  ;;  %5521 = vrot.lane.b32.xlu0 %v5520_v27, %s6120_s0 }
 0xee6   :  { %v1478_v17 = vmul.f32 %v1474_v12, %v6242_v8 }
 0xee8   :  { %5294 = vmatmul.msk.f32.vlgmr.msrb.gmra.mxu1 %vm108_vm1, %v1478_v17 }
 0xeea   :  { %v1243_v10 = vpop.permute.xlu0 %1242  ;;  %v1433_v18 = vpop.permute.xlu1 %1432 }
 0xeeb   :  { %v1261_v50 = vsel %vm312_vm4, %v1257_v25, %v1243_v10  ;;  %v1467_v23 = vsel %vm218_vm2, %v6581_v39, %v1433_v18  ;;  %v1459_v29 = vpop.permute.xlu2 %1458 }
 0xeec   :  { %v1265_v28 = vmul.f32 %v1261_v50, %v6246_v9 }
 0xeee   :  { %5286 = vmatmul.msk.f32.gmra.mxu0 %vm108_vm1, %v1265_v28 }
 0xef2   :  { %v1221_v16 = vpop.permute.xlu0 %1220  ;;  %v1245_v32 = vpop.permute.xlu1 %1244 }
 0xef3   :  { %v1254_v41 = vsel %vm218_vm2, %v6579_v42, %v1221_v16  ;;  %v1461_v14 = vpop.permute.xlu2 %1460 }
 0xef4   :  { %v1258_v48 = vsel %vm307_vm3, %v1254_v41, %v1233_v22 }
 0xef5   :  { %v1262_v56 = vsel %vm312_vm4, %v1258_v48, %v1245_v32 }
 0xef6   :  { %v1266_v61 = vmul.f32 %v1262_v56, %v6236_v3 }
 0xef8   :  { %5287 = vmatmul.msk.f32.gmra.mxu0 %vm108_vm1, %v1266_v61 }
 0xefa   :  { %v1445_v60 = vpop.permute.xlu0 %1444  ;;  %v1435_v34 = vpop.permute.xlu1 %1434 }
 0xefb   :  { %v1471_v54 = vsel %vm307_vm3, %v1467_v23, %v1445_v60  ;;  %v1468_v12 = vsel %vm218_vm2, %v6597_v44, %v1435_v34 }
 0xefc   :  { %v1475_v4 = vsel %vm312_vm4, %v1471_v54, %v1457_v30 }
 0xefd   :  { %v1479_v42 = vmul.f32 %v1475_v4, %v6246_v9 }
 0xeff   :  { %5295 = vmatmul.msk.f32.gmra.mxu1 %vm108_vm1, %v1479_v42 }
 0xf02   :  { %v1223_v6 = vpop.permute.xlu0 %1222  ;;  %v1247_v5 = vpop.permute.xlu1 %1246 }
 0xf03   :  { %v1255_v7 = vsel %vm218_vm2, %v6595_v38, %v1223_v6  ;;  %v1559_v6 = vpop.permute.xlu2 %1558 }
 0xf04   :  { %v1259_v47 = vsel %vm307_vm3, %v1255_v7, %v1235_v45 }
 0xf05   :  { %v1263_v39 = vsel %vm312_vm4, %v1259_v47, %v1247_v5  ;;  %v2015_v47 = vld [vmem:[%s7907_s1] sm:$0xff]  ;;  %s6125_s1 = smov 104  }
 0xf06   :  { %v1267_v11 = vmul.f32 %v1263_v39, %v6229_v63  ;;  %vm2016_vm14 = vcmp.ne.f32.partialorder %v2015_v47, %v2015_v47 }
 0xf08   :  { %5288 = vmatmul.msk.f32.gmra.mxu0 %vm108_vm1, %v1267_v11  ;;  %v2017_v11 = vsel %vm2016_vm14, 0.0, %v2015_v47 }
 0xf0a   :  { %v1447_v17 = vpop.permute.xlu0 %1446  ;;  %v1449_v18 = vpop.permute.xlu1 %1448 }
 0xf0b   :  { %v1472_v13 = vsel %vm307_vm3, %v1468_v12, %v1447_v17  ;;  %v6677_v12 = vclamps-f32 %v2017_v11, 3.4028235e+38 }
 0xf0c   :  { %v1476_v25 = vsel %vm312_vm4, %v1472_v13, %v1459_v29  ;;  %v6021_v13 = vld [vmem:[#allocation2 + $0x260] sm:$0xff] }
 0xf0d   :  { %v1480_v38 = vmul.f32 %v1476_v25, %v6236_v3  ;;  %v2021_v17 = vrot.slane %v6677_v12, 7 }
 0xf0f   :  { %5296 = vmatmul.msk.f32.gmra.mxu1 %vm108_vm1, %v1480_v38 }
 0xf12   :  { %v1437_v10 = vpop.permute.xlu0 %1436  ;;  %v5527_v26 = vpop.permute.xlu1 %5526 }
 0xf13   :  { %v1469_v50 = vsel %vm218_vm2, %v6611_v52, %v1437_v10  ;;  %v5529_v37 = vunpack.i.h.bf16 %v5527_v26  ;;  %v5528_v16 = vunpack.i.l.bf16 %v5527_v26 }
 0xf14   :  { %v1473_v15 = vsel %vm307_vm3, %v1469_v50, %v1449_v18  ;;  %v2024_v50 = vrot.slane %v6677_v12, 1 }
 0xf15   :  { %v1477_v27 = vsel %vm312_vm4, %v1473_v15, %v1461_v14 }
 0xf16   :  { %v1481_v44 = vmul.f32 %v1477_v27, %v6229_v63  ;;  %v2073_v27 = vld [vmem:[#allocation2 + $0x38] sm:$0xff] }
 0xf18   :  { %5297 = vmatmul.msk.f32.gmra.mxu1 %vm108_vm1, %v1481_v44  ;;  %v2072_v44 = vld [vmem:[#allocation2 + $0x30] sm:$0xff] }
 0xf4c   :  { %v1317_v52 = vpop.f32.mrf.mxu0 }
 0xf57   :  { %v5522_v22 = vpop.permute.xlu0 %5521 }
 0xf58   :  { %v5524_v28 = vunpack.i.h.bf16 %v5522_v22  ;;  %v5523_v33 = vunpack.i.l.bf16 %v5522_v22 }
 0xf5a   :  { %1579 = vmatpush.msrb.mxu3 %v5523_v33 }
 0xf5c   :  { %1580 = vmatpush.msrb.mxu3 %v5524_v28 }
 0xf5e   :  { %1581 = vmatpush.msrb.mxu3 %v5528_v16 }
 0xf60   :  { %1582 = vmatpush.msrb.mxu3 %v5529_v37 }
 0xf65   :  { %v1531_v41 = vpop.f32.mrf.mxu1 }
 0xf6b   :  { %v1320_v32 = vpop.f32.mrf.mxu0 }
 0xf6c   :  { %v1329_v56 = vadd.f32 %v1320_v32, %v1317_v52 }
 0xf75   :  { %v1323_v48 = vpop.f32.mrf.mxu0 }
 0xf76   :  { %v1330_v30 = vadd.f32 %v1329_v56, %v1323_v48 }
 0xf7c   :  { %v1534_v61 = vpop.f32.mrf.mxu1 }
 0xf7d   :  { %v1543_v54 = vadd.f32 %v1534_v61, %v1531_v41 }
 0xf85   :  { %v1326_v23 = vpop.f32.mrf.mxu0 }
 0xf86   :  { %v1331_v60 = vadd.f32 %v1330_v30, %v1326_v23 }
 0xf88   :  { %5298 = vmatmul.msk.f32.vlgmr.msrb.gmra.mxu3 %vm108_vm1, %v1331_v60 }
 0xf8c   :  { %v1537_v34 = vpop.f32.mrf.mxu1 }
 0xf8d   :  { %v1544_v4 = vadd.f32 %v1543_v54, %v1537_v34 }
 0xf95   :  { %v1540_v42 = vpop.f32.mrf.mxu1 }
 0xf96   :  { %v1545_v45 = vadd.f32 %v1544_v4, %v1540_v42 }
 0xf98   :  { %5299 = vmatmul.msk.f32.gmra.mxu3 %vm108_vm1, %v1545_v45  ;;  %v6709_v45 = vld [vmem:[#allocation2 + $0x48] ss:$0 sm:$0xff] }
0x100b   :  { %v1584_v7 = vpop.f32.mrf.mxu3 }
0x100c   :  { %v1585_v5 = vadd.f32 %v1584_v7, %v1559_v6 }
0x100e   :  { %1592 = vrot.lane.b32.xlu0 %v1585_v5, %s6121_s21 }
0x101b   :  { %v1587_v39 = vpop.f32.mrf.mxu3 }
0x101c   :  { %v1588_v29 = vadd.f32 %v1587_v39, %v1559_v6 }
0x101e   :  { %1594 = vrot.lane.b32.xlu1 %v1588_v29, %s6121_s21 }
0x1026   :  { %2029 = vperm.xlu1 %5427, %v2021_v17  }
0x102e   :  { %2063 = vrot.lane.b32.xlu1 %v6021_v13, %s6121_s21 }
0x102f   :  { %5532 = vset.pattern.permute.xlu1 %v6118_v1 }
0x1080   :  { %v1593_v25 = vpop.permute.xlu0 %1592 }
0x1081   :  { %v1598_v38 = vadd.f32 %v1593_v25, %v6501_v36  ;;  %v2074_v36 = vld [vmem:[#allocation2 + $0x40] sm:$0xff] }
0x1082   :  { %2095 = vmatpush.msra.mxu1 %v2074_v36 }
0x1083   :  { %1602 = vrot.lane.b32.xlu2 %v1598_v38, %s6121_s21 }
0x1084   :  { %2096 = vmatpush.msra.mxu1 %v2073_v27 }
0x1086   :  { %2097 = vmatpush.msra.mxu1 %v2072_v44 }
0x108b   :  { %2034 = vperm.xlu2 %5530, %v6677_v12  }
0x1090   :  { %v1595_v10 = vpop.permute.xlu1 %1594 }
0x1091   :  { %v1599_v18 = vadd.f32 %v1595_v10, %v6503_v35  ;;  %v2071_v35 = vld [vmem:[#allocation2 + $0x28] sm:$0xff] }
0x1092   :  { %2098 = vmatpush.msra.mxu1 %v2071_v35 }
0x1093   :  { %1604 = vrot.lane.b32.xlu0 %v1599_v18, %s6121_s21  ;;  %5533 = vset.pattern.permute.xlu2 %v6118_v1 }
0x1098   :  { %v2030_v33 = vpop.permute.xlu1 %2029 }
0x1099   :  { %v2032_v37 = vmul.f32 %v2030_v33, %v6162_v19 }
0x109b   :  { %2041 = vperm.xlu0 %5531, %v2024_v50  }
0x10a0   :  { %v2064_v41 = vpop.permute.xlu1 %2063 }
0x10a3   :  { %5744 = vset.pattern.permute.xlu0 %v6118_v1 }
0x10dd   :  { %v1603_v14 = vpop.permute.xlu2 %1602 }
0x10de   :  { %v1608_v15 = vsel %vm108_vm1, %v1603_v14, 0.0 }
0x10df   :  { %1609 = vadd.xlane.f32.xlu2 %v1608_v15 }
0x10e5   :  { %v2035_v26 = vpop.permute.xlu2 %2034 }
0x10e6   :  { %v2037_v1 = vmul.f32 %v2035_v26, %v6164_v20 }
0x10e8   :  { %v2038_v52 = vadd.f32 %v2037_v1, %v2032_v37 }
0x1105   :  { %v1605_v22 = vpop.permute.xlu0 %1604 }
0x1106   :  { %v1611_v28 = vsel %vm108_vm1, %v1605_v22, 0.0 }
0x1107   :  { %1612 = vadd.xlane.f32.xlu1 %v1611_v28 }
0x110d   :  { %v2042_v16 = vpop.permute.xlu0 %2041 }
0x110e   :  { %v2044_v32 = vmul.f32 %v2042_v16, %v6166_v21 }
0x1110   :  { %v2045_v48 = vadd.f32 %v2044_v32, %v2038_v52 }
0x1112   :  { %v6695_v56 = vadd.f32 %v2064_v41, %v2045_v48 }
0x1114   :  { %5305 = vmatmul.msk.f32.vlgmr.msra.gmra.mxu1 %vm108_vm1, %v6695_v56 }
0x1120   :  { %1660 = vrot.lane.b32.xlu1 %v6489_v40, %s6120_s0 }
0x1152   :  { %v1610_v30 = vpop.xlane.xlu2 %1609 }
0x1153   :  { %v1614_v61 = vmul.f32 %v1610_v30, %v6414_v43 }
0x1155   :  { %v1616_v23 = vsub.f32 %v1598_v38, %v1614_v61 }
0x1157   :  { %v1618_v60 = vmul.f32 %v1616_v23, %v1616_v23 }
0x1159   :  { %1622 = vrot.lane.b32.xlu0 %v1618_v60, %s6121_s21 }
0x117a   :  { %v1613_v34 = vpop.xlane.xlu1 %1612 }
0x117b   :  { %v1615_v54 = vmul.f32 %v1613_v34, %v6414_v43  ;;  %v6739_v34 = vld [vmem:[#allocation2 + $0x268] sm:$0xff] }
0x117d   :  { %v6704_v4 = vsub.f32 %v1599_v18, %v1615_v54 }
0x117f   :  { %v1619_v42 = vmul.f32 %v6704_v4, %v6704_v4 }
0x1181   :  { %1624 = vrot.lane.b32.xlu0 %v1619_v42, %s6121_s21 }
0x1191   :  { %v2100_v6 = vpop.f32.mrf.mxu1 }
0x1192   :  { %v6712_v7 = vadd.f32 %v6709_v45, %v2100_v6  ;;  %v1661_v29 = vpop.permute.xlu1 %1660  ;;  %v6023_v6 = vld [vmem:[#allocation2 + $0x1b8] sm:$0xff] }
0x1194   :  { %2115 = vrot.lane.b32.xlu1 %v6712_v7, %s6119_s2  ;;  %v2110_v25 = vmul.f32 %v6712_v7, %v6199_v49  ;;  %v2112_v38 = vmul.f32 %v6712_v7, %v6208_v53  ;;  %v2113_v10 = vmul.f32 %v6712_v7, %v6220_v59 }
0x119c   :  { %2047 = vperm.xlu1 %5532, %v2021_v17   ;;  %v2111_v17 = vmul.f32 %v6712_v7, %v6204_v51 }
0x11a4   :  { %2058 = vperm.xlu1 %5532, %v2024_v50  }
0x11cb   :  { %v1623_v5 = vpop.permute.xlu0 %1622 }
0x11cc   :  { %v1628_v47 = vsel %vm108_vm1, %v1623_v5, 0.0  ;;  %v6024_v5 = vld [vmem:[#allocation2 + $0x1c0] sm:$0xff] }
0x11cd   :  { %1629 = vadd.xlane.f32.xlu0 %v1628_v47  ;;  %v5544_v47 = vpack.i.bf16 %v6023_v6, %v6024_v5  ;;  %v6037_v5 = vld [vmem:[#allocation2 + $0x168] sm:$0xff] }
0x11f3   :  { %v1625_v39 = vpop.permute.xlu0 %1624 }
0x11f4   :  { %v1631_v11 = vsel %vm108_vm1, %v1625_v39, 0.0 }
0x11f5   :  { %1632 = vadd.xlane.f32.xlu2 %v1631_v11 }
0x1206   :  { %v2116_v13 = vpop.permute.xlu1 %2115 }
0x1207   :  { %5307 = vmatpush.xpose.msk.msra.mxu3 %vm108_vm1, %v2116_v13  ;;  %v6025_v13 = vld [vmem:[#allocation2 + $0x188] sm:$0xff] }
0x120a   :  { %5308 = vmatmul.msk.f32.vlgmr.msra.gmra.mxu3 %vm108_vm1, %v2110_v25  ;;  %v6026_v25 = vld [vmem:[#allocation2 + $0x190] sm:$0xff] }
0x120d   :  { %1665 = vrot.lane.b32.xlu2 %v6495_v46, %s6120_s0 }
0x120e   :  { %v2048_v6 = vpop.permute.xlu1 %2047 }
0x1212   :  { %5309 = vmatmul.msk.f32.gmra.mxu3 %vm108_vm1, %v2111_v17  ;;  %v5559_v17 = vpack.i.bf16 %v6025_v13, %v6026_v25 }
0x121a   :  { %5310 = vmatmul.msk.f32.gmra.mxu3 %vm108_vm1, %v2112_v38  ;;  %v6027_v38 = vld [vmem:[#allocation2 + $0x1d8] sm:$0xff] }
0x1222   :  { %5311 = vmatmul.msk.f32.gmra.mxu3 %vm108_vm1, %v2113_v10 }
0x1240   :  { %v1630_v18 = vpop.xlane.xlu0 %1629 }
0x1241   :  { %v1634_v50 = vmul.f32 %v1630_v18, %v6414_v43  ;;  %v6029_v18 = vld [vmem:[#allocation2 + $0x1a8] sm:$0xff] }
0x1243   :  { %v1636_v14 = vadd.f32 1e-05, %v1634_v50  ;;  %v6030_v50 = vld [vmem:[#allocation2 + $0x1b0] sm:$0xff] }
0x1245   :  { %5836 = vrsqrt.f32 %v1636_v14  ;;  %vm1644_vm0 = vweird.f32 %v1636_v14 }
0x124b   :  { %v5837_v15 = vpop.eup %5836 }
0x124c   :  { %v1639_v36 = vmul.f32 %v5837_v15, %v1636_v14  ;;  %vm1645_vm15 = vweird.f32 %v5837_v15  ;;  %v5549_v14 = vpack.i.bf16 %v6029_v18, %v6030_v50 }
0x124d   :  { %vm1646_vm5 = vmor %vm1644_vm0, %vm1645_vm15 }
0x124e   :  { %v1640_v27 = vmul.f32 %v5837_v15, %v1639_v36  ;;  %v6031_v36 = vld [vmem:[#allocation2 + $0x178] sm:$0xff] }
0x1250   :  { %v1641_v44 = vmul.f32 0.5, %v1640_v27  ;;  %v6032_v27 = vld [vmem:[#allocation2 + $0x180] sm:$0xff] }
0x1252   :  { %v1642_v35 = vsub.f32 1.5, %v1641_v44  ;;  %v5564_v44 = vpack.i.bf16 %v6031_v36, %v6032_v27 }
0x1254   :  { %v1643_v22 = vmul.f32 %v5837_v15, %v1642_v35 }
0x1256   :  { %v1647_v33 = vsel %vm1646_vm5, %v5837_v15, %v1643_v22 }
0x1257   :  { %v1658_v37 = vmul.f32 %v1647_v33, %v1616_v23 }
0x1259   :  { %v1663_v16 = vmul.f32 %v1661_v29, %v1658_v37  ;;  %v1672_v37 = vld [vmem:[#allocation2 + $0x128] sm:$0xff] }
0x1268   :  { %v1633_v28 = vpop.xlane.xlu2 %1632 }
0x1269   :  { %v1635_v26 = vmul.f32 %v1633_v28, %v6414_v43 }
0x126b   :  { %v1637_v1 = vadd.f32 1e-05, %v1635_v26 }
0x126d   :  { %5838 = vrsqrt.f32 %v1637_v1  ;;  %vm1654_vm7 = vweird.f32 %v1637_v1 }
0x1270   :  { %v1666_v52 = vpop.permute.xlu2 %1665 }
0x1271   :  { %v6735_v32 = vadd.f32 %v1666_v52, %v1663_v16  ;;  %v1671_v16 = vld [vmem:[#allocation2 + $0x120] sm:$0xff] }
0x1273   :  { %v5839_v41 = vpop.eup %5838  ;;  %1678 = vrot.lane.b32.xlu0 %v6735_v32, %s6121_s21 }
0x1274   :  { %v1649_v48 = vmul.f32 %v5839_v41, %v1637_v1  ;;  %vm1655_vm6 = vweird.f32 %v5839_v41 }
0x1275   :  { %vm1656_vm8 = vmor %vm1654_vm7, %vm1655_vm6 }
0x1276   :  { %v1650_v30 = vmul.f32 %v5839_v41, %v1649_v48 }
0x1278   :  { %v1651_v61 = vmul.f32 0.5, %v1650_v30  ;;  %v6033_v30 = vld [vmem:[#allocation2 + $0x1c8] sm:$0xff] }
0x127a   :  { %v1652_v60 = vsub.f32 1.5, %v1651_v61  ;;  %v6034_v61 = vld [vmem:[#allocation2 + $0x1d0] sm:$0xff] }
0x127b   :  { %2065 = vrot.lane.b32.xlu0 %v6739_v34, %s6121_s21 }
0x127c   :  { %v1653_v23 = vmul.f32 %v5839_v41, %v1652_v60  ;;  %v5539_v60 = vpack.i.bf16 %v6033_v30, %v6034_v61 }
0x127e   :  { %v1657_v54 = vsel %vm1656_vm8, %v5839_v41, %v1653_v23  ;;  %5540 = vrot.lane.b32.xlu1 %v5539_v60, %s6120_s0  ;;  %v6035_v23 = vld [vmem:[#allocation2 + $0x198] sm:$0xff] }
0x127f   :  { %v1659_v42 = vmul.f32 %v1657_v54, %v6704_v4  ;;  %v6028_v4 = vld [vmem:[#allocation2 + $0x1e0] sm:$0xff] }
0x1280   :  { %v5534_v10 = vpack.i.bf16 %v6027_v38, %v6028_v4  ;;  %v6036_v54 = vld [vmem:[#allocation2 + $0x1a0] sm:$0xff]  ;;  %v2050_v4 = vmul.f32 %v2048_v6, %v6162_v19  ;;  %v5751_v6 = vld [vmem:[#allocation2 + $0x138] ss:$0 sm:$0xff] }
0x1281   :  { %v1664_v39 = vmul.f32 %v1661_v29, %v1659_v42  ;;  %v5554_v42 = vpack.i.bf16 %v6035_v23, %v6036_v54 }
0x1283   :  { %v6744_v11 = vadd.f32 %v1666_v52, %v1664_v39  ;;  %5545 = vrot.lane.b32.xlu0 %v5544_v47, %s6120_s0  ;;  %v1670_v52 = vld [vmem:[#allocation2 + $0x118] sm:$0xff]  ;;  %v6038_v47 = vld [vmem:[#allocation2 + $0x170] sm:$0xff] }
0x1284   :  { %v5569_v39 = vpack.i.bf16 %v6037_v5, %v6038_v47 }
0x1285   :  { %1680 = vrot.lane.b32.xlu2 %v6744_v11, %s6121_s21 }
0x1286   :  { %5555 = vrot.lane.b32.xlu1 %v5554_v42, %s6120_s0 }
0x128b   :  { %5560 = vrot.lane.b32.xlu0 %v5559_v17, %s6120_s0  ;;  %v2059_v17 = vpop.permute.xlu1 %2058 }
0x128d   :  { %2052 = vperm.xlu2 %5533, %v6677_v12   ;;  %v2148_v29 = vpop.f32.mrf.mxu3  ;;  %v1673_v12 = vld [vmem:[#allocation2 + $0x130] sm:$0xff] }
0x128e   :  { %1698 = vmatpush.msrb.mxu0 %v1673_v12  ;;  %v2149_v22 = vadd.f32 %v2148_v29, %v6212_v55  ;;  %5570 = vrot.lane.b32.xlu1 %v5569_v39, %s6120_s0  ;;  %v2061_v29 = vmul.f32 %v2059_v17, %v6166_v21 }
0x1290   :  { %v2160_v28 = vsel %vm218_vm2, %v2149_v22, -inf  ;;  %1699 = vmatpush.msrb.mxu0 %v1672_v37 }
0x1292   :  { %1700 = vmatpush.msrb.mxu0 %v1671_v16 }
0x1294   :  { %1701 = vmatpush.msrb.mxu0 %v1670_v52 }
0x1295   :  { %5535 = vrot.lane.b32.xlu2 %v5534_v10, %s6120_s0  ;;  %v2151_v15 = vpop.f32.mrf.mxu3 }
0x1296   :  { %v2152_v41 = vadd.f32 %v2151_v15, %v6233_v2 }
0x1298   :  { %v2163_v48 = vsel %vm218_vm2, %v2152_v41, -inf }
0x129d   :  { %5550 = vrot.lane.b32.xlu2 %v5549_v14, %s6120_s0  ;;  %v6754_v35 = vpop.f32.mrf.mxu3 }
0x12a5   :  { %5565 = vrot.lane.b32.xlu2 %v5564_v44, %s6120_s0  ;;  %v2157_v33 = vpop.f32.mrf.mxu3 }
0x12a6   :  { %v6759_v26 = vadd.f32 %v2157_v33, %v6218_v58 }
0x12a8   :  { %v2169_v1 = vsel %vm218_vm2, %v6759_v26, -inf }
0x12b5   :  { %2161 = vmax.xlane.f32.xlu0 %v2160_v28 }
0x12bd   :  { %2170 = vmax.xlane.f32.xlu0 %v2169_v1 }
0x12ce   :  { %2164 = vmax.xlane.f32.xlu2 %v2163_v48 }
0x12df   :  { %v1681_v13 = vpop.permute.xlu2 %1680 }
0x12e5   :  { %v1679_v25 = vpop.permute.xlu0 %1678 }
0x12e6   :  { %5300 = vmatmul.msk.f32.vlgmr.msrb.gmra.mxu0 %vm108_vm1, %v1679_v25 }
0x12e7   :  { %v2053_v38 = vpop.permute.xlu2 %2052 }
0x12e8   :  { %v2055_v10 = vmul.f32 %v2053_v38, %v6164_v20 }
0x12ea   :  { %v2056_v18 = vadd.f32 %v2055_v10, %v2050_v4 }
0x12ec   :  { %v2062_v50 = vadd.f32 %v2061_v29, %v2056_v18 }
0x12ed   :  { %v2066_v14 = vpop.permute.xlu0 %2065 }
0x12ee   :  { %v6772_v15 = vadd.f32 %v2066_v14, %v2062_v50  ;;  %5301 = vmatmul.msk.f32.gmra.mxu0 %vm108_vm1, %v1681_v13 }
0x12ef   :  { %v5536_v36 = vpop.permute.xlu2 %5535 }
0x12f0   :  { %5306 = vmatmul.msk.f32.gmra.mxu1 %vm108_vm1, %v6772_v15  ;;  %v5538_v27 = vunpack.i.h.bf16 %v5536_v36  ;;  %v5537_v44 = vunpack.i.l.bf16 %v5536_v36  ;;  %v5541_v60 = vpop.permute.xlu1 %5540 }
0x12f1   :  { %v5542_v23 = vunpack.i.l.bf16 %v5541_v60  ;;  %v5543_v42 = vunpack.i.h.bf16 %v5541_v60 }
0x12f2   :  { %1848 = vmatpush.msrb.mxu2 %v5537_v44 }
0x12f4   :  { %1849 = vmatpush.msrb.mxu2 %v5538_v27 }
0x12f5   :  { %v5546_v19 = vpop.permute.xlu0 %5545 }
0x12f6   :  { %v5547_v54 = vunpack.i.l.bf16 %v5546_v19  ;;  %1850 = vmatpush.msrb.mxu2 %v5542_v23  ;;  %v5548_v5 = vunpack.i.h.bf16 %v5546_v19 }
0x12f7   :  { %v5551_v33 = vpop.permute.xlu2 %5550 }
0x12f8   :  { %1851 = vmatpush.msrb.mxu2 %v5543_v42  ;;  %v5553_v13 = vunpack.i.h.bf16 %v5551_v33  ;;  %v5556_v38 = vpop.permute.xlu1 %5555 }
0x12f9   :  { %v5557_v4 = vunpack.i.l.bf16 %v5556_v38  ;;  %v5558_v50 = vunpack.i.h.bf16 %v5556_v38 }
0x12fa   :  { %1852 = vmatpush.msrb.mxu2 %v5547_v54 }
0x12fc   :  { %1853 = vmatpush.msrb.mxu2 %v5548_v5 }
0x12fd   :  { %v6777_v12 = vpop.permute.xlu0 %5560 }
0x12fe   :  { %v5562_v29 = vunpack.i.l.bf16 %v6777_v12  ;;  %v5563_v44 = vunpack.i.h.bf16 %v6777_v12 }
0x12ff   :  { %v6783_v16 = vpop.permute.xlu2 %5565 }
0x1300   :  { %v5571_v42 = vpop.permute.xlu1 %5570 }
0x1301   :  { %v5572_v5 = vunpack.i.l.bf16 %v5571_v42 }
0x1328   :  { %v2162_v20 = vpop.xlane.xlu0 %2161 }
0x1329   :  { %v2172_v21 = vsub.f32 %v2149_v22, %v2162_v20 }
0x132b   :  { %v2176_v28 = vmul.f32 1.442695, %v2172_v21 }
0x132d   :  { %5840 = vpow2.f32 %v2176_v28 }
0x1333   :  { %v6779_v1 = vpop.eup %5840 }
0x1334   :  { %v2184_v37 = vsel %vm218_vm2, %v6779_v1, 0.0 }
0x1335   :  { %2185 = vadd.xlane.f32.xlu2 %v2184_v37  ;;  %v5567_v37 = vunpack.i.l.bf16 %v6783_v16 }
0x1341   :  { %v2165_v52 = vpop.xlane.xlu2 %2164 }
0x1342   :  { %v2173_v48 = vsub.f32 %v2152_v41, %v2165_v52  ;;  %v5552_v41 = vunpack.i.l.bf16 %v5551_v33 }
0x1344   :  { %v2178_v30 = vmul.f32 1.442695, %v2173_v48  ;;  %1854 = vmatpush.msrb.mxu2 %v5552_v41  ;;  %v2171_v41 = vpop.xlane.xlu0 %2170 }
0x1346   :  { %5842 = vpow2.f32 %v2178_v30  ;;  %1855 = vmatpush.msrb.mxu2 %v5553_v13  ;;  %v5568_v30 = vunpack.i.h.bf16 %v6783_v16 }
0x1348   :  { %1856 = vmatpush.msrb.mxu2 %v5557_v4 }
0x134a   :  { %1857 = vmatpush.msrb.mxu2 %v5558_v50 }
0x134c   :  { %v6785_v61 = vpop.eup %5842  ;;  %1858 = vmatpush.msrb.mxu2 %v5562_v29 }
0x134d   :  { %2264 = vrot.lane.b32.xlu2 %v6712_v7, %s6125_s1  ;;  %v2187_v22 = vsel %vm218_vm2, %v6785_v61, 0.0 }
0x134e   :  { %2188 = vadd.xlane.f32.xlu0 %v2187_v22  ;;  %1859 = vmatpush.msrb.mxu2 %v5563_v44 }
0x1350   :  { %1860 = vmatpush.msrb.mxu2 %v5567_v37 }
0x1352   :  { %1861 = vmatpush.msrb.mxu2 %v5568_v30 }
0x1354   :  { %1862 = vmatpush.msrb.mxu2 %v5572_v5 }
0x1362   :  { %2260 = vrot.lane.b32.xlu0 %v6712_v7, %s6126_s26 }
0x1363   :  { %v1703_v47 = vpop.f32.mrf.mxu0 }
0x1364   :  { %v6793_v39 = vadd.f32 %v5751_v6, %v1703_v47 }
0x1366   :  { %v6796_v25 = vmul.f32 0.70710677, %v6793_v39 }
0x1368   :  { %v1713_v17 = vmul.f32 %v6796_v25, %v6796_v25 }
0x136a   :  { %v6800_v10 = vmin.f32 %v1713_v17, 16.0  ;;  %v5573_v17 = vunpack.i.h.bf16 %v5571_v42 }
0x136b   :  { %v1706_v18 = vpop.f32.mrf.mxu0 }
0x136c   :  { %v1715_v14 = vmul.f32 2.1237322e-06, %v6800_v10  ;;  %v1726_v36 = vmul.f32 3.8918573e-05, %v6800_v10  ;;  %v6805_v27 = vadd.f32 %v5751_v6, %v1706_v18  ;;  %v2175_v18 = vsub.f32 %v6759_v26, %v2171_v41  ;;  %1863 = vmatpush.msrb.mxu2 %v5573_v17 }
0x136d   :  { %v2103_v19 = vpop.f32.mrf.mxu1 }
0x136e   :  { %v1716_v20 = vadd.f32 0.00028619796, %v1715_v14  ;;  %v1727_v21 = vadd.f32 0.001143296, %v1726_v36  ;;  %v6809_v28 = vmul.f32 0.70710677, %v6805_v27  ;;  %v6812_v33 = vadd.f32 %v6709_v45, %v2103_v19 }
0x1370   :  { %v1717_v52 = vmul.f32 %v1716_v20, %v6800_v10  ;;  %v1728_v48 = vmul.f32 %v1727_v21, %v6800_v10  ;;  %v1753_v12 = vmul.f32 %v6809_v28, %v6809_v28  ;;  %2418 = vrot.lane.b32.xlu1 %v6812_v33, %s6119_s2  ;;  %v2182_v21 = vmul.f32 1.442695, %v2175_v18 }
0x1372   :  { %v1729_v22 = vadd.f32 0.014752088, %v1728_v48  ;;  %v6822_v60 = vmin.f32 %v1753_v12, 16.0  ;;  %v1718_v45 = vadd.f32 0.0036580483, %v1717_v52 }
0x1374   :  { %v1730_v23 = vmul.f32 %v1729_v22, %v6800_v10  ;;  %v1755_v54 = vmul.f32 2.1237322e-06, %v6822_v60  ;;  %v1766_v6 = vmul.f32 3.8918573e-05, %v6822_v60  ;;  %v1719_v16 = vmul.f32 %v1718_v45, %v6800_v10 }
0x1376   :  { %v1731_v47 = vadd.f32 0.112945676, %v1730_v23  ;;  %v1756_v13 = vadd.f32 0.00028619796, %v1755_v54  ;;  %v1767_v38 = vadd.f32 0.001143296, %v1766_v6 }
0x1377   :  { %v1720_v36 = vadd.f32 0.05243302, %v1719_v16 }
0x1378   :  { %v1732_v4 = vmul.f32 %v1731_v47, %v6800_v10  ;;  %v1757_v29 = vmul.f32 %v1756_v13, %v6822_v60  ;;  %v1768_v50 = vmul.f32 %v1767_v38, %v6822_v60 }
0x1379   :  { %v1721_v48 = vmul.f32 %v1720_v36, %v6800_v10 }
0x137a   :  { %v1733_v14 = vadd.f32 0.4994258, %v1732_v4  ;;  %v1769_v44 = vadd.f32 0.014752088, %v1768_v50  ;;  %v1758_v20 = vadd.f32 0.0036580483, %v1757_v29 }
0x137b   :  { %v1722_v22 = vadd.f32 0.18741608, %v1721_v48 }
0x137c   :  { %v1734_v19 = vmul.f32 %v1733_v14, %v6800_v10  ;;  %v1770_v37 = vmul.f32 %v1769_v44, %v6822_v60  ;;  %v1759_v30 = vmul.f32 %v1758_v20, %v6822_v60 }
0x137d   :  { %v1723_v5 = vmul.f32 %v1722_v22, %v6800_v10 }
0x137e   :  { %v1735_v52 = vadd.f32 1.0, %v1734_v19  ;;  %v1771_v12 = vadd.f32 0.112945676, %v1770_v37  ;;  %v1760_v23 = vadd.f32 0.05243302, %v1759_v30 }
0x137f   :  { %v1724_v4 = vadd.f32 1.1283791, %v1723_v5 }
0x1380   :  { %5844 = vrcp.f32 %v1735_v52  ;;  %v1772_v26 = vmul.f32 %v1771_v12, %v6822_v60  ;;  %v1761_v13 = vmul.f32 %v1760_v23, %v6822_v60  ;;  %v1747_v17 = vand.u32 2147483648, %v1735_v52 }
0x1381   :  { %5846 = vpow2.f32 %v2182_v21  ;;  %v1745_v18 = vand.u32 2147483647, %v1735_v52  ;;  %vm1741_vm10 = vweird.f32 %v1735_v52  ;;  %v1725_v44 = vmul.f32 %v1724_v4, %v6796_v25 }
0x1382   :  { %v1773_v45 = vadd.f32 0.4994258, %v1772_v26  ;;  %v1762_v50 = vadd.f32 0.18741608, %v1761_v13  ;;  %v1748_v10 = vor.u32 1.1754944e-38, %v1747_v17 }
0x1383   :  { %vm1746_vm12 = vcmp.eq.f32.partialorder %v1745_v18, 8.507059e+37 }
0x1384   :  { %v1774_v54 = vmul.f32 %v1773_v45, %v6822_v60  ;;  %v1763_v21 = vmul.f32 %v1762_v50, %v6822_v60 }
0x1386   :  { %v5845_v42 = vpop.eup %5844  ;;  %v1775_v47 = vadd.f32 1.0, %v1774_v54  ;;  %v1764_v22 = vadd.f32 1.1283791, %v1763_v21  ;;  %v1709_v54 = vmul.f32 0.5, %v6793_v39 }
0x1387   :  { %v6838_v6 = vpop.eup %5846  ;;  %v1737_v41 = vmul.f32 %v5845_v42, %v1735_v52  ;;  %vm1742_vm9 = vweird.f32 %v5845_v42  ;;  %v2155_v52 = vadd.f32 %v6754_v35, %v6227_v62  ;;  %v1710_v35 = vmul.f32 0.5, %v6805_v27 }
0x1388   :  { %5848 = vrcp.f32 %v1775_v47  ;;  %v2193_v38 = vsel %vm218_vm2, %v6838_v6, 0.0  ;;  %vm1743_vm11 = vmor %vm1741_vm10, %vm1742_vm9  ;;  %v1787_v26 = vand.u32 2147483648, %v1775_v47  ;;  %v1785_v23 = vand.u32 2147483647, %v1775_v47 }
0x1389   :  { %v1738_v16 = vsub.f32 1.0, %v1737_v41  ;;  %vm1781_vm14 = vweird.f32 %v1775_v47  ;;  %v1765_v41 = vmul.f32 %v1764_v22, %v6809_v28  ;;  %v2413_v27 = vmul.f32 %v6812_v33, %v6199_v49 }
0x138a   :  { %v1788_v60 = vor.u32 1.1754944e-38, %v1787_v26  ;;  %vm1786_vm0 = vcmp.eq.f32.partialorder %v1785_v23, 8.507059e+37 }
0x138b   :  { %v1739_v29 = vmul.f32 %v5845_v42, %v1738_v16  ;;  %v2166_v16 = vsel %vm218_vm2, %v2155_v52, -inf }
0x138c   :  { %2194 = vadd.xlane.f32.xlu0 %v2193_v38 }
0x138d   :  { %v1740_v14 = vadd.f32 %v5845_v42, %v1739_v29 }
0x138e   :  { %v5849_v36 = vpop.eup %5848 }
0x138f   :  { %v1744_v19 = vsel %vm1743_vm11, %v5845_v42, %v1740_v14  ;;  %v1777_v37 = vmul.f32 %v5849_v36, %v1775_v47  ;;  %vm1782_vm13 = vweird.f32 %v5849_v36  ;;  %v2414_v14 = vmul.f32 %v6812_v33, %v6204_v51 }
0x1390   :  { %v1749_v20 = vsel %vm1746_vm12, %v1748_v10, %v1744_v19  ;;  %vm1783_vm15 = vmor %vm1781_vm14, %vm1782_vm13  ;;  %v2416_v10 = vmul.f32 %v6812_v33, %v6220_v59 }
0x1391   :  { %v1750_v48 = vmul.f32 %v1749_v20, %v1725_v44  ;;  %v1778_v12 = vsub.f32 1.0, %v1777_v37 }
0x1393   :  { %v5302_v30 = vclamps-f32 %v1750_v48, 1.0  ;;  %v1779_v45 = vmul.f32 %v5849_v36, %v1778_v12 }
0x1395   :  { %v1793_v25 = vadd.f32 1.0, %v5302_v30  ;;  %v1780_v42 = vadd.f32 %v5849_v36, %v1779_v45 }
0x1397   :  { %v1795_v5 = vmul.f32 %v1793_v25, %v1709_v54  ;;  %v1784_v13 = vsel %vm1783_vm15, %v5849_v36, %v1780_v42  ;;  %v6039_v25 = vld [vmem:[#allocation2 + $0x1e8] ss:$0 sm:$0xff] }
0x1398   :  { %v1789_v17 = vsel %vm1786_vm0, %v1788_v60, %v1784_v13 }
0x1399   :  { %1864 = vmatmul.f32.vlgmr.msrb.gmra.mxu2 %v1795_v5  ;;  %v1790_v38 = vmul.f32 %v1789_v17, %v1765_v41 }
0x139a   :  { %2167 = vmax.xlane.f32.xlu1 %v2166_v16 }
0x139b   :  { %v5303_v4 = vclamps-f32 %v1790_v38, 1.0 }
0x139d   :  { %v1794_v39 = vadd.f32 1.0, %v5303_v4 }
0x139f   :  { %v1796_v29 = vmul.f32 %v1794_v39, %v1710_v35 }
0x13a1   :  { %1867 = vmatmul.f32.gmra.mxu2 %v1796_v29 }
0x13a8   :  { %v2186_v37 = vpop.xlane.xlu2 %2185 }
0x13b0   :  { %v2265_v12 = vpop.permute.xlu2 %2264 }
0x13b3   :  { %2262 = vrot.lane.b32.xlu1 %v6712_v7, %s6127_s27 }
0x13c1   :  { %v2189_v47 = vpop.xlane.xlu0 %2188 }
0x13c2   :  { %5850 = vrcp.f32 %v2189_v47 }
0x13c8   :  { %v5851_v28 = vpop.eup %5850 }
0x13c9   :  { %v6855_v18 = vmul.f32 %v5851_v28, %v6785_v61  ;;  %v2415_v61 = vmul.f32 %v6812_v33, %v6208_v53 }
0x13cb   :  { %2222 = vrot.lane.b32.xlu0 %v6855_v18, %s6122_s22 }
0x13d4   :  { %v2261_v48 = vpop.permute.xlu0 %2260 }
0x13e2   :  { %v2419_v50 = vpop.permute.xlu1 %2418 }
0x13e3   :  { %5317 = vmatpush.xpose.msk.msra.mxu2 %vm108_vm1, %v2419_v50 }
0x13e6   :  { %5318 = vmatmul.msk.f32.vlgmr.msra.gmra.mxu2 %vm108_vm1, %v2413_v27 }
0x13ee   :  { %5319 = vmatmul.msk.f32.gmra.mxu2 %vm108_vm1, %v2414_v14 }
0x13f6   :  { %5320 = vmatmul.msk.f32.gmra.mxu2 %vm108_vm1, %v2415_v61 }
0x13fe   :  { %5321 = vmatmul.msk.f32.gmra.mxu2 %vm108_vm1, %v2416_v10 }
0x13ff   :  { %v2195_v45 = vpop.xlane.xlu0 %2194 }
0x140d   :  { %v2168_v36 = vpop.xlane.xlu1 %2167 }
0x140e   :  { %v2174_v44 = vsub.f32 %v2155_v52, %v2168_v36 }
0x1410   :  { %v2180_v19 = vmul.f32 1.442695, %v2174_v44 }
0x1412   :  { %5852 = vpow2.f32 %v2180_v19 }
0x1413   :  { %5854 = vrcp.f32 %v2186_v37  ;;  %v2109_v37 = vld [vmem:[#allocation2 + $0x278] sm:$0xff] }
0x1414   :  { %5856 = vrcp.f32 %v2195_v45 }
0x1418   :  { %v5853_v20 = vpop.eup %5852 }
0x1419   :  { %v2190_v21 = vsel %vm218_vm2, %v5853_v20, 0.0  ;;  %v5855_v22 = vpop.eup %5854 }
0x141a   :  { %2191 = vadd.xlane.f32.xlu2 %v2190_v21  ;;  %v2200_v23 = vmul.f32 %v5855_v22, %v6779_v1  ;;  %v5857_v52 = vpop.eup %5856  ;;  %v5579_v1 = vpack.i.bf16 %v6712_v7, %v2261_v48 }
0x141b   :  { %v6880_v54 = vmul.f32 %v5857_v52, %v6838_v6 }
0x1425   :  { %v2263_v30 = vpop.permute.xlu1 %2262 }
0x1426   :  { %v5574_v26 = vpack.i.bf16 %v2263_v30, %v2265_v12 }
0x1428   :  { %5575 = vrot.lane.b32.xlu1 %v5574_v26, %s6121_s21 }
0x1430   :  { %2208 = vrot.lane.b32.xlu1 %v2200_v23, %s6116_s18 }
0x1432   :  { %2210 = vrot.lane.b32.xlu2 %v6855_v18, %s6116_s18 }
0x1438   :  { %2220 = vrot.lane.b32.xlu1 %v2200_v23, %s6122_s22 }
0x143a   :  { %2214 = vrot.lane.b32.xlu2 %v6880_v54, %s6116_s18 }
0x1440   :  { %2232 = vrot.lane.b32.xlu1 %v2200_v23, %s6123_s23 }
0x1442   :  { %1845 = vrot.lane.b32.xlu2 %v6039_v25, %s6120_s0 }
0x1448   :  { %5580 = vrot.lane.b32.xlu1 %v5579_v1, %s6121_s21 }
0x144a   :  { %2563 = vrot.lane.b32.xlu2 %v6812_v33, %s6126_s26 }
0x1450   :  { %2234 = vrot.lane.b32.xlu1 %v6855_v18, %s6123_s23 }
0x1452   :  { %2381 = vrot.lane.b32.xlu2 %v2109_v37, %s6119_s2 }
0x148d   :  { %v2192_v6 = vpop.xlane.xlu2 %2191 }
0x148e   :  { %5858 = vrcp.f32 %v2192_v6 }
0x1494   :  { %v5859_v42 = vpop.eup %5858 }
0x1495   :  { %v2211_v5 = vpop.permute.xlu2 %2210  ;;  %v2202_v60 = vmul.f32 %v5859_v42, %v5853_v20 }
0x1496   :  { %v2245_v36 = vsel %vm218_vm2, %v6855_v18, %v2211_v5  ;;  %v2108_v5 = vld [vmem:[#allocation2 + $0x270] sm:$0xff] }
0x1497   :  { %2236 = vrot.lane.b32.xlu0 %v2202_v60, %s6123_s23  ;;  %2212 = vrot.lane.b32.xlu1 %v2202_v60, %s6116_s18 }
0x149a   :  { %v5576_v41 = vpop.permute.xlu1 %5575 }
0x149b   :  { %v5577_v13 = vunpack.i.l.bf16 %v5576_v41  ;;  %v5578_v7 = vunpack.i.h.bf16 %v5576_v41 }
0x149d   :  { %2302 = vmatpush.msra.mxu0 %v5577_v13  ;;  %v2215_v16 = vpop.permute.xlu2 %2214 }
0x149e   :  { %v2247_v52 = vsel %vm218_vm2, %v6880_v54, %v2215_v16  ;;  %v1865_v16 = vpop.f32.mrf.mxu2 }
0x149f   :  { %2303 = vmatpush.msra.mxu0 %v5578_v7  ;;  %2224 = vrot.lane.b32.xlu1 %v2202_v60, %s6122_s22 }
0x14a0   :  { %2238 = vrot.lane.b32.xlu0 %v6880_v54, %s6123_s23 }
0x14a2   :  { %v2209_v17 = vpop.permute.xlu1 %2208 }
0x14a3   :  { %v2244_v47 = vsel %vm218_vm2, %v2200_v23, %v2209_v17 }
0x14a5   :  { %v6897_v38 = vpop.permute.xlu2 %1845 }
0x14a6   :  { %v1866_v17 = vadd.f32 %v1865_v16, %v6897_v38 }
0x14a7   :  { %2226 = vrot.lane.b32.xlu1 %v6880_v54, %s6122_s22 }
0x14a8   :  { %2567 = vrot.lane.b32.xlu0 %v6812_v33, %s6125_s1 }
0x14aa   :  { %v2221_v4 = vpop.permute.xlu1 %2220 }
0x14ab   :  { %v2248_v28 = vsel %vm307_vm3, %v2244_v47, %v2221_v4  ;;  %v6944_v4 = vpop.f32.mrf.mxu2 }
0x14ad   :  { %v2564_v35 = vpop.permute.xlu2 %2563 }
0x14ae   :  { %v5589_v39 = vpack.i.bf16 %v6812_v33, %v2564_v35 }
0x14af   :  { %2565 = vrot.lane.b32.xlu1 %v6812_v33, %s6127_s27  ;;  %v2223_v33 = vpop.permute.xlu0 %2222 }
0x14b0   :  { %5590 = vrot.lane.b32.xlu0 %v5589_v39, %s6121_s21  ;;  %v2249_v19 = vsel %vm307_vm3, %v2245_v36, %v2223_v33 }
0x14b2   :  { %v2233_v29 = vpop.permute.xlu1 %2232 }
0x14b3   :  { %v2252_v27 = vsel %vm312_vm4, %v2248_v28, %v2233_v29  ;;  %v2451_v35 = vpop.f32.mrf.mxu2 }
0x14b4   :  { %v2256_v10 = vmul.f32 %v2252_v27, %v6242_v8  ;;  %v2452_v39 = vadd.f32 %v2451_v35, %v6212_v55 }
0x14b5   :  { %v6948_v47 = vpop.permute.xlu2 %2381 }
0x14b6   :  { %v2463_v29 = vsel %vm218_vm2, %v2452_v39, -inf }
0x14b8   :  { %2379 = vrot.lane.b32.xlu0 %v2108_v5, %s6119_s2 }
0x14ba   :  { %v5581_v50 = vpop.permute.xlu1 %5580 }
0x14bb   :  { %v5582_v14 = vunpack.i.l.bf16 %v5581_v50  ;;  %v5583_v61 = vunpack.i.h.bf16 %v5581_v50  ;;  %v2454_v37 = vpop.f32.mrf.mxu2 }
0x14bd   :  { %2304 = vmatpush.msra.mxu0 %v5582_v14 }
0x14bf   :  { %2305 = vmatpush.msra.mxu0 %v5583_v61 }
0x14c0   :  { %5312 = vmatmul.msk.f32.vlgmr.msra.gmra.mxu0 %vm108_vm1, %v2256_v10 }
0x14c2   :  { %v2235_v44 = vpop.permute.xlu1 %2234 }
0x14c3   :  { %v2253_v20 = vsel %vm312_vm4, %v2249_v19, %v2235_v44 }
0x14c4   :  { %v2257_v21 = vmul.f32 %v2253_v20, %v6246_v9 }
0x14c8   :  { %5313 = vmatmul.msk.f32.gmra.mxu0 %vm108_vm1, %v2257_v21 }
0x1509   :  { %v2213_v48 = vpop.permute.xlu1 %2212  ;;  %v2237_v12 = vpop.permute.xlu0 %2236 }
0x150a   :  { %v2246_v18 = vsel %vm218_vm2, %v2202_v60, %v2213_v48  ;;  %v2457_v48 = vpop.f32.mrf.mxu2 }
0x1511   :  { %v2225_v30 = vpop.permute.xlu1 %2224 }
0x1512   :  { %v2250_v26 = vsel %vm307_vm3, %v2246_v18, %v2225_v30  ;;  %v2239_v23 = vpop.permute.xlu0 %2238 }
0x1513   :  { %v2254_v22 = vsel %vm312_vm4, %v2250_v26, %v2237_v12  ;;  %v2458_v12 = vadd.f32 %v2457_v48, %v6227_v62  ;;  %v2460_v26 = vpop.f32.mrf.mxu2 }
0x1514   :  { %v2258_v45 = vmul.f32 %v2254_v22, %v6236_v3  ;;  %v2461_v22 = vadd.f32 %v2460_v26, %v6218_v58 }
0x1515   :  { %v2469_v18 = vsel %vm218_vm2, %v2458_v12, -inf }
0x1516   :  { %5314 = vmatmul.msk.f32.gmra.mxu0 %vm108_vm1, %v2258_v45  ;;  %v2472_v45 = vsel %vm218_vm2, %v2461_v22, -inf }
0x1519   :  { %v2227_v25 = vpop.permute.xlu1 %2226 }
0x151a   :  { %v2251_v1 = vsel %vm307_vm3, %v2247_v52, %v2227_v25  ;;  %v2568_v60 = vpop.permute.xlu0 %2567 }
0x151b   :  { %v2255_v6 = vsel %vm312_vm4, %v2251_v1, %v2239_v23 }
0x151c   :  { %v2259_v42 = vmul.f32 %v2255_v6, %v6229_v63 }
0x151e   :  { %5315 = vmatmul.msk.f32.gmra.mxu0 %vm108_vm1, %v2259_v42 }
0x1521   :  { %v2566_v41 = vpop.permute.xlu1 %2565 }
0x1522   :  { %v5584_v13 = vpack.i.bf16 %v2566_v41, %v2568_v60  ;;  %v5591_v14 = vpop.permute.xlu0 %5590 }
0x1523   :  { %v5592_v36 = vunpack.i.l.bf16 %v5591_v14  ;;  %v5593_v44 = vunpack.i.h.bf16 %v5591_v14 }
0x1524   :  { %5585 = vrot.lane.b32.xlu1 %v5584_v13, %s6121_s21 }
0x152a   :  { %v6976_v60 = vpop.permute.xlu0 %2379 }
0x153d   :  { %v6932_v7 = vpop.f32.mrf.mxu0 }
0x153e   :  { %2323 = vrot.lane.b32.xlu2 %v6932_v7, %s6116_s18 }
0x1545   :  { %v6936_v54 = vpop.f32.mrf.mxu0 }
0x1546   :  { %2337 = vrot.lane.b32.xlu2 %v6936_v54, %s6122_s22  ;;  %2325 = vrot.lane.b32.xlu0 %v6936_v54, %s6116_s18 }
0x154e   :  { %1873 = vrot.lane.b32.xlu2 %v1866_v17, %s6121_s21 }
0x1577   :  { %2464 = vmax.xlane.f32.xlu2 %v2463_v29 }
0x1593   :  { %v2313_v28 = vpop.f32.mrf.mxu0 }
0x1594   :  { %2327 = vrot.lane.b32.xlu1 %v2313_v28, %s6116_s18 }
0x1596   :  { %v5586_v50 = vpop.permute.xlu1 %5585 }
0x1597   :  { %v5587_v27 = vunpack.i.l.bf16 %v5586_v50  ;;  %v5588_v10 = vunpack.i.h.bf16 %v5586_v50 }
0x1598   :  { %v6951_v61 = vpop.permute.xlu2 %2323 }
0x1599   :  { %2605 = vmatpush.msrb.mxu1 %v5587_v27 }
0x159b   :  { %v2316_v33 = vpop.f32.mrf.mxu0  ;;  %2606 = vmatpush.msrb.mxu1 %v5588_v10 }
0x159c   :  { %2353 = vrot.lane.b32.xlu0 %v2316_v33, %s6123_s23  ;;  %2339 = vrot.lane.b32.xlu1 %v2313_v28, %s6122_s22 }
0x159d   :  { %2607 = vmatpush.msrb.mxu1 %v5592_v36 }
0x159f   :  { %2608 = vmatpush.msrb.mxu1 %v5593_v44 }
0x15a0   :  { %v6955_v19 = vpop.permute.xlu2 %2337 }
0x15a4   :  { %2351 = vrot.lane.b32.xlu1 %v2313_v28, %s6123_s23 }
0x15a8   :  { %v1874_v20 = vpop.permute.xlu2 %1873 }
0x15a9   :  { %v6959_v21 = vadd.f32 %v1874_v20, %v6735_v32  ;;  %v2455_v32 = vadd.f32 %v2454_v37, %v6233_v2 }
0x15ab   :  { %1883 = vrot.lane.b32.xlu2 %v6959_v21, %s6121_s21  ;;  %v2466_v30 = vsel %vm218_vm2, %v2455_v32, -inf }
0x15ac   :  { %2329 = vrot.lane.b32.xlu1 %v2316_v33, %s6116_s18 }
0x15b3   :  { %2335 = vrot.lane.b32.xlu2 %v6932_v7, %s6122_s22 }
0x15b4   :  { %2341 = vrot.lane.b32.xlu1 %v2316_v33, %s6122_s22 }
0x15b8   :  { %v2326_v16 = vpop.permute.xlu0 %2325 }
0x15c6   :  { %2470 = vmax.xlane.f32.xlu0 %v2469_v18 }
0x15de   :  { %2467 = vmax.xlane.f32.xlu1 %v2466_v30 }
0x15e6   :  { %2473 = vmax.xlane.f32.xlu1 %v2472_v45  ;;  %v2107_v45 = vld [vmem:[#allocation2 + $0x268] sm:$0xff] }
0x15ea   :  { %v2465_v23 = vpop.xlane.xlu2 %2464 }
0x15eb   :  { %v2475_v52 = vsub.f32 %v2452_v39, %v2465_v23 }
0x15ed   :  { %v2479_v25 = vmul.f32 1.442695, %v2475_v52 }
0x15ef   :  { %5860 = vpow2.f32 %v2479_v25 }
0x15f5   :  { %v5861_v1 = vpop.eup %5860 }
0x15f6   :  { %v2487_v6 = vsel %vm218_vm2, %v5861_v1, 0.0 }
0x15f7   :  { %2488 = vadd.xlane.f32.xlu0 %v2487_v6 }
0x1606   :  { %v2328_v42 = vpop.permute.xlu1 %2327 }
0x1607   :  { %v2361_v17 = vsel %vm218_vm2, %v2313_v28, %v2328_v42 }
0x160b   :  { %2349 = vrot.lane.b32.xlu0 %v6936_v54, %s6123_s23 }
0x160e   :  { %v2340_v5 = vpop.permute.xlu1 %2339  ;;  %v2354_v29 = vpop.permute.xlu0 %2353 }
0x160f   :  { %v2365_v50 = vsel %vm307_vm3, %v2361_v17, %v2340_v5 }
0x1616   :  { %v2352_v41 = vpop.permute.xlu1 %2351 }
0x1617   :  { %v2369_v14 = vsel %vm312_vm4, %v2365_v50, %v2352_v41  ;;  %v1884_v50 = vpop.permute.xlu2 %1883 }
0x1618   :  { %v2389_v44 = vmul.f32 %v6976_v60, %v2369_v14 }
0x161e   :  { %v2330_v13 = vpop.permute.xlu1 %2329 }
0x161f   :  { %v2362_v35 = vsel %vm218_vm2, %v2316_v33, %v2330_v13 }
0x1626   :  { %v2342_v39 = vpop.permute.xlu1 %2341 }
0x1627   :  { %v2366_v27 = vsel %vm307_vm3, %v2362_v35, %v2342_v39 }
0x1628   :  { %v2370_v10 = vsel %vm312_vm4, %v2366_v27, %v2354_v29 }
0x1629   :  { %v2390_v36 = vmul.f32 %v6948_v47, %v2370_v10 }
0x162b   :  { %2405 = vmatpush.msrb.mxu3 %v2390_v36 }
0x162d   :  { %2406 = vmatpush.msrb.mxu3 %v2389_v44  ;;  %v2336_v44 = vpop.permute.xlu2 %2335 }
0x1639   :  { %v2471_v20 = vpop.xlane.xlu0 %2470 }
0x163a   :  { %v2477_v28 = vsub.f32 %v2458_v12, %v2471_v20  ;;  %v2106_v12 = vld [vmem:[#allocation2 + $0x260] sm:$0xff] }
0x163c   :  { %v2483_v37 = vmul.f32 1.442695, %v2477_v28 }
0x163e   :  { %5862 = vpow2.f32 %v2483_v37 }
0x1644   :  { %v5863_v33 = vpop.eup %5862 }
0x1645   :  { %v2493_v48 = vsel %vm218_vm2, %v5863_v33, 0.0 }
0x1646   :  { %2494 = vadd.xlane.f32.xlu0 %v2493_v48 }
0x1651   :  { %v2468_v18 = vpop.xlane.xlu1 %2467 }
0x1652   :  { %v2476_v30 = vsub.f32 %v2455_v32, %v2468_v18 }
0x1654   :  { %v2481_v26 = vmul.f32 1.442695, %v2476_v30 }
0x1656   :  { %5864 = vpow2.f32 %v2481_v26 }
0x1659   :  { %v2474_v23 = vpop.xlane.xlu1 %2473 }
0x165a   :  { %v2478_v52 = vsub.f32 %v2461_v22, %v2474_v23  ;;  %2377 = vrot.lane.b32.xlu0 %v2107_v45, %s6119_s2 }
0x165c   :  { %v5865_v25 = vpop.eup %5864  ;;  %v2485_v6 = vmul.f32 1.442695, %v2478_v52 }
0x165d   :  { %v2490_v42 = vsel %vm218_vm2, %v5865_v25, 0.0 }
0x165e   :  { %5866 = vpow2.f32 %v2485_v6  ;;  %2491 = vadd.xlane.f32.xlu1 %v2490_v42 }
0x1662   :  { %2375 = vrot.lane.b32.xlu0 %v2106_v12, %s6119_s2 }
0x1664   :  { %v5867_v5 = vpop.eup %5866 }
0x1665   :  { %v2496_v41 = vsel %vm218_vm2, %v5867_v5, 0.0 }
0x1666   :  { %2497 = vadd.xlane.f32.xlu2 %v2496_v41 }
0x166a   :  { %v2489_v32 = vpop.xlane.xlu0 %2488 }
0x166b   :  { %5868 = vrcp.f32 %v2489_v32 }
0x1671   :  { %v5869_v13 = vpop.eup %5868 }
0x1672   :  { %v2503_v17 = vmul.f32 %v5869_v13, %v5861_v1  ;;  %v2360_v1 = vsel %vm218_vm2, %v6936_v54, %v2326_v16 }
0x1673   :  { %v2364_v27 = vsel %vm307_vm3, %v2360_v1, %v6955_v19  ;;  %v2359_v19 = vsel %vm218_vm2, %v6932_v7, %v6951_v61 }
0x1674   :  { %v2363_v48 = vsel %vm307_vm3, %v2359_v19, %v2336_v44 }
0x1677   :  { %2511 = vrot.lane.b32.xlu1 %v2503_v17, %s6116_s18 }
0x167d   :  { %v2350_v22 = vpop.permute.xlu0 %2349 }
0x167e   :  { %2347 = vrot.lane.b32.xlu2 %v6932_v7, %s6123_s23  ;;  %v2368_v14 = vsel %vm312_vm4, %v2364_v27, %v2350_v22 }
0x167f   :  { %2523 = vrot.lane.b32.xlu1 %v2503_v17, %s6122_s22 }
0x1687   :  { %2535 = vrot.lane.b32.xlu1 %v2503_v17, %s6123_s23 }
0x16b9   :  { %v2495_v35 = vpop.xlane.xlu0 %2494 }
0x16ba   :  { %5870 = vrcp.f32 %v2495_v35 }
0x16c0   :  { %v5871_v39 = vpop.eup %5870 }
0x16c1   :  { %v2505_v29 = vmul.f32 %v5871_v39, %v5863_v33 }
0x16c3   :  { %2539 = vrot.lane.b32.xlu0 %v2505_v29, %s6123_s23  ;;  %2527 = vrot.lane.b32.xlu2 %v2505_v29, %s6122_s22 }
0x16cc   :  { %v7003_v10 = vpop.permute.xlu0 %2377 }
0x16cd   :  { %v2388_v36 = vmul.f32 %v7003_v10, %v2368_v14 }
0x16cf   :  { %2407 = vmatpush.msrb.mxu3 %v2388_v36 }
0x16d1   :  { %v2492_v20 = vpop.xlane.xlu1 %2491 }
0x16d2   :  { %5872 = vrcp.f32 %v2492_v20 }
0x16d4   :  { %v7010_v16 = vpop.permute.xlu0 %2375 }
0x16d8   :  { %v5873_v28 = vpop.eup %5872 }
0x16d9   :  { %v2498_v37 = vpop.xlane.xlu2 %2497  ;;  %v2504_v33 = vmul.f32 %v5873_v28, %v5865_v25 }
0x16da   :  { %5874 = vrcp.f32 %v2498_v37 }
0x16db   :  { %2513 = vrot.lane.b32.xlu1 %v2504_v33, %s6116_s18 }
0x16e0   :  { %v5875_v54 = vpop.eup %5874 }
0x16e1   :  { %v2348_v18 = vpop.permute.xlu2 %2347  ;;  %v2506_v30 = vmul.f32 %v5875_v54, %v5867_v5 }
0x16e2   :  { %v2367_v26 = vsel %vm312_vm4, %v2363_v48, %v2348_v18 }
0x16e3   :  { %2525 = vrot.lane.b32.xlu1 %v2504_v33, %s6122_s22  ;;  %2541 = vrot.lane.b32.xlu0 %v2506_v30, %s6123_s23  ;;  %v2387_v45 = vmul.f32 %v7010_v16, %v2367_v26 }
0x16e4   :  { %2529 = vrot.lane.b32.xlu2 %v2506_v30, %s6122_s22 }
0x16e5   :  { %2408 = vmatpush.msrb.mxu3 %v2387_v45  ;;  %v7053_v45 = vld [vmem:[#allocation2 + $0x208] sm:$0xff] }
0x16e6   :  { %5316 = vmatmul.msk.f32.vlgmr.msrb.gmra.mxu3 %vm108_vm1, %v6739_v34  ;;  %v1889_v34 = vsel %vm108_vm1, %v1884_v50, 0.0 }
0x16e9   :  { %v2512_v7 = vpop.permute.xlu1 %2511 }
0x16ea   :  { %v2547_v23 = vsel %vm218_vm2, %v2503_v17, %v2512_v7 }
0x16eb   :  { %2537 = vrot.lane.b32.xlu1 %v2504_v33, %s6123_s23 }
0x16f1   :  { %v2524_v61 = vpop.permute.xlu1 %2523 }
0x16f2   :  { %v2551_v52 = vsel %vm307_vm3, %v2547_v23, %v2524_v61  ;;  %v7061_v61 = vld [vmem:[#allocation2 + $0x1f0] sm:$0xff] }
0x16f3   :  { %2515 = vrot.lane.b32.xlu1 %v2505_v29, %s6116_s18 }
0x16f9   :  { %v2536_v25 = vpop.permute.xlu1 %2535 }
0x16fa   :  { %v2555_v6 = vsel %vm312_vm4, %v2551_v52, %v2536_v25  ;;  %v1869_v52 = vadd.f32 %v6944_v4, %v6897_v38 }
0x16fb   :  { %v2559_v42 = vmul.f32 %v2555_v6, %v6242_v8  ;;  %2517 = vrot.lane.b32.xlu1 %v2506_v30, %s6116_s18 }
0x16fd   :  { %5322 = vmatmul.msk.f32.vlgmr.msrb.gmra.mxu1 %vm108_vm1, %v2559_v42 }
0x171d   :  { %v2528_v39 = vpop.permute.xlu2 %2527 }
0x1725   :  { %1890 = vadd.xlane.f32.xlu1 %v1889_v34 }
0x1735   :  { %v2540_v27 = vpop.permute.xlu0 %2539 }
0x173e   :  { %v2530_v20 = vpop.permute.xlu2 %2529 }
0x174d   :  { %v2514_v12 = vpop.permute.xlu1 %2513 }
0x174e   :  { %v2548_v41 = vsel %vm218_vm2, %v2504_v33, %v2514_v12 }
0x1755   :  { %v2526_v5 = vpop.permute.xlu1 %2525  ;;  %v2542_v37 = vpop.permute.xlu0 %2541 }
0x1756   :  { %v2552_v32 = vsel %vm307_vm3, %v2548_v41, %v2526_v5 }
0x175d   :  { %v2538_v13 = vpop.permute.xlu1 %2537 }
0x175e   :  { %v2556_v17 = vsel %vm312_vm4, %v2552_v32, %v2538_v13 }
0x175f   :  { %v2560_v22 = vmul.f32 %v2556_v17, %v6246_v9 }
0x1761   :  { %5323 = vmatmul.msk.f32.gmra.mxu1 %vm108_vm1, %v2560_v22 }
0x1765   :  { %v2516_v35 = vpop.permute.xlu1 %2515 }
0x1766   :  { %v2549_v1 = vsel %vm218_vm2, %v2505_v29, %v2516_v35  ;;  %v7092_v35 = vld [vmem:[#allocation2 + $0x210] ss:$0 sm:$0xff] }
0x1767   :  { %v2553_v50 = vsel %vm307_vm3, %v2549_v1, %v2528_v39 }
0x1768   :  { %v2557_v14 = vsel %vm312_vm4, %v2553_v50, %v2540_v27 }
0x1769   :  { %v2561_v36 = vmul.f32 %v2557_v14, %v6236_v3  ;;  %v2410_v22 = vpop.f32.mrf.mxu3 }
0x176b   :  { %5324 = vmatmul.msk.f32.gmra.mxu1 %vm108_vm1, %v2561_v36 }
0x176d   :  { %v2518_v44 = vpop.permute.xlu1 %2517 }
0x176e   :  { %v2550_v28 = vsel %vm218_vm2, %v2506_v30, %v2518_v44  ;;  %v7051_v30 = vld [vmem:[#allocation2 + $0x200] sm:$0xff] }
0x176f   :  { %v2554_v33 = vsel %vm307_vm3, %v2550_v28, %v2530_v20  ;;  %v7057_v7 = vpack.i.bf16 %v7051_v30, %v7053_v45 }
0x1770   :  { %v2558_v54 = vsel %vm312_vm4, %v2554_v33, %v2542_v37 }
0x1771   :  { %v2562_v29 = vmul.f32 %v2558_v54, %v6229_v63 }
0x1773   :  { %5325 = vmatmul.msk.f32.gmra.mxu1 %vm108_vm1, %v2562_v29 }
0x177a   :  { %v7074_v25 = vpop.f32.mrf.mxu1 }
0x1798   :  { %v1891_v19 = vpop.xlane.xlu1 %1890 }
0x1799   :  { %v1895_v48 = vmul.f32 %v1891_v19, %v6414_v43 }
0x179b   :  { %v7046_v18 = vsub.f32 %v6959_v21, %v1895_v48  ;;  %v7063_v21 = vld [vmem:[#allocation2 + $0x1f8] sm:$0xff] }
0x179c   :  { %v7067_v23 = vpack.i.bf16 %v7061_v61, %v7063_v21 }
0x179d   :  { %v1899_v26 = vmul.f32 %v7046_v18, %v7046_v18 }
0x179f   :  { %1903 = vrot.lane.b32.xlu2 %v1899_v26, %s6121_s21 }
0x17a7   :  { %5595 = vrot.lane.b32.xlu2 %v7057_v7, %s6121_s21 }
0x17af   :  { %5600 = vrot.lane.b32.xlu2 %v7067_v23, %s6121_s21 }
0x17b7   :  { %1875 = vrot.lane.b32.xlu2 %v1869_v52, %s6121_s21 }
0x17bf   :  { %2626 = vrot.lane.b32.xlu2 %v7074_v25, %s6116_s18 }
0x17de   :  { %v7078_v6 = vpop.f32.mrf.mxu1 }
0x17df   :  { %2628 = vrot.lane.b32.xlu2 %v7078_v6, %s6116_s18 }
0x17e8   :  { %v7082_v42 = vpop.f32.mrf.mxu1 }
0x17e9   :  { %2642 = vrot.lane.b32.xlu2 %v7082_v42, %s6122_s22 }
0x17f0   :  { %v2619_v34 = vpop.f32.mrf.mxu1 }
0x17f1   :  { %2632 = vrot.lane.b32.xlu2 %v2619_v34, %s6116_s18 }
0x17f9   :  { %2644 = vrot.lane.b32.xlu2 %v2619_v34, %s6122_s22  ;;  %v1904_v38 = vpop.permute.xlu2 %1903 }
0x17fa   :  { %v1909_v4 = vsel %vm108_vm1, %v1904_v38, 0.0 }
0x17fb   :  { %1910 = vadd.xlane.f32.xlu0 %v1909_v4 }
0x1801   :  { %2656 = vrot.lane.b32.xlu2 %v2619_v34, %s6123_s23  ;;  %v5596_v12 = vpop.permute.xlu2 %5595 }
0x1802   :  { %v5598_v5 = vunpack.i.h.bf16 %v5596_v12  ;;  %v5597_v41 = vunpack.i.l.bf16 %v5596_v12 }
0x1804   :  { %2742 = vmatpush.msrb.mxu0 %v5597_v41 }
0x1806   :  { %2743 = vmatpush.msrb.mxu0 %v5598_v5 }
0x1809   :  { %2650 = vrot.lane.b32.xlu2 %v7074_v25, %s6123_s23  ;;  %v5601_v32 = vpop.permute.xlu2 %5600 }
0x180a   :  { %v5603_v13 = vunpack.i.h.bf16 %v5601_v32  ;;  %v5602_v17 = vunpack.i.l.bf16 %v5601_v32 }
0x180c   :  { %2744 = vmatpush.msrb.mxu0 %v5602_v17 }
0x180e   :  { %2745 = vmatpush.msrb.mxu0 %v5603_v13 }
0x180f   :  { %2640 = vrot.lane.b32.xlu0 %v7078_v6, %s6122_s22  ;;  %5327 = vmatmul.msk.f32.vlgmr.msrb.gmra.mxu0 %vm108_vm1, %v2410_v22 }
0x1811   :  { %v1876_v39 = vpop.permute.xlu2 %1875  ;;  %2721 = vrot.lane.b32.xlu2 %v7092_v35, %s6121_s21 }
0x1812   :  { %v1880_v1 = vadd.f32 %v1876_v39, %v6744_v11 }
0x1814   :  { %1885 = vrot.lane.b32.xlu1 %v1880_v1, %s6121_s21 }
0x1817   :  { %2630 = vrot.lane.b32.xlu0 %v7082_v42, %s6116_s18 }
0x1819   :  { %v2627_v27 = vpop.permute.xlu2 %2626 }
0x181c   :  { %2654 = vrot.lane.b32.xlu1 %v7082_v42, %s6123_s23 }
0x1824   :  { %2652 = vrot.lane.b32.xlu1 %v7078_v6, %s6123_s23 }
0x1839   :  { %v2629_v50 = vpop.permute.xlu2 %2628 }
0x1843   :  { %v2643_v14 = vpop.permute.xlu2 %2642 }
0x184b   :  { %v2633_v36 = vpop.permute.xlu2 %2632 }
0x184c   :  { %v2665_v20 = vsel %vm218_vm2, %v2619_v34, %v2633_v36 }
0x1853   :  { %v2645_v44 = vpop.permute.xlu2 %2644 }
0x1854   :  { %v2669_v11 = vsel %vm307_vm3, %v2665_v20, %v2645_v44 }
0x185b   :  { %v2657_v28 = vpop.permute.xlu2 %2656 }
0x185c   :  { %v2673_v37 = vsel %vm312_vm4, %v2669_v11, %v2657_v28  ;;  %v2663_v28 = vsel %vm218_vm2, %v7078_v6, %v2629_v50  ;;  %v2662_v6 = vsel %vm218_vm2, %v7074_v25, %v2627_v27 }
0x185d   :  { %v2677_v33 = vmul.f32 %v2673_v37, %v6948_v47 }
0x185f   :  { %2690 = vmatpush.msra.mxu3 %v2677_v33 }
0x186e   :  { %v1911_v54 = vpop.xlane.xlu0 %1910 }
0x186f   :  { %v1915_v29 = vmul.f32 %v1911_v54, %v6414_v43 }
0x1871   :  { %v1917_v19 = vadd.f32 1e-05, %v1915_v29 }
0x1873   :  { %5876 = vrsqrt.f32 %v1917_v19  ;;  %vm1925_vm6 = vweird.f32 %v1917_v19 }
0x1879   :  { %v5877_v48 = vpop.eup %5876 }
0x187a   :  { %v1920_v26 = vmul.f32 %v5877_v48, %v1917_v19  ;;  %vm1926_vm5 = vweird.f32 %v5877_v48 }
0x187b   :  { %vm1927_vm7 = vmor %vm1925_vm6, %vm1926_vm5 }
0x187c   :  { %v1921_v52 = vmul.f32 %v5877_v48, %v1920_v26 }
0x187e   :  { %v1922_v38 = vmul.f32 0.5, %v1921_v52 }
0x1880   :  { %v1923_v4 = vsub.f32 1.5, %v1922_v38  ;;  %v2651_v38 = vpop.permute.xlu2 %2650 }
0x1881   :  { %v2641_v34 = vpop.permute.xlu0 %2640 }
0x1882   :  { %v1924_v12 = vmul.f32 %v5877_v48, %v1923_v4  ;;  %v2667_v37 = vsel %vm307_vm3, %v2663_v28, %v2641_v34 }
0x1884   :  { %v1928_v5 = vsel %vm1927_vm7, %v5877_v48, %v1924_v12 }
0x1885   :  { %v1939_v41 = vmul.f32 %v1928_v5, %v7046_v18  ;;  %v6040_v5 = vld [vmem:[#allocation2 + $0x268] sm:$0xff] }
0x1886   :  { %v1886_v32 = vpop.permute.xlu1 %1885 }
0x1887   :  { %v1892_v13 = vsel %vm108_vm1, %v1886_v32, 0.0  ;;  %v1941_v17 = vmul.f32 %v1939_v41, %v6489_v40 }
0x1888   :  { %1893 = vadd.xlane.f32.xlu1 %v1892_v13 }
0x1889   :  { %v2631_v22 = vpop.permute.xlu0 %2630  ;;  %v1943_v39 = vadd.f32 %v1941_v17, %v6495_v46 }
0x188a   :  { %v2664_v36 = vsel %vm218_vm2, %v7082_v42, %v2631_v22 }
0x188b   :  { %1947 = vrot.lane.b32.xlu0 %v1943_v39, %s6121_s21  ;;  %v2668_v20 = vsel %vm307_vm3, %v2664_v36, %v2643_v14 }
0x188c   :  { %v2747_v36 = vpop.f32.mrf.mxu0 }
0x188e   :  { %v2655_v44 = vpop.permute.xlu1 %2654 }
0x188f   :  { %v2672_v11 = vsel %vm312_vm4, %v2668_v20, %v2655_v44 }
0x1890   :  { %v2676_v18 = vmul.f32 %v2672_v11, %v6976_v60 }
0x1892   :  { %2691 = vmatpush.msra.mxu3 %v2676_v18 }
0x1893   :  { %2638 = vrot.lane.b32.xlu0 %v7074_v25, %s6122_s22 }
0x1896   :  { %v2653_v33 = vpop.permute.xlu1 %2652 }
0x1897   :  { %v2671_v42 = vsel %vm312_vm4, %v2667_v37, %v2653_v33 }
0x1898   :  { %v2675_v54 = vmul.f32 %v2671_v42, %v7003_v10 }
0x189a   :  { %2692 = vmatpush.msra.mxu3 %v2675_v54 }
0x18fb   :  { %v1894_v14 = vpop.xlane.xlu1 %1893 }
0x18fc   :  { %v1896_v29 = vmul.f32 %v1894_v14, %v6414_v43 }
0x18fd   :  { %v1948_v19 = vpop.permute.xlu0 %1947 }
0x18fe   :  { %v1898_v48 = vsub.f32 %v1880_v1, %v1896_v29  ;;  %v1953_v26 = vsel %vm108_vm1, %v1948_v19, 0.0  ;;  %v2722_v1 = vpop.permute.xlu2 %2721 }
0x18ff   :  { %1954 = vadd.xlane.f32.xlu0 %v1953_v26  ;;  %v2748_v44 = vadd.f32 %v2747_v36, %v2722_v1 }
0x1900   :  { %v1900_v52 = vmul.f32 %v1898_v48, %v1898_v48 }
0x1901   :  { %v2753_v20 = vadd.f32 %v2748_v44, %v6695_v56 }
0x1902   :  { %1905 = vrot.lane.b32.xlu2 %v1900_v52, %s6121_s21 }
0x1903   :  { %v2756_v11 = vsel %vm108_vm1, %v2753_v20, 0.0 }
0x1905   :  { %v2639_v50 = vpop.permute.xlu0 %2638 }
0x1906   :  { %v2666_v4 = vsel %vm307_vm3, %v2662_v6, %v2639_v50 }
0x1907   :  { %v2670_v34 = vsel %vm312_vm4, %v2666_v4, %v2651_v38  ;;  %v2755_v38 = vld [vmem:[#allocation2 + $0x270] sm:$0x3] }
0x1908   :  { %v2674_v12 = vmul.f32 %v2670_v34, %v7010_v16 }
0x190a   :  { %2693 = vmatpush.msra.mxu3 %v2674_v12 }
0x190b   :  { %5326 = vmatmul.msk.f32.vlgmr.msra.gmra.mxu3 %vm108_vm1, %v6040_v5  ;;  %v2800_v5 = vperm.slane %v2755_v38, 0 }
0x195c   :  { %v1906_v41 = vpop.permute.xlu2 %1905 }
0x195d   :  { %v1912_v32 = vsel %vm108_vm1, %v1906_v41, 0.0 }
0x195e   :  { %1913 = vadd.xlane.f32.xlu1 %v1912_v32 }
0x1972   :  { %v1955_v13 = vpop.xlane.xlu0 %1954 }
0x1973   :  { %v1959_v25 = vmul.f32 %v1955_v13, %v6414_v43 }
0x1975   :  { %v7140_v27 = vsub.f32 %v1943_v39, %v1959_v25 }
0x1977   :  { %v1963_v17 = vmul.f32 %v7140_v27, %v7140_v27  ;;  %2005 = vrot.lane.b32.xlu1 %v6489_v40, %s6119_s2 }
0x1979   :  { %1967 = vrot.lane.b32.xlu2 %v1963_v17, %s6121_s21 }
0x197f   :  { %5605 = vrot.lane.b32.xlu1 %v7057_v7, %s6119_s2 }
0x1987   :  { %5610 = vrot.lane.b32.xlu1 %v7067_v23, %s6119_s2 }
0x198e   :  { %v2695_v22 = vpop.f32.mrf.mxu3 }
0x198f   :  { %5328 = vmatmul.msk.f32.gmra.mxu0 %vm108_vm1, %v2695_v22 }
0x19a2   :  { %2757 = vadd.xlane.f32.xlu2 %v2756_v11 }
0x19d1   :  { %v1914_v39 = vpop.xlane.xlu1 %1913 }
0x19d2   :  { %v1916_v18 = vmul.f32 %v1914_v39, %v6414_v43 }
0x19d3   :  { %v1968_v28 = vpop.permute.xlu2 %1967 }
0x19d4   :  { %v1918_v37 = vadd.f32 1e-05, %v1916_v18  ;;  %v1973_v33 = vsel %vm108_vm1, %v1968_v28, 0.0 }
0x19d5   :  { %1974 = vadd.xlane.f32.xlu0 %v1973_v33 }
0x19d6   :  { %5878 = vrsqrt.f32 %v1918_v37  ;;  %vm1935_vm9 = vweird.f32 %v1918_v37 }
0x19dc   :  { %v5879_v42 = vpop.eup %5878 }
0x19dd   :  { %v1930_v54 = vmul.f32 %v5879_v42, %v1918_v37  ;;  %vm1936_vm8 = vweird.f32 %v5879_v42 }
0x19de   :  { %vm1937_vm10 = vmor %vm1935_vm9, %vm1936_vm8 }
0x19df   :  { %v1931_v14 = vmul.f32 %v5879_v42, %v1930_v54 }
0x19e1   :  { %v1932_v29 = vmul.f32 0.5, %v1931_v14 }
0x19e3   :  { %v1933_v19 = vsub.f32 1.5, %v1932_v29 }
0x19e5   :  { %v1934_v26 = vmul.f32 %v5879_v42, %v1933_v19 }
0x19e7   :  { %v1938_v56 = vsel %vm1937_vm10, %v5879_v42, %v1934_v26 }
0x19e8   :  { %v1940_v52 = vmul.f32 %v1938_v56, %v1898_v48  ;;  %v2807_v48 = vperm.slane %v2755_v38, 1 }
0x19e9   :  { %2010 = vrot.lane.b32.xlu0 %v6495_v46, %s6119_s2  ;;  %v7173_v28 = vpop.permute.xlu1 %2005 }
0x19ea   :  { %v1942_v6 = vmul.f32 %v1940_v52, %v6489_v40  ;;  %v7182_v52 = vld [vmem:[#allocation2 + $0x158] sm:$0xff] }
0x19eb   :  { %2886 = vmatpush.msrb.mxu2 %v7182_v52 }
0x19ec   :  { %v7156_v50 = vadd.f32 %v1942_v6, %v6495_v46 }
0x19f1   :  { %1949 = vrot.lane.b32.xlu0 %v7156_v50, %s6121_s21  ;;  %v5606_v14 = vpop.permute.xlu1 %5605 }
0x19f2   :  { %v5608_v29 = vunpack.i.h.bf16 %v5606_v14  ;;  %v5607_v19 = vunpack.i.l.bf16 %v5606_v14 }
0x19f4   :  { %2847 = vmatpush.msrb.mxu3 %v5607_v19 }
0x19f6   :  { %2848 = vmatpush.msrb.mxu3 %v5608_v29 }
0x19f9   :  { %2809 = vrot.lane.b32.xlu0 %v2807_v48, %s6120_s0  ;;  %v5611_v26 = vpop.permute.xlu1 %5610 }
0x19fa   :  { %v5612_v56 = vunpack.i.l.bf16 %v5611_v26 }
0x19fc   :  { %2849 = vmatpush.msrb.mxu3 %v5612_v56 }
0x1a0c   :  { %v2750_v23 = vpop.f32.mrf.mxu0 }
0x1a0d   :  { %v2751_v17 = vadd.f32 %v2750_v23, %v2722_v1 }
0x1a0f   :  { %v2754_v44 = vadd.f32 %v2751_v17, %v6772_v15 }
0x1a11   :  { %v2759_v18 = vsel %vm108_vm1, %v2754_v44, 0.0 }
0x1a15   :  { %v2758_v4 = vpop.xlane.xlu2 %2757 }
0x1a16   :  { %v2762_v34 = vmul.f32 %v2758_v4, %v6414_v43 }
0x1a18   :  { %v2764_v40 = vsub.f32 %v2753_v20, %v2762_v34 }
0x1a1a   :  { %v2766_v12 = vmul.f32 %v2764_v40, %v2764_v40 }
0x1a1c   :  { %v2768_v46 = vsel %vm108_vm1, %v2766_v12, 0.0 }
0x1a1d   :  { %2769 = vadd.xlane.f32.xlu2 %v2768_v46 }
0x1a35   :  { %2802 = vrot.lane.b32.xlu2 %v2800_v5, %s6120_s0 }
0x1a48   :  { %v1975_v41 = vpop.xlane.xlu0 %1974 }
0x1a49   :  { %v1979_v7 = vmul.f32 %v1975_v41, %v6414_v43 }
0x1a4b   :  { %v1981_v32 = vadd.f32 1e-05, %v1979_v7 }
0x1a4d   :  { %5880 = vrsqrt.f32 %v1981_v32  ;;  %vm1989_vm12 = vweird.f32 %v1981_v32 }
0x1a53   :  { %v5881_v13 = vpop.eup %5880 }
0x1a54   :  { %v1984_v25 = vmul.f32 %v5881_v13, %v1981_v32  ;;  %vm1990_vm11 = vweird.f32 %v5881_v13 }
0x1a55   :  { %vm1991_vm13 = vmor %vm1989_vm12, %vm1990_vm11 }
0x1a56   :  { %v1985_v22 = vmul.f32 %v5881_v13, %v1984_v25 }
0x1a58   :  { %v1986_v36 = vmul.f32 0.5, %v1985_v22  ;;  %v7190_v22 = vld [vmem:[#allocation2 + $0x150] sm:$0xff] }
0x1a59   :  { %2887 = vmatpush.msrb.mxu2 %v7190_v22 }
0x1a5a   :  { %v1987_v20 = vsub.f32 1.5, %v1986_v36  ;;  %v7192_v36 = vld [vmem:[#allocation2 + $0x148] sm:$0xff] }
0x1a5b   :  { %v7170_v11 = vpop.permute.xlu0 %2010  ;;  %2888 = vmatpush.msrb.mxu2 %v7192_v36 }
0x1a5c   :  { %v1988_v39 = vmul.f32 %v5881_v13, %v1987_v20  ;;  %v7194_v20 = vld [vmem:[#allocation2 + $0x140] sm:$0xff] }
0x1a5d   :  { %2889 = vmatpush.msrb.mxu2 %v7194_v20 }
0x1a5e   :  { %2760 = vadd.xlane.f32.xlu2 %v2759_v18  ;;  %v1992_v37 = vsel %vm1991_vm13, %v5881_v13, %v1988_v39  ;;  %v5664_v39 = vpack.i.bf16 %v7190_v22, %v7182_v52 }
0x1a5f   :  { %v2003_v33 = vmul.f32 %v1992_v37, %v7140_v27  ;;  %v5613_v27 = vunpack.i.h.bf16 %v5611_v26 }
0x1a61   :  { %v2008_v1 = vmul.f32 %v7173_v28, %v2003_v33  ;;  %2850 = vmatpush.msrb.mxu3 %v5613_v27 }
0x1a63   :  { %v2013_v42 = vadd.f32 %v7170_v11, %v2008_v1  ;;  %v1950_v15 = vpop.permute.xlu0 %1949 }
0x1a64   :  { %v1956_v54 = vsel %vm108_vm1, %v1950_v15, 0.0 }
0x1a65   :  { %2866 = vrot.lane.b32.xlu1 %v2013_v42, %s6121_s21  ;;  %1957 = vadd.xlane.f32.xlu0 %v1956_v54 }
0x1a6b   :  { %v2810_v13 = vpop.permute.xlu0 %2809 }
0x1a79   :  { %2826 = vrot.lane.b32.xlu0 %v7092_v35, %s6119_s2 }
0x1a90   :  { %v2770_v6 = vpop.xlane.xlu2 %2769 }
0x1a91   :  { %v2774_v38 = vmul.f32 %v2770_v6, %v6414_v43 }
0x1a93   :  { %v2776_v4 = vadd.f32 1e-05, %v2774_v38 }
0x1a95   :  { %5882 = vrsqrt.f32 %v2776_v4  ;;  %vm2784_vm15 = vweird.f32 %v2776_v4 }
0x1a98   :  { %v2803_v32 = vpop.permute.xlu2 %2802 }
0x1a9b   :  { %v5883_v48 = vpop.eup %5882 }
0x1a9c   :  { %v2779_v34 = vmul.f32 %v5883_v48, %v2776_v4  ;;  %vm2785_vm14 = vweird.f32 %v5883_v48 }
0x1a9d   :  { %vm2786_vm0 = vmor %vm2784_vm15, %vm2785_vm14 }
0x1a9e   :  { %v2780_v12 = vmul.f32 %v5883_v48, %v2779_v34 }
0x1aa0   :  { %v2781_v46 = vmul.f32 0.5, %v2780_v12  ;;  %v7216_v12 = vld [vmem:[#allocation2 + $0x160] ss:$0 sm:$0xff] }
0x1aa2   :  { %v2782_v5 = vsub.f32 1.5, %v2781_v46 }
0x1aa4   :  { %v2783_v41 = vmul.f32 %v5883_v48, %v2782_v5 }
0x1aa6   :  { %v2787_v7 = vsel %vm2786_vm0, %v5883_v48, %v2783_v41 }
0x1aa7   :  { %v2798_v23 = vmul.f32 %v2787_v7, %v2764_v40 }
0x1aa9   :  { %v2805_v25 = vmul.f32 %v2803_v32, %v2798_v23 }
0x1aab   :  { %v7186_v17 = vadd.f32 %v2810_v13, %v2805_v25 }
0x1aad   :  { %5329 = vmatmul.msk.f32.vlgmr.msrb.gmra.mxu3 %vm108_vm1, %v7186_v17 }
0x1ad1   :  { %v2761_v18 = vpop.xlane.xlu2 %2760 }
0x1ad2   :  { %v2763_v37 = vmul.f32 %v2761_v18, %v6414_v43 }
0x1ad4   :  { %v2765_v33 = vsub.f32 %v2754_v44, %v2763_v37 }
0x1ad6   :  { %v2767_v1 = vmul.f32 %v2765_v33, %v2765_v33 }
0x1ad7   :  { %v7204_v42 = vpop.permute.xlu1 %2866 }
0x1ad8   :  { %5331 = vmatmul.msk.f32.vlgmr.msrb.gmra.mxu2 %vm108_vm1, %v7204_v42  ;;  %v1958_v15 = vpop.xlane.xlu0 %1957  ;;  %v2771_v54 = vsel %vm108_vm1, %v2767_v1, 0.0 }
0x1ad9   :  { %v1960_v14 = vmul.f32 %v1958_v15, %v6414_v43  ;;  %2772 = vadd.xlane.f32.xlu2 %v2771_v54 }
0x1adb   :  { %v1962_v29 = vsub.f32 %v7156_v50, %v1960_v14 }
0x1add   :  { %v1964_v19 = vmul.f32 %v1962_v29, %v1962_v29 }
0x1adf   :  { %1969 = vrot.lane.b32.xlu1 %v1964_v19, %s6121_s21 }
0x1aeb   :  { %v7214_v4 = vpop.permute.xlu0 %2826 }
0x1b30   :  { %v2852_v48 = vpop.f32.mrf.mxu3 }
0x1b31   :  { %v2853_v46 = vadd.f32 %v2852_v48, %v7214_v4 }
0x1b33   :  { %v2897_v25 = vmul.f32 %v2853_v46, %v6199_v49  ;;  %v2898_v14 = vmul.f32 %v2853_v46, %v6204_v51 }
0x1b4c   :  { %v2773_v26 = vpop.xlane.xlu2 %2772 }
0x1b4d   :  { %v2775_v44 = vmul.f32 %v2773_v26, %v6414_v43 }
0x1b4f   :  { %v2777_v27 = vadd.f32 1e-05, %v2775_v44 }
0x1b51   :  { %5884 = vrsqrt.f32 %v2777_v27  ;;  %v1970_v56 = vpop.permute.xlu1 %1969  ;;  %vm2794_vm6 = vweird.f32 %v2777_v27 }
0x1b52   :  { %v1976_v6 = vsel %vm108_vm1, %v1970_v56, 0.0 }
0x1b53   :  { %1977 = vadd.xlane.f32.xlu1 %v1976_v6 }
0x1b57   :  { %v5885_v38 = vpop.eup %5884 }
0x1b58   :  { %v2789_v34 = vmul.f32 %v5885_v38, %v2777_v27  ;;  %vm2795_vm5 = vweird.f32 %v5885_v38 }
0x1b59   :  { %vm2796_vm7 = vmor %vm2794_vm6, %vm2795_vm5 }
0x1b5a   :  { %v2790_v50 = vmul.f32 %v5885_v38, %v2789_v34 }
0x1b5b   :  { %v2891_v5 = vpop.f32.mrf.mxu2 }
0x1b5c   :  { %v2791_v41 = vmul.f32 0.5, %v2790_v50  ;;  %v2892_v7 = vadd.f32 %v7216_v12, %v2891_v5 }
0x1b5e   :  { %v2792_v23 = vsub.f32 1.5, %v2791_v41  ;;  %5333 = vmatpush.xpose.msk.msra.mxu1 %vm108_vm1, %v2892_v7 }
0x1b60   :  { %v2793_v18 = vmul.f32 %v5885_v38, %v2792_v23 }
0x1b61   :  { %5334 = vmatmul.msk.f32.vlgmr.msra.gmra.mxu1 %vm108_vm1, %v2897_v25 }
0x1b62   :  { %3339 = vmatpush.msrb.mxu1 %v7053_v45  ;;  %v2797_v37 = vsel %vm2796_vm7, %v5885_v38, %v2793_v18  ;;  %v2899_v45 = vmul.f32 %v2853_v46, %v6208_v53  ;;  %v3048_v18 = vmul.f32 %v2892_v7, %v6218_v58 }
0x1b63   :  { %v2799_v1 = vmul.f32 %v2797_v37, %v2765_v33 }
0x1b64   :  { %3340 = vmatpush.msrb.mxu1 %v7051_v30  ;;  %v2900_v30 = vmul.f32 %v2853_v46, %v6220_v59 }
0x1b65   :  { %v2806_v15 = vmul.f32 %v2803_v32, %v2799_v1  ;;  %v3046_v1 = vmul.f32 %v2892_v7, %v6233_v2 }
0x1b66   :  { %3341 = vmatpush.msrb.mxu1 %v7063_v21 }
0x1b67   :  { %v7227_v54 = vadd.f32 %v2810_v13, %v2806_v15 }
0x1b68   :  { %3342 = vmatpush.msrb.mxu1 %v7061_v61 }
0x1b69   :  { %5330 = vmatmul.msk.f32.gmra.mxu3 %vm108_vm1, %v7227_v54  ;;  %5335 = vmatmul.msk.f32.gmra.mxu1 %vm108_vm1, %v2898_v14 }
0x1b71   :  { %5336 = vmatmul.msk.f32.gmra.mxu1 %vm108_vm1, %v2899_v45 }
0x1b79   :  { %5337 = vmatmul.msk.f32.gmra.mxu1 %vm108_vm1, %v2900_v30 }
0x1bc6   :  { %v1978_v21 = vpop.xlane.xlu1 %1977 }
0x1bc7   :  { %v1980_v61 = vmul.f32 %v1978_v21, %v6414_v43 }
0x1bc9   :  { %v1982_v32 = vadd.f32 1e-05, %v1980_v61 }
0x1bcb   :  { %5886 = vrsqrt.f32 %v1982_v32  ;;  %vm1999_vm9 = vweird.f32 %v1982_v32 }
0x1bd1   :  { %v5887_v13 = vpop.eup %5886 }
0x1bd2   :  { %v1994_v33 = vmul.f32 %v5887_v13, %v1982_v32  ;;  %vm2000_vm8 = vweird.f32 %v5887_v13 }
0x1bd3   :  { %vm2001_vm10 = vmor %vm1999_vm9, %vm2000_vm8 }
0x1bd4   :  { %v1995_v19 = vmul.f32 %v5887_v13, %v1994_v33 }
0x1bd6   :  { %v1996_v26 = vmul.f32 0.5, %v1995_v19 }
0x1bd8   :  { %v1997_v44 = vsub.f32 1.5, %v1996_v26 }
0x1bda   :  { %v1998_v27 = vmul.f32 %v5887_v13, %v1997_v44 }
0x1bdc   :  { %v2002_v56 = vsel %vm2001_vm10, %v5887_v13, %v1998_v27 }
0x1bdd   :  { %v2004_v6 = vmul.f32 %v2002_v56, %v1962_v29  ;;  %v3047_v29 = vmul.f32 %v2892_v7, %v6227_v62 }
0x1bde   :  { %v2933_v38 = vpop.f32.mrf.mxu1 }
0x1bdf   :  { %v2945_v48 = vsel %vm218_vm2, %v2933_v38, -inf  ;;  %v2009_v34 = vmul.f32 %v7173_v28, %v2004_v6  ;;  %v5614_v37 = vpack.i.bf16 %v3047_v29, %v3048_v18 }
0x1be0   :  { %2946 = vmax.xlane.f32.xlu2 %v2945_v48 }
0x1be1   :  { %v2014_v50 = vadd.f32 %v7170_v11, %v2009_v34  ;;  %v3045_v11 = vmul.f32 %v2892_v7, %v6212_v55 }
0x1be3   :  { %2868 = vrot.lane.b32.xlu1 %v2014_v50, %s6121_s21  ;;  %v5619_v15 = vpack.i.bf16 %v3045_v11, %v3046_v1 }
0x1be6   :  { %v2936_v46 = vpop.f32.mrf.mxu1 }
0x1be7   :  { %v2948_v5 = vsel %vm218_vm2, %v2936_v46, -inf }
0x1be8   :  { %2949 = vmax.xlane.f32.xlu0 %v2948_v5 }
0x1bec   :  { %v2855_v11 = vpop.f32.mrf.mxu3 }
0x1bed   :  { %v2856_v1 = vadd.f32 %v2855_v11, %v7214_v4  ;;  %v6041_v4 = vld [vmem:[#allocation2 + $0x1e0] sm:$0xff] }
0x1bee   :  { %v2939_v41 = vpop.f32.mrf.mxu1  ;;  %v6053_v11 = vld [vmem:[#allocation2 + $0x180] sm:$0xff] }
0x1bef   :  { %v2951_v23 = vsel %vm218_vm2, %v2939_v41, -inf }
0x1bf0   :  { %2952 = vmax.xlane.f32.xlu2 %v2951_v23 }
0x1bf6   :  { %v2942_v25 = vpop.f32.mrf.mxu1 }
0x1bf7   :  { %v2954_v28 = vsel %vm218_vm2, %v2942_v25, -inf }
0x1bf8   :  { %2955 = vmax.xlane.f32.xlu2 %v2954_v28 }
0x1bfc   :  { %5615 = vrot.lane.b32.xlu0 %v5614_v37, %s6119_s2 }
0x1c04   :  { %5620 = vrot.lane.b32.xlu0 %v5619_v15, %s6119_s2 }
0x1c53   :  { %v2947_v14 = vpop.xlane.xlu2 %2946 }
0x1c54   :  { %v2957_v45 = vsub.f32 %v2933_v38, %v2947_v14 }
0x1c55   :  { %v7251_v30 = vpop.permute.xlu1 %2868 }
0x1c56   :  { %v2961_v21 = vmul.f32 1.442695, %v2957_v45  ;;  %5332 = vmatmul.msk.f32.gmra.mxu2 %vm108_vm1, %v7251_v30 }
0x1c58   :  { %5888 = vpow2.f32 %v2961_v21 }
0x1c5b   :  { %v2950_v61 = vpop.xlane.xlu0 %2949 }
0x1c5c   :  { %v2958_v32 = vsub.f32 %v2936_v46, %v2950_v61 }
0x1c5e   :  { %v5889_v13 = vpop.eup %5888  ;;  %v2963_v33 = vmul.f32 1.442695, %v2958_v32  ;;  %v3109_v32 = vmul.f32 %v2856_v1, %v6199_v49 }
0x1c5f   :  { %v2969_v19 = vsel %vm218_vm2, %v5889_v13, 0.0 }
0x1c60   :  { %5890 = vpow2.f32 %v2963_v33  ;;  %2970 = vadd.xlane.f32.xlu1 %v2969_v19  ;;  %v6043_v33 = vld [vmem:[#allocation2 + $0x1d0] sm:$0xff] }
0x1c63   :  { %v2953_v7 = vpop.xlane.xlu2 %2952 }
0x1c64   :  { %v2959_v26 = vsub.f32 %v2939_v41, %v2953_v7 }
0x1c66   :  { %v5891_v44 = vpop.eup %5890  ;;  %v2965_v27 = vmul.f32 1.442695, %v2959_v26  ;;  %v6044_v26 = vld [vmem:[#allocation2 + $0x1c8] sm:$0xff] }
0x1c67   :  { %v2972_v56 = vsel %vm218_vm2, %v5891_v44, 0.0 }
0x1c68   :  { %5892 = vpow2.f32 %v2965_v27  ;;  %2973 = vadd.xlane.f32.xlu2 %v2972_v56  ;;  %v3110_v27 = vmul.f32 %v2856_v1, %v6204_v51  ;;  %v6045_v56 = vld [vmem:[#allocation2 + $0x1c0] sm:$0xff] }
0x1c6b   :  { %v2956_v6 = vpop.xlane.xlu2 %2955 }
0x1c6c   :  { %v2960_v38 = vsub.f32 %v2942_v25, %v2956_v6  ;;  %v6046_v6 = vld [vmem:[#allocation2 + $0x1b8] sm:$0xff] }
0x1c6e   :  { %v5893_v48 = vpop.eup %5892  ;;  %v2967_v34 = vmul.f32 1.442695, %v2960_v38  ;;  %v5616_v50 = vpop.permute.xlu0 %5615 }
0x1c6f   :  { %v5617_v46 = vunpack.i.l.bf16 %v5616_v50  ;;  %v2975_v5 = vsel %vm218_vm2, %v5893_v48, 0.0  ;;  %v5618_v23 = vunpack.i.h.bf16 %v5616_v50 }
0x1c70   :  { %5894 = vpow2.f32 %v2967_v34  ;;  %2976 = vadd.xlane.f32.xlu2 %v2975_v5  ;;  %v6047_v34 = vld [vmem:[#allocation2 + $0x1b0] sm:$0xff]  ;;  %v3111_v5 = vmul.f32 %v2856_v1, %v6208_v53 }
0x1c71   :  { %3089 = vmatpush.msra.mxu0 %v5617_v46  ;;  %v6048_v46 = vld [vmem:[#allocation2 + $0x1a8] sm:$0xff] }
0x1c73   :  { %3090 = vmatpush.msra.mxu0 %v5618_v23  ;;  %v6049_v23 = vld [vmem:[#allocation2 + $0x1a0] sm:$0xff] }
0x1c76   :  { %v7258_v41 = vpop.eup %5894  ;;  %v5621_v29 = vpop.permute.xlu0 %5620 }
0x1c77   :  { %v5622_v18 = vunpack.i.l.bf16 %v5621_v29  ;;  %v2978_v28 = vsel %vm218_vm2, %v7258_v41, 0.0  ;;  %v5623_v25 = vunpack.i.h.bf16 %v5621_v29  ;;  %v6050_v29 = vld [vmem:[#allocation2 + $0x198] sm:$0xff] }
0x1c78   :  { %2979 = vadd.xlane.f32.xlu2 %v2978_v28  ;;  %v6051_v28 = vld [vmem:[#allocation2 + $0x190] sm:$0xff] }
0x1c79   :  { %3091 = vmatpush.msra.mxu0 %v5622_v18 }
0x1c7b   :  { %3092 = vmatpush.msra.mxu0 %v5623_v25  ;;  %v6052_v25 = vld [vmem:[#allocation2 + $0x188] sm:$0xff] }
0x1cd3   :  { %v2971_v37 = vpop.xlane.xlu1 %2970 }
0x1cd4   :  { %5896 = vrcp.f32 %v2971_v37  ;;  %v3112_v37 = vmul.f32 %v2856_v1, %v6220_v59 }
0x1cd9   :  { %v2894_v15 = vpop.f32.mrf.mxu2 }
0x1cda   :  { %v5897_v14 = vpop.eup %5896  ;;  %v7264_v45 = vadd.f32 %v7216_v12, %v2894_v15  ;;  %v6042_v12 = vld [vmem:[#allocation2 + $0x1d8] sm:$0xff] }
0x1cdb   :  { %v2974_v21 = vpop.xlane.xlu2 %2973  ;;  %v7266_v61 = vmul.f32 %v5897_v14, %v5889_v13  ;;  %v6054_v15 = vld [vmem:[#allocation2 + $0x178] sm:$0xff]  ;;  %v6055_v14 = vld [vmem:[#allocation2 + $0x170] sm:$0xff] }
0x1cdc   :  { %5898 = vrcp.f32 %v2974_v21  ;;  %5342 = vmatpush.xpose.msk.msra.mxu3 %vm108_vm1, %v7264_v45  ;;  %v6056_v21 = vld [vmem:[#allocation2 + $0x168] sm:$0xff] }
0x1cdd   :  { %3017 = vrot.lane.b32.xlu0 %v7266_v61, %s6123_s23  ;;  %3005 = vrot.lane.b32.xlu1 %v7266_v61, %s6122_s22 }
0x1cde   :  { %2993 = vrot.lane.b32.xlu2 %v7266_v61, %s6116_s18 }
0x1cdf   :  { %5343 = vmatmul.msk.f32.vlgmr.msra.gmra.mxu3 %vm108_vm1, %v3109_v32 }
0x1ce0   :  { %3526 = vmatpush.msrb.mxu3 %v6041_v4 }
0x1ce2   :  { %3527 = vmatpush.msrb.mxu3 %v6042_v12  ;;  %v5899_v13 = vpop.eup %5898 }
0x1ce3   :  { %v2977_v19 = vpop.xlane.xlu2 %2976  ;;  %v2986_v7 = vmul.f32 %v5899_v13, %v5891_v44 }
0x1ce4   :  { %3528 = vmatpush.msrb.mxu3 %v6043_v33  ;;  %5900 = vrcp.f32 %v2977_v19 }
0x1ce5   :  { %3007 = vrot.lane.b32.xlu0 %v2986_v7, %s6122_s22 }
0x1ce6   :  { %3529 = vmatpush.msrb.mxu3 %v6044_v26  ;;  %2995 = vrot.lane.b32.xlu2 %v2986_v7, %s6116_s18 }
0x1ce7   :  { %5344 = vmatmul.msk.f32.gmra.mxu3 %vm108_vm1, %v3110_v27 }
0x1ce8   :  { %3530 = vmatpush.msrb.mxu3 %v6045_v56 }
0x1cea   :  { %3531 = vmatpush.msrb.mxu3 %v6046_v6  ;;  %v5901_v38 = vpop.eup %5900 }
0x1ceb   :  { %v2980_v50 = vpop.xlane.xlu2 %2979  ;;  %v2987_v44 = vmul.f32 %v5901_v38, %v5893_v48 }
0x1cec   :  { %3532 = vmatpush.msrb.mxu3 %v6047_v34  ;;  %5902 = vrcp.f32 %v2980_v50 }
0x1ced   :  { %3009 = vrot.lane.b32.xlu1 %v2987_v44, %s6122_s22  ;;  %2997 = vrot.lane.b32.xlu0 %v2987_v44, %s6116_s18 }
0x1cee   :  { %3533 = vmatpush.msrb.mxu3 %v6048_v46  ;;  %3019 = vrot.lane.b32.xlu2 %v2986_v7, %s6123_s23 }
0x1cef   :  { %5345 = vmatmul.msk.f32.gmra.mxu3 %vm108_vm1, %v3111_v5 }
0x1cf0   :  { %3534 = vmatpush.msrb.mxu3 %v6049_v23 }
0x1cf2   :  { %3535 = vmatpush.msrb.mxu3 %v6050_v29  ;;  %v5903_v18 = vpop.eup %5902 }
0x1cf3   :  { %v2988_v48 = vmul.f32 %v5903_v18, %v7258_v41 }
0x1cf4   :  { %3536 = vmatpush.msrb.mxu3 %v6051_v28 }
0x1cf5   :  { %3011 = vrot.lane.b32.xlu1 %v2988_v48, %s6122_s22  ;;  %2999 = vrot.lane.b32.xlu0 %v2988_v48, %s6116_s18 }
0x1cf6   :  { %3537 = vmatpush.msrb.mxu3 %v6052_v25  ;;  %3021 = vrot.lane.b32.xlu2 %v2987_v44, %s6123_s23 }
0x1cf7   :  { %5346 = vmatmul.msk.f32.gmra.mxu3 %vm108_vm1, %v3112_v37 }
0x1cf8   :  { %3538 = vmatpush.msrb.mxu3 %v6053_v11 }
0x1cfa   :  { %3539 = vmatpush.msrb.mxu3 %v6054_v15 }
0x1cfc   :  { %3540 = vmatpush.msrb.mxu3 %v6055_v14 }
0x1cfe   :  { %3541 = vmatpush.msrb.mxu3 %v6056_v21  ;;  %3023 = vrot.lane.b32.xlu2 %v2988_v48, %s6123_s23 }
0x1d38   :  { %v2994_v41 = vpop.permute.xlu2 %2993 }
0x1d39   :  { %v3029_v4 = vsel %vm218_vm2, %v7266_v61, %v2994_v41 }
0x1d40   :  { %v2996_v32 = vpop.permute.xlu2 %2995 }
0x1d41   :  { %v3030_v27 = vsel %vm218_vm2, %v2986_v7, %v2996_v32 }
0x1d48   :  { %v3020_v26 = vpop.permute.xlu2 %3019 }
0x1d4f   :  { %v3018_v1 = vpop.permute.xlu0 %3017  ;;  %v3006_v12 = vpop.permute.xlu1 %3005 }
0x1d50   :  { %v3033_v13 = vsel %vm307_vm3, %v3029_v4, %v3006_v12  ;;  %v3022_v34 = vpop.permute.xlu2 %3021 }
0x1d51   :  { %v3037_v33 = vsel %vm312_vm4, %v3033_v13, %v3018_v1 }
0x1d52   :  { %v3041_v19 = vmul.f32 %v3037_v33, %v6242_v8 }
0x1d54   :  { %5338 = vmatmul.msk.f32.vlgmr.msra.gmra.mxu0 %vm108_vm1, %v3041_v19 }
0x1d57   :  { %v3008_v56 = vpop.permute.xlu0 %3007 }
0x1d58   :  { %v3034_v6 = vsel %vm307_vm3, %v3030_v27, %v3008_v56  ;;  %v3024_v15 = vpop.permute.xlu2 %3023 }
0x1d59   :  { %v3038_v38 = vsel %vm312_vm4, %v3034_v6, %v3020_v26 }
0x1d5a   :  { %v3042_v61 = vmul.f32 %v3038_v38, %v6246_v9 }
0x1d5c   :  { %5339 = vmatmul.msk.f32.gmra.mxu0 %vm108_vm1, %v3042_v61 }
0x1d5f   :  { %v3010_v50 = vpop.permute.xlu1 %3009  ;;  %v2998_v46 = vpop.permute.xlu0 %2997 }
0x1d60   :  { %v3031_v5 = vsel %vm218_vm2, %v2987_v44, %v2998_v46 }
0x1d61   :  { %v3035_v23 = vsel %vm307_vm3, %v3031_v5, %v3010_v50 }
0x1d62   :  { %v3145_v29 = vpop.f32.mrf.mxu3  ;;  %v3039_v18 = vsel %vm312_vm4, %v3035_v23, %v3022_v34 }
0x1d63   :  { %v3157_v7 = vsel %vm218_vm2, %v3145_v29, -inf  ;;  %v3043_v28 = vmul.f32 %v3039_v18, %v6236_v3 }
0x1d64   :  { %3158 = vmax.xlane.f32.xlu0 %v3157_v7 }
0x1d65   :  { %5340 = vmatmul.msk.f32.gmra.mxu0 %vm108_vm1, %v3043_v28 }
0x1d67   :  { %v3012_v25 = vpop.permute.xlu1 %3011  ;;  %v3000_v37 = vpop.permute.xlu0 %2999 }
0x1d68   :  { %v3032_v11 = vsel %vm218_vm2, %v2988_v48, %v3000_v37 }
0x1d69   :  { %v3036_v14 = vsel %vm307_vm3, %v3032_v11, %v3012_v25 }
0x1d6a   :  { %v3148_v44 = vpop.f32.mrf.mxu3  ;;  %v3040_v21 = vsel %vm312_vm4, %v3036_v14, %v3024_v15 }
0x1d6b   :  { %v3160_v41 = vsel %vm218_vm2, %v3148_v44, -inf  ;;  %v3044_v32 = vmul.f32 %v3040_v21, %v6229_v63 }
0x1d6c   :  { %3161 = vmax.xlane.f32.xlu1 %v3160_v41 }
0x1d6d   :  { %5341 = vmatmul.msk.f32.gmra.mxu0 %vm108_vm1, %v3044_v32 }
0x1d72   :  { %v3151_v4 = vpop.f32.mrf.mxu3 }
0x1d73   :  { %v3163_v1 = vsel %vm218_vm2, %v3151_v4, -inf }
0x1d74   :  { %3164 = vmax.xlane.f32.xlu2 %v3163_v1  ;;  %v3260_v1 = vmul.f32 %v7264_v45, %v6218_v58 }
0x1d7a   :  { %v3154_v12 = vpop.f32.mrf.mxu3 }
0x1d7b   :  { %v3166_v48 = vsel %vm218_vm2, %v3154_v12, -inf }
0x1d7c   :  { %3167 = vmax.xlane.f32.xlu2 %v3166_v48 }
0x1dd1   :  { %v3094_v13 = vpop.f32.mrf.mxu0 }
0x1dd7   :  { %v3159_v33 = vpop.xlane.xlu0 %3158 }
0x1dd8   :  { %v3169_v19 = vsub.f32 %v3145_v29, %v3159_v33 }
0x1dd9   :  { %v3097_v26 = vpop.f32.mrf.mxu0 }
0x1dda   :  { %v3173_v27 = vmul.f32 1.442695, %v3169_v19  ;;  %v3106_v46 = vadd.f32 %v3097_v26, %v3094_v13  ;;  %v3257_v26 = vmul.f32 %v7264_v45, %v6212_v55 }
0x1ddc   :  { %5904 = vpow2.f32 %v3173_v27  ;;  %v3258_v27 = vmul.f32 %v7264_v45, %v6233_v2 }
0x1ddf   :  { %v3162_v56 = vpop.xlane.xlu1 %3161 }
0x1de0   :  { %v3170_v6 = vsub.f32 %v3148_v44, %v3162_v56 }
0x1de2   :  { %v5905_v38 = vpop.eup %5904  ;;  %v3175_v61 = vmul.f32 1.442695, %v3170_v6  ;;  %v3100_v34 = vpop.f32.mrf.mxu0 }
0x1de3   :  { %v3181_v50 = vsel %vm218_vm2, %v5905_v38, 0.0  ;;  %v3107_v18 = vadd.f32 %v3106_v46, %v3100_v34  ;;  %v5629_v34 = vpack.i.bf16 %v3257_v26, %v3258_v27 }
0x1de4   :  { %5906 = vpow2.f32 %v3175_v61  ;;  %3182 = vadd.xlane.f32.xlu0 %v3181_v50 }
0x1de7   :  { %v3165_v5 = vpop.xlane.xlu2 %3164 }
0x1de8   :  { %v3171_v23 = vsub.f32 %v3151_v4, %v3165_v5  ;;  %v3259_v4 = vmul.f32 %v7264_v45, %v6227_v62 }
0x1dea   :  { %v5907_v7 = vpop.eup %5906  ;;  %v3177_v28 = vmul.f32 1.442695, %v3171_v23  ;;  %v3103_v25 = vpop.f32.mrf.mxu0  ;;  %v5624_v48 = vpack.i.bf16 %v3259_v4, %v3260_v1 }
0x1deb   :  { %v3108_v29 = vadd.f32 %v3107_v18, %v3103_v25  ;;  %v3184_v37 = vsel %vm218_vm2, %v5907_v7, 0.0 }
0x1dec   :  { %5908 = vpow2.f32 %v3177_v28  ;;  %3185 = vadd.xlane.f32.xlu1 %v3184_v37 }
0x1ded   :  { %5351 = vmatmul.msk.f32.vlgmr.msrb.gmra.mxu1 %vm108_vm1, %v3108_v29 }
0x1def   :  { %v3168_v11 = vpop.xlane.xlu2 %3167 }
0x1df0   :  { %v3172_v15 = vsub.f32 %v3154_v12, %v3168_v11 }
0x1df2   :  { %v5909_v14 = vpop.eup %5908  ;;  %v3179_v44 = vmul.f32 1.442695, %v3172_v15 }
0x1df3   :  { %v3187_v21 = vsel %vm218_vm2, %v5909_v14, 0.0 }
0x1df4   :  { %5910 = vpow2.f32 %v3179_v44  ;;  %3188 = vadd.xlane.f32.xlu2 %v3187_v21 }
0x1dfa   :  { %v5911_v41 = vpop.eup %5910 }
0x1dfb   :  { %v3190_v32 = vsel %vm218_vm2, %v5911_v41, 0.0 }
0x1dfc   :  { %3191 = vadd.xlane.f32.xlu0 %v3190_v32 }
0x1e05   :  { %5625 = vrot.lane.b32.xlu1 %v5624_v48, %s6119_s2 }
0x1e57   :  { %v3183_v12 = vpop.xlane.xlu0 %3182 }
0x1e58   :  { %5912 = vrcp.f32 %v3183_v12 }
0x1e5e   :  { %v5913_v13 = vpop.eup %5912 }
0x1e5f   :  { %v3186_v33 = vpop.xlane.xlu1 %3185  ;;  %v3197_v19 = vmul.f32 %v5913_v13, %v5905_v38 }
0x1e60   :  { %5914 = vrcp.f32 %v3186_v33 }
0x1e61   :  { %3229 = vrot.lane.b32.xlu1 %v3197_v19, %s6123_s23  ;;  %3205 = vrot.lane.b32.xlu2 %v3197_v19, %s6116_s18 }
0x1e62   :  { %3217 = vrot.lane.b32.xlu0 %v3197_v19, %s6122_s22 }
0x1e66   :  { %v5915_v56 = vpop.eup %5914 }
0x1e67   :  { %v3189_v6 = vpop.xlane.xlu2 %3188  ;;  %v3198_v61 = vmul.f32 %v5915_v56, %v5907_v7 }
0x1e68   :  { %5916 = vrcp.f32 %v3189_v6 }
0x1e69   :  { %3219 = vrot.lane.b32.xlu1 %v3198_v61, %s6122_s22  ;;  %3207 = vrot.lane.b32.xlu2 %v3198_v61, %s6116_s18 }
0x1e6a   :  { %5630 = vrot.lane.b32.xlu0 %v5629_v34, %s6119_s2  ;;  %v3344_v28 = vpop.f32.mrf.mxu1 }
0x1e6b   :  { %v3345_v25 = vadd.f32 %v7092_v35, %v3344_v28 }
0x1e6d   :  { %v3350_v29 = vadd.f32 %v3345_v25, %v7186_v17 }
0x1e6e   :  { %v5917_v38 = vpop.eup %5916 }
0x1e6f   :  { %v3192_v50 = vpop.xlane.xlu0 %3191  ;;  %v3199_v46 = vmul.f32 %v5917_v38, %v5909_v14  ;;  %v3353_v37 = vsel %vm108_vm1, %v3350_v29, 0.0 }
0x1e70   :  { %5918 = vrcp.f32 %v3192_v50 }
0x1e71   :  { %3221 = vrot.lane.b32.xlu1 %v3199_v46, %s6122_s22  ;;  %3209 = vrot.lane.b32.xlu2 %v3199_v46, %s6116_s18 }
0x1e72   :  { %3231 = vrot.lane.b32.xlu0 %v3198_v61, %s6123_s23 }
0x1e76   :  { %v5919_v45 = vpop.eup %5918 }
0x1e77   :  { %v5626_v5 = vpop.permute.xlu1 %5625  ;;  %v3200_v23 = vmul.f32 %v5919_v45, %v5911_v41 }
0x1e78   :  { %v5627_v18 = vunpack.i.l.bf16 %v5626_v5  ;;  %v5628_v7 = vunpack.i.h.bf16 %v5626_v5 }
0x1e79   :  { %3223 = vrot.lane.b32.xlu1 %v3200_v23, %s6122_s22  ;;  %3211 = vrot.lane.b32.xlu2 %v3200_v23, %s6116_s18 }
0x1e7a   :  { %3233 = vrot.lane.b32.xlu0 %v3199_v46, %s6123_s23  ;;  %3301 = vmatpush.msra.mxu2 %v5627_v18 }
0x1e7c   :  { %3302 = vmatpush.msra.mxu2 %v5628_v7 }
0x1e82   :  { %3235 = vrot.lane.b32.xlu0 %v3200_v23, %s6123_s23 }
0x1ea2   :  { %3354 = vadd.xlane.f32.xlu2 %v3353_v37 }
0x1ebb   :  { %v3206_v11 = vpop.permute.xlu2 %3205 }
0x1ebc   :  { %v3241_v44 = vsel %vm218_vm2, %v3197_v19, %v3206_v11 }
0x1ec3   :  { %v3208_v41 = vpop.permute.xlu2 %3207 }
0x1ec4   :  { %v3242_v17 = vsel %vm218_vm2, %v3198_v61, %v3208_v41 }
0x1ecb   :  { %v3210_v26 = vpop.permute.xlu2 %3209 }
0x1ecc   :  { %v3243_v6 = vsel %vm218_vm2, %v3199_v46, %v3210_v26 }
0x1ed3   :  { %v3230_v15 = vpop.permute.xlu1 %3229  ;;  %v3212_v45 = vpop.permute.xlu2 %3211 }
0x1ed4   :  { %v3218_v14 = vpop.permute.xlu0 %3217  ;;  %v3244_v18 = vsel %vm218_vm2, %v3200_v23, %v3212_v45 }
0x1ed5   :  { %v3245_v21 = vsel %vm307_vm3, %v3241_v44, %v3218_v14 }
0x1ed6   :  { %v3249_v4 = vsel %vm312_vm4, %v3245_v21, %v3230_v15 }
0x1ed7   :  { %v3253_v35 = vmul.f32 %v3249_v4, %v6242_v8 }
0x1edb   :  { %v3220_v1 = vpop.permute.xlu1 %3219 }
0x1edc   :  { %v5631_v32 = vpop.permute.xlu0 %5630  ;;  %v3246_v13 = vsel %vm307_vm3, %v3242_v17, %v3220_v1  ;;  %v3404_v17 = vld [vmem:[#allocation2 + $0x8] sm:$0xff] }
0x1edd   :  { %v5632_v48 = vunpack.i.l.bf16 %v5631_v32  ;;  %v5633_v12 = vunpack.i.h.bf16 %v5631_v32 }
0x1edf   :  { %3303 = vmatpush.msra.mxu2 %v5632_v48 }
0x1ee1   :  { %3304 = vmatpush.msra.mxu2 %v5633_v12  ;;  %v3406_v12 = vld [vmem:[#allocation2 + $0x18] sm:$0xff] }
0x1ee2   :  { %5347 = vmatmul.msk.f32.vlgmr.msra.gmra.mxu2 %vm108_vm1, %v3253_v35  ;;  %3427 = vmatpush.msrb.mxu0 %v3406_v12  ;;  %v3405_v35 = vld [vmem:[#allocation2 + $0x10] sm:$0xff] }
0x1ee3   :  { %v3222_v27 = vpop.permute.xlu1 %3221 }
0x1ee4   :  { %v3232_v33 = vpop.permute.xlu0 %3231  ;;  %v3247_v34 = vsel %vm307_vm3, %v3243_v6, %v3222_v27  ;;  %3428 = vmatpush.msrb.mxu0 %v3405_v35 }
0x1ee5   :  { %v3250_v19 = vsel %vm312_vm4, %v3246_v13, %v3232_v33  ;;  %v3403_v13 = vld [vmem:[#allocation2] sm:$0xff] }
0x1ee6   :  { %v3254_v56 = vmul.f32 %v3250_v19, %v6246_v9  ;;  %3429 = vmatpush.msrb.mxu0 %v3404_v17 }
0x1ee8   :  { %3430 = vmatpush.msrb.mxu0 %v3403_v13 }
0x1eea   :  { %5348 = vmatmul.msk.f32.gmra.mxu2 %vm108_vm1, %v3254_v56 }
0x1eeb   :  { %v3224_v5 = vpop.permute.xlu1 %3223 }
0x1eec   :  { %v3234_v38 = vpop.permute.xlu0 %3233  ;;  %v3248_v7 = vsel %vm307_vm3, %v3244_v18, %v3224_v5 }
0x1eed   :  { %v3251_v50 = vsel %vm312_vm4, %v3247_v34, %v3234_v38  ;;  %v3352_v34 = vld [vmem:[#allocation2 + $0x278] sm:$0x3] }
0x1eee   :  { %v3255_v61 = vmul.f32 %v3251_v50, %v6236_v3  ;;  %v7373_v45 = vperm.slane %v3352_v34, 0  ;;  %v7375_v18 = vperm.slane %v3352_v34, 1 }
0x1ef2   :  { %5349 = vmatmul.msk.f32.gmra.mxu2 %vm108_vm1, %v3255_v61 }
0x1ef4   :  { %v3236_v28 = vpop.permute.xlu0 %3235 }
0x1ef5   :  { %v3252_v25 = vsel %vm312_vm4, %v3248_v7, %v3236_v28 }
0x1ef6   :  { %v3256_v46 = vmul.f32 %v3252_v25, %v6229_v63 }
0x1efa   :  { %5350 = vmatmul.msk.f32.gmra.mxu2 %vm108_vm1, %v3256_v46  ;;  %v6057_v46 = vld [vmem:[#allocation2 + $0x210] ss:$0 sm:$0xff] }
0x1f15   :  { %v3355_v37 = vpop.xlane.xlu2 %3354 }
0x1f16   :  { %v3359_v11 = vmul.f32 %v3355_v37, %v6414_v43 }
0x1f18   :  { %v3361_v15 = vsub.f32 %v3350_v29, %v3359_v11 }
0x1f1a   :  { %v3363_v14 = vmul.f32 %v3361_v15, %v3361_v15 }
0x1f1c   :  { %v3365_v44 = vsel %vm108_vm1, %v3363_v14, 0.0 }
0x1f1d   :  { %3366 = vadd.xlane.f32.xlu1 %v3365_v44  ;;  %v7385_v44 = vld [vmem:[#allocation2 + $0x20] ss:$0 sm:$0xff] }
0x1f65   :  { %v3306_v21 = vpop.f32.mrf.mxu2 }
0x1f6d   :  { %v3309_v41 = vpop.f32.mrf.mxu2 }
0x1f6e   :  { %v3318_v32 = vadd.f32 %v3309_v41, %v3306_v21 }
0x1f75   :  { %v3312_v23 = vpop.f32.mrf.mxu2 }
0x1f76   :  { %v3319_v4 = vadd.f32 %v3318_v32, %v3312_v23 }
0x1f7d   :  { %v3315_v1 = vpop.f32.mrf.mxu2 }
0x1f7e   :  { %v3320_v48 = vadd.f32 %v3319_v4, %v3315_v1 }
0x1f80   :  { %5352 = vmatmul.msk.f32.gmra.mxu1 %vm108_vm1, %v3320_v48 }
0x1f90   :  { %v3367_v29 = vpop.xlane.xlu1 %3366 }
0x1f91   :  { %v3371_v33 = vmul.f32 %v3367_v29, %v6414_v43 }
0x1f93   :  { %v3373_v19 = vadd.f32 1e-05, %v3371_v33 }
0x1f95   :  { %5920 = vrsqrt.f32 %v3373_v19  ;;  %vm3381_vm12 = vweird.f32 %v3373_v19 }
0x1f9b   :  { %v5921_v26 = vpop.eup %5920 }
0x1f9c   :  { %v3376_v27 = vmul.f32 %v5921_v26, %v3373_v19  ;;  %vm3382_vm11 = vweird.f32 %v5921_v26 }
0x1f9d   :  { %vm3383_vm13 = vmor %vm3381_vm12, %vm3382_vm11 }
0x1f9e   :  { %v3377_v56 = vmul.f32 %v5921_v26, %v3376_v27 }
0x1fa0   :  { %v3378_v6 = vmul.f32 0.5, %v3377_v56 }
0x1fa2   :  { %v3379_v38 = vsub.f32 1.5, %v3378_v6 }
0x1fa4   :  { %v3380_v50 = vmul.f32 %v5921_v26, %v3379_v38 }
0x1fa6   :  { %v3384_v61 = vsel %vm3383_vm13, %v5921_v26, %v3380_v50 }
0x1fa7   :  { %v3395_v5 = vmul.f32 %v3384_v61, %v3361_v15 }
0x1fa9   :  { %v3398_v7 = vmul.f32 %v7373_v45, %v3395_v5 }
0x1fab   :  { %v7379_v28 = vadd.f32 %v7375_v18, %v3398_v7 }
0x1fad   :  { %5353 = vmatmul.msk.f32.vlgmr.msrb.gmra.mxu0 %vm108_vm1, %v7379_v28 }
0x1ffd   :  { %v3347_v25 = vpop.f32.mrf.mxu1 }
0x1ffe   :  { %v3348_v37 = vadd.f32 %v6057_v46, %v3347_v25 }
0x2000   :  { %v3351_v11 = vadd.f32 %v3348_v37, %v7227_v54 }
0x2002   :  { %v3356_v14 = vsel %vm108_vm1, %v3351_v11, 0.0 }
0x2003   :  { %3357 = vadd.xlane.f32.xlu0 %v3356_v14 }
0x202a   :  { %v3432_v15 = vpop.f32.mrf.mxu0 }
0x202b   :  { %v3433_v21 = vadd.f32 %v7385_v44, %v3432_v15 }
0x202d   :  { %v3440_v41 = vmul.f32 0.70710677, %v3433_v21 }
0x202f   :  { %v3442_v23 = vmul.f32 %v3440_v41, %v3440_v41 }
0x2031   :  { %v3443_v32 = vmin.f32 %v3442_v23, 16.0 }
0x2033   :  { %v3444_v4 = vmul.f32 2.1237322e-06, %v3443_v32  ;;  %v3455_v1 = vmul.f32 3.8918573e-05, %v3443_v32 }
0x2035   :  { %v3445_v48 = vadd.f32 0.00028619796, %v3444_v4  ;;  %v3456_v12 = vadd.f32 0.001143296, %v3455_v1 }
0x2037   :  { %v3446_v35 = vmul.f32 %v3445_v48, %v3443_v32  ;;  %v3457_v17 = vmul.f32 %v3456_v12, %v3443_v32 }
0x2039   :  { %v3458_v13 = vadd.f32 0.014752088, %v3457_v17  ;;  %v3447_v29 = vadd.f32 0.0036580483, %v3446_v35 }
0x203b   :  { %v3459_v54 = vmul.f32 %v3458_v13, %v3443_v32  ;;  %v3448_v19 = vmul.f32 %v3447_v29, %v3443_v32  ;;  %v3438_v13 = vmul.f32 0.5, %v3433_v21 }
0x203d   :  { %v3460_v33 = vadd.f32 0.112945676, %v3459_v54  ;;  %v3449_v56 = vadd.f32 0.05243302, %v3448_v19 }
0x203f   :  { %v3461_v26 = vmul.f32 %v3460_v33, %v3443_v32  ;;  %v3450_v38 = vmul.f32 %v3449_v56, %v3443_v32  ;;  %v7392_v56 = vld [vmem:[#allocation2 + $0x1e8] ss:$0 sm:$0xff] }
0x2041   :  { %v3462_v27 = vadd.f32 0.4994258, %v3461_v26  ;;  %v3451_v50 = vadd.f32 0.18741608, %v3450_v38 }
0x2043   :  { %v3463_v6 = vmul.f32 %v3462_v27, %v3443_v32  ;;  %v3452_v5 = vmul.f32 %v3451_v50, %v3443_v32 }
0x2045   :  { %v3464_v34 = vadd.f32 1.0, %v3463_v6  ;;  %v3453_v37 = vadd.f32 1.1283791, %v3452_v5 }
0x2047   :  { %5922 = vrcp.f32 %v3464_v34  ;;  %v3476_v46 = vand.u32 2147483648, %v3464_v34  ;;  %v3474_v15 = vand.u32 2147483647, %v3464_v34  ;;  %vm3470_vm15 = vweird.f32 %v3464_v34 }
0x2048   :  { %v3454_v1 = vmul.f32 %v3453_v37, %v3440_v41 }
0x2049   :  { %v3477_v4 = vor.u32 1.1754944e-38, %v3476_v46  ;;  %vm3475_vm5 = vcmp.eq.f32.partialorder %v3474_v15, 8.507059e+37 }
0x204d   :  { %v5923_v61 = vpop.eup %5922 }
0x204e   :  { %v3466_v7 = vmul.f32 %v5923_v61, %v3464_v34  ;;  %vm3471_vm14 = vweird.f32 %v5923_v61 }
0x204f   :  { %vm3472_vm0 = vmor %vm3470_vm15, %vm3471_vm14 }
0x2050   :  { %v3467_v25 = vsub.f32 1.0, %v3466_v7 }
0x2052   :  { %v3468_v14 = vmul.f32 %v5923_v61, %v3467_v25 }
0x2054   :  { %v3469_v23 = vadd.f32 %v5923_v61, %v3468_v14 }
0x2056   :  { %v3473_v48 = vsel %vm3472_vm0, %v5923_v61, %v3469_v23 }
0x2057   :  { %v3478_v12 = vsel %vm3475_vm5, %v3477_v4, %v3473_v48 }
0x2058   :  { %v3479_v35 = vmul.f32 %v3478_v12, %v3454_v1 }
0x205a   :  { %v5355_v17 = vclamps-f32 %v3479_v35, 1.0 }
0x205c   :  { %v3522_v29 = vadd.f32 1.0, %v5355_v17 }
0x205e   :  { %v3524_v32 = vmul.f32 %v3522_v29, %v3438_v13 }
0x2060   :  { %3542 = vmatmul.f32.vlgmr.msrb.gmra.mxu3 %v3524_v32 }
0x2076   :  { %v3358_v54 = vpop.xlane.xlu0 %3357 }
0x2077   :  { %v3360_v33 = vmul.f32 %v3358_v54, %v6414_v43 }
0x2079   :  { %v3362_v19 = vsub.f32 %v3351_v11, %v3360_v33 }
0x207b   :  { %v3364_v26 = vmul.f32 %v3362_v19, %v3362_v19 }
0x207d   :  { %v3368_v27 = vsel %vm108_vm1, %v3364_v26, 0.0 }
0x207e   :  { %3369 = vadd.xlane.f32.xlu2 %v3368_v27 }
0x2096   :  { %3596 = vrot.lane.b32.xlu2 %v7373_v45, %s6121_s21 }
0x20e3   :  { %v3543_v41 = vpop.f32.mrf.mxu3 }
0x20e4   :  { %v3544_v6 = vadd.f32 %v7392_v56, %v3543_v41 }
0x20e6   :  { %v3549_v21 = vadd.f32 %v3544_v6, %v7379_v28 }
0x20e8   :  { %v3551_v34 = vsel %vm108_vm1, %v3549_v21, 0.0 }
0x20e9   :  { %3552 = vadd.xlane.f32.xlu1 %v3551_v34 }
0x20f1   :  { %v3370_v38 = vpop.xlane.xlu2 %3369 }
0x20f2   :  { %v3372_v11 = vmul.f32 %v3370_v38, %v6414_v43 }
0x20f4   :  { %v3374_v50 = vadd.f32 1e-05, %v3372_v11 }
0x20f6   :  { %5924 = vrsqrt.f32 %v3374_v50  ;;  %vm3391_vm7 = vweird.f32 %v3374_v50 }
0x20fc   :  { %v5925_v61 = vpop.eup %5924 }
0x20fd   :  { %v3386_v5 = vmul.f32 %v5925_v61, %v3374_v50  ;;  %vm3392_vm6 = vweird.f32 %v5925_v61 }
0x20fe   :  { %vm3393_vm8 = vmor %vm3391_vm7, %vm3392_vm6 }
0x20ff   :  { %v3387_v7 = vmul.f32 %v5925_v61, %v3386_v5 }
0x2101   :  { %v3388_v25 = vmul.f32 0.5, %v3387_v7 }
0x2102   :  { %3602 = vrot.lane.b32.xlu1 %v7375_v18, %s6121_s21 }
0x2103   :  { %v3389_v46 = vsub.f32 1.5, %v3388_v25 }
0x2105   :  { %v3390_v37 = vmul.f32 %v5925_v61, %v3389_v46 }
0x2107   :  { %v3394_v28 = vsel %vm3393_vm8, %v5925_v61, %v3390_v37 }
0x2108   :  { %v3396_v14 = vmul.f32 %v3394_v28, %v3362_v19 }
0x210a   :  { %v3399_v15 = vmul.f32 %v7373_v45, %v3396_v14 }
0x210c   :  { %v7402_v23 = vadd.f32 %v7375_v18, %v3399_v15 }
0x210e   :  { %5354 = vmatmul.msk.f32.gmra.mxu0 %vm108_vm1, %v7402_v23 }
0x215c   :  { %v3553_v4 = vpop.xlane.xlu1 %3552 }
0x215d   :  { %v3557_v1 = vmul.f32 %v3553_v4, %v6414_v43 }
0x215f   :  { %v7407_v48 = vsub.f32 %v3549_v21, %v3557_v1 }
0x2161   :  { %v3561_v12 = vmul.f32 %v7407_v48, %v7407_v48 }
0x2163   :  { %v3563_v35 = vsel %vm108_vm1, %v3561_v12, 0.0 }
0x2164   :  { %3564 = vadd.xlane.f32.xlu0 %v3563_v35 }
0x218b   :  { %v3435_v17 = vpop.f32.mrf.mxu0 }
0x218c   :  { %v3436_v13 = vadd.f32 %v7385_v44, %v3435_v17 }
0x218e   :  { %v3441_v29 = vmul.f32 0.70710677, %v3436_v13 }
0x2190   :  { %v3482_v32 = vmul.f32 %v3441_v29, %v3441_v29 }
0x2192   :  { %v3483_v54 = vmin.f32 %v3482_v32, 16.0 }
0x2194   :  { %v3484_v33 = vmul.f32 2.1237322e-06, %v3483_v54  ;;  %v3495_v19 = vmul.f32 3.8918573e-05, %v3483_v54 }
0x2196   :  { %v3485_v26 = vadd.f32 0.00028619796, %v3484_v33  ;;  %v3496_v27 = vadd.f32 0.001143296, %v3495_v19 }
0x2198   :  { %v3486_v41 = vmul.f32 %v3485_v26, %v3483_v54  ;;  %v3497_v6 = vmul.f32 %v3496_v27, %v3483_v54 }
0x219a   :  { %v3498_v21 = vadd.f32 0.014752088, %v3497_v6  ;;  %v3487_v34 = vadd.f32 0.0036580483, %v3486_v41 }
0x219c   :  { %v3499_v38 = vmul.f32 %v3498_v21, %v3483_v54  ;;  %v3488_v50 = vmul.f32 %v3487_v34, %v3483_v54  ;;  %v3439_v21 = vmul.f32 0.5, %v3436_v13 }
0x219e   :  { %v3500_v11 = vadd.f32 0.112945676, %v3499_v38  ;;  %v3489_v7 = vadd.f32 0.05243302, %v3488_v50  ;;  %v3610_v38 = vld [vmem:[#allocation2 + $0x90] sm:$0xff]  ;;  %v3608_v50 = vld [vmem:[#allocation2 + $0x80] sm:$0xff] }
0x219f   :  { %3631 = vmatpush.msrb.mxu2 %v3610_v38 }
0x21a0   :  { %v3501_v61 = vmul.f32 %v3500_v11, %v3483_v54  ;;  %v3490_v44 = vmul.f32 %v3489_v7, %v3483_v54  ;;  %v3609_v11 = vld [vmem:[#allocation2 + $0x88] sm:$0xff] }
0x21a1   :  { %3632 = vmatpush.msrb.mxu2 %v3609_v11 }
0x21a2   :  { %v3502_v5 = vadd.f32 0.4994258, %v3501_v61  ;;  %v3491_v37 = vadd.f32 0.18741608, %v3490_v44  ;;  %v3607_v61 = vld [vmem:[#allocation2 + $0x78] sm:$0xff] }
0x21a3   :  { %3633 = vmatpush.msrb.mxu2 %v3608_v50 }
0x21a4   :  { %v3503_v25 = vmul.f32 %v3502_v5, %v3483_v54  ;;  %v3492_v14 = vmul.f32 %v3491_v37, %v3483_v54 }
0x21a5   :  { %3634 = vmatpush.msrb.mxu2 %v3607_v61 }
0x21a6   :  { %v3504_v46 = vadd.f32 1.0, %v3503_v25  ;;  %v3493_v12 = vadd.f32 1.1283791, %v3492_v14 }
0x21a8   :  { %5926 = vrcp.f32 %v3504_v46  ;;  %v3516_v1 = vand.u32 2147483648, %v3504_v46  ;;  %v3514_v17 = vand.u32 2147483647, %v3504_v46  ;;  %vm3510_vm10 = vweird.f32 %v3504_v46 }
0x21a9   :  { %v3494_v19 = vmul.f32 %v3493_v12, %v3441_v29 }
0x21aa   :  { %v3517_v33 = vor.u32 1.1754944e-38, %v3516_v1  ;;  %vm3515_vm12 = vcmp.eq.f32.partialorder %v3514_v17, 8.507059e+37  ;;  %v3603_v1 = vpop.permute.xlu1 %3602 }
0x21ae   :  { %v5927_v28 = vpop.eup %5926 }
0x21af   :  { %v3506_v15 = vmul.f32 %v5927_v28, %v3504_v46  ;;  %vm3511_vm9 = vweird.f32 %v5927_v28 }
0x21b0   :  { %vm3512_vm11 = vmor %vm3510_vm10, %vm3511_vm9 }
0x21b1   :  { %v3507_v4 = vsub.f32 1.0, %v3506_v15  ;;  %v3597_v15 = vpop.permute.xlu2 %3596 }
0x21b3   :  { %v3508_v35 = vmul.f32 %v5927_v28, %v3507_v4 }
0x21b5   :  { %v3509_v32 = vadd.f32 %v5927_v28, %v3508_v35 }
0x21b7   :  { %v3513_v26 = vsel %vm3512_vm11, %v5927_v28, %v3509_v32 }
0x21b8   :  { %v3518_v27 = vsel %vm3515_vm12, %v3517_v33, %v3513_v26  ;;  %v5755_v26 = vld [vmem:[#allocation2 + $0x98] ss:$0 sm:$0xff] }
0x21b9   :  { %v3519_v41 = vmul.f32 %v3518_v27, %v3494_v19 }
0x21bb   :  { %v5356_v6 = vclamps-f32 %v3519_v41, 1.0 }
0x21bd   :  { %v3523_v34 = vadd.f32 1.0, %v5356_v6 }
0x21bf   :  { %v3525_v54 = vmul.f32 %v3523_v34, %v3439_v21 }
0x21c1   :  { %3545 = vmatmul.f32.gmra.mxu3 %v3525_v54 }
0x21d7   :  { %v3565_v5 = vpop.xlane.xlu0 %3564 }
0x21d8   :  { %v3569_v29 = vmul.f32 %v3565_v5, %v6414_v43 }
0x21da   :  { %v3571_v7 = vadd.f32 1e-05, %v3569_v29 }
0x21dc   :  { %5928 = vrsqrt.f32 %v3571_v7  ;;  %vm3579_vm14 = vweird.f32 %v3571_v7 }
0x21e2   :  { %v5929_v25 = vpop.eup %5928 }
0x21e3   :  { %v3574_v46 = vmul.f32 %v5929_v25, %v3571_v7  ;;  %vm3580_vm13 = vweird.f32 %v5929_v25 }
0x21e4   :  { %vm3581_vm15 = vmor %vm3579_vm14, %vm3580_vm13 }
0x21e5   :  { %v3575_v44 = vmul.f32 %v5929_v25, %v3574_v46 }
0x21e7   :  { %v3576_v13 = vmul.f32 0.5, %v3575_v44 }
0x21e9   :  { %v3577_v37 = vsub.f32 1.5, %v3576_v13 }
0x21eb   :  { %v3578_v28 = vmul.f32 %v5929_v25, %v3577_v37 }
0x21ed   :  { %v3582_v14 = vsel %vm3581_vm15, %v5929_v25, %v3578_v28 }
0x21ee   :  { %v3593_v4 = vmul.f32 %v3582_v14, %v7407_v48 }
0x21f0   :  { %v3599_v12 = vmul.f32 %v3597_v15, %v3593_v4 }
0x21f2   :  { %v7415_v35 = vadd.f32 %v3603_v1, %v3599_v12 }
0x21f4   :  { %5357 = vmatmul.msk.f32.vlgmr.msrb.gmra.mxu2 %vm108_vm1, %v7415_v35 }
0x2244   :  { %v3546_v17 = vpop.f32.mrf.mxu3 }
0x2245   :  { %v3547_v32 = vadd.f32 %v7392_v56, %v3546_v17 }
0x2247   :  { %v3550_v33 = vadd.f32 %v3547_v32, %v7402_v23 }
0x2249   :  { %v3554_v19 = vsel %vm108_vm1, %v3550_v33, 0.0 }
0x224a   :  { %3555 = vadd.xlane.f32.xlu0 %v3554_v19 }
0x2277   :  { %v3636_v27 = vpop.f32.mrf.mxu2 }
0x2278   :  { %v7422_v41 = vadd.f32 %v5755_v26, %v3636_v27 }
0x227a   :  { %3647 = vrot.lane.b32.xlu0 %v7422_v41, %s6119_s2  ;;  %v3642_v23 = vmul.f32 %v7422_v41, %v6199_v49  ;;  %v3643_v38 = vmul.f32 %v7422_v41, %v6204_v51  ;;  %v3644_v11 = vmul.f32 %v7422_v41, %v6208_v53  ;;  %v3645_v50 = vmul.f32 %v7422_v41, %v6220_v59 }
0x22bd   :  { %v3556_v48 = vpop.xlane.xlu0 %3555 }
0x22be   :  { %v3558_v6 = vmul.f32 %v3556_v48, %v6414_v43 }
0x22c0   :  { %v3560_v21 = vsub.f32 %v3550_v33, %v3558_v6 }
0x22c2   :  { %v3562_v34 = vmul.f32 %v3560_v21, %v3560_v21 }
0x22c4   :  { %v3566_v54 = vsel %vm108_vm1, %v3562_v34, 0.0 }
0x22c5   :  { %3567 = vadd.xlane.f32.xlu2 %v3566_v54 }
0x22ec   :  { %v3648_v56 = vpop.permute.xlu0 %3647 }
0x22ed   :  { %5359 = vmatpush.xpose.msk.msra.mxu1 %vm108_vm1, %v3648_v56 }
0x22f0   :  { %5360 = vmatmul.msk.f32.vlgmr.msra.gmra.mxu1 %vm108_vm1, %v3642_v23 }
0x22f8   :  { %5361 = vmatmul.msk.f32.gmra.mxu1 %vm108_vm1, %v3643_v38 }
0x2300   :  { %5362 = vmatmul.msk.f32.gmra.mxu1 %vm108_vm1, %v3644_v11 }
0x2308   :  { %5363 = vmatmul.msk.f32.gmra.mxu1 %vm108_vm1, %v3645_v50 }
0x2338   :  { %v3568_v61 = vpop.xlane.xlu2 %3567 }
0x2339   :  { %v3570_v5 = vmul.f32 %v3568_v61, %v6414_v43 }
0x233b   :  { %v3572_v29 = vadd.f32 1e-05, %v3570_v5 }
0x233d   :  { %5930 = vrsqrt.f32 %v3572_v29  ;;  %vm3589_vm5 = vweird.f32 %v3572_v29 }
0x2343   :  { %v5931_v7 = vpop.eup %5930 }
0x2344   :  { %v3584_v25 = vmul.f32 %v5931_v7, %v3572_v29  ;;  %vm3590_vm0 = vweird.f32 %v5931_v7 }
0x2345   :  { %vm3591_vm6 = vmor %vm3589_vm5, %vm3590_vm0 }
0x2346   :  { %v3585_v46 = vmul.f32 %v5931_v7, %v3584_v25 }
0x2348   :  { %v3586_v44 = vmul.f32 0.5, %v3585_v46 }
0x234a   :  { %v3587_v13 = vsub.f32 1.5, %v3586_v44 }
0x234c   :  { %v3588_v37 = vmul.f32 %v5931_v7, %v3587_v13 }
0x234e   :  { %v3592_v28 = vsel %vm3591_vm6, %v5931_v7, %v3588_v37 }
0x234f   :  { %v3594_v14 = vmul.f32 %v3592_v28, %v3560_v21 }
0x2351   :  { %v3600_v4 = vmul.f32 %v3597_v15, %v3594_v14 }
0x2353   :  { %v7442_v12 = vadd.f32 %v3603_v1, %v3600_v4 }
0x2355   :  { %5358 = vmatmul.msk.f32.gmra.mxu2 %vm108_vm1, %v7442_v12 }
0x236d   :  { %v3680_v17 = vpop.f32.mrf.mxu1 }
0x236e   :  { %v3681_v32 = vadd.f32 %v3680_v17, %v6212_v55 }
0x2370   :  { %v3692_v33 = vsel %vm218_vm2, %v3681_v32, -inf }
0x2371   :  { %3693 = vmax.xlane.f32.xlu1 %v3692_v33 }
0x2375   :  { %v3683_v19 = vpop.f32.mrf.mxu1 }
0x2376   :  { %v3684_v27 = vadd.f32 %v3683_v19, %v6233_v2 }
0x2378   :  { %v3695_v48 = vsel %vm218_vm2, %v3684_v27, -inf }
0x2379   :  { %3696 = vmax.xlane.f32.xlu0 %v3695_v48 }
0x237d   :  { %v3686_v6 = vpop.f32.mrf.mxu1 }
0x237e   :  { %v3687_v61 = vadd.f32 %v3686_v6, %v6227_v62 }
0x2380   :  { %v3698_v5 = vsel %vm218_vm2, %v3687_v61, -inf }
0x2385   :  { %v3689_v21 = vpop.f32.mrf.mxu1 }
0x2386   :  { %v3690_v15 = vadd.f32 %v3689_v21, %v6218_v58 }
0x2388   :  { %v3701_v1 = vsel %vm218_vm2, %v3690_v15, -inf }
0x2389   :  { %3702 = vmax.xlane.f32.xlu1 %v3701_v1 }
0x23a2   :  { %3794 = vrot.lane.b32.xlu1 %v7422_v41, %s6127_s27 }
0x23d8   :  { %v3639_v34 = vpop.f32.mrf.mxu2 }
0x23d9   :  { %v7454_v54 = vadd.f32 %v5755_v26, %v3639_v34 }
0x23db   :  { %3932 = vrot.lane.b32.xlu2 %v7454_v54, %s6119_s2  ;;  %v3927_v46 = vmul.f32 %v7454_v54, %v6199_v49  ;;  %v3928_v44 = vmul.f32 %v7454_v54, %v6204_v51  ;;  %v3929_v28 = vmul.f32 %v7454_v54, %v6208_v53  ;;  %v3930_v14 = vmul.f32 %v7454_v54, %v6220_v59 }
0x23e4   :  { %v3694_v56 = vpop.xlane.xlu1 %3693 }
0x23e5   :  { %v3704_v23 = vsub.f32 %v3681_v32, %v3694_v56 }
0x23e7   :  { %v3708_v38 = vmul.f32 1.442695, %v3704_v23 }
0x23e9   :  { %5932 = vpow2.f32 %v3708_v38 }
0x23ec   :  { %v3697_v4 = vpop.xlane.xlu0 %3696 }
0x23ed   :  { %v3705_v23 = vsub.f32 %v3684_v27, %v3697_v4 }
0x23ef   :  { %v5933_v11 = vpop.eup %5932  ;;  %v3710_v38 = vmul.f32 1.442695, %v3705_v23 }
0x23f0   :  { %v3716_v50 = vsel %vm218_vm2, %v5933_v11, 0.0 }
0x23f1   :  { %3717 = vadd.xlane.f32.xlu0 %v3716_v50 }
0x23fc   :  { %v3703_v26 = vpop.xlane.xlu1 %3702 }
0x23fd   :  { %v3707_v29 = vsub.f32 %v3690_v15, %v3703_v26 }
0x23ff   :  { %v3714_v25 = vmul.f32 1.442695, %v3707_v29 }
0x2401   :  { %5934 = vpow2.f32 %v3714_v25 }
0x2404   :  { %3699 = vmax.xlane.f32.xlu2 %v3698_v5 }
0x2405   :  { %3796 = vrot.lane.b32.xlu0 %v7422_v41, %s6125_s1 }
0x2407   :  { %v5935_v13 = vpop.eup %5934 }
0x2408   :  { %v3725_v37 = vsel %vm218_vm2, %v5935_v13, 0.0 }
0x2414   :  { %v3795_v32 = vpop.permute.xlu1 %3794 }
0x241c   :  { %3792 = vrot.lane.b32.xlu2 %v7422_v41, %s6126_s26 }
0x2435   :  { %v3933_v7 = vpop.permute.xlu2 %3932 }
0x2436   :  { %5369 = vmatpush.xpose.msk.msra.mxu2 %vm108_vm1, %v3933_v7 }
0x2439   :  { %5370 = vmatmul.msk.f32.vlgmr.msra.gmra.mxu2 %vm108_vm1, %v3927_v46 }
0x2441   :  { %5371 = vmatmul.msk.f32.gmra.mxu2 %vm108_vm1, %v3928_v44 }
0x2445   :  { %3726 = vadd.xlane.f32.xlu2 %v3725_v37 }
0x2449   :  { %5372 = vmatmul.msk.f32.gmra.mxu2 %vm108_vm1, %v3929_v28 }
0x2451   :  { %5373 = vmatmul.msk.f32.gmra.mxu2 %vm108_vm1, %v3930_v14 }
0x2464   :  { %v3718_v17 = vpop.xlane.xlu0 %3717 }
0x2477   :  { %v3700_v33 = vpop.xlane.xlu2 %3699  ;;  %v3797_v19 = vpop.permute.xlu0 %3796 }
0x2478   :  { %v3706_v48 = vsub.f32 %v3687_v61, %v3700_v33  ;;  %v5634_v6 = vpack.i.bf16 %v3795_v32, %v3797_v19 }
0x247a   :  { %v3712_v21 = vmul.f32 1.442695, %v3706_v48  ;;  %5635 = vrot.lane.b32.xlu1 %v5634_v6, %s6121_s21 }
0x247c   :  { %5936 = vpow2.f32 %v3712_v21 }
0x247d   :  { %5938 = vpow2.f32 %v3710_v38 }
0x247e   :  { %5940 = vrcp.f32 %v3718_v17 }
0x247f   :  { %v3793_v15 = vpop.permute.xlu2 %3792 }
0x2480   :  { %v5639_v1 = vpack.i.bf16 %v7422_v41, %v3793_v15 }
0x2482   :  { %v5937_v34 = vpop.eup %5936  ;;  %5640 = vrot.lane.b32.xlu1 %v5639_v1, %s6121_s21 }
0x2483   :  { %v3722_v56 = vsel %vm218_vm2, %v5937_v34, 0.0  ;;  %v5939_v50 = vpop.eup %5938 }
0x2484   :  { %3723 = vadd.xlane.f32.xlu0 %v3722_v56  ;;  %v3719_v61 = vsel %vm218_vm2, %v5939_v50, 0.0  ;;  %v5941_v5 = vpop.eup %5940 }
0x2485   :  { %v3732_v26 = vmul.f32 %v5941_v5, %v5933_v11 }
0x24ac   :  { %3720 = vadd.xlane.f32.xlu1 %v3719_v61 }
0x24b8   :  { %v3727_v37 = vpop.xlane.xlu2 %3726 }
0x24bc   :  { %v3965_v48 = vpop.f32.mrf.mxu2 }
0x24bd   :  { %v3966_v38 = vadd.f32 %v3965_v48, %v6212_v55 }
0x24c4   :  { %v3968_v21 = vpop.f32.mrf.mxu2 }
0x24c5   :  { %3740 = vrot.lane.b32.xlu1 %v3732_v26, %s6116_s18 }
0x24cc   :  { %v3971_v23 = vpop.f32.mrf.mxu2 }
0x24cd   :  { %3752 = vrot.lane.b32.xlu1 %v3732_v26, %s6122_s22 }
0x24d4   :  { %v3974_v61 = vpop.f32.mrf.mxu2 }
0x24d5   :  { %3764 = vrot.lane.b32.xlu1 %v3732_v26, %s6123_s23  ;;  %v3975_v5 = vadd.f32 %v3974_v61, %v6218_v58 }
0x24ec   :  { %v5636_v41 = vpop.permute.xlu1 %5635 }
0x24ed   :  { %v5637_v29 = vunpack.i.l.bf16 %v5636_v41  ;;  %v5638_v7 = vunpack.i.h.bf16 %v5636_v41  ;;  %v3986_v41 = vsel %vm218_vm2, %v3975_v5, -inf }
0x24ef   :  { %3834 = vmatpush.msra.mxu0 %v5637_v29 }
0x24f1   :  { %3835 = vmatpush.msra.mxu0 %v5638_v7  ;;  %v3972_v7 = vadd.f32 %v3971_v23, %v6227_v62 }
0x24f4   :  { %v5641_v27 = vpop.permute.xlu1 %5640 }
0x24f5   :  { %v5642_v25 = vunpack.i.l.bf16 %v5641_v27  ;;  %v5643_v46 = vunpack.i.h.bf16 %v5641_v27  ;;  %v3983_v27 = vsel %vm218_vm2, %v3972_v7, -inf }
0x24f7   :  { %3836 = vmatpush.msra.mxu0 %v5642_v25  ;;  %v3724_v11 = vpop.xlane.xlu0 %3723 }
0x24f9   :  { %3837 = vmatpush.msra.mxu0 %v5643_v46 }
0x251f   :  { %v3721_v44 = vpop.xlane.xlu1 %3720 }
0x2520   :  { %5942 = vrcp.f32 %v3721_v44 }
0x2521   :  { %5944 = vrcp.f32 %v3727_v37 }
0x2522   :  { %5946 = vrcp.f32 %v3724_v11 }
0x2526   :  { %v5943_v28 = vpop.eup %5942 }
0x2527   :  { %v3733_v14 = vmul.f32 %v5943_v28, %v5939_v50  ;;  %v5945_v4 = vpop.eup %5944  ;;  %v3977_v50 = vsel %vm218_vm2, %v3966_v38, -inf }
0x2528   :  { %v5947_v17 = vpop.eup %5946  ;;  %v3735_v33 = vmul.f32 %v5945_v4, %v5935_v13 }
0x2529   :  { %3766 = vrot.lane.b32.xlu1 %v3733_v14, %s6123_s23  ;;  %3754 = vrot.lane.b32.xlu2 %v3733_v14, %s6122_s22  ;;  %v3734_v32 = vmul.f32 %v5947_v17, %v5937_v34 }
0x252a   :  { %3742 = vrot.lane.b32.xlu0 %v3733_v14, %s6116_s18 }
0x2531   :  { %3744 = vrot.lane.b32.xlu1 %v3734_v32, %s6116_s18  ;;  %3746 = vrot.lane.b32.xlu2 %v3735_v33, %s6116_s18 }
0x2532   :  { %3756 = vrot.lane.b32.xlu0 %v3734_v32, %s6122_s22 }
0x2537   :  { %v3741_v19 = vpop.permute.xlu1 %3740 }
0x2538   :  { %v3776_v15 = vsel %vm218_vm2, %v3732_v26, %v3741_v19  ;;  %v3969_v26 = vadd.f32 %v3968_v21, %v6233_v2 }
0x2539   :  { %3768 = vrot.lane.b32.xlu1 %v3734_v32, %s6123_s23 }
0x253a   :  { %3758 = vrot.lane.b32.xlu0 %v3735_v33, %s6122_s22  ;;  %v3980_v29 = vsel %vm218_vm2, %v3969_v26, -inf }
0x253f   :  { %v3753_v6 = vpop.permute.xlu1 %3752 }
0x2540   :  { %v3780_v13 = vsel %vm307_vm3, %v3776_v15, %v3753_v6 }
0x2541   :  { %3770 = vrot.lane.b32.xlu1 %v3735_v33, %s6123_s23 }
0x2547   :  { %v3765_v1 = vpop.permute.xlu1 %3764 }
0x2548   :  { %v3784_v34 = vsel %vm312_vm4, %v3780_v13, %v3765_v1 }
0x2549   :  { %v3788_v56 = vmul.f32 %v3784_v34, %v6242_v8 }
0x254b   :  { %5364 = vmatmul.msk.f32.vlgmr.msra.gmra.mxu0 %vm108_vm1, %v3788_v56 }
0x255a   :  { %3978 = vmax.xlane.f32.xlu2 %v3977_v50 }
0x2562   :  { %3987 = vmax.xlane.f32.xlu2 %v3986_v41 }
0x2564   :  { %3981 = vmax.xlane.f32.xlu0 %v3980_v29 }
0x256b   :  { %3984 = vmax.xlane.f32.xlu1 %v3983_v27 }
0x257a   :  { %4081 = vrot.lane.b32.xlu2 %v7454_v54, %s6125_s1 }
0x2583   :  { %v3755_v44 = vpop.permute.xlu2 %3754 }
0x259b   :  { %v3767_v25 = vpop.permute.xlu1 %3766 }
0x259c   :  { %v3743_v46 = vpop.permute.xlu0 %3742 }
0x259d   :  { %v3777_v37 = vsel %vm218_vm2, %v3733_v14, %v3743_v46  ;;  %v3747_v14 = vpop.permute.xlu2 %3746 }
0x259e   :  { %v3781_v11 = vsel %vm307_vm3, %v3777_v37, %v3755_v44  ;;  %v3779_v34 = vsel %vm218_vm2, %v3735_v33, %v3747_v14 }
0x259f   :  { %v3785_v28 = vsel %vm312_vm4, %v3781_v11, %v3767_v25 }
0x25a0   :  { %v3789_v4 = vmul.f32 %v3785_v28, %v6246_v9 }
0x25a2   :  { %5365 = vmatmul.msk.f32.gmra.mxu0 %vm108_vm1, %v3789_v4 }
0x25a3   :  { %v3745_v17 = vpop.permute.xlu1 %3744 }
0x25a4   :  { %v3757_v19 = vpop.permute.xlu0 %3756  ;;  %v3778_v48 = vsel %vm218_vm2, %v3734_v32, %v3745_v17 }
0x25a5   :  { %v3782_v6 = vsel %vm307_vm3, %v3778_v48, %v3757_v19 }
0x25ab   :  { %v3769_v21 = vpop.permute.xlu1 %3768 }
0x25ac   :  { %v3786_v15 = vsel %vm312_vm4, %v3782_v6, %v3769_v21  ;;  %v3759_v1 = vpop.permute.xlu0 %3758 }
0x25ad   :  { %v3790_v13 = vmul.f32 %v3786_v15, %v6236_v3  ;;  %v3783_v56 = vsel %vm307_vm3, %v3779_v34, %v3759_v1 }
0x25af   :  { %5366 = vmatmul.msk.f32.gmra.mxu0 %vm108_vm1, %v3790_v13 }
0x25b3   :  { %v3771_v23 = vpop.permute.xlu1 %3770 }
0x25b4   :  { %v3787_v50 = vsel %vm312_vm4, %v3783_v56, %v3771_v23 }
0x25b5   :  { %v3791_v32 = vmul.f32 %v3787_v50, %v6229_v63 }
0x25b7   :  { %5367 = vmatmul.msk.f32.gmra.mxu0 %vm108_vm1, %v3791_v32 }
0x25c8   :  { %v7533_v48 = vpop.f32.mrf.mxu0 }
0x25cd   :  { %v3979_v61 = vpop.xlane.xlu2 %3978 }
0x25ce   :  { %v3989_v41 = vsub.f32 %v3966_v38, %v3979_v61 }
0x25d0   :  { %v3993_v29 = vmul.f32 1.442695, %v3989_v41 }
0x25d2   :  { %5948 = vpow2.f32 %v3993_v29 }
0x25d7   :  { %v3982_v27 = vpop.xlane.xlu0 %3981 }
0x25d8   :  { %v5949_v25 = vpop.eup %5948  ;;  %v3990_v46 = vsub.f32 %v3969_v26, %v3982_v27  ;;  %v3988_v26 = vpop.xlane.xlu2 %3987 }
0x25d9   :  { %v4001_v44 = vsel %vm218_vm2, %v5949_v25, 0.0 }
0x25da   :  { %v3995_v37 = vmul.f32 1.442695, %v3990_v46  ;;  %4002 = vadd.xlane.f32.xlu0 %v4001_v44 }
0x25dc   :  { %5950 = vpow2.f32 %v3995_v37 }
0x25de   :  { %v3985_v33 = vpop.xlane.xlu1 %3984 }
0x25df   :  { %v3991_v11 = vsub.f32 %v3972_v7, %v3985_v33  ;;  %v3992_v7 = vsub.f32 %v3975_v5, %v3988_v26 }
0x25e0   :  { %v4082_v23 = vpop.permute.xlu2 %4081 }
0x25e1   :  { %v3997_v28 = vmul.f32 1.442695, %v3991_v11  ;;  %v3999_v6 = vmul.f32 1.442695, %v3992_v7 }
0x25e2   :  { %v5951_v4 = vpop.eup %5950 }
0x25e3   :  { %5952 = vpow2.f32 %v3997_v28  ;;  %v4004_v17 = vsel %vm218_vm2, %v5951_v4, 0.0 }
0x25e4   :  { %4005 = vadd.xlane.f32.xlu1 %v4004_v17  ;;  %5954 = vpow2.f32 %v3999_v6 }
0x25e9   :  { %v5953_v19 = vpop.eup %5952 }
0x25ea   :  { %v4007_v38 = vsel %vm218_vm2, %v5953_v19, 0.0  ;;  %v5955_v21 = vpop.eup %5954 }
0x25eb   :  { %4008 = vadd.xlane.f32.xlu2 %v4007_v38  ;;  %v4010_v15 = vsel %vm218_vm2, %v5955_v21, 0.0 }
0x25ee   :  { %4079 = vrot.lane.b32.xlu0 %v7454_v54, %s6127_s27 }
0x25fd   :  { %4077 = vrot.lane.b32.xlu1 %v7454_v54, %s6126_s26 }
0x2605   :  { %3855 = vrot.lane.b32.xlu1 %v7533_v48, %s6116_s18 }
0x260d   :  { %3867 = vrot.lane.b32.xlu1 %v7533_v48, %s6122_s22 }
0x2618   :  { %4011 = vadd.xlane.f32.xlu0 %v4010_v15 }
0x261f   :  { %v7540_v13 = vpop.f32.mrf.mxu0 }
0x2620   :  { %3869 = vrot.lane.b32.xlu1 %v7540_v13, %s6122_s22  ;;  %3857 = vrot.lane.b32.xlu2 %v7540_v13, %s6116_s18 }
0x2628   :  { %3879 = vrot.lane.b32.xlu2 %v7533_v48, %s6123_s23 }
0x262c   :  { %v3845_v5 = vpop.f32.mrf.mxu0  ;;  %3881 = vrot.lane.b32.xlu0 %v7540_v13, %s6123_s23 }
0x262d   :  { %3859 = vrot.lane.b32.xlu1 %v3845_v5, %s6116_s18 }
0x2634   :  { %3883 = vrot.lane.b32.xlu0 %v3845_v5, %s6123_s23  ;;  %v3848_v14 = vpop.f32.mrf.mxu0 }
0x2635   :  { %3871 = vrot.lane.b32.xlu1 %v3845_v5, %s6122_s22 }
0x263d   :  { %3861 = vrot.lane.b32.xlu1 %v3848_v14, %s6116_s18 }
0x2645   :  { %3873 = vrot.lane.b32.xlu1 %v3848_v14, %s6122_s22 }
0x264d   :  { %3885 = vrot.lane.b32.xlu1 %v3848_v14, %s6123_s23  ;;  %v4003_v1 = vpop.xlane.xlu0 %4002 }
0x264e   :  { %5956 = vrcp.f32 %v4003_v1 }
0x2654   :  { %v5957_v34 = vpop.eup %5956 }
0x2655   :  { %v7556_v56 = vmul.f32 %v5957_v34, %v5949_v25 }
0x2657   :  { %v4006_v50 = vpop.xlane.xlu1 %4005  ;;  %4037 = vrot.lane.b32.xlu2 %v7556_v56, %s6122_s22  ;;  %4025 = vrot.lane.b32.xlu1 %v7556_v56, %s6116_s18 }
0x2658   :  { %5958 = vrcp.f32 %v4006_v50 }
0x265e   :  { %v5959_v32 = vpop.eup %5958  ;;  %v4009_v61 = vpop.xlane.xlu2 %4008 }
0x265f   :  { %5960 = vrcp.f32 %v4009_v61  ;;  %v7562_v41 = vmul.f32 %v5959_v32, %v5951_v4 }
0x2660   :  { %v4080_v29 = vpop.permute.xlu0 %4079 }
0x2661   :  { %4027 = vrot.lane.b32.xlu2 %v7562_v41, %s6116_s18  ;;  %v5644_v27 = vpack.i.bf16 %v4080_v29, %v4082_v23 }
0x2663   :  { %5645 = vrot.lane.b32.xlu0 %v5644_v27, %s6121_s21 }
0x2665   :  { %v5961_v25 = vpop.eup %5960 }
0x2666   :  { %v7567_v46 = vmul.f32 %v5961_v25, %v5953_v19 }
0x2669   :  { %4029 = vrot.lane.b32.xlu2 %v7567_v46, %s6116_s18 }
0x266b   :  { %4049 = vrot.lane.b32.xlu0 %v7556_v56, %s6123_s23 }
0x266f   :  { %v4078_v44 = vpop.permute.xlu1 %4077 }
0x2670   :  { %v5649_v37 = vpack.i.bf16 %v7454_v54, %v4078_v44 }
0x2672   :  { %5650 = vrot.lane.b32.xlu1 %v5649_v37, %s6121_s21 }
0x2673   :  { %4039 = vrot.lane.b32.xlu0 %v7562_v41, %s6122_s22 }
0x2677   :  { %v3856_v33 = vpop.permute.xlu1 %3855 }
0x2678   :  { %v3891_v37 = vsel %vm218_vm2, %v7533_v48, %v3856_v33 }
0x267a   :  { %4051 = vrot.lane.b32.xlu1 %v7562_v41, %s6123_s23  ;;  %v3858_v6 = vpop.permute.xlu2 %3857 }
0x267b   :  { %4041 = vrot.lane.b32.xlu0 %v7567_v46, %s6122_s22  ;;  %v3892_v61 = vsel %vm218_vm2, %v7540_v13, %v3858_v6 }
0x267f   :  { %v3868_v28 = vpop.permute.xlu1 %3867 }
0x2682   :  { %4053 = vrot.lane.b32.xlu1 %v7567_v46, %s6123_s23  ;;  %v3880_v25 = vpop.permute.xlu2 %3879 }
0x268b   :  { %v4012_v11 = vpop.xlane.xlu0 %4011 }
0x268c   :  { %5962 = vrcp.f32 %v4012_v11  ;;  %v3895_v11 = vsel %vm307_vm3, %v3891_v37, %v3868_v28 }
0x268d   :  { %v3899_v13 = vsel %vm312_vm4, %v3895_v11, %v3880_v25 }
0x2692   :  { %v5963_v4 = vpop.eup %5962  ;;  %v3870_v17 = vpop.permute.xlu1 %3869 }
0x2693   :  { %v7583_v54 = vmul.f32 %v5963_v4, %v5955_v21  ;;  %v3896_v44 = vsel %vm307_vm3, %v3892_v61, %v3870_v17  ;;  %v7609_v17 = vld [vmem:[#allocation2 + $0x268] sm:$0xff] }
0x2695   :  { %4055 = vrot.lane.b32.xlu1 %v7583_v54, %s6123_s23  ;;  %4043 = vrot.lane.b32.xlu0 %v7583_v54, %s6122_s22 }
0x2696   :  { %4031 = vrot.lane.b32.xlu2 %v7583_v54, %s6116_s18 }
0x269e   :  { %v3882_v7 = vpop.permute.xlu0 %3881 }
0x269f   :  { %v3860_v19 = vpop.permute.xlu1 %3859 }
0x26a0   :  { %v3893_v1 = vsel %vm218_vm2, %v3845_v5, %v3860_v19 }
0x26a6   :  { %v3884_v23 = vpop.permute.xlu0 %3883 }
0x26a7   :  { %v3872_v38 = vpop.permute.xlu1 %3871 }
0x26a8   :  { %v3897_v21 = vsel %vm307_vm3, %v3893_v1, %v3872_v38  ;;  %v3903_v38 = vmul.f32 %v3899_v13, %v7010_v16 }
0x26a9   :  { %v3901_v29 = vsel %vm312_vm4, %v3897_v21, %v3884_v23 }
0x26aa   :  { %v3905_v4 = vmul.f32 %v3901_v29, %v6976_v60 }
0x26af   :  { %v3862_v26 = vpop.permute.xlu1 %3861 }
0x26b0   :  { %v3894_v34 = vsel %vm218_vm2, %v3848_v14, %v3862_v26  ;;  %v3900_v14 = vsel %vm312_vm4, %v3896_v44, %v3882_v7 }
0x26b1   :  { %v3904_v19 = vmul.f32 %v3900_v14, %v7003_v10  ;;  %v4038_v26 = vpop.permute.xlu2 %4037 }
0x26b7   :  { %v3874_v15 = vpop.permute.xlu1 %3873 }
0x26b8   :  { %v3898_v50 = vsel %vm307_vm3, %v3894_v34, %v3874_v15 }
0x26bf   :  { %v3886_v32 = vpop.permute.xlu1 %3885 }
0x26c0   :  { %v3902_v27 = vsel %vm312_vm4, %v3898_v50, %v3886_v32  ;;  %v4028_v50 = vpop.permute.xlu2 %4027 }
0x26c1   :  { %v3906_v5 = vmul.f32 %v3902_v27, %v6948_v47  ;;  %v4062_v27 = vsel %vm218_vm2, %v7562_v41, %v4028_v50  ;;  %v6062_v50 = vld [vmem:[#allocation2 + $0x220] sm:$0xff] }
0x26c3   :  { %3919 = vmatpush.msra.mxu3 %v3906_v5 }
0x26c5   :  { %3920 = vmatpush.msra.mxu3 %v3905_v4 }
0x26c7   :  { %3921 = vmatpush.msra.mxu3 %v3904_v19 }
0x26c8   :  { %v4030_v5 = vpop.permute.xlu2 %4029 }
0x26c9   :  { %3922 = vmatpush.msra.mxu3 %v3903_v38  ;;  %v4026_v7 = vpop.permute.xlu1 %4025  ;;  %v4063_v11 = vsel %vm218_vm2, %v7567_v46, %v4030_v5 }
0x26ca   :  { %5368 = vmatmul.msk.f32.vlgmr.msra.gmra.mxu3 %vm108_vm1, %v7609_v17  ;;  %v4061_v15 = vsel %vm218_vm2, %v7556_v56, %v4026_v7 }
0x26cb   :  { %v4065_v1 = vsel %vm307_vm3, %v4061_v15, %v4038_v26 }
0x26d5   :  { %v5646_v48 = vpop.permute.xlu0 %5645 }
0x26d6   :  { %v5647_v33 = vunpack.i.l.bf16 %v5646_v48  ;;  %v5648_v28 = vunpack.i.h.bf16 %v5646_v48 }
0x26d8   :  { %4119 = vmatpush.msrb.mxu3 %v5647_v33 }
0x26da   :  { %4120 = vmatpush.msrb.mxu3 %v5648_v28 }
0x26dd   :  { %v4050_v6 = vpop.permute.xlu0 %4049 }
0x26de   :  { %v4069_v34 = vsel %vm312_vm4, %v4065_v1, %v4050_v6 }
0x26df   :  { %v4073_v29 = vmul.f32 %v4069_v34, %v6242_v8  ;;  %v7646_v34 = vld [vmem:[#allocation2 + $0x238] ss:$0 sm:$0xff] }
0x26e4   :  { %v5651_v21 = vpop.permute.xlu1 %5650 }
0x26e5   :  { %v5652_v23 = vunpack.i.l.bf16 %v5651_v21  ;;  %v5653_v32 = vunpack.i.h.bf16 %v5651_v21  ;;  %v4040_v61 = vpop.permute.xlu0 %4039 }
0x26e6   :  { %v4066_v56 = vsel %vm307_vm3, %v4062_v27, %v4040_v61  ;;  %v6063_v61 = vld [vmem:[#allocation2 + $0x228] sm:$0xff] }
0x26e7   :  { %4121 = vmatpush.msrb.mxu3 %v5652_v23  ;;  %v6061_v23 = vld [vmem:[#allocation2 + $0x218] sm:$0xff] }
0x26e9   :  { %4122 = vmatpush.msrb.mxu3 %v5653_v32  ;;  %v5659_v32 = vpack.i.bf16 %v6061_v23, %v6062_v50 }
0x26ea   :  { %5374 = vmatmul.msk.f32.vlgmr.msrb.gmra.mxu3 %vm108_vm1, %v4073_v29  ;;  %v6064_v29 = vld [vmem:[#allocation2 + $0x230] sm:$0xff] }
0x26eb   :  { %v5654_v27 = vpack.i.bf16 %v6063_v61, %v6064_v29 }
0x26ec   :  { %v4052_v25 = vpop.permute.xlu1 %4051 }
0x26ed   :  { %v4070_v44 = vsel %vm312_vm4, %v4066_v56, %v4052_v25  ;;  %v4042_v14 = vpop.permute.xlu0 %4041 }
0x26ee   :  { %v4074_v37 = vmul.f32 %v4070_v44, %v6246_v9  ;;  %v4067_v4 = vsel %vm307_vm3, %v4063_v11, %v4042_v14 }
0x26f0   :  { %v4032_v38 = vpop.permute.xlu2 %4031 }
0x26f1   :  { %v4064_v48 = vsel %vm218_vm2, %v7583_v54, %v4032_v38 }
0x26f2   :  { %5375 = vmatmul.msk.f32.gmra.mxu3 %vm108_vm1, %v4074_v37 }
0x26f4   :  { %v4054_v13 = vpop.permute.xlu1 %4053 }
0x26f5   :  { %v4071_v19 = vsel %vm312_vm4, %v4067_v4, %v4054_v13 }
0x26f6   :  { %v4075_v41 = vmul.f32 %v4071_v19, %v6236_v3 }
0x26fa   :  { %5376 = vmatmul.msk.f32.gmra.mxu3 %vm108_vm1, %v4075_v41 }
0x2707   :  { %v4056_v33 = vpop.permute.xlu1 %4055  ;;  %v4044_v28 = vpop.permute.xlu0 %4043 }
0x2708   :  { %v4068_v26 = vsel %vm307_vm3, %v4064_v48, %v4044_v28 }
0x2709   :  { %v4072_v7 = vsel %vm312_vm4, %v4068_v26, %v4056_v33 }
0x270a   :  { %v4076_v46 = vmul.f32 %v4072_v7, %v6229_v63 }
0x270c   :  { %5377 = vmatmul.msk.f32.gmra.mxu3 %vm108_vm1, %v4076_v46 }
0x274d   :  { %v7637_v6 = vpop.f32.mrf.mxu3 }
0x276d   :  { %v4124_v15 = vpop.f32.mrf.mxu3 }
0x276e   :  { %4140 = vrot.lane.b32.xlu1 %v4124_v15, %s6116_s18 }
0x2775   :  { %v4127_v1 = vpop.f32.mrf.mxu3 }
0x2776   :  { %4154 = vrot.lane.b32.xlu0 %v4127_v1, %s6122_s22  ;;  %4142 = vrot.lane.b32.xlu1 %v4127_v1, %s6116_s18 }
0x277d   :  { %v4130_v54 = vpop.f32.mrf.mxu3 }
0x277e   :  { %4168 = vrot.lane.b32.xlu2 %v4130_v54, %s6123_s23  ;;  %4156 = vrot.lane.b32.xlu0 %v4130_v54, %s6122_s22 }
0x277f   :  { %4144 = vrot.lane.b32.xlu1 %v4130_v54, %s6116_s18 }
0x2787   :  { %4164 = vrot.lane.b32.xlu1 %v4124_v15, %s6123_s23 }
0x278f   :  { %v4133_v21 = vpop.f32.mrf.mxu3  ;;  %4224 = vrot.lane.b32.xlu1 %v7646_v34, %s6119_s2 }
0x2790   :  { %4158 = vrot.lane.b32.xlu0 %v4133_v21, %s6122_s22  ;;  %4146 = vrot.lane.b32.xlu2 %v4133_v21, %s6116_s18 }
0x2798   :  { %4152 = vrot.lane.b32.xlu0 %v4124_v15, %s6122_s22  ;;  %4170 = vrot.lane.b32.xlu2 %v4133_v21, %s6123_s23 }
0x27a0   :  { %5660 = vrot.lane.b32.xlu0 %v5659_v32, %s6119_s2  ;;  %4166 = vrot.lane.b32.xlu2 %v4127_v1, %s6123_s23 }
0x27a8   :  { %5655 = vrot.lane.b32.xlu2 %v5654_v27, %s6119_s2 }
0x27d8   :  { %v4169_v56 = vpop.permute.xlu2 %4168 }
0x27e0   :  { %v4141_v25 = vpop.permute.xlu1 %4140 }
0x27e8   :  { %v4155_v5 = vpop.permute.xlu0 %4154  ;;  %v4143_v37 = vpop.permute.xlu1 %4142 }
0x27e9   :  { %v4177_v38 = vsel %vm218_vm2, %v4127_v1, %v4143_v37 }
0x27ea   :  { %v4147_v44 = vpop.permute.xlu2 %4146  ;;  %v4181_v40 = vsel %vm307_vm3, %v4177_v38, %v4155_v5 }
0x27eb   :  { %v4179_v48 = vsel %vm218_vm2, %v4133_v21, %v4147_v44  ;;  %v4176_v44 = vsel %vm218_vm2, %v4124_v15, %v4141_v25 }
0x27f0   :  { %v4157_v11 = vpop.permute.xlu0 %4156 }
0x27f1   :  { %v4145_v13 = vpop.permute.xlu1 %4144 }
0x27f2   :  { %v4171_v14 = vpop.permute.xlu2 %4170  ;;  %v4178_v19 = vsel %vm218_vm2, %v4130_v54, %v4145_v13 }
0x27f3   :  { %v4182_v41 = vsel %vm307_vm3, %v4178_v19, %v4157_v11 }
0x27f4   :  { %v4186_v27 = vsel %vm312_vm4, %v4182_v41, %v4169_v56 }
0x27f5   :  { %v4190_v1 = vmul.f32 %v4186_v27, %v6976_v60 }
0x27fa   :  { %v4167_v4 = vpop.permute.xlu2 %4166 }
0x27fb   :  { %v4185_v11 = vsel %vm312_vm4, %v4181_v40, %v4167_v4 }
0x27fc   :  { %v4189_v21 = vmul.f32 %v4185_v11, %v7003_v10 }
0x2802   :  { %v4159_v33 = vpop.permute.xlu0 %4158  ;;  %v5656_v28 = vpop.permute.xlu2 %5655 }
0x2803   :  { %v4183_v26 = vsel %vm307_vm3, %v4179_v48, %v4159_v33  ;;  %v5658_v7 = vunpack.i.h.bf16 %v5656_v28  ;;  %v5657_v46 = vunpack.i.l.bf16 %v5656_v28 }
0x2804   :  { %v4187_v32 = vsel %vm312_vm4, %v4183_v26, %v4171_v14  ;;  %v4165_v14 = vpop.permute.xlu1 %4164 }
0x2805   :  { %v4191_v54 = vmul.f32 %v4187_v32, %v6948_v47  ;;  %4245 = vmatpush.msrb.mxu0 %v5657_v46 }
0x2807   :  { %4204 = vmatpush.msrb.mxu1 %v4191_v54  ;;  %4246 = vmatpush.msrb.mxu0 %v5658_v7 }
0x2809   :  { %4205 = vmatpush.msrb.mxu1 %v4190_v1 }
0x280a   :  { %v4153_v37 = vpop.permute.xlu0 %4152 }
0x280b   :  { %v4180_v56 = vsel %vm307_vm3, %v4176_v44, %v4153_v37  ;;  %4206 = vmatpush.msrb.mxu1 %v4189_v21 }
0x280c   :  { %v4184_v5 = vsel %vm312_vm4, %v4180_v56, %v4165_v14 }
0x280d   :  { %v4188_v47 = vmul.f32 %v4184_v5, %v7010_v16  ;;  %v4225_v16 = vpop.permute.xlu1 %4224 }
0x280f   :  { %4207 = vmatpush.msrb.mxu1 %v4188_v47 }
0x2810   :  { %5378 = vmatmul.msk.f32.vlgmr.msrb.gmra.mxu1 %vm108_vm1, %v7609_v17 }
0x2811   :  { %4330 = vmatpush.msra.mxu1 %v6064_v29 }
0x2812   :  { %v5661_v60 = vpop.permute.xlu0 %5660 }
0x2813   :  { %v5663_v40 = vunpack.i.h.bf16 %v5661_v60  ;;  %v5662_v10 = vunpack.i.l.bf16 %v5661_v60  ;;  %4331 = vmatpush.msra.mxu1 %v6063_v61 }
0x2815   :  { %4247 = vmatpush.msrb.mxu0 %v5662_v10  ;;  %4332 = vmatpush.msra.mxu1 %v6062_v50 }
0x2817   :  { %4248 = vmatpush.msrb.mxu0 %v5663_v40  ;;  %4333 = vmatpush.msra.mxu1 %v6061_v23 }
0x2818   :  { %5379 = vmatmul.msk.f32.vlgmr.msrb.gmra.mxu0 %vm108_vm1, %v7637_v6 }
0x288d   :  { %v4209_v15 = vpop.f32.mrf.mxu1 }
0x288e   :  { %5380 = vmatmul.msk.f32.gmra.mxu0 %vm108_vm1, %v4209_v15 }
0x2895   :  { %v4250_v25 = vpop.f32.mrf.mxu0 }
0x2896   :  { %v4251_v4 = vadd.f32 %v4250_v25, %v4225_v16 }
0x2898   :  { %v4256_v17 = vadd.f32 %v4251_v4, %v7415_v35  ;;  %v7910_v35 = vpack.i.bf16 %v7194_v20, %v7192_v36 }
0x289a   :  { %v4258_v29 = vsel %vm108_vm1, %v4256_v17, 0.0 }
0x289b   :  { %4259 = vadd.xlane.f32.xlu2 %v4258_v29 }
0x290b   :  { %v4253_v13 = vpop.f32.mrf.mxu0 }
0x290c   :  { %v4254_v61 = vadd.f32 %v4253_v13, %v4225_v16 }
0x290e   :  { %v4257_v50 = vadd.f32 %v4254_v61, %v7442_v12  ;;  %v4260_v19 = vpop.xlane.xlu2 %4259  ;;  %v6065_v12 = vld [vmem:[#allocation2 + $0x160] ss:$0 sm:$0xff] }
0x290f   :  { %v4264_v23 = vmul.f32 %v4260_v19, %v6414_v43 }
0x2910   :  { %v4261_v6 = vsel %vm108_vm1, %v4257_v50, 0.0 }
0x2911   :  { %v4266_v41 = vsub.f32 %v4256_v17, %v4264_v23  ;;  %4262 = vadd.xlane.f32.xlu0 %v4261_v6 }
0x2913   :  { %v4268_v38 = vmul.f32 %v4266_v41, %v4266_v41 }
0x2915   :  { %v4270_v48 = vsel %vm108_vm1, %v4268_v38, 0.0 }
0x2916   :  { %4271 = vadd.xlane.f32.xlu1 %v4270_v48 }
0x2925   :  { %5665 = vrot.lane.b32.xlu0 %v5664_v39, %s6121_s21 }
0x292d   :  { %4307 = vrot.lane.b32.xlu0 %v7375_v18, %s6120_s0 }
0x292f   :  { %5670 = vrot.lane.b32.xlu1 %v7910_v35, %s6121_s21 }
0x2937   :  { %4358 = vrot.lane.b32.xlu1 %v6065_v12, %s6121_s21 }
0x2984   :  { %v4263_v33 = vpop.xlane.xlu0 %4262 }
0x2985   :  { %v4265_v28 = vmul.f32 %v4263_v33, %v6414_v43 }
0x2987   :  { %v4267_v26 = vsub.f32 %v4257_v50, %v4265_v28 }
0x2989   :  { %v4269_v7 = vmul.f32 %v4267_v26, %v4267_v26  ;;  %v4272_v18 = vpop.xlane.xlu1 %4271 }
0x298a   :  { %v4276_v27 = vmul.f32 %v4272_v18, %v6414_v43 }
0x298b   :  { %v4273_v46 = vsel %vm108_vm1, %v4269_v7, 0.0 }
0x298c   :  { %4274 = vadd.xlane.f32.xlu2 %v4273_v46  ;;  %v4278_v54 = vadd.f32 1e-05, %v4276_v27 }
0x298e   :  { %5964 = vrsqrt.f32 %v4278_v54  ;;  %vm4286_vm8 = vweird.f32 %v4278_v54 }
0x2994   :  { %v5965_v11 = vpop.eup %5964 }
0x2995   :  { %v4281_v1 = vmul.f32 %v5965_v11, %v4278_v54  ;;  %vm4287_vm7 = vweird.f32 %v5965_v11 }
0x2996   :  { %vm4288_vm9 = vmor %vm4286_vm8, %vm4287_vm7 }
0x2997   :  { %v5666_v52 = vpop.permute.xlu0 %5665  ;;  %v4282_v21 = vmul.f32 %v5965_v11, %v4281_v1 }
0x2998   :  { %v5668_v22 = vunpack.i.h.bf16 %v5666_v52  ;;  %v5667_v39 = vunpack.i.l.bf16 %v5666_v52 }
0x2999   :  { %v4283_v44 = vmul.f32 0.5, %v4282_v21 }
0x299a   :  { %4373 = vmatpush.msrb.mxu2 %v5667_v39 }
0x299b   :  { %v4284_v37 = vsub.f32 1.5, %v4283_v44 }
0x299c   :  { %4374 = vmatpush.msrb.mxu2 %v5668_v22 }
0x299d   :  { %v4285_v56 = vmul.f32 %v5965_v11, %v4284_v37 }
0x299f   :  { %v4289_v5 = vsel %vm4288_vm9, %v5965_v11, %v4285_v56  ;;  %v4308_v60 = vpop.permute.xlu0 %4307 }
0x29a1   :  { %v5671_v32 = vpop.permute.xlu1 %5670 }
0x29a2   :  { %v5673_v36 = vunpack.i.h.bf16 %v5671_v32  ;;  %v5672_v20 = vunpack.i.l.bf16 %v5671_v32 }
0x29a4   :  { %4375 = vmatpush.msrb.mxu2 %v5672_v20  ;;  %4302 = vrot.lane.b32.xlu2 %v7373_v45, %s6120_s0 }
0x29a6   :  { %4376 = vmatpush.msrb.mxu2 %v5673_v36 }
0x29a7   :  { %5383 = vmatmul.msk.f32.vlgmr.msrb.gmra.mxu2 %vm108_vm1, %v7204_v42 }
0x29a9   :  { %v4359_v23 = vpop.permute.xlu1 %4358 }
0x29af   :  { %5384 = vmatmul.msk.f32.gmra.mxu2 %vm108_vm1, %v7251_v30  ;;  %v4300_v30 = vmul.f32 %v4289_v5, %v4266_v41 }
0x29ff   :  { %v4275_v14 = vpop.xlane.xlu2 %4274 }
0x2a00   :  { %v4277_v45 = vmul.f32 %v4275_v14, %v6414_v43 }
0x2a02   :  { %v4279_v42 = vadd.f32 1e-05, %v4277_v45 }
0x2a04   :  { %5966 = vrsqrt.f32 %v4279_v42  ;;  %vm4296_vm11 = vweird.f32 %v4279_v42 }
0x2a07   :  { %v4303_v47 = vpop.permute.xlu2 %4302 }
0x2a08   :  { %v4305_v40 = vmul.f32 %v4303_v47, %v4300_v30 }
0x2a0a   :  { %v5967_v10 = vpop.eup %5966  ;;  %v7705_v15 = vadd.f32 %v4308_v60, %v4305_v40 }
0x2a0b   :  { %v4291_v16 = vmul.f32 %v5967_v10, %v4279_v42  ;;  %vm4297_vm10 = vweird.f32 %v5967_v10 }
0x2a0c   :  { %5381 = vmatmul.msk.f32.vlgmr.msra.gmra.mxu1 %vm108_vm1, %v7705_v15  ;;  %vm4298_vm12 = vmor %vm4296_vm11, %vm4297_vm10 }
0x2a0d   :  { %v4292_v25 = vmul.f32 %v5967_v10, %v4291_v16 }
0x2a0f   :  { %v4293_v4 = vmul.f32 0.5, %v4292_v25 }
0x2a11   :  { %v4294_v17 = vsub.f32 1.5, %v4293_v4 }
0x2a13   :  { %v4295_v29 = vmul.f32 %v5967_v10, %v4294_v17 }
0x2a15   :  { %v4299_v13 = vsel %vm4298_vm12, %v5967_v10, %v4295_v29 }
0x2a16   :  { %v4301_v61 = vmul.f32 %v4299_v13, %v4267_v26 }
0x2a18   :  { %v4306_v50 = vmul.f32 %v4303_v47, %v4301_v61 }
0x2a1a   :  { %v7709_v19 = vadd.f32 %v4308_v60, %v4306_v50 }
0x2a1c   :  { %5382 = vmatmul.msk.f32.gmra.mxu1 %vm108_vm1, %v7709_v19 }
0x2a2a   :  { %v4378_v6 = vpop.f32.mrf.mxu2 }
0x2a2b   :  { %v4379_v41 = vadd.f32 %v4378_v6, %v4359_v23 }
0x2a2d   :  { %5385 = vmatpush.xpose.msk.msra.mxu3 %vm108_vm1, %v4379_v41  ;;  %v4534_v38 = vmul.f32 %v4379_v41, %v6227_v62  ;;  %v4535_v48 = vmul.f32 %v4379_v41, %v6218_v58  ;;  %v4533_v28 = vmul.f32 %v4379_v41, %v6233_v2  ;;  %v4532_v52 = vmul.f32 %v4379_v41, %v6212_v55 }
0x2a2f   :  { %v5674_v35 = vpack.i.bf16 %v4534_v38, %v4535_v48 }
0x2a31   :  { %5675 = vrot.lane.b32.xlu0 %v5674_v35, %s6119_s2 }
0x2a32   :  { %v4381_v12 = vpop.f32.mrf.mxu2 }
0x2a33   :  { %v4382_v33 = vadd.f32 %v4381_v12, %v4359_v23 }
0x2a35   :  { %5394 = vmatpush.xpose.msk.msrb.mxu1 %vm108_vm1, %v4382_v33  ;;  %v4747_v26 = vmul.f32 %v4382_v33, %v6218_v58  ;;  %v4746_v46 = vmul.f32 %v4382_v33, %v6227_v62  ;;  %v4744_v39 = vmul.f32 %v4382_v33, %v6212_v55  ;;  %v4745_v18 = vmul.f32 %v4382_v33, %v6233_v2 }
0x2a37   :  { %v5679_v7 = vpack.i.bf16 %v4533_v28, %v4747_v26  ;;  %v5684_v22 = vpack.i.bf16 %v4532_v52, %v4746_v46  ;;  %v5689_v32 = vpack.i.bf16 %v4744_v39, %v4745_v18 }
0x2a39   :  { %5680 = vrot.lane.b32.xlu1 %v5679_v7, %s6119_s2 }
0x2a41   :  { %5685 = vrot.lane.b32.xlu1 %v5684_v22, %s6119_s2 }
0x2a49   :  { %5690 = vrot.lane.b32.xlu1 %v5689_v32, %s6119_s2 }
0x2a89   :  { %v4335_v36 = vpop.f32.mrf.mxu1 }
0x2a8a   :  { %v4336_v58 = vadd.f32 %v7646_v34, %v4335_v36 }
0x2a8c   :  { %v4384_v20 = vmul.f32 %v4336_v58, %v6199_v49  ;;  %v4385_v62 = vmul.f32 %v4336_v58, %v6204_v51  ;;  %v4386_v2 = vmul.f32 %v4336_v58, %v6208_v53  ;;  %v4387_v21 = vmul.f32 %v4336_v58, %v6220_v59 }
0x2a8e   :  { %5386 = vmatmul.msk.f32.vlgmr.msra.gmra.mxu3 %vm108_vm1, %v4384_v20 }
0x2a96   :  { %5387 = vmatmul.msk.f32.gmra.mxu3 %vm108_vm1, %v4385_v62 }
0x2a99   :  { %v4338_v27 = vpop.f32.mrf.mxu1 }
0x2a9a   :  { %v4339_v54 = vadd.f32 %v7646_v34, %v4338_v27 }
0x2a9c   :  { %v4596_v55 = vmul.f32 %v4339_v54, %v6199_v49  ;;  %v4597_v44 = vmul.f32 %v4339_v54, %v6204_v51  ;;  %v4598_v56 = vmul.f32 %v4339_v54, %v6208_v53  ;;  %v4599_v51 = vmul.f32 %v4339_v54, %v6220_v59 }
0x2a9e   :  { %5388 = vmatmul.msk.f32.gmra.mxu3 %vm108_vm1, %v4386_v2  ;;  %5395 = vmatmul.msk.f32.vlgmr.msrb.gmra.mxu1 %vm108_vm1, %v4596_v55 }
0x2aa3   :  { %v5676_v11 = vpop.permute.xlu0 %5675 }
0x2aa4   :  { %v5677_v1 = vunpack.i.l.bf16 %v5676_v11  ;;  %v5678_v37 = vunpack.i.h.bf16 %v5676_v11 }
0x2aa6   :  { %5389 = vmatmul.msk.f32.gmra.mxu3 %vm108_vm1, %v4387_v21  ;;  %4576 = vmatpush.msra.mxu0 %v5677_v1 }
0x2aa7   :  { %5396 = vmatmul.msk.f32.gmra.mxu1 %vm108_vm1, %v4597_v44 }
0x2aa8   :  { %4577 = vmatpush.msra.mxu0 %v5678_v37 }
0x2aab   :  { %v5681_v49 = vpop.permute.xlu1 %5680 }
0x2aac   :  { %v5683_v34 = vunpack.i.h.bf16 %v5681_v49  ;;  %v5682_v14 = vunpack.i.l.bf16 %v5681_v49 }
0x2aae   :  { %4578 = vmatpush.msra.mxu0 %v5683_v34  ;;  %4788 = vmatpush.msra.mxu2 %v5682_v14 }
0x2aaf   :  { %5397 = vmatmul.msk.f32.gmra.mxu1 %vm108_vm1, %v4598_v56 }
0x2ab3   :  { %v5686_v45 = vpop.permute.xlu1 %5685 }
0x2ab4   :  { %v5688_v42 = vunpack.i.h.bf16 %v5686_v45  ;;  %v5687_v5 = vunpack.i.l.bf16 %v5686_v45 }
0x2ab6   :  { %4579 = vmatpush.msra.mxu0 %v5688_v42  ;;  %4789 = vmatpush.msra.mxu2 %v5687_v5 }
0x2ab7   :  { %5398 = vmatmul.msk.f32.gmra.mxu1 %vm108_vm1, %v4599_v51 }
0x2abb   :  { %v5691_v30 = vpop.permute.xlu1 %5690 }
0x2abc   :  { %v5692_v47 = vunpack.i.l.bf16 %v5691_v30  ;;  %v5693_v60 = vunpack.i.h.bf16 %v5691_v30 }
0x2abe   :  { %4790 = vmatpush.msra.mxu2 %v5692_v47 }
0x2ac0   :  { %4791 = vmatpush.msra.mxu2 %v5693_v60 }
0x2b11   :  { %v4420_v40 = vpop.f32.mrf.mxu3 }
0x2b12   :  { %v4432_v53 = vsel %vm218_vm2, %v4420_v40, -inf }
0x2b13   :  { %4433 = vmax.xlane.f32.xlu2 %v4432_v53 }
0x2b19   :  { %v4423_v10 = vpop.f32.mrf.mxu3 }
0x2b1a   :  { %v4435_v16 = vsel %vm218_vm2, %v4423_v10, -inf }
0x2b1b   :  { %4436 = vmax.xlane.f32.xlu1 %v4435_v16  ;;  %v4632_v11 = vpop.f32.mrf.mxu1 }
0x2b1c   :  { %v4644_v49 = vsel %vm218_vm2, %v4632_v11, -inf }
0x2b21   :  { %v4426_v25 = vpop.f32.mrf.mxu3 }
0x2b22   :  { %v4438_v59 = vsel %vm218_vm2, %v4426_v25, -inf }
0x2b23   :  { %4439 = vmax.xlane.f32.xlu0 %v4438_v59 }
0x2b24   :  { %v4635_v1 = vpop.f32.mrf.mxu1 }
0x2b25   :  { %v4647_v21 = vsel %vm218_vm2, %v4635_v1, -inf }
0x2b29   :  { %v4429_v4 = vpop.f32.mrf.mxu3 }
0x2b2a   :  { %v4441_v17 = vsel %vm218_vm2, %v4429_v4, -inf }
0x2b2b   :  { %4442 = vmax.xlane.f32.xlu1 %v4441_v17 }
0x2b2c   :  { %v4638_v44 = vpop.f32.mrf.mxu1 }
0x2b2d   :  { %v4650_v37 = vsel %vm218_vm2, %v4638_v44, -inf }
0x2b34   :  { %v4641_v34 = vpop.f32.mrf.mxu1 }
0x2b35   :  { %v4653_v14 = vsel %vm218_vm2, %v4641_v34, -inf }
0x2b86   :  { %v4434_v29 = vpop.xlane.xlu2 %4433 }
0x2b87   :  { %v4444_v13 = vsub.f32 %v4420_v40, %v4434_v29 }
0x2b89   :  { %v4448_v61 = vmul.f32 1.442695, %v4444_v13 }
0x2b8b   :  { %5968 = vpow2.f32 %v4448_v61 }
0x2b8e   :  { %v4437_v50 = vpop.xlane.xlu1 %4436 }
0x2b8f   :  { %v4445_v23 = vsub.f32 %v4423_v10, %v4437_v50 }
0x2b91   :  { %v5969_v6 = vpop.eup %5968  ;;  %v4450_v41 = vmul.f32 1.442695, %v4445_v23 }
0x2b92   :  { %v4456_v38 = vsel %vm218_vm2, %v5969_v6, 0.0 }
0x2b93   :  { %5970 = vpow2.f32 %v4450_v41  ;;  %4457 = vadd.xlane.f32.xlu2 %v4456_v38 }
0x2b96   :  { %v4440_v48 = vpop.xlane.xlu0 %4439 }
0x2b97   :  { %v4446_v35 = vsub.f32 %v4426_v25, %v4440_v48 }
0x2b99   :  { %v5971_v12 = vpop.eup %5970  ;;  %v4452_v33 = vmul.f32 1.442695, %v4446_v35 }
0x2b9a   :  { %v4459_v28 = vsel %vm218_vm2, %v5971_v12, 0.0 }
0x2b9b   :  { %5972 = vpow2.f32 %v4452_v33  ;;  %4460 = vadd.xlane.f32.xlu0 %v4459_v28 }
0x2b9e   :  { %v4443_v26 = vpop.xlane.xlu1 %4442 }
0x2b9f   :  { %v4447_v7 = vsub.f32 %v4429_v4, %v4443_v26 }
0x2ba1   :  { %v5973_v46 = vpop.eup %5972  ;;  %v4454_v52 = vmul.f32 1.442695, %v4447_v7 }
0x2ba2   :  { %v4462_v22 = vsel %vm218_vm2, %v5973_v46, 0.0 }
0x2ba3   :  { %5974 = vpow2.f32 %v4454_v52  ;;  %4463 = vadd.xlane.f32.xlu1 %v4462_v22 }
0x2ba9   :  { %v5975_v39 = vpop.eup %5974 }
0x2baa   :  { %v4465_v18 = vsel %vm218_vm2, %v5975_v39, 0.0 }
0x2bab   :  { %4466 = vadd.xlane.f32.xlu2 %v4465_v18 }
0x2c06   :  { %v4458_v32 = vpop.xlane.xlu2 %4457 }
0x2c07   :  { %5976 = vrcp.f32 %v4458_v32 }
0x2c0d   :  { %v5977_v36 = vpop.eup %5976 }
0x2c0e   :  { %v4461_v58 = vpop.xlane.xlu0 %4460  ;;  %v4472_v20 = vmul.f32 %v5977_v36, %v5969_v6 }
0x2c0f   :  { %5978 = vrcp.f32 %v4461_v58 }
0x2c10   :  { %4492 = vrot.lane.b32.xlu0 %v4472_v20, %s6122_s22  ;;  %4480 = vrot.lane.b32.xlu2 %v4472_v20, %s6116_s18 }
0x2c15   :  { %v5979_v62 = vpop.eup %5978 }
0x2c16   :  { %v4464_v27 = vpop.xlane.xlu1 %4463  ;;  %v4473_v54 = vmul.f32 %v5979_v62, %v5971_v12 }
0x2c17   :  { %5980 = vrcp.f32 %v4464_v27 }
0x2c18   :  { %4504 = vrot.lane.b32.xlu0 %v4472_v20, %s6123_s23  ;;  %4506 = vrot.lane.b32.xlu1 %v4473_v54, %s6123_s23 }
0x2c19   :  { %4494 = vrot.lane.b32.xlu2 %v4473_v54, %s6122_s22 }
0x2c1d   :  { %v5981_v55 = vpop.eup %5980 }
0x2c1e   :  { %v4474_v2 = vmul.f32 %v5981_v55, %v5973_v46  ;;  %v4467_v56 = vpop.xlane.xlu2 %4466 }
0x2c1f   :  { %5982 = vrcp.f32 %v4467_v56 }
0x2c20   :  { %4482 = vrot.lane.b32.xlu0 %v4473_v54, %s6116_s18  ;;  %4508 = vrot.lane.b32.xlu1 %v4474_v2, %s6123_s23 }
0x2c21   :  { %4496 = vrot.lane.b32.xlu2 %v4474_v2, %s6122_s22 }
0x2c25   :  { %v5983_v45 = vpop.eup %5982 }
0x2c26   :  { %v7766_v42 = vmul.f32 %v5983_v45, %v5975_v39 }
0x2c28   :  { %4484 = vrot.lane.b32.xlu0 %v4474_v2, %s6116_s18 }
0x2c4a   :  { %4648 = vmax.xlane.f32.xlu2 %v4647_v21 }
0x2c52   :  { %4651 = vmax.xlane.f32.xlu2 %v4650_v37  ;;  %4645 = vmax.xlane.f32.xlu0 %v4644_v49 }
0x2c5a   :  { %4654 = vmax.xlane.f32.xlu0 %v4653_v14 }
0x2c6a   :  { %4498 = vrot.lane.b32.xlu2 %v7766_v42, %s6122_s22  ;;  %v4481_v51 = vpop.permute.xlu2 %4480 }
0x2c6b   :  { %v4516_v30 = vsel %vm218_vm2, %v4472_v20, %v4481_v51 }
0x2c6e   :  { %4486 = vrot.lane.b32.xlu0 %v7766_v42, %s6116_s18 }
0x2c73   :  { %v4495_v10 = vpop.permute.xlu2 %4494 }
0x2c7b   :  { %v4497_v61 = vpop.permute.xlu2 %4496 }
0x2c82   :  { %v4493_v5 = vpop.permute.xlu0 %4492 }
0x2c83   :  { %v4520_v47 = vsel %vm307_vm3, %v4516_v30, %v4493_v5 }
0x2c8a   :  { %v4505_v60 = vpop.permute.xlu0 %4504  ;;  %v4507_v16 = vpop.permute.xlu1 %4506 }
0x2c8b   :  { %v4524_v40 = vsel %vm312_vm4, %v4520_v47, %v4505_v60 }
0x2c8c   :  { %v4528_v53 = vmul.f32 %v4524_v40, %v6242_v8 }
0x2c8e   :  { %5390 = vmatmul.msk.f32.vlgmr.msra.gmra.mxu0 %vm108_vm1, %v4528_v53 }
0x2c92   :  { %v4483_v25 = vpop.permute.xlu0 %4482  ;;  %v4509_v23 = vpop.permute.xlu1 %4508 }
0x2c93   :  { %v4517_v59 = vsel %vm218_vm2, %v4473_v54, %v4483_v25 }
0x2c94   :  { %v4521_v4 = vsel %vm307_vm3, %v4517_v59, %v4495_v10  ;;  %v6068_v59 = vld [vmem:[#allocation2 + $0x200] sm:$0xff] }
0x2c95   :  { %v4525_v17 = vsel %vm312_vm4, %v4521_v4, %v4507_v16  ;;  %v6067_v16 = vld [vmem:[#allocation2 + $0x1f8] sm:$0xff]  ;;  %v6069_v4 = vld [vmem:[#allocation2 + $0x208] sm:$0xff] }
0x2c96   :  { %v4529_v29 = vmul.f32 %v4525_v17, %v6246_v9  ;;  %v5694_v17 = vpack.i.bf16 %v6068_v59, %v6069_v4 }
0x2c98   :  { %5391 = vmatmul.msk.f32.gmra.mxu0 %vm108_vm1, %v4529_v29  ;;  %v6070_v29 = vld [vmem:[#allocation2 + $0x210] ss:$0 sm:$0xff] }
0x2c9a   :  { %v4485_v13 = vpop.permute.xlu0 %4484 }
0x2c9b   :  { %v4518_v50 = vsel %vm218_vm2, %v4474_v2, %v4485_v13 }
0x2c9c   :  { %v4522_v6 = vsel %vm307_vm3, %v4518_v50, %v4497_v61 }
0x2c9d   :  { %v4526_v41 = vsel %vm312_vm4, %v4522_v6, %v4509_v23 }
0x2c9e   :  { %v4530_v38 = vmul.f32 %v4526_v41, %v6236_v3 }
0x2ca0   :  { %5392 = vmatmul.msk.f32.gmra.mxu0 %vm108_vm1, %v4530_v38 }
0x2cbd   :  { %v4649_v48 = vpop.xlane.xlu2 %4648 }
0x2cbe   :  { %v4657_v35 = vsub.f32 %v4635_v1, %v4649_v48 }
0x2cc0   :  { %v4662_v12 = vmul.f32 1.442695, %v4657_v35 }
0x2cc2   :  { %5984 = vpow2.f32 %v4662_v12 }
0x2cc5   :  { %v4652_v33 = vpop.xlane.xlu2 %4651  ;;  %v4646_v28 = vpop.xlane.xlu0 %4645 }
0x2cc6   :  { %v4658_v26 = vsub.f32 %v4638_v44, %v4652_v33  ;;  %v4656_v7 = vsub.f32 %v4632_v11, %v4646_v28 }
0x2cc8   :  { %v5985_v46 = vpop.eup %5984  ;;  %v4664_v52 = vmul.f32 1.442695, %v4658_v26  ;;  %v4660_v22 = vmul.f32 1.442695, %v4656_v7 }
0x2cc9   :  { %v4671_v39 = vsel %vm218_vm2, %v5985_v46, 0.0 }
0x2cca   :  { %5986 = vpow2.f32 %v4664_v52  ;;  %4672 = vadd.xlane.f32.xlu2 %v4671_v39 }
0x2ccb   :  { %5988 = vpow2.f32 %v4660_v22 }
0x2ccd   :  { %v4655_v20 = vpop.xlane.xlu0 %4654  ;;  %v4499_v2 = vpop.permute.xlu2 %4498 }
0x2cce   :  { %v4659_v62 = vsub.f32 %v4641_v34, %v4655_v20 }
0x2cd0   :  { %v5987_v18 = vpop.eup %5986  ;;  %v4666_v27 = vmul.f32 1.442695, %v4659_v62 }
0x2cd1   :  { %v5989_v32 = vpop.eup %5988  ;;  %v4674_v36 = vsel %vm218_vm2, %v5987_v18, 0.0 }
0x2cd2   :  { %4675 = vadd.xlane.f32.xlu0 %v4674_v36  ;;  %v4668_v58 = vsel %vm218_vm2, %v5989_v32, 0.0  ;;  %5990 = vpow2.f32 %v4666_v27 }
0x2cd3   :  { %4669 = vadd.xlane.f32.xlu1 %v4668_v58 }
0x2cd8   :  { %v5991_v54 = vpop.eup %5990 }
0x2cd9   :  { %v4677_v55 = vsel %vm218_vm2, %v5991_v54, 0.0 }
0x2ce0   :  { %v4487_v11 = vpop.permute.xlu0 %4486 }
0x2ce1   :  { %v4519_v5 = vsel %vm218_vm2, %v7766_v42, %v4487_v11 }
0x2ce2   :  { %v4523_v51 = vsel %vm307_vm3, %v4519_v5, %v4499_v2 }
0x2cec   :  { %4510 = vrot.lane.b32.xlu1 %v7766_v42, %s6123_s23  ;;  %v6066_v42 = vld [vmem:[#allocation2 + $0x1f0] sm:$0xff] }
0x2ced   :  { %v5699_v25 = vpack.i.bf16 %v6066_v42, %v6067_v16 }
0x2d0b   :  { %v4581_v36 = vpop.f32.mrf.mxu0 }
0x2d15   :  { %v4584_v58 = vpop.f32.mrf.mxu0 }
0x2d16   :  { %4678 = vadd.xlane.f32.xlu1 %v4677_v55 }
0x2d1d   :  { %v4587_v11 = vpop.f32.mrf.mxu0 }
0x2d3d   :  { %v4673_v1 = vpop.xlane.xlu2 %4672 }
0x2d3e   :  { %5992 = vrcp.f32 %v4673_v1 }
0x2d44   :  { %v5993_v21 = vpop.eup %5992 }
0x2d45   :  { %v4676_v44 = vpop.xlane.xlu0 %4675  ;;  %v4685_v37 = vmul.f32 %v5993_v21, %v5985_v46 }
0x2d46   :  { %5994 = vrcp.f32 %v4676_v44  ;;  %v4670_v49 = vpop.xlane.xlu1 %4669 }
0x2d47   :  { %5996 = vrcp.f32 %v4670_v49  ;;  %4718 = vrot.lane.b32.xlu1 %v4685_v37, %s6123_s23  ;;  %v4593_v49 = vadd.f32 %v4584_v58, %v4581_v36 }
0x2d4c   :  { %v5995_v14 = vpop.eup %5994 }
0x2d4d   :  { %v5997_v34 = vpop.eup %5996  ;;  %v4686_v56 = vmul.f32 %v5995_v14, %v5987_v18 }
0x2d4e   :  { %v4684_v45 = vmul.f32 %v5997_v34, %v5989_v32 }
0x2d4f   :  { %4720 = vrot.lane.b32.xlu1 %v4686_v56, %s6123_s23 }
0x2d50   :  { %4704 = vrot.lane.b32.xlu0 %v4684_v45, %s6122_s22  ;;  %4692 = vrot.lane.b32.xlu2 %v4684_v45, %s6116_s18 }
0x2d58   :  { %4694 = vrot.lane.b32.xlu0 %v4685_v37, %s6116_s18  ;;  %4716 = vrot.lane.b32.xlu2 %v4684_v45, %s6123_s23 }
0x2d5e   :  { %v4511_v30 = vpop.permute.xlu1 %4510 }
0x2d5f   :  { %v4527_v47 = vsel %vm312_vm4, %v4523_v51, %v4511_v30 }
0x2d60   :  { %v4531_v60 = vmul.f32 %v4527_v47, %v6229_v63  ;;  %4696 = vrot.lane.b32.xlu0 %v4686_v56, %s6116_s18  ;;  %4706 = vrot.lane.b32.xlu2 %v4685_v37, %s6122_s22 }
0x2d62   :  { %5393 = vmatmul.msk.f32.gmra.mxu0 %vm108_vm1, %v4531_v60 }
0x2d68   :  { %4708 = vrot.lane.b32.xlu2 %v4686_v56, %s6122_s22 }
0x2d89   :  { %v4679_v40 = vpop.xlane.xlu1 %4678 }
0x2d8a   :  { %5998 = vrcp.f32 %v4679_v40 }
0x2d90   :  { %v5999_v53 = vpop.eup %5998 }
0x2d91   :  { %v4687_v10 = vmul.f32 %v5999_v53, %v5991_v54 }
0x2d93   :  { %4722 = vrot.lane.b32.xlu1 %v4687_v10, %s6123_s23  ;;  %4710 = vrot.lane.b32.xlu2 %v4687_v10, %s6122_s22 }
0x2d94   :  { %4698 = vrot.lane.b32.xlu0 %v4687_v10, %s6116_s18 }
0x2d9b   :  { %5700 = vrot.lane.b32.xlu2 %v5699_v25, %s6120_s0  ;;  %4820 = vrot.lane.b32.xlu1 %v6070_v29, %s6120_s0 }
0x2d9c   :  { %5695 = vrot.lane.b32.xlu0 %v5694_v17, %s6120_s0 }
0x2daa   :  { %v4693_v13 = vpop.permute.xlu2 %4692 }
0x2dab   :  { %v4728_v50 = vsel %vm218_vm2, %v4684_v45, %v4693_v13 }
0x2db2   :  { %v4717_v61 = vpop.permute.xlu2 %4716 }
0x2db9   :  { %v4719_v35 = vpop.permute.xlu1 %4718 }
0x2dba   :  { %v4707_v48 = vpop.permute.xlu2 %4706 }
0x2dc2   :  { %v4705_v23 = vpop.permute.xlu0 %4704  ;;  %v4709_v52 = vpop.permute.xlu2 %4708 }
0x2dc3   :  { %v4732_v6 = vsel %vm307_vm3, %v4728_v50, %v4705_v23 }
0x2dc4   :  { %v4736_v41 = vsel %vm312_vm4, %v4732_v6, %v4717_v61 }
0x2dc5   :  { %v4740_v38 = vmul.f32 %v4736_v41, %v6242_v8  ;;  %v4721_v8 = vpop.permute.xlu1 %4720  ;;  %v4905_v41 = vld [vmem:[#allocation2 + $0x68] sm:$0xff] }
0x2dc6   :  { %4926 = vmatpush.msrb.mxu0 %v4905_v41 }
0x2dc7   :  { %5399 = vmatmul.msk.f32.vlgmr.msra.gmra.mxu2 %vm108_vm1, %v4740_v38  ;;  %v4903_v38 = vld [vmem:[#allocation2 + $0x58] sm:$0xff] }
0x2dca   :  { %v4695_v12 = vpop.permute.xlu0 %4694 }
0x2dcb   :  { %v4729_v33 = vsel %vm218_vm2, %v4685_v37, %v4695_v12  ;;  %v6072_v12 = vld [vmem:[#allocation2 + $0x1e0] sm:$0xff] }
0x2dcc   :  { %v4733_v28 = vsel %vm307_vm3, %v4729_v33, %v4707_v48  ;;  %v4902_v48 = vld [vmem:[#allocation2 + $0x50] sm:$0xff] }
0x2dcd   :  { %v4737_v26 = vsel %vm312_vm4, %v4733_v28, %v4719_v35  ;;  %v6071_v35 = vld [vmem:[#allocation2 + $0x1d8] sm:$0xff]  ;;  %v6073_v28 = vld [vmem:[#allocation2 + $0x1c8] sm:$0xff] }
0x2dce   :  { %v4741_v7 = vmul.f32 %v4737_v26, %v6246_v9  ;;  %v5704_v33 = vpack.i.bf16 %v6071_v35, %v6072_v12 }
0x2dd0   :  { %5400 = vmatmul.msk.f32.gmra.mxu2 %vm108_vm1, %v4741_v7 }
0x2dd2   :  { %v4697_v46 = vpop.permute.xlu0 %4696 }
0x2dd3   :  { %v4730_v22 = vsel %vm218_vm2, %v4686_v56, %v4697_v46  ;;  %v4594_v56 = vadd.f32 %v4593_v49, %v4587_v11 }
0x2dd4   :  { %v4734_v39 = vsel %vm307_vm3, %v4730_v22, %v4709_v52 }
0x2dd5   :  { %v4738_v18 = vsel %vm312_vm4, %v4734_v39, %v4721_v8 }
0x2dd6   :  { %v4742_v32 = vmul.f32 %v4738_v18, %v6236_v3  ;;  %v6075_v18 = vld [vmem:[#allocation2 + $0x1a8] sm:$0xff] }
0x2dd8   :  { %5401 = vmatmul.msk.f32.gmra.mxu2 %vm108_vm1, %v4742_v32  ;;  %v6076_v32 = vld [vmem:[#allocation2 + $0x1b0] sm:$0xff] }
0x2dd9   :  { %v5719_v36 = vpack.i.bf16 %v6075_v18, %v6076_v32 }
0x2ddf   :  { %v4590_v14 = vpop.f32.mrf.mxu0 }
0x2de0   :  { %v4595_v45 = vadd.f32 %v4594_v56, %v4590_v14 }
0x2ded   :  { %v4711_v20 = vpop.permute.xlu2 %4710 }
0x2df5   :  { %v5701_v3 = vpop.permute.xlu2 %5700 }
0x2df6   :  { %v5702_v37 = vunpack.i.l.bf16 %v5701_v3  ;;  %v5703_v34 = vunpack.i.h.bf16 %v5701_v3  ;;  %v6081_v3 = vld [vmem:[#allocation2 + $0x168] sm:$0xff] }
0x2e05   :  { %v4723_v54 = vpop.permute.xlu1 %4722 }
0x2e06   :  { %v4699_v62 = vpop.permute.xlu0 %4698 }
0x2e07   :  { %v4731_v9 = vsel %vm218_vm2, %v4687_v10, %v4699_v62  ;;  %v6078_v62 = vld [vmem:[#allocation2 + $0x1a0] sm:$0xff] }
0x2e08   :  { %v4735_v27 = vsel %vm307_vm3, %v4731_v9, %v4711_v20  ;;  %v6077_v20 = vld [vmem:[#allocation2 + $0x198] sm:$0xff] }
0x2e09   :  { %v4739_v55 = vsel %vm312_vm4, %v4735_v27, %v4723_v54  ;;  %v5724_v9 = vpack.i.bf16 %v6077_v20, %v6078_v62 }
0x2e0a   :  { %v4743_v2 = vmul.f32 %v4739_v55, %v6229_v63  ;;  %v6079_v55 = vld [vmem:[#allocation2 + $0x188] sm:$0xff] }
0x2e0c   :  { %5402 = vmatmul.msk.f32.gmra.mxu2 %vm108_vm1, %v4743_v2  ;;  %v6080_v2 = vld [vmem:[#allocation2 + $0x190] sm:$0xff] }
0x2e0d   :  { %v4821_v53 = vpop.permute.xlu1 %4820  ;;  %v5729_v11 = vpack.i.bf16 %v6079_v55, %v6080_v2 }
0x2e0e   :  { %v5696_v1 = vpop.permute.xlu0 %5695 }
0x2e0f   :  { %v5698_v21 = vunpack.i.h.bf16 %v5696_v1  ;;  %v5697_v44 = vunpack.i.l.bf16 %v5696_v1 }
0x2e11   :  { %4841 = vmatpush.msrb.mxu3 %v5697_v44 }
0x2e13   :  { %4842 = vmatpush.msrb.mxu3 %v5698_v21  ;;  %v6082_v21 = vld [vmem:[#allocation2 + $0x170] sm:$0xff] }
0x2e14   :  { %v5739_v44 = vpack.i.bf16 %v6081_v3, %v6082_v21 }
0x2e15   :  { %4843 = vmatpush.msrb.mxu3 %v5702_v37 }
0x2e17   :  { %4844 = vmatpush.msrb.mxu3 %v5703_v34 }
0x2e18   :  { %5403 = vmatmul.msk.f32.vlgmr.msrb.gmra.mxu3 %vm108_vm1, %v4595_v45 }
0x2e4a   :  { %v4793_v63 = vpop.f32.mrf.mxu2 }
0x2e53   :  { %v4796_v5 = vpop.f32.mrf.mxu2 }
0x2e54   :  { %v4805_v30 = vadd.f32 %v4796_v5, %v4793_v63  ;;  %v6083_v63 = vld [vmem:[#allocation2 + $0x1e8] ss:$0 sm:$0xff] }
0x2e5b   :  { %v4799_v51 = vpop.f32.mrf.mxu2 }
0x2e5c   :  { %v4806_v47 = vadd.f32 %v4805_v30, %v4799_v51  ;;  %v6084_v30 = vld [vmem:[#allocation2 + $0x1b8] sm:$0xff] }
0x2e8f   :  { %v4802_v60 = vpop.f32.mrf.mxu2 }
0x2e90   :  { %v4807_v40 = vadd.f32 %v4806_v47, %v4802_v60  ;;  %v6085_v47 = vld [vmem:[#allocation2 + $0x1c0] sm:$0xff] }
0x2e91   :  { %v5714_v60 = vpack.i.bf16 %v6084_v30, %v6085_v47 }
0x2e92   :  { %5404 = vmatmul.msk.f32.gmra.mxu3 %vm108_vm1, %v4807_v40  ;;  %v6086_v40 = vld [vmem:[#allocation2 + $0x178] sm:$0xff] }
0x2e9b   :  { %v4846_v10 = vpop.f32.mrf.mxu3 }
0x2e9c   :  { %v4847_v42 = vadd.f32 %v4846_v10, %v4821_v53 }
0x2e9e   :  { %v4852_v16 = vadd.f32 %v4847_v42, %v7705_v15  ;;  %v4904_v15 = vld [vmem:[#allocation2 + $0x60] sm:$0xff] }
0x2e9f   :  { %4927 = vmatpush.msrb.mxu0 %v4904_v15 }
0x2ea0   :  { %v4854_v25 = vsel %vm108_vm1, %v4852_v16, 0.0 }
0x2ea1   :  { %4855 = vadd.xlane.f32.xlu0 %v4854_v25  ;;  %4928 = vmatpush.msrb.mxu0 %v4903_v38 }
0x2ea3   :  { %4929 = vmatpush.msrb.mxu0 %v4902_v48 }
0x2eb5   :  { %5705 = vrot.lane.b32.xlu0 %v5704_v33, %s6119_s2 }
0x2ebd   :  { %5720 = vrot.lane.b32.xlu0 %v5719_v36, %s6119_s2 }
0x2ec5   :  { %5730 = vrot.lane.b32.xlu0 %v5729_v11, %s6119_s2 }
0x2ecd   :  { %5073 = vrot.lane.b32.xlu0 %v6083_v63, %s6119_s2 }
0x2f14   :  { %v4856_v59 = vpop.xlane.xlu0 %4855 }
0x2f15   :  { %v4860_v4 = vmul.f32 %v4856_v59, %v6414_v43  ;;  %v4849_v17 = vpop.f32.mrf.mxu3 }
0x2f16   :  { %v4850_v29 = vadd.f32 %v4849_v17, %v4821_v53  ;;  %v6087_v53 = vld [vmem:[#allocation2 + $0x180] sm:$0xff] }
0x2f17   :  { %v4862_v13 = vsub.f32 %v4852_v16, %v4860_v4  ;;  %v5734_v10 = vpack.i.bf16 %v6086_v40, %v6087_v53 }
0x2f18   :  { %v4853_v61 = vadd.f32 %v4850_v29, %v7709_v19  ;;  %v6074_v19 = vld [vmem:[#allocation2 + $0x1d0] sm:$0xff] }
0x2f19   :  { %v4864_v50 = vmul.f32 %v4862_v13, %v4862_v13  ;;  %v5709_v26 = vpack.i.bf16 %v6073_v28, %v6074_v19  ;;  %v7867_v28 = vld [vmem:[#allocation2 + $0x70] ss:$0 sm:$0xff] }
0x2f1a   :  { %v4857_v23 = vsel %vm108_vm1, %v4853_v61, 0.0 }
0x2f1b   :  { %4858 = vadd.xlane.f32.xlu2 %v4857_v23  ;;  %v4866_v6 = vsel %vm108_vm1, %v4864_v50, 0.0 }
0x2f1c   :  { %4867 = vadd.xlane.f32.xlu1 %v4866_v6 }
0x2f27   :  { %v5706_v50 = vpop.permute.xlu0 %5705 }
0x2f28   :  { %v5707_v6 = vunpack.i.l.bf16 %v5706_v50  ;;  %v5708_v15 = vunpack.i.h.bf16 %v5706_v50 }
0x2f2a   :  { %5076 = vmatpush.msra.mxu1 %v5707_v6 }
0x2f2c   :  { %5077 = vmatpush.msra.mxu1 %v5708_v15 }
0x2f35   :  { %5710 = vrot.lane.b32.xlu1 %v5709_v26, %s6119_s2 }
0x2f3d   :  { %5725 = vrot.lane.b32.xlu1 %v5724_v9, %s6119_s2 }
0x2f45   :  { %5740 = vrot.lane.b32.xlu1 %v5739_v44, %s6119_s2 }
0x2f8e   :  { %v4859_v7 = vpop.xlane.xlu2 %4858 }
0x2f8f   :  { %v4861_v46 = vmul.f32 %v4859_v7, %v6414_v43  ;;  %v4868_v52 = vpop.xlane.xlu1 %4867 }
0x2f90   :  { %v4872_v22 = vmul.f32 %v4868_v52, %v6414_v43 }
0x2f91   :  { %v4863_v8 = vsub.f32 %v4853_v61, %v4861_v46 }
0x2f92   :  { %v4874_v39 = vadd.f32 1e-05, %v4872_v22  ;;  %v5721_v22 = vpop.permute.xlu0 %5720 }
0x2f93   :  { %v4865_v58 = vmul.f32 %v4863_v8, %v4863_v8  ;;  %v5723_v18 = vunpack.i.h.bf16 %v5721_v22 }
0x2f94   :  { %6000 = vrsqrt.f32 %v4874_v39  ;;  %vm4882_vm3 = vweird.f32 %v4874_v39 }
0x2f95   :  { %v4869_v27 = vsel %vm108_vm1, %v4865_v58, 0.0 }
0x2f96   :  { %4870 = vadd.xlane.f32.xlu2 %v4869_v27 }
0x2f9a   :  { %v6001_v54 = vpop.eup %6000 }
0x2f9b   :  { %v4877_v1 = vmul.f32 %v6001_v54, %v4874_v39  ;;  %vm4883_vm2 = vweird.f32 %v6001_v54 }
0x2f9c   :  { %vm4884_vm4 = vmor %vm4882_vm3, %vm4883_vm2 }
0x2f9d   :  { %v4878_v37 = vmul.f32 %v6001_v54, %v4877_v1 }
0x2f9f   :  { %v4879_v49 = vmul.f32 0.5, %v4878_v37 }
0x2fa1   :  { %v4880_v14 = vsub.f32 1.5, %v4879_v49 }
0x2fa3   :  { %v4881_v34 = vmul.f32 %v6001_v54, %v4880_v14 }
0x2fa5   :  { %v4885_v56 = vsel %vm4884_vm4, %v6001_v54, %v4881_v34  ;;  %v5731_v54 = vpop.permute.xlu0 %5730 }
0x2fa6   :  { %v4896_v45 = vmul.f32 %v4885_v56, %v4862_v13  ;;  %v5732_v55 = vunpack.i.l.bf16 %v5731_v54  ;;  %v5733_v1 = vunpack.i.h.bf16 %v5731_v54 }
0x2fa7   :  { %v5711_v48 = vpop.permute.xlu1 %5710 }
0x2fa8   :  { %v4898_v5 = vmul.f32 %v4896_v45, %v6420_v57  ;;  %v5712_v35 = vunpack.i.l.bf16 %v5711_v48  ;;  %v5713_v33 = vunpack.i.h.bf16 %v5711_v48 }
0x2faa   :  { %v7854_v51 = vadd.f32 %v4898_v5, %v6426_v0  ;;  %5078 = vmatpush.msra.mxu1 %v5712_v35 }
0x2fac   :  { %5405 = vmatmul.msk.f32.vlgmr.msrb.gmra.mxu0 %vm108_vm1, %v7854_v51  ;;  %5079 = vmatpush.msra.mxu1 %v5713_v33 }
0x2fae   :  { %5715 = vrot.lane.b32.xlu2 %v5714_v60, %s6119_s2 }
0x2faf   :  { %v5726_v36 = vpop.permute.xlu1 %5725 }
0x2fb0   :  { %v5727_v58 = vunpack.i.l.bf16 %v5726_v36  ;;  %v5728_v62 = vunpack.i.h.bf16 %v5726_v36 }
0x2fb6   :  { %5735 = vrot.lane.b32.xlu2 %v5734_v10, %s6119_s2 }
0x2fb7   :  { %v5741_v45 = vpop.permute.xlu1 %5740 }
0x2fb8   :  { %v5742_v63 = vunpack.i.l.bf16 %v5741_v45  ;;  %v5743_v47 = vunpack.i.h.bf16 %v5741_v45 }
0x3009   :  { %v4871_v42 = vpop.xlane.xlu2 %4870 }
0x300a   :  { %v4873_v16 = vmul.f32 %v4871_v42, %v6414_v43 }
0x300c   :  { %v4875_v25 = vadd.f32 1e-05, %v4873_v16 }
0x300e   :  { %6002 = vrsqrt.f32 %v4875_v25  ;;  %vm4892_vm14 = vweird.f32 %v4875_v25 }
0x3011   :  { %v5716_v19 = vpop.permute.xlu2 %5715 }
0x3012   :  { %v5717_v26 = vunpack.i.l.bf16 %v5716_v19  ;;  %v5718_v46 = vunpack.i.h.bf16 %v5716_v19 }
0x3014   :  { %v6003_v59 = vpop.eup %6002  ;;  %5080 = vmatpush.msra.mxu1 %v5717_v26 }
0x3015   :  { %v4887_v4 = vmul.f32 %v6003_v59, %v4875_v25  ;;  %vm4893_vm13 = vweird.f32 %v6003_v59 }
0x3016   :  { %vm4894_vm15 = vmor %vm4892_vm14, %vm4893_vm13  ;;  %5081 = vmatpush.msra.mxu1 %v5718_v46 }
0x3017   :  { %v4888_v17 = vmul.f32 %v6003_v59, %v4887_v4 }
0x3019   :  { %v4889_v29 = vmul.f32 0.5, %v4888_v17  ;;  %v5736_v44 = vpop.permute.xlu2 %5735 }
0x301a   :  { %v5737_v37 = vunpack.i.l.bf16 %v5736_v44  ;;  %v5738_v34 = vunpack.i.h.bf16 %v5736_v44 }
0x301b   :  { %v4890_v13 = vsub.f32 1.5, %v4889_v29 }
0x301d   :  { %v4891_v61 = vmul.f32 %v6003_v59, %v4890_v13 }
0x301f   :  { %v4895_v23 = vsel %vm4894_vm15, %v6003_v59, %v4891_v61 }
0x3020   :  { %v4897_v41 = vmul.f32 %v4895_v23, %v4863_v8  ;;  %v5722_v8 = vunpack.i.l.bf16 %v5721_v22 }
0x3022   :  { %v4899_v38 = vmul.f32 %v4897_v41, %v6420_v57  ;;  %5082 = vmatpush.msra.mxu1 %v5722_v8 }
0x3024   :  { %v7863_v12 = vadd.f32 %v4899_v38, %v6426_v0  ;;  %5083 = vmatpush.msra.mxu1 %v5723_v18 }
0x3026   :  { %5406 = vmatmul.msk.f32.gmra.mxu0 %vm108_vm1, %v7863_v12  ;;  %5084 = vmatpush.msra.mxu1 %v5727_v58 }
0x3028   :  { %5085 = vmatpush.msra.mxu1 %v5728_v62 }
0x3029   :  { %v4931_v7 = vpop.f32.mrf.mxu0 }
0x302a   :  { %v7870_v52 = vadd.f32 %v7867_v28, %v4931_v7  ;;  %5086 = vmatpush.msra.mxu1 %v5732_v55 }
0x302c   :  { %v4939_v39 = vmul.f32 0.70710677, %v7870_v52  ;;  %5087 = vmatpush.msra.mxu1 %v5733_v1  ;;  %v4937_v19 = vmul.f32 0.5, %v7870_v52 }
0x302e   :  { %v4941_v32 = vmul.f32 %v4939_v39, %v4939_v39  ;;  %5088 = vmatpush.msra.mxu1 %v5737_v37 }
0x3030   :  { %v4942_v20 = vmin.f32 %v4941_v32, 16.0  ;;  %5089 = vmatpush.msra.mxu1 %v5738_v34 }
0x3032   :  { %v4943_v9 = vmul.f32 2.1237322e-06, %v4942_v20  ;;  %v4954_v27 = vmul.f32 3.8918573e-05, %v4942_v20  ;;  %5090 = vmatpush.msra.mxu1 %v5742_v63 }
0x3034   :  { %v4944_v2 = vadd.f32 0.00028619796, %v4943_v9  ;;  %v4955_v11 = vadd.f32 0.001143296, %v4954_v27  ;;  %5091 = vmatpush.msra.mxu1 %v5743_v47 }
0x3036   :  { %v4945_v3 = vmul.f32 %v4944_v2, %v4942_v20  ;;  %v4956_v21 = vmul.f32 %v4955_v11, %v4942_v20 }
0x3038   :  { %v4957_v49 = vadd.f32 0.014752088, %v4956_v21  ;;  %v4946_v14 = vadd.f32 0.0036580483, %v4945_v3 }
0x303a   :  { %v4958_v56 = vmul.f32 %v4957_v49, %v4942_v20  ;;  %v4947_v30 = vmul.f32 %v4946_v14, %v4942_v20 }
0x303c   :  { %v4959_v5 = vadd.f32 0.112945676, %v4958_v56  ;;  %v4948_v53 = vadd.f32 0.05243302, %v4947_v30 }
0x303e   :  { %v4960_v60 = vmul.f32 %v4959_v5, %v4942_v20  ;;  %v4949_v16 = vmul.f32 %v4948_v53, %v4942_v20 }
0x3040   :  { %v4961_v40 = vadd.f32 0.4994258, %v4960_v60  ;;  %v4950_v25 = vadd.f32 0.18741608, %v4949_v16 }
0x3042   :  { %v4962_v10 = vmul.f32 %v4961_v40, %v4942_v20  ;;  %v4951_v4 = vmul.f32 %v4950_v25, %v4942_v20 }
0x3044   :  { %v4963_v42 = vadd.f32 1.0, %v4962_v10  ;;  %v4952_v61 = vadd.f32 1.1283791, %v4951_v4 }
0x3046   :  { %6004 = vrcp.f32 %v4963_v42  ;;  %v4975_v13 = vand.u32 2147483648, %v4963_v42  ;;  %v4973_v23 = vand.u32 2147483647, %v4963_v42  ;;  %vm4969_vm5 = vweird.f32 %v4963_v42 }
0x3047   :  { %v4953_v15 = vmul.f32 %v4952_v61, %v4939_v39 }
0x3048   :  { %v4976_v41 = vor.u32 1.1754944e-38, %v4975_v13  ;;  %vm4974_vm7 = vcmp.eq.f32.partialorder %v4973_v23, 8.507059e+37 }
0x304c   :  { %v6005_v59 = vpop.eup %6004 }
0x304d   :  { %v4965_v17 = vmul.f32 %v6005_v59, %v4963_v42  ;;  %vm4970_vm0 = vweird.f32 %v6005_v59 }
0x304e   :  { %vm4971_vm6 = vmor %vm4969_vm5, %vm4970_vm0 }
0x304f   :  { %v4966_v29 = vsub.f32 1.0, %v4965_v17  ;;  %v5074_v17 = vpop.permute.xlu0 %5073 }
0x3051   :  { %v4967_v50 = vmul.f32 %v6005_v59, %v4966_v29 }
0x3053   :  { %v4968_v6 = vadd.f32 %v6005_v59, %v4967_v50 }
0x3055   :  { %v4972_v38 = vsel %vm4971_vm6, %v6005_v59, %v4968_v6 }
0x3056   :  { %v4977_v48 = vsel %vm4974_vm7, %v4976_v41, %v4972_v38 }
0x3057   :  { %v4978_v35 = vmul.f32 %v4977_v48, %v4953_v15 }
0x3059   :  { %v5407_v33 = vclamps-f32 %v4978_v35, 1.0 }
0x305b   :  { %v5021_v26 = vadd.f32 1.0, %v5407_v33 }
0x305d   :  { %v5023_v7 = vmul.f32 %v5021_v26, %v4937_v19 }
0x305f   :  { %5092 = vmatmul.f32.vlgmr.msra.gmra.mxu1 %v5023_v7 }
0x30a3   :  { %v4934_v46 = vpop.f32.mrf.mxu0 }
0x30a4   :  { %v4935_v22 = vadd.f32 %v7867_v28, %v4934_v46 }
0x30a6   :  { %v4940_v8 = vmul.f32 0.70710677, %v4935_v22  ;;  %v4938_v25 = vmul.f32 0.5, %v4935_v22 }
0x30a8   :  { %v4981_v18 = vmul.f32 %v4940_v8, %v4940_v8 }
0x30aa   :  { %v4982_v32 = vmin.f32 %v4981_v18, 16.0 }
0x30ac   :  { %v4983_v36 = vmul.f32 2.1237322e-06, %v4982_v32  ;;  %v4994_v58 = vmul.f32 3.8918573e-05, %v4982_v32 }
0x30ae   :  { %v4984_v20 = vadd.f32 0.00028619796, %v4983_v36  ;;  %v4995_v39 = vadd.f32 0.001143296, %v4994_v58 }
0x30b0   :  { %v4985_v62 = vmul.f32 %v4984_v20, %v4982_v32  ;;  %v4996_v9 = vmul.f32 %v4995_v39, %v4982_v32 }
0x30b2   :  { %v4997_v27 = vadd.f32 0.014752088, %v4996_v9  ;;  %v4986_v54 = vadd.f32 0.0036580483, %v4985_v62 }
0x30b4   :  { %v4998_v55 = vmul.f32 %v4997_v27, %v4982_v32  ;;  %v4987_v52 = vmul.f32 %v4986_v54, %v4982_v32 }
0x30b6   :  { %v4999_v2 = vadd.f32 0.112945676, %v4998_v55  ;;  %v4988_v3 = vadd.f32 0.05243302, %v4987_v52 }
0x30b8   :  { %v5000_v11 = vmul.f32 %v4999_v2, %v4982_v32  ;;  %v4989_v28 = vmul.f32 %v4988_v3, %v4982_v32 }
0x30ba   :  { %v5001_v1 = vadd.f32 0.4994258, %v5000_v11  ;;  %v4990_v37 = vadd.f32 0.18741608, %v4989_v28 }
0x30bc   :  { %v5002_v21 = vmul.f32 %v5001_v1, %v4982_v32  ;;  %v4991_v14 = vmul.f32 %v4990_v37, %v4982_v32 }
0x30be   :  { %v5003_v44 = vadd.f32 1.0, %v5002_v21  ;;  %v4992_v63 = vadd.f32 1.1283791, %v4991_v14 }
0x30c0   :  { %6006 = vrcp.f32 %v5003_v44  ;;  %v5015_v45 = vand.u32 2147483648, %v5003_v44  ;;  %v5013_v30 = vand.u32 2147483647, %v5003_v44  ;;  %vm5009_vm9 = vweird.f32 %v5003_v44 }
0x30c1   :  { %v4993_v40 = vmul.f32 %v4992_v63, %v4940_v8 }
0x30c2   :  { %v5016_v60 = vor.u32 1.1754944e-38, %v5015_v45  ;;  %vm5014_vm11 = vcmp.eq.f32.partialorder %v5013_v30, 8.507059e+37 }
0x30c6   :  { %v6007_v49 = vpop.eup %6006 }
0x30c7   :  { %v5005_v34 = vmul.f32 %v6007_v49, %v5003_v44  ;;  %vm5010_vm8 = vweird.f32 %v6007_v49 }
0x30c8   :  { %vm5011_vm10 = vmor %vm5009_vm9, %vm5010_vm8  ;;  %vm5242_vm9 = vcmask 7168  }
0x30c9   :  { %v5006_v56 = vsub.f32 1.0, %v5005_v34 }
0x30cb   :  { %v5007_v5 = vmul.f32 %v6007_v49, %v5006_v56 }
0x30cd   :  { %v5008_v47 = vadd.f32 %v6007_v49, %v5007_v5 }
0x30cf   :  { %v5012_v53 = vsel %vm5011_vm10, %v6007_v49, %v5008_v47  ;;  %vm5244_vm10 = vcmask 15360  }
0x30d0   :  { %v5017_v10 = vsel %vm5014_vm11, %v5016_v60, %v5012_v53  ;;  %v5206_v53 = vld [vmem:[#allocation2 + $0x258] sm:$0xff] }
0x30d1   :  { %v5018_v42 = vmul.f32 %v5017_v10, %v4993_v40  ;;  %v5205_v10 = vld [vmem:[#allocation2 + $0x250] sm:$0xff]  ;;  %5227 = vmatpush.msrb.mxu2 %v5206_v53 }
0x30d3   :  { %v5408_v16 = vclamps-f32 %v5018_v42, 1.0  ;;  %5228 = vmatpush.msrb.mxu2 %v5205_v10 }
0x30d5   :  { %v5022_v59 = vadd.f32 1.0, %v5408_v16 }
0x30d7   :  { %v5024_v4 = vmul.f32 %v5022_v59, %v4938_v25 }
0x30d9   :  { %5095 = vmatmul.f32.gmra.mxu1 %v5024_v4 }
0x30dc   :  { %v5093_v29 = vpop.f32.mrf.mxu1 }
0x30dd   :  { %v5094_v13 = vadd.f32 %v5093_v29, %v5074_v17 }
0x30df   :  { %v5099_v61 = vadd.f32 %v5094_v13, %v7854_v51 }
0x30e1   :  { %v5101_v50 = vsel %vm108_vm1, %v5099_v61, 0.0 }
0x30e2   :  { %5102 = vadd.xlane.f32.xlu2 %v5101_v50 }
0x3155   :  { %v5103_v23 = vpop.xlane.xlu2 %5102 }
0x3156   :  { %v5107_v6 = vmul.f32 %v5103_v23, %v6414_v43  ;;  %v5096_v41 = vpop.f32.mrf.mxu1 }
0x3157   :  { %v5097_v15 = vadd.f32 %v5096_v41, %v5074_v17 }
0x3158   :  { %v5109_v38 = vsub.f32 %v5099_v61, %v5107_v6 }
0x3159   :  { %v5100_v48 = vadd.f32 %v5097_v15, %v7863_v12 }
0x315a   :  { %v5111_v35 = vmul.f32 %v5109_v38, %v5109_v38 }
0x315b   :  { %v5104_v33 = vsel %vm108_vm1, %v5100_v48, 0.0 }
0x315c   :  { %5105 = vadd.xlane.f32.xlu1 %v5104_v33  ;;  %v5113_v19 = vsel %vm108_vm1, %v5111_v35, 0.0 }
0x315d   :  { %5114 = vadd.xlane.f32.xlu0 %v5113_v19 }
0x31cf   :  { %v5106_v26 = vpop.xlane.xlu1 %5105 }
0x31d0   :  { %v5108_v51 = vmul.f32 %v5106_v26, %v6414_v43  ;;  %v5115_v7 = vpop.xlane.xlu0 %5114 }
0x31d1   :  { %v5119_v46 = vmul.f32 %v5115_v7, %v6414_v43 }
0x31d2   :  { %v5110_v22 = vsub.f32 %v5100_v48, %v5108_v51 }
0x31d3   :  { %v5121_v8 = vadd.f32 1e-05, %v5119_v46 }
0x31d4   :  { %v5112_v18 = vmul.f32 %v5110_v22, %v5110_v22 }
0x31d5   :  { %6008 = vrsqrt.f32 %v5121_v8  ;;  %vm5129_vm2 = vweird.f32 %v5121_v8 }
0x31d6   :  { %v5116_v32 = vsel %vm108_vm1, %v5112_v18, 0.0 }
0x31d7   :  { %5117 = vadd.xlane.f32.xlu2 %v5116_v32 }
0x31db   :  { %v6009_v12 = vpop.eup %6008 }
0x31dc   :  { %v5124_v36 = vmul.f32 %v6009_v12, %v5121_v8  ;;  %vm5130_vm12 = vweird.f32 %v6009_v12 }
0x31dd   :  { %vm5131_vm3 = vmor %vm5129_vm2, %vm5130_vm12 }
0x31de   :  { %v5125_v58 = vmul.f32 %v6009_v12, %v5124_v36 }
0x31e0   :  { %v5126_v20 = vmul.f32 0.5, %v5125_v58 }
0x31e2   :  { %v5127_v39 = vsub.f32 1.5, %v5126_v20 }
0x31e4   :  { %v5128_v62 = vmul.f32 %v6009_v12, %v5127_v39 }
0x31e6   :  { %v5132_v9 = vsel %vm5131_vm3, %v6009_v12, %v5128_v62  ;;  %v5757_v62 = vld [vmem:[#allocation2 + $0x260] ss:$0 sm:$0xff] }
0x31e7   :  { %v5143_v27 = vmul.f32 %v5132_v9, %v5109_v38 }
0x31e9   :  { %v5145_v54 = vmul.f32 %v5143_v27, %v6432_v31 }
0x31eb   :  { %v5147_v55 = vadd.f32 %v5145_v54, %v6435_v24 }
0x31ed   :  { %v5149_v2 = vsel %vm108_vm1, %v5147_v55, 0.0 }
0x31ee   :  { %5150 = vadd.xlane.f32.xlu1 %v5149_v2 }
0x324a   :  { %v5118_v52 = vpop.xlane.xlu2 %5117 }
0x324b   :  { %v5120_v11 = vmul.f32 %v5118_v52, %v6414_v43 }
0x324d   :  { %v5122_v1 = vadd.f32 1e-05, %v5120_v11 }
0x324f   :  { %6010 = vrsqrt.f32 %v5122_v1  ;;  %vm5139_vm13 = vweird.f32 %v5122_v1 }
0x3255   :  { %v6011_v3 = vpop.eup %6010 }
0x3256   :  { %v5134_v21 = vmul.f32 %v6011_v3, %v5122_v1  ;;  %vm5140_vm4 = vweird.f32 %v6011_v3 }
0x3257   :  { %vm5141_vm14 = vmor %vm5139_vm13, %vm5140_vm4 }
0x3258   :  { %v5135_v44 = vmul.f32 %v6011_v3, %v5134_v21 }
0x325a   :  { %v5136_v28 = vmul.f32 0.5, %v5135_v44 }
0x325c   :  { %v5137_v37 = vsub.f32 1.5, %v5136_v28 }
0x325e   :  { %v5138_v49 = vmul.f32 %v6011_v3, %v5137_v37 }
0x3260   :  { %v5142_v14 = vsel %vm5141_vm14, %v6011_v3, %v5138_v49 }
0x3261   :  { %v5151_v34 = vpop.xlane.xlu1 %5150  ;;  %v5144_v56 = vmul.f32 %v5142_v14, %v5110_v22 }
0x3262   :  { %v5155_v45 = vmul.f32 %v5151_v34, %v6414_v43 }
0x3263   :  { %v5146_v63 = vmul.f32 %v5144_v56, %v6432_v31  ;;  %v5204_v31 = vld [vmem:[#allocation2 + $0x248] sm:$0xff] }
0x3264   :  { %v5157_v5 = vsub.f32 %v5147_v55, %v5155_v45  ;;  %5229 = vmatpush.msrb.mxu2 %v5204_v31 }
0x3265   :  { %v5148_v30 = vadd.f32 %v5146_v63, %v6435_v24  ;;  %v5203_v24 = vld [vmem:[#allocation2 + $0x240] sm:$0xff] }
0x3266   :  { %v5159_v47 = vmul.f32 %v5157_v5, %v5157_v5  ;;  %5230 = vmatpush.msrb.mxu2 %v5203_v24 }
0x3267   :  { %v5152_v60 = vsel %vm108_vm1, %v5148_v30, 0.0 }
0x3268   :  { %5153 = vadd.xlane.f32.xlu0 %v5152_v60  ;;  %v5161_v40 = vsel %vm108_vm1, %v5159_v47, 0.0 }
0x3269   :  { %5162 = vadd.xlane.f32.xlu2 %v5161_v40 }
0x327c   :  { %5193 = vrot.lane.b32.xlu0 %v6420_v57, %s6121_s21 }
0x3281   :  { %5198 = vrot.lane.b32.xlu2 %v6426_v0, %s6121_s21 }
0x32db   :  { %v5154_v42 = vpop.xlane.xlu0 %5153 }
0x32dc   :  { %v5156_v16 = vmul.f32 %v5154_v42, %v6414_v43  ;;  %v5163_v25 = vpop.xlane.xlu2 %5162 }
0x32dd   :  { %v5167_v59 = vmul.f32 %v5163_v25, %v6414_v43 }
0x32de   :  { %v5158_v4 = vsub.f32 %v5148_v30, %v5156_v16 }
0x32df   :  { %v5169_v17 = vadd.f32 1e-05, %v5167_v59 }
0x32e0   :  { %v5160_v57 = vmul.f32 %v5158_v4, %v5158_v4 }
0x32e1   :  { %6012 = vrsqrt.f32 %v5169_v17  ;;  %vm5177_vm0 = vweird.f32 %v5169_v17 }
0x32e2   :  { %v5164_v0 = vsel %vm108_vm1, %v5160_v57, 0.0 }
0x32e3   :  { %5165 = vadd.xlane.f32.xlu1 %v5164_v0 }
0x32e4   :  { %v5199_v48 = vpop.permute.xlu2 %5198 }
0x32e7   :  { %v6013_v29 = vpop.eup %6012 }
0x32e8   :  { %v5172_v13 = vmul.f32 %v6013_v29, %v5169_v17  ;;  %vm5178_vm15 = vweird.f32 %v6013_v29 }
0x32e9   :  { %vm5179_vm5 = vmor %vm5177_vm0, %vm5178_vm15 }
0x32ea   :  { %v5173_v61 = vmul.f32 %v6013_v29, %v5172_v13 }
0x32ec   :  { %v5174_v50 = vmul.f32 0.5, %v5173_v61 }
0x32ee   :  { %v5175_v23 = vsub.f32 1.5, %v5174_v50  ;;  %v5194_v41 = vpop.permute.xlu0 %5193 }
0x32f0   :  { %v5176_v6 = vmul.f32 %v6013_v29, %v5175_v23 }
0x32f2   :  { %v5180_v15 = vsel %vm5179_vm5, %v6013_v29, %v5176_v6 }
0x32f3   :  { %v5191_v38 = vmul.f32 %v5180_v15, %v5157_v5 }
0x32f5   :  { %v5196_v35 = vmul.f32 %v5194_v41, %v5191_v38 }
0x32f7   :  { %v5201_v33 = vadd.f32 %v5199_v48, %v5196_v35 }
0x32f9   :  { %5409 = vmatmul.msk.f32.vlgmr.msrb.gmra.mxu2 %vm108_vm1, %v5201_v33 }
0x3356   :  { %v5166_v19 = vpop.xlane.xlu1 %5165 }
0x3357   :  { %v5168_v26 = vmul.f32 %v5166_v19, %v6414_v43 }
0x3359   :  { %v5170_v51 = vadd.f32 1e-05, %v5168_v26 }
0x335b   :  { %6014 = vrsqrt.f32 %v5170_v51  ;;  %vm5187_vm7 = vweird.f32 %v5170_v51 }
0x3361   :  { %v6015_v7 = vpop.eup %6014 }
0x3362   :  { %v5182_v46 = vmul.f32 %v6015_v7, %v5170_v51  ;;  %vm5188_vm6 = vweird.f32 %v6015_v7 }
0x3363   :  { %vm5189_vm8 = vmor %vm5187_vm7, %vm5188_vm6 }
0x3364   :  { %v5183_v22 = vmul.f32 %v6015_v7, %v5182_v46 }
0x3366   :  { %v5184_v8 = vmul.f32 0.5, %v5183_v22 }
0x3368   :  { %v5185_v18 = vsub.f32 1.5, %v5184_v8 }
0x336a   :  { %v5186_v32 = vmul.f32 %v6015_v7, %v5185_v18 }
0x336c   :  { %v5190_v12 = vsel %vm5189_vm8, %v6015_v7, %v5186_v32 }
0x336d   :  { %v5192_v36 = vmul.f32 %v5190_v12, %v5158_v4 }
0x336f   :  { %v5197_v58 = vmul.f32 %v5194_v41, %v5192_v36 }
0x3371   :  { %v5202_v20 = vadd.f32 %v5199_v48, %v5197_v58 }
0x3373   :  { %5410 = vmatmul.msk.f32.gmra.mxu2 %vm108_vm1, %v5202_v20 }
0x337c   :  { %v5232_v39 = vpop.f32.mrf.mxu2 }
0x337d   :  { %v5233_v27 = vadd.f32 %v5757_v62, %v5232_v39 }
0x33f6   :  { %v5235_v43 = vpop.f32.mrf.mxu2 }
0x33f7   :  { %v5236_v9 = vadd.f32 %v5757_v62, %v5235_v43 }
0x33f9   :  { %5239 = vrot.lane.b32.xlu1 %v5236_v9, %s6128_s28 }
0x346b   :  { %v5240_v54 = vpop.permute.xlu1 %5239 }
0x346c   :  { %v5243_v55 = vsel %vm5242_vm9, %v5233_v27, %v5240_v54 }
0x346d   :  { %5245 = vst.msk [vmem:[%s7909_s3] sm:$0xff] %vm5244_vm10, %v5243_v55 }
0x346e   :  { %5250 = vsyncpa [#allocation3], 1 }

</bundles_post_ra>
